<compile_context>
chip_gen: v7x
topology: tpu7x:2x2x1
jax: 0.10.0
libtpu: 0.0.40
codegen_flags: <defaults>
</compile_context>

<pallas_src>
import jax
import jax.numpy as jnp
from jax import lax
from jax.experimental import pallas as pl
from jax.experimental.pallas import tpu as pltpu


# ------------------------------ fused Pallas kernel ------------------------------

def _layernorm(x, g, b, eps=1e-5):
    # f32 LayerNorm over the full feature axis of each row (== PyTorch LayerNorm([C,H,W])).
    mean = jnp.mean(x, axis=-1, keepdims=True)
    xc = x - mean
    var = jnp.mean(xc * xc, axis=-1, keepdims=True)
    return xc * lax.rsqrt(var + eps) * g + b


def _fused_connector_kernel(x_ref, m1_ref, b1_ref, g1_ref, be1_ref,
                            m2_ref, b2_ref, g2_ref, be2_ref,
                            mf_ref, bf_ref, o_ref):
    # proj1 (3x3 s2 conv folded to dense, bf16 MXU, f32 acc) + bias
    x = x_ref[...].astype(jnp.bfloat16)
    h = jnp.dot(x, m1_ref[...], preferred_element_type=jnp.float32) + b1_ref[...]
    # norm1 (f32)
    h = _layernorm(h, g1_ref[...], be1_ref[...])
    # proj2 (3x3 s2 conv folded to dense) + bias
    h = jnp.dot(h.astype(jnp.bfloat16), m2_ref[...], preferred_element_type=jnp.float32) + b2_ref[...]
    # norm2 (f32)
    h = _layernorm(h, g2_ref[...], be2_ref[...])
    # fc (1x1 conv == block-diagonal dense) + bias
    h = jnp.dot(h.astype(jnp.bfloat16), mf_ref[...], preferred_element_type=jnp.float32) + bf_ref[...]
    # lane-dense store: (B, H2*W2*C2), last dim multiple of 128
    o_ref[...] = h.astype(o_ref.dtype)


def _fused_pallas_call(x_flat, dp):
    B, _ = x_flat.shape
    n_out = dp["bf"].shape[1]
    args = (x_flat, dp["m1"], dp["b1"], dp["g1"], dp["be1"],
            dp["m2"], dp["b2"], dp["g2"], dp["be2"], dp["mf"], dp["bf"])
    full = lambda a: pl.BlockSpec(a.shape, lambda i: (0, 0))
    return pl.pallas_call(
        _fused_connector_kernel,
        out_shape=jax.ShapeDtypeStruct((B, n_out), jnp.float32),
        grid=(1,),
        in_specs=[full(a) for a in args],
        out_specs=pl.BlockSpec((B, n_out), lambda i: (0, 0)),
        compiler_params=pltpu.CompilerParams(
            dimension_semantics=("arbitrary",),
            vmem_limit_bytes=32 * 1024 * 1024,  # bf16 weights ~6.5 MB, x2 buffering ~13 MB
        ),
    )(*args)


def compression_connector_forward(x_nchw, dp, c2):
    """x_nchw: (B, c1, 2*size, 2*size); dp: preprocessed dense params; c2: static int."""
    B = x_nchw.shape[0]
    x_flat = x_nchw.reshape(B, -1)            # free view of the NCHW input (CHW flat order)
    out_flat = _fused_pallas_call(x_flat, dp)  # (B, H2*W2*c2), lane-dense
    return out_flat.reshape(B, -1, c2)         # == x.view(B, C, HW).permute(0, 2, 1)


# ---------------- one-time weight preprocessing (conv -> dense fold) ----------------

def _conv2d_nhwc_ref(x_nhwc, w_oikk, stride, pad):
    """Reference PyTorch-semantics conv (pure jnp); used only for weight folding & checks."""
    B, H, W, Cin = x_nhwc.shape
    Cout, _, K, _ = w_oikk.shape
    xp = jnp.pad(x_nhwc, ((0, 0), (pad, pad), (pad, pad), (0, 0)))
    Ho = (H + 2 * pad - K) // stride + 1
    Wo = (W + 2 * pad - K) // stride + 1
    cols = []
    for di in range(K):
        for dj in range(K):
            cols.append(lax.slice(
                xp, (0, di, dj, 0),
                (B, di + (Ho - 1) * stride + 1, dj + (Wo - 1) * stride + 1, Cin),
                (1, stride, stride, 1)))
    patches = jnp.concatenate(cols, axis=-1)                      # (B,Ho,Wo,K*K*Cin), (di,dj,cin)
    wm = jnp.transpose(w_oikk, (2, 3, 1, 0)).reshape(K * K * Cin, Cout)
    return jnp.einsum("bhwk,kc->bhwc", patches, wm,
                      precision=lax.Precision.HIGHEST)            # (B,Ho,Wo,Cout), no bias


def _conv_to_dense(w_oikk, Hin, Win, stride, pad, flat_in):
    """Dense matrix M with y_flat(HWC order) = x_flat(flat_in order) @ M.  Entries are exact
    copies of conv weights (each basis response touches one weight), so no precision loss."""
    Cout, Cin, K, _ = w_oikk.shape
    n = Cin * Hin * Win
    eye = jnp.eye(n, dtype=jnp.float32)
    if flat_in == "CHW":
        basis = jnp.transpose(eye.reshape(n, Cin, Hin, Win), (0, 2, 3, 1))
    else:  # "HWC"
        basis = eye.reshape(n, Hin, Win, Cin)
    y = _conv2d_nhwc_ref(basis, w_oikk, stride, pad)              # (n, Ho, Wo, Cout)
    return y.reshape(n, -1)


def fold_params(params, matmul_dtype=jnp.bfloat16):
    """One-time preprocessing: fold convs/fc into dense matrices, reorder LN params to HWC."""
    size = params["g1"].shape[1]         # norm1 spatial == proj1 output spatial
    Hin = Win = 2 * size
    H1 = W1 = size
    H2 = W2 = size // 2

    m1 = _conv_to_dense(params["w1"], Hin, Win, 2, 1, flat_in="CHW")   # (c1*Hin*Win, H1*W1*c2)
    m2 = _conv_to_dense(params["w2"], H1, W1, 2, 1, flat_in="HWC")     # (H1*W1*c2, H2*W2*c2)
    mf = jnp.kron(jnp.eye(H2 * W2, dtype=jnp.float32),
                  params["wf"][:, :, 0, 0].T)                           # (H2*W2*c2, H2*W2*c2)

    tile_bias = lambda b, npix: jnp.tile(b, npix).reshape(1, -1).astype(jnp.float32)
    hwc = lambda p: jnp.transpose(p, (1, 2, 0)).reshape(1, -1).astype(jnp.float32)

    return {
        "m1": m1.astype(matmul_dtype), "b1": tile_bias(params["b1"], H1 * W1),
        "g1": hwc(params["g1"]), "be1": hwc(params["be1"]),
        "m2": m2.astype(matmul_dtype), "b2": tile_bias(params["b2"], H2 * W2),
        "g2": hwc(params["g2"]), "be2": hwc(params["be2"]),
        "mf": mf.astype(matmul_dtype), "bf": tile_bias(params["bf"], H2 * W2),
    }


# ------------------------------ pure-JAX references ------------------------------

def _ln_nhwc_ref(x_nhwc, g_chw, b_chw, eps=1e-5):
    B = x_nhwc.shape[0]
    xf = x_nhwc.reshape(B, -1)
    mean = xf.mean(-1, keepdims=True)
    var = ((xf - mean) ** 2).mean(-1, keepdims=True)
    xn = ((xf - mean) * lax.rsqrt(var + eps)).reshape(x_nhwc.shape)
    return xn * jnp.transpose(g_chw, (1, 2, 0)) + jnp.transpose(b_chw, (1, 2, 0))


def _reference_forward(x_nchw, params):
    """Direct conv/LN path in f32 (mirrors the PyTorch module)."""
    x = jnp.transpose(x_nchw, (0, 2, 3, 1))
    x = _conv2d_nhwc_ref(x, params["w1"], 2, 1) + params["b1"]
    x = _ln_nhwc_ref(x, params["g1"], params["be1"])
    x = _conv2d_nhwc_ref(x, params["w2"], 2, 1) + params["b2"]
    x = _ln_nhwc_ref(x, params["g2"], params["be2"])
    x = jnp.einsum("bhwc,dc->bhwd", x, params["wf"][:, :, 0, 0],
                   precision=lax.Precision.HIGHEST) + params["bf"]
    B, H, W, C = x.shape
    return x.reshape(B, H * W, C)


def _dense_ref(x_flat, dp, act_dtype):
    """Pure-jnp mirror of the fused kernel math (used to validate the fold and the kernel)."""
    h = jnp.dot(x_flat.astype(act_dtype), dp["m1"], preferred_element_type=jnp.float32,
                precision=lax.Precision.HIGHEST) + dp["b1"]
    h = _layernorm(h, dp["g1"], dp["be1"])
    h = jnp.dot(h.astype(act_dtype), dp["m2"], preferred_element_type=jnp.float32,
                precision=lax.Precision.HIGHEST) + dp["b2"]
    h = _layernorm(h, dp["g2"], dp["be2"])
    h = jnp.dot(h.astype(act_dtype), dp["mf"], preferred_element_type=jnp.float32,
                precision=lax.Precision.HIGHEST) + dp["bf"]
    return h


# ----------------------------------- main -----------------------------------

if __name__ == "__main__":
    key = jax.random.PRNGKey(0)
    B, c1, c2, size = 2, 4, 32, 8          # input spatial = 2*size = 16
    Hin = Win = 2 * size

    ks = jax.random.split(key, 11)
    params = {
        "w1":  0.1 * jax.random.normal(ks[0], (c2, c1, 3, 3), jnp.float32),
        "b1":  0.1 * jax.random.normal(ks[1], (c2,), jnp.float32),
        "g1":  1.0 + 0.1 * jax.random.normal(ks[2], (c2, size, size), jnp.float32),
        "be1": 0.1 * jax.random.normal(ks[3], (c2, size, size), jnp.float32),
        "w2":  0.1 * jax.random.normal(ks[4], (c2, c2, 3, 3), jnp.float32),
        "b2":  0.1 * jax.random.normal(ks[5], (c2,), jnp.float32),
        "g2":  1.0 + 0.1 * jax.random.normal(ks[6], (c2, size // 2, size // 2), jnp.float32),
        "be2": 0.1 * jax.random.normal(ks[7], (c2, size // 2, size // 2), jnp.float32),
        "wf":  0.1 * jax.random.normal(ks[8], (c2, c2, 1, 1), jnp.float32),
        "bf":  0.1 * jax.random.normal(ks[9], (c2,), jnp.float32),
    }
    x = jax.random.normal(ks[10], (B, c1, Hin, Win), jnp.float32)

    # One-time weight preprocessing (analogous to weight repacking at model-load time).
    dp = fold_params(params, matmul_dtype=jnp.bfloat16)

    fwd = jax.jit(compression_connector_forward, static_argnums=(2,))
    out = jax.block_until_ready(fwd(x, dp, c2))

    expected_shape = (B, (size // 2) * (size // 2), c2)   # (2, 16, 32)
    assert out.shape == expected_shape, (out.shape, expected_shape)
    assert bool(jnp.all(jnp.isfinite(out)))

    # Check 1: the dense fold (f32, pure jnp) matches the direct conv/LN reference exactly.
    ref = _reference_forward(x, params)
    dp_f32 = fold_params(params, matmul_dtype=jnp.float32)
    fold_f32 = _dense_ref(x.reshape(B, -1), dp_f32, jnp.float32).reshape(expected_shape)
    assert bool(jnp.allclose(fold_f32, ref, atol=1e-3, rtol=1e-3))

    # Check 2: the Pallas kernel matches a pure-jnp mirror of the same bf16 math.
    mirror = _dense_ref(x.reshape(B, -1), dp, jnp.bfloat16).reshape(expected_shape)
    assert bool(jnp.allclose(out, mirror, atol=2e-2, rtol=2e-2))

    print("KERNEL_OK")
</pallas_src>

<mosaic_0001>
module attributes {stable_mosaic.version = 11 : i64} {
  func.func @_fused_connector_kernel(%arg0: i32, %arg1: memref<2x1024xf32, #tpu.memory_space<vmem>>, %arg2: memref<1024x2048xbf16, #tpu.memory_space<vmem>>, %arg3: memref<1x2048xf32, #tpu.memory_space<vmem>>, %arg4: memref<1x2048xf32, #tpu.memory_space<vmem>>, %arg5: memref<1x2048xf32, #tpu.memory_space<vmem>>, %arg6: memref<2048x512xbf16, #tpu.memory_space<vmem>>, %arg7: memref<1x512xf32, #tpu.memory_space<vmem>>, %arg8: memref<1x512xf32, #tpu.memory_space<vmem>>, %arg9: memref<1x512xf32, #tpu.memory_space<vmem>>, %arg10: memref<512x512xbf16, #tpu.memory_space<vmem>>, %arg11: memref<1x512xf32, #tpu.memory_space<vmem>>, %arg12: memref<2x512xf32, #tpu.memory_space<vmem>>) attributes {dimension_semantics = [#tpu.dimension_semantics<arbitrary>], iteration_bounds = array<i64: 1>, scalar_prefetch = 0 : i64, scratch_operands = 0 : i64, tpu.core_type = #tpu.core_type<tc>, window_params = [{pipeline_mode = #tpu.pipeline_mode<synchronous>, transform_indices = @transform_0, window_bounds = array<i64: 2, 1024>}, {pipeline_mode = #tpu.pipeline_mode<synchronous>, transform_indices = @transform_1, window_bounds = array<i64: 1024, 2048>}, {pipeline_mode = #tpu.pipeline_mode<synchronous>, transform_indices = @transform_2, window_bounds = array<i64: 1, 2048>}, {pipeline_mode = #tpu.pipeline_mode<synchronous>, transform_indices = @transform_3, window_bounds = array<i64: 1, 2048>}, {pipeline_mode = #tpu.pipeline_mode<synchronous>, transform_indices = @transform_4, window_bounds = array<i64: 1, 2048>}, {pipeline_mode = #tpu.pipeline_mode<synchronous>, transform_indices = @transform_5, window_bounds = array<i64: 2048, 512>}, {pipeline_mode = #tpu.pipeline_mode<synchronous>, transform_indices = @transform_6, window_bounds = array<i64: 1, 512>}, {pipeline_mode = #tpu.pipeline_mode<synchronous>, transform_indices = @transform_7, window_bounds = array<i64: 1, 512>}, {pipeline_mode = #tpu.pipeline_mode<synchronous>, transform_indices = @transform_8, window_bounds = array<i64: 1, 512>}, {pipeline_mode = #tpu.pipeline_mode<synchronous>, transform_indices = @transform_9, window_bounds = array<i64: 512, 512>}, {pipeline_mode = #tpu.pipeline_mode<synchronous>, transform_indices = @transform_10, window_bounds = array<i64: 1, 512>}, {pipeline_mode = #tpu.pipeline_mode<synchronous>, transform_indices = @transform_11, window_bounds = array<i64: 2, 512>}]} {
    %c0 = arith.constant 0 : index
    %c0_0 = arith.constant 0 : index
    %0 = vector.load %arg1[%c0, %c0_0] : memref<2x1024xf32, #tpu.memory_space<vmem>>, vector<2x1024xf32>
    %1 = arith.truncf %0 : vector<2x1024xf32> to vector<2x1024xbf16>
    %c0_1 = arith.constant 0 : index
    %c0_2 = arith.constant 0 : index
    %2 = vector.load %arg2[%c0_1, %c0_2] : memref<1024x2048xbf16, #tpu.memory_space<vmem>>, vector<1024x2048xbf16>
    %cst = arith.constant dense<0.000000e+00> : vector<2x2048xf32>
    %3 = tpu.matmul %1, %2, %cst {dimension_numbers = #tpu.dot_dimension_numbers<[1], [0], [0], [1], [0, 0, 1, 1], [], []>} : vector<2x1024xbf16>, vector<1024x2048xbf16>, vector<2x2048xf32> -> vector<2x2048xf32>
    %c0_3 = arith.constant 0 : index
    %c0_4 = arith.constant 0 : index
    %4 = vector.load %arg3[%c0_3, %c0_4] : memref<1x2048xf32, #tpu.memory_space<vmem>>, vector<1x2048xf32>
    %5 = vector.broadcast %4 : vector<1x2048xf32> to vector<2x2048xf32>
    %6 = arith.addf %3, %5 : vector<2x2048xf32>
    %c0_5 = arith.constant 0 : index
    %c0_6 = arith.constant 0 : index
    %7 = vector.load %arg4[%c0_5, %c0_6] : memref<1x2048xf32, #tpu.memory_space<vmem>>, vector<1x2048xf32>
    %c0_7 = arith.constant 0 : index
    %c0_8 = arith.constant 0 : index
    %8 = vector.load %arg5[%c0_7, %c0_8] : memref<1x2048xf32, #tpu.memory_space<vmem>>, vector<1x2048xf32>
    %cst_9 = arith.constant dense<0.000000e+00> : vector<2xf32>
    %9 = vector.multi_reduction <add>, %6, %cst_9 [1] : vector<2x2048xf32> to vector<2xf32>
    %10 = vector.shape_cast %9 : vector<2xf32> to vector<2x1xf32>
    %cst_10 = arith.constant 2.048000e+03 : f32
    %11 = vector.broadcast %cst_10 : f32 to vector<2x1xf32>
    %12 = arith.divf %10, %11 : vector<2x1xf32>
    %13 = vector.broadcast %12 : vector<2x1xf32> to vector<2x2048xf32>
    %14 = arith.subf %6, %13 : vector<2x2048xf32>
    %15 = arith.mulf %14, %14 : vector<2x2048xf32>
    %cst_11 = arith.constant dense<0.000000e+00> : vector<2xf32>
    %16 = vector.multi_reduction <add>, %15, %cst_11 [1] : vector<2x2048xf32> to vector<2xf32>
    %17 = vector.shape_cast %16 : vector<2xf32> to vector<2x1xf32>
    %cst_12 = arith.constant 2.048000e+03 : f32
    %18 = vector.broadcast %cst_12 : f32 to vector<2x1xf32>
    %19 = arith.divf %17, %18 : vector<2x1xf32>
    %cst_13 = arith.constant 9.99999974E-6 : f32
    %20 = vector.broadcast %cst_13 : f32 to vector<2x1xf32>
    %21 = arith.addf %19, %20 : vector<2x1xf32>
    %22 = math.rsqrt %21 : vector<2x1xf32>
    %23 = vector.broadcast %22 : vector<2x1xf32> to vector<2x2048xf32>
    %24 = arith.mulf %14, %23 : vector<2x2048xf32>
    %25 = vector.broadcast %7 : vector<1x2048xf32> to vector<2x2048xf32>
    %26 = arith.mulf %24, %25 : vector<2x2048xf32>
    %27 = vector.broadcast %8 : vector<1x2048xf32> to vector<2x2048xf32>
    %28 = arith.addf %26, %27 : vector<2x2048xf32>
    %29 = arith.truncf %28 : vector<2x2048xf32> to vector<2x2048xbf16>
    %c0_14 = arith.constant 0 : index
    %c0_15 = arith.constant 0 : index
    %30 = vector.load %arg6[%c0_14, %c0_15] : memref<2048x512xbf16, #tpu.memory_space<vmem>>, vector<2048x512xbf16>
    %cst_16 = arith.constant dense<0.000000e+00> : vector<2x512xf32>
    %31 = tpu.matmul %29, %30, %cst_16 {dimension_numbers = #tpu.dot_dimension_numbers<[1], [0], [0], [1], [0, 0, 1, 1], [], []>} : vector<2x2048xbf16>, vector<2048x512xbf16>, vector<2x512xf32> -> vector<2x512xf32>
    %c0_17 = arith.constant 0 : index
    %c0_18 = arith.constant 0 : index
    %32 = vector.load %arg7[%c0_17, %c0_18] : memref<1x512xf32, #tpu.memory_space<vmem>>, vector<1x512xf32>
    %33 = vector.broadcast %32 : vector<1x512xf32> to vector<2x512xf32>
    %34 = arith.addf %31, %33 : vector<2x512xf32>
    %c0_19 = arith.constant 0 : index
    %c0_20 = arith.constant 0 : index
    %35 = vector.load %arg8[%c0_19, %c0_20] : memref<1x512xf32, #tpu.memory_space<vmem>>, vector<1x512xf32>
    %c0_21 = arith.constant 0 : index
    %c0_22 = arith.constant 0 : index
    %36 = vector.load %arg9[%c0_21, %c0_22] : memref<1x512xf32, #tpu.memory_space<vmem>>, vector<1x512xf32>
    %cst_23 = arith.constant dense<0.000000e+00> : vector<2xf32>
    %37 = vector.multi_reduction <add>, %34, %cst_23 [1] : vector<2x512xf32> to vector<2xf32>
    %38 = vector.shape_cast %37 : vector<2xf32> to vector<2x1xf32>
    %cst_24 = arith.constant 5.120000e+02 : f32
    %39 = vector.broadcast %cst_24 : f32 to vector<2x1xf32>
    %40 = arith.divf %38, %39 : vector<2x1xf32>
    %41 = vector.broadcast %40 : vector<2x1xf32> to vector<2x512xf32>
    %42 = arith.subf %34, %41 : vector<2x512xf32>
    %43 = arith.mulf %42, %42 : vector<2x512xf32>
    %cst_25 = arith.constant dense<0.000000e+00> : vector<2xf32>
    %44 = vector.multi_reduction <add>, %43, %cst_25 [1] : vector<2x512xf32> to vector<2xf32>
    %45 = vector.shape_cast %44 : vector<2xf32> to vector<2x1xf32>
    %cst_26 = arith.constant 5.120000e+02 : f32
    %46 = vector.broadcast %cst_26 : f32 to vector<2x1xf32>
    %47 = arith.divf %45, %46 : vector<2x1xf32>
    %cst_27 = arith.constant 9.99999974E-6 : f32
    %48 = vector.broadcast %cst_27 : f32 to vector<2x1xf32>
    %49 = arith.addf %47, %48 : vector<2x1xf32>
    %50 = math.rsqrt %49 : vector<2x1xf32>
    %51 = vector.broadcast %50 : vector<2x1xf32> to vector<2x512xf32>
    %52 = arith.mulf %42, %51 : vector<2x512xf32>
    %53 = vector.broadcast %35 : vector<1x512xf32> to vector<2x512xf32>
    %54 = arith.mulf %52, %53 : vector<2x512xf32>
    %55 = vector.broadcast %36 : vector<1x512xf32> to vector<2x512xf32>
    %56 = arith.addf %54, %55 : vector<2x512xf32>
    %57 = arith.truncf %56 : vector<2x512xf32> to vector<2x512xbf16>
    %c0_28 = arith.constant 0 : index
    %c0_29 = arith.constant 0 : index
    %58 = vector.load %arg10[%c0_28, %c0_29] : memref<512x512xbf16, #tpu.memory_space<vmem>>, vector<512x512xbf16>
    %cst_30 = arith.constant dense<0.000000e+00> : vector<2x512xf32>
    %59 = tpu.matmul %57, %58, %cst_30 {dimension_numbers = #tpu.dot_dimension_numbers<[1], [0], [0], [1], [0, 0, 1, 1], [], []>} : vector<2x512xbf16>, vector<512x512xbf16>, vector<2x512xf32> -> vector<2x512xf32>
    %c0_31 = arith.constant 0 : index
    %c0_32 = arith.constant 0 : index
    %60 = vector.load %arg11[%c0_31, %c0_32] : memref<1x512xf32, #tpu.memory_space<vmem>>, vector<1x512xf32>
    %61 = vector.broadcast %60 : vector<1x512xf32> to vector<2x512xf32>
    %62 = arith.addf %59, %61 : vector<2x512xf32>
    %c0_33 = arith.constant 0 : index
    %c0_34 = arith.constant 0 : index
    %63 = vector.load %arg12[%c0_33, %c0_34] : memref<2x512xf32, #tpu.memory_space<vmem>>, vector<2x512xf32>
    tpu.vector_store %arg12[%c0_33, %c0_34], %62 {strides = array<i32>} : memref<2x512xf32, #tpu.memory_space<vmem>>, vector<2x512xf32>,
    return
  }
  func.func @transform_0(%arg0: i32) -> (i32, i32) {
    %c0_i32 = arith.constant 0 : i32
    %c0_i32_0 = arith.constant 0 : i32
    %c0_i32_1 = arith.constant 0 : i32
    return %c0_i32, %c0_i32_0 : i32, i32
  }
  func.func @transform_1(%arg0: i32) -> (i32, i32) {
    %c0_i32 = arith.constant 0 : i32
    %c0_i32_0 = arith.constant 0 : i32
    %c0_i32_1 = arith.constant 0 : i32
    return %c0_i32, %c0_i32_0 : i32, i32
  }
  func.func @transform_2(%arg0: i32) -> (i32, i32) {
    %c0_i32 = arith.constant 0 : i32
    %c0_i32_0 = arith.constant 0 : i32
    %c0_i32_1 = arith.constant 0 : i32
    return %c0_i32, %c0_i32_0 : i32, i32
  }
  func.func @transform_3(%arg0: i32) -> (i32, i32) {
    %c0_i32 = arith.constant 0 : i32
    %c0_i32_0 = arith.constant 0 : i32
    %c0_i32_1 = arith.constant 0 : i32
    return %c0_i32, %c0_i32_0 : i32, i32
  }
  func.func @transform_4(%arg0: i32) -> (i32, i32) {
    %c0_i32 = arith.constant 0 : i32
    %c0_i32_0 = arith.constant 0 : i32
    %c0_i32_1 = arith.constant 0 : i32
    return %c0_i32, %c0_i32_0 : i32, i32
  }
  func.func @transform_5(%arg0: i32) -> (i32, i32) {
    %c0_i32 = arith.constant 0 : i32
    %c0_i32_0 = arith.constant 0 : i32
    %c0_i32_1 = arith.constant 0 : i32
    return %c0_i32, %c0_i32_0 : i32, i32
  }
  func.func @transform_6(%arg0: i32) -> (i32, i32) {
    %c0_i32 = arith.constant 0 : i32
    %c0_i32_0 = arith.constant 0 : i32
    %c0_i32_1 = arith.constant 0 : i32
    return %c0_i32, %c0_i32_0 : i32, i32
  }
  func.func @transform_7(%arg0: i32) -> (i32, i32) {
    %c0_i32 = arith.constant 0 : i32
    %c0_i32_0 = arith.constant 0 : i32
    %c0_i32_1 = arith.constant 0 : i32
    return %c0_i32, %c0_i32_0 : i32, i32
  }
  func.func @transform_8(%arg0: i32) -> (i32, i32) {
    %c0_i32 = arith.constant 0 : i32
    %c0_i32_0 = arith.constant 0 : i32
    %c0_i32_1 = arith.constant 0 : i32
    return %c0_i32, %c0_i32_0 : i32, i32
  }
  func.func @transform_9(%arg0: i32) -> (i32, i32) {
    %c0_i32 = arith.constant 0 : i32
    %c0_i32_0 = arith.constant 0 : i32
    %c0_i32_1 = arith.constant 0 : i32
    return %c0_i32, %c0_i32_0 : i32, i32
  }
  func.func @transform_10(%arg0: i32) -> (i32, i32) {
    %c0_i32 = arith.constant 0 : i32
    %c0_i32_0 = arith.constant 0 : i32
    %c0_i32_1 = arith.constant 0 : i32
    return %c0_i32, %c0_i32_0 : i32, i32
  }
  func.func @transform_11(%arg0: i32) -> (i32, i32) {
    %c0_i32 = arith.constant 0 : i32
    %c0_i32_0 = arith.constant 0 : i32
    %c0_i32_1 = arith.constant 0 : i32
    return %c0_i32, %c0_i32_0 : i32, i32
  }
}

</mosaic_0001>

<bundles_post_ra>
// kernel: compression_connector_forward.1
= control target key start
LH: loop header
LB: loop body
LE: loop exit
PB: predicated region body
PF: predicated region fallthrough
CT: control target
= control target key end

     0   :  { %16 = vsyncpa [#allocation3], 0  ;;  %s16744_s0 = inlined_call_operand.vmem [shape: f32[2,1024], index: 0, kind: input, shape index: {}]   ;;  %s16745_s1 = inlined_call_operand.hbm [shape: bf16[1024,2048], index: 1, kind: input, shape index: {}]   ;;  %s16746_s2 = inlined_call_operand.hbm [shape: f32[1,2048], index: 2, kind: input, shape index: {}]   ;;  %s16747_s3 = inlined_call_operand.hbm [shape: f32[1,2048], index: 3, kind: input, shape index: {}]   ;;  %s16748_s4 = inlined_call_operand.hbm [shape: f32[1,2048], index: 4, kind: input, shape index: {}]   ;;  %s16749_s5 = inlined_call_operand.hbm [shape: bf16[2048,512], index: 5, kind: input, shape index: {}]   ;;  %s16750_s6 = inlined_call_operand.hbm [shape: f32[1,512], index: 6, kind: input, shape index: {}]   ;;  %s16751_s7 = inlined_call_operand.hbm [shape: f32[1,512], index: 7, kind: input, shape index: {}]   ;;  %s16752_s8 = inlined_call_operand.hbm [shape: f32[1,512], index: 8, kind: input, shape index: {}]   ;;  %s16753_s9 = inlined_call_operand.hbm [shape: bf16[512,512], index: 9, kind: input, shape index: {}]   ;;  %s16754_s10 = inlined_call_operand.hbm [shape: f32[1,512], index: 10, kind: input, shape index: {}]   ;;  %s16755_s11 = inlined_call_operand.vmem [shape: f32[2,512], index: 11, kind: output, shape index: {}]  }
   0x1   :  { %17 = vsyncpa [#allocation5], 0 }
   0x2   :  { %18 = vsyncpa [#allocation8], 0 }
   0x3   :  { %19 = vsyncpa [#allocation11], 0 }
   0x4   :  { %20 = vsyncpa [#allocation14], 0 }
   0x5   :  { %21 = vsyncpa [#allocation17], 0  ;;  %s15981_s17 = smov [#allocation4]   ;;  %s15982_s19 = smov [#allocation7]  }
   0x6   :  { %s42_s18 = sshll.u32 %s15981_s17, 4  ;;  %s62_s20 = sshll.u32 %s15982_s19, 4  ;;  %s43_s18 = int_to_ptr.vmem [resolvable:$true] %s42_s18  ;;  %s63_s20 = int_to_ptr.vmem [resolvable:$true] %s62_s20 }
   0x7   :  { %s15749_s23 = scalar_lea.hbm %s16746_s2, 256 }
   0x8   :  { %p15750_p0 = scmp.ne.s32.totalorder %s16746_s2, %s15749_s23  ;;  %p15753_p1 = scmp.lt.u32.totalorder %s15749_s23, %s16746_s2 }
   0xa   :  { %p15755_p2 = pnand %p15753_p1, %p15750_p0 }
   0xc   :  { %15758 = shalt.err (!%p15755_p2)
}
   0xd   :  { %s15759_s28 = scalar_lea.vmem %s43_s18, 256  ;;  %p15764_p4 = scmp.lt.s32.totalorder %s43_s18, %s43_s18 }
   0xe   :  { %p15760_p3 = scmp.ne.s32.totalorder %s43_s18, %s15759_s28  ;;  %p15765_p5 = scmp.lt.s32.totalorder %s15759_s28, %s15759_s28 }
  0x10   :  { %p15766_p6 = por %p15765_p5, %p15764_p4 }
  0x12   :  { %p15767_p7 = pnand %p15766_p6, %p15760_p3 }
  0x14   :  { %15770 = shalt.err (!%p15767_p7)
}
  0x15   :  { %45 = dma.hbm_to_vmem [thread:$0]  %s16746_s2, 256, %s43_s18, [#allocation5]  }
  0x16   :  { %s15771_s14 = scalar_lea.hbm %s16748_s4, 256 }
  0x17   :  { %p15772_p8 = scmp.ne.s32.totalorder %s16748_s4, %s15771_s14  ;;  %p15775_p9 = scmp.lt.u32.totalorder %s15771_s14, %s16748_s4 }
  0x19   :  { %p15777_p10 = pnand %p15775_p9, %p15772_p8 }
  0x1b   :  { %15780 = shalt.err (!%p15777_p10)
}
  0x1c   :  { %s15781_s21 = scalar_lea.vmem %s63_s20, 256  ;;  %p15786_p12 = scmp.lt.s32.totalorder %s63_s20, %s63_s20 }
  0x1d   :  { %p15782_p11 = scmp.ne.s32.totalorder %s63_s20, %s15781_s21  ;;  %p15787_p13 = scmp.lt.s32.totalorder %s15781_s21, %s15781_s21 }
  0x1f   :  { %p15788_p0 = por %p15787_p13, %p15786_p12 }
  0x21   :  { %p15789_p1 = pnand %p15788_p0, %p15782_p11 }
  0x23   :  { %15792 = shalt.err (!%p15789_p1)
}
  0x24   :  { %65 = dma.hbm_to_vmem [thread:$0]  %s16748_s4, 256, %s63_s20, [#allocation8]  }
  0x25   :  { %s15983_s22 = smov [#allocation10]   ;;  %s15984_s24 = smov [#allocation13]  }
  0x26   :  { %s84_s23 = sshll.u32 %s15983_s22, 4  ;;  %s104_s25 = sshll.u32 %s15984_s24, 4  ;;  %s85_s23 = int_to_ptr.vmem [resolvable:$true] %s84_s23  ;;  %s105_s25 = int_to_ptr.vmem [resolvable:$true] %s104_s25 }
  0x27   :  { %s15793_s28 = scalar_lea.hbm %s16750_s6, 64 }
  0x28   :  { %p15794_p2 = scmp.ne.s32.totalorder %s16750_s6, %s15793_s28  ;;  %p15797_p3 = scmp.lt.u32.totalorder %s15793_s28, %s16750_s6 }
  0x2a   :  { %p15799_p4 = pnand %p15797_p3, %p15794_p2 }
  0x2c   :  { %15802 = shalt.err (!%p15799_p4)
}
  0x2d   :  { %s15803_s4 = scalar_lea.vmem %s85_s23, 64  ;;  %p15808_p6 = scmp.lt.s32.totalorder %s85_s23, %s85_s23 }
  0x2e   :  { %p15804_p5 = scmp.ne.s32.totalorder %s85_s23, %s15803_s4  ;;  %p15809_p7 = scmp.lt.s32.totalorder %s15803_s4, %s15803_s4 }
  0x30   :  { %p15810_p8 = por %p15809_p7, %p15808_p6 }
  0x32   :  { %p15811_p9 = pnand %p15810_p8, %p15804_p5 }
  0x34   :  { %15814 = shalt.err (!%p15811_p9)
}
  0x35   :  { %87 = dma.hbm_to_vmem [thread:$0]  %s16750_s6, 64, %s85_s23, [#allocation11]  }
  0x36   :  { %s15815_s17 = scalar_lea.hbm %s16752_s8, 64 }
  0x37   :  { %p15816_p10 = scmp.ne.s32.totalorder %s16752_s8, %s15815_s17  ;;  %p15819_p11 = scmp.lt.u32.totalorder %s15815_s17, %s16752_s8 }
  0x39   :  { %p15821_p12 = pnand %p15819_p11, %p15816_p10 }
  0x3b   :  { %15824 = shalt.err (!%p15821_p12)
}
  0x3c   :  { %s15825_s22 = scalar_lea.vmem %s105_s25, 64  ;;  %p15830_p0 = scmp.lt.s32.totalorder %s105_s25, %s105_s25 }
  0x3d   :  { %p15826_p13 = scmp.ne.s32.totalorder %s105_s25, %s15825_s22  ;;  %p15831_p1 = scmp.lt.s32.totalorder %s15825_s22, %s15825_s22 }
  0x3f   :  { %p15832_p2 = por %p15831_p1, %p15830_p0 }
  0x41   :  { %p15833_p3 = pnand %p15832_p2, %p15826_p13 }
  0x43   :  { %15836 = shalt.err (!%p15833_p3)
}
  0x44   :  { %107 = dma.hbm_to_vmem [thread:$0]  %s16752_s8, 64, %s105_s25, [#allocation14]  }
  0x45   :  { %s15985_s24 = smov [#allocation2]   ;;  %s15837_s29 = scalar_lea.hbm %s16745_s1, 131072 }
  0x46   :  { %s29_s26 = sshll.u32 %s15985_s24, 4  ;;  %p15838_p4 = scmp.ne.s32.totalorder %s16745_s1, %s15837_s29  ;;  %s30_s26 = int_to_ptr.vmem [resolvable:$true] %s29_s26 }
  0x47   :  { %p15841_p5 = scmp.lt.u32.totalorder %s15837_s29, %s16745_s1 }
  0x49   :  { %p15843_p6 = pnand %p15841_p5, %p15838_p4 }
  0x4b   :  { %15846 = shalt.err (!%p15843_p6)
}
  0x4c   :  { %s15847_s20 = scalar_lea.vmem %s30_s26, 131072  ;;  %p15852_p8 = scmp.lt.s32.totalorder %s30_s26, %s30_s26 }
  0x4d   :  { %p15848_p7 = scmp.ne.s32.totalorder %s30_s26, %s15847_s20  ;;  %p15853_p9 = scmp.lt.s32.totalorder %s15847_s20, %s15847_s20 }
  0x4f   :  { %p15854_p10 = por %p15853_p9, %p15852_p8 }
  0x51   :  { %p15855_p11 = pnand %p15854_p10, %p15848_p7 }
  0x53   :  { %15858 = shalt.err (!%p15855_p11)
}
  0x54   :  { %s15986_s8 = smov 1024   ;;  %s15987_s25 = smov 64  }
  0x55   :  { %35 = dma.hbm_to_vmem [thread:$0]  %s16745_s1, 131072, %s30_s26, [#allocation3], %s15986_s8, %s15986_s8, %s15987_s25  }
  0x56   :  { %s15988_s16 = smov [#allocation6]   ;;  %s15989_s19 = smov [#allocation9]  }
  0x57   :  { %s52_s17 = sshll.u32 %s15988_s16, 4  ;;  %s71_s21 = sshll.u32 %s15989_s19, 4  ;;  %s53_s17 = int_to_ptr.vmem [resolvable:$true] %s52_s17  ;;  %s72_s21 = int_to_ptr.vmem [resolvable:$true] %s71_s21 }
  0x58   :  { %s15859_s22 = scalar_lea.hbm %s16747_s3, 256 }
  0x59   :  { %p15860_p12 = scmp.ne.s32.totalorder %s16747_s3, %s15859_s22  ;;  %p15863_p13 = scmp.lt.u32.totalorder %s15859_s22, %s16747_s3 }
  0x5b   :  { %p15865_p0 = pnand %p15863_p13, %p15860_p12 }
  0x5d   :  { %15868 = shalt.err (!%p15865_p0)
}
  0x5e   :  { %s15869_s1 = scalar_lea.vmem %s53_s17, 256  ;;  %p15874_p2 = scmp.lt.s32.totalorder %s53_s17, %s53_s17 }
  0x5f   :  { %p15870_p1 = scmp.ne.s32.totalorder %s53_s17, %s15869_s1  ;;  %p15875_p3 = scmp.lt.s32.totalorder %s15869_s1, %s15869_s1 }
  0x61   :  { %p15876_p4 = por %p15875_p3, %p15874_p2 }
  0x63   :  { %p15877_p5 = pnand %p15876_p4, %p15870_p1 }
  0x65   :  { %15880 = shalt.err (!%p15877_p5)
}
  0x66   :  { %55 = dma.hbm_to_vmem [thread:$0]  %s16747_s3, 256, %s53_s17, [#allocation5]  }
  0x67   :  { %s15881_s12 = scalar_lea.hbm %s16749_s5, 65536 }
  0x68   :  { %p15882_p6 = scmp.ne.s32.totalorder %s16749_s5, %s15881_s12  ;;  %p15885_p7 = scmp.lt.u32.totalorder %s15881_s12, %s16749_s5 }
  0x6a   :  { %p15887_p8 = pnand %p15885_p7, %p15882_p6 }
  0x6c   :  { %15890 = shalt.err (!%p15887_p8)
}
  0x6d   :  { %s15891_s25 = scalar_lea.vmem %s72_s21, 65536  ;;  %p15896_p10 = scmp.lt.s32.totalorder %s72_s21, %s72_s21 }
  0x6e   :  { %p15892_p9 = scmp.ne.s32.totalorder %s72_s21, %s15891_s25  ;;  %p15897_p11 = scmp.lt.s32.totalorder %s15891_s25, %s15891_s25 }
  0x70   :  { %p15898_p12 = por %p15897_p11, %p15896_p10 }
  0x72   :  { %p15899_p13 = pnand %p15898_p12, %p15892_p9 }
  0x74   :  { %15902 = shalt.err (!%p15899_p13)
}
  0x75   :  { %s15990_s3 = smov 256   ;;  %s15991_s14 = smov 16  }
  0x76   :  { %77 = dma.hbm_to_vmem [thread:$0]  %s16749_s5, 65536, %s72_s21, [#allocation8], %s15990_s3, %s15990_s3, %s15991_s14  }
  0x77   :  { %s15992_s17 = smov [#allocation12]   ;;  %s15993_s2 = smov [#allocation15]  }
  0x78   :  { %s94_s19 = sshll.u32 %s15992_s17, 4  ;;  %s113_s18 = sshll.u32 %s15993_s2, 4  ;;  %s95_s19 = int_to_ptr.vmem [resolvable:$true] %s94_s19  ;;  %s114_s18 = int_to_ptr.vmem [resolvable:$true] %s113_s18 }
  0x79   :  { %s15903_s23 = scalar_lea.hbm %s16751_s7, 64 }
  0x7a   :  { %p15904_p0 = scmp.ne.s32.totalorder %s16751_s7, %s15903_s23  ;;  %p15907_p1 = scmp.lt.u32.totalorder %s15903_s23, %s16751_s7 }
  0x7c   :  { %p15909_p2 = pnand %p15907_p1, %p15904_p0 }
  0x7e   :  { %15912 = shalt.err (!%p15909_p2)
}
  0x7f   :  { %s15913_s5 = scalar_lea.vmem %s95_s19, 64  ;;  %p15918_p4 = scmp.lt.s32.totalorder %s95_s19, %s95_s19 }
  0x80   :  { %p15914_p3 = scmp.ne.s32.totalorder %s95_s19, %s15913_s5  ;;  %p15919_p5 = scmp.lt.s32.totalorder %s15913_s5, %s15913_s5 }
  0x82   :  { %p15920_p6 = por %p15919_p5, %p15918_p4 }
  0x84   :  { %p15921_p7 = pnand %p15920_p6, %p15914_p3 }
  0x86   :  { %15924 = shalt.err (!%p15921_p7)
}
  0x87   :  { %97 = dma.hbm_to_vmem [thread:$0]  %s16751_s7, 64, %s95_s19, [#allocation11]  }
  0x88   :  { %s15925_s12 = scalar_lea.hbm %s16753_s9, 16384 }
  0x89   :  { %p15926_p8 = scmp.ne.s32.totalorder %s16753_s9, %s15925_s12  ;;  %p15929_p9 = scmp.lt.u32.totalorder %s15925_s12, %s16753_s9 }
  0x8b   :  { %p15931_p10 = pnand %p15929_p9, %p15926_p8 }
  0x8d   :  { %15934 = shalt.err (!%p15931_p10)
}
  0x8e   :  { %s15935_s25 = scalar_lea.vmem %s114_s18, 16384  ;;  %p15940_p12 = scmp.lt.s32.totalorder %s114_s18, %s114_s18 }
  0x8f   :  { %p15936_p11 = scmp.ne.s32.totalorder %s114_s18, %s15935_s25  ;;  %p15941_p13 = scmp.lt.s32.totalorder %s15935_s25, %s15935_s25 }
  0x91   :  { %p15942_p0 = por %p15941_p13, %p15940_p12 }
  0x93   :  { %p15943_p1 = pnand %p15942_p0, %p15936_p11 }
  0x95   :  { %15946 = shalt.err (!%p15943_p1)
}
  0x96   :  { %119 = dma.hbm_to_vmem [thread:$0]  %s16753_s9, 16384, %s114_s18, [#allocation14], %s15990_s3, %s15990_s3, %s15991_s14  }
  0x97   :  { %s15994_s16 = smov [#allocation16]   ;;  %s15947_s22 = scalar_lea.hbm %s16754_s10, 64 }
  0x98   :  { %s126_s17 = sshll.u32 %s15994_s16, 4  ;;  %p15948_p2 = scmp.ne.s32.totalorder %s16754_s10, %s15947_s22  ;;  %s127_s17 = int_to_ptr.vmem [resolvable:$true] %s126_s17 }
  0x99   :  { %p15951_p3 = scmp.lt.u32.totalorder %s15947_s22, %s16754_s10 }
  0x9b   :  { %p15953_p4 = pnand %p15951_p3, %p15948_p2 }
  0x9d   :  { %15956 = shalt.err (!%p15953_p4)
}
  0x9e   :  { %s15957_s1 = scalar_lea.vmem %s127_s17, 64  ;;  %p15962_p6 = scmp.lt.s32.totalorder %s127_s17, %s127_s17 }
  0x9f   :  { %p15958_p5 = scmp.ne.s32.totalorder %s127_s17, %s15957_s1  ;;  %p15963_p7 = scmp.lt.s32.totalorder %s15957_s1, %s15957_s1 }
  0xa1   :  { %p15964_p8 = por %p15963_p7, %p15962_p6 }
  0xa3   :  { %p15965_p9 = pnand %p15964_p8, %p15958_p5 }
  0xa5   :  { %15968 = shalt.err (!%p15965_p9)
}
  0xa6   :  { %129 = dma.hbm_to_vmem [thread:$0]  %s16754_s10, 64, %s127_s17, [#allocation17]  }
  0xa7   :  { %15969 = dma.done.wait [#allocation3], 131072  }
  0xa8   :  { %15970 = vsyncadd [#allocation3], 4294836224 }
  0xa9   :  { %15971 = dma.done.wait [#allocation5], 512  }
  0xaa   :  { %15972 = vsyncadd [#allocation5], 4294966784 }
  0xab   :  { %15973 = dma.done.wait [#allocation8], 65792  }
  0xac   :  { %15974 = vsyncadd [#allocation8], 4294901504 }
  0xad   :  { %15975 = dma.done.wait [#allocation11], 128  }
  0xae   :  { %15976 = vsyncadd [#allocation11], 4294967168 }
  0xaf   :  { %15977 = dma.done.wait [#allocation14], 16448  }
  0xb0   :  { %15978 = vsyncadd [#allocation14], 4294950848 }
  0xb1   :  { %15979 = dma.done.wait [#allocation17], 64  }
  0xb2   :  { %15980 = vsyncadd [#allocation17], 4294967232  ;;  %v214_v0 = vld [vmem:[#allocation2] sm:$0xff]  ;;  %v215_v2 = vld [vmem:[#allocation2 + $0x8] sm:$0xff]  ;;  %v15995_v32 = vmov 1983009808   ;;  %v168_v34 = vlaneseq }
  0xb3   :  { %v222_v1 = vld [vmem:[#allocation2 + $0x40] sm:$0xff]  ;;  %v223_v4 = vld [vmem:[#allocation2 + $0x48] sm:$0xff]  ;;  %v166_v33 = vunpack.c.l.s4 %v15995_v32  ;;  %vm7758_vm0 = vcmask 1041408  }
  0xb4   :  { %v12919_v3 = vcombine.high %v214_v0, %v222_v1  ;;  %v12918_v5 = vcombine.low %v214_v0, %v222_v1  ;;  %v230_v6 = vld [vmem:[#allocation2 + $0x80] sm:$0xff]  ;;  %v12921_v8 = vcombine.high %v215_v2, %v223_v4  ;;  %v12920_v9 = vcombine.low %v215_v2, %v223_v4  ;;  %v231_v11 = vld [vmem:[#allocation2 + $0x88] sm:$0xff] }
  0xb5   :  { %v238_v7 = vld [vmem:[#allocation2 + $0xc0] sm:$0xff]  ;;  %v239_v12 = vld [vmem:[#allocation2 + $0xc8] sm:$0xff]  ;;  %v167_v43 = vunpack.c.0.s8 %v166_v33  ;;  %v16182_v44 = vshrl.u32 %v168_v34, 7 }
  0xb6   :  { %v12935_v10 = vcombine.high %v230_v6, %v238_v7  ;;  %v246_v13 = vld [vmem:[#allocation2 + $0x100] sm:$0xff]  ;;  %6442 = vmatprep.subr.bf16.mxu0 %v12919_v3  ;;  %v12937_v14 = vcombine.high %v231_v11, %v239_v12  ;;  %v247_v16 = vld [vmem:[#allocation2 + $0x108] sm:$0xff]  ;;  %6606 = vmatprep.subr.bf16.mxu1 %v12921_v8  ;;  %v12934_v18 = vcombine.low %v230_v6, %v238_v7 }
  0xb7   :  { %v254_v15 = vld [vmem:[#allocation2 + $0x140] sm:$0xff]  ;;  %v255_v17 = vld [vmem:[#allocation2 + $0x148] sm:$0xff]  ;;  %6443 = vmatpush1.bf16.msra.mxu0 %v12918_v5  ;;  %6607 = vmatpush1.bf16.msra.mxu1 %v12920_v9  ;;  %v12936_v19 = vcombine.low %v231_v11, %v239_v12  ;;  %v16185_v53 = vsub.s32 %v167_v43, %v16182_v44 }
  0xb8   :  { %6444 = vmatprep.subr.bf16.mxu0 %v12935_v10  ;;  %v12951_v20 = vcombine.high %v246_v13, %v254_v15  ;;  %6608 = vmatprep.subr.bf16.mxu1 %v12937_v14  ;;  %v12953_v21 = vcombine.high %v247_v16, %v255_v17  ;;  %v262_v22 = vld [vmem:[#allocation2 + $0x180] sm:$0xff]  ;;  %v263_v24 = vld [vmem:[#allocation2 + $0x188] sm:$0xff]  ;;  %v12950_v26 = vcombine.low %v246_v13, %v254_v15 }
  0xb9   :  { %v270_v23 = vld [vmem:[#allocation2 + $0x1c0] sm:$0xff]  ;;  %v271_v25 = vld [vmem:[#allocation2 + $0x1c8] sm:$0xff]  ;;  %v12952_v27 = vcombine.low %v247_v16, %v255_v17 }
  0xba   :  { %v12967_v28 = vcombine.high %v262_v22, %v270_v23  ;;  %v12969_v29 = vcombine.high %v263_v24, %v271_v25  ;;  %v278_v30 = vld [vmem:[#allocation2 + $0x200] sm:$0xff]  ;;  %v279_v35 = vld [vmem:[#allocation2 + $0x208] sm:$0xff]  ;;  %v12966_v37 = vcombine.low %v262_v22, %v270_v23  ;;  %v12968_v38 = vcombine.low %v263_v24, %v271_v25 }
  0xbb   :  { %6445 = vmatpush1.bf16.msra.mxu0 %v12934_v18  ;;  %6609 = vmatpush1.bf16.msra.mxu1 %v12936_v19  ;;  %v286_v31 = vld [vmem:[#allocation2 + $0x240] sm:$0xff]  ;;  %v287_v36 = vld [vmem:[#allocation2 + $0x248] sm:$0xff] }
  0xbc   :  { %6446 = vmatprep.subr.bf16.mxu0 %v12951_v20  ;;  %6610 = vmatprep.subr.bf16.mxu1 %v12953_v21  ;;  %v12983_v39 = vcombine.high %v278_v30, %v286_v31  ;;  %v12985_v40 = vcombine.high %v279_v35, %v287_v36  ;;  %v294_v41 = vld [vmem:[#allocation2 + $0x280] sm:$0xff]  ;;  %v295_v45 = vld [vmem:[#allocation2 + $0x288] sm:$0xff]  ;;  %v12982_v47 = vcombine.low %v278_v30, %v286_v31 }
  0xbd   :  { %v302_v42 = vld [vmem:[#allocation2 + $0x2c0] sm:$0xff]  ;;  %v303_v46 = vld [vmem:[#allocation2 + $0x2c8] sm:$0xff]  ;;  %v12984_v48 = vcombine.low %v279_v35, %v287_v36 }
  0xbe   :  { %v12999_v49 = vcombine.high %v294_v41, %v302_v42  ;;  %v13001_v50 = vcombine.high %v295_v45, %v303_v46  ;;  %v310_v51 = vld [vmem:[#allocation2 + $0x300] sm:$0xff]  ;;  %v311_v54 = vld [vmem:[#allocation2 + $0x308] sm:$0xff]  ;;  %v12998_v56 = vcombine.low %v294_v41, %v302_v42  ;;  %v13000_v57 = vcombine.low %v295_v45, %v303_v46 }
  0xbf   :  { %6447 = vmatpush1.bf16.msra.mxu0 %v12950_v26  ;;  %6611 = vmatpush1.bf16.msra.mxu1 %v12952_v27  ;;  %v318_v52 = vld [vmem:[#allocation2 + $0x340] sm:$0xff]  ;;  %v319_v55 = vld [vmem:[#allocation2 + $0x348] sm:$0xff] }
  0xc0   :  { %6448 = vmatprep.subr.bf16.mxu0 %v12967_v28  ;;  %6612 = vmatprep.subr.bf16.mxu1 %v12969_v29  ;;  %v13015_v58 = vcombine.high %v310_v51, %v318_v52  ;;  %v16190_v59 = vld [vmem:[%s16744_s0] sm:$0xff]  ;;  %v13017_v60 = vcombine.high %v311_v54, %v319_v55  ;;  %v327_v0 = vld [vmem:[#allocation2 + $0x388] sm:$0xff]  ;;  %v13014_v2 = vcombine.low %v310_v51, %v318_v52 }
  0xc1   :  { %v326_v61 = vld [vmem:[#allocation2 + $0x380] sm:$0xff]  ;;  %v16194_v63 = vrot.slane %v16190_v59, %v16185_v53  ;;  %v335_v1 = vld [vmem:[#allocation2 + $0x3c8] sm:$0xff]  ;;  %v13016_v4 = vcombine.low %v311_v54, %v319_v55 }
  0xc2   :  { %v334_v62 = vld [vmem:[#allocation2 + $0x3c0] sm:$0xff]  ;;  %v13033_v6 = vcombine.high %v327_v0, %v335_v1  ;;  %v343_v10 = vld [vmem:[#allocation2 + $0x408] sm:$0xff]  ;;  %v13032_v13 = vcombine.low %v327_v0, %v335_v1 }
  0xc3   :  { %6449 = vmatpush1.bf16.msra.mxu0 %v12966_v37  ;;  %6613 = vmatpush1.bf16.msra.mxu1 %v12968_v38  ;;  %v179_v3 = vcombine.high %v16194_v63, %v16194_v63  ;;  %v13031_v5 = vcombine.high %v326_v61, %v334_v62  ;;  %v342_v7 = vld [vmem:[#allocation2 + $0x400] sm:$0xff]  ;;  %v351_v11 = vld [vmem:[#allocation2 + $0x448] sm:$0xff]  ;;  %v13030_v12 = vcombine.low %v326_v61, %v334_v62 }
  0xc4   :  { %6450 = vmatprep.subr.bf16.mxu0 %v12983_v39  ;;  %6614 = vmatprep.subr.bf16.mxu1 %v12985_v40  ;;  %v350_v8 = vld [vmem:[#allocation2 + $0x440] sm:$0xff]  ;;  %v13049_v15 = vcombine.high %v343_v10, %v351_v11  ;;  %v359_v18 = vld [vmem:[#allocation2 + $0x488] sm:$0xff]  ;;  %v13048_v21 = vcombine.low %v343_v10, %v351_v11 }
  0xc5   :  { %v16198_v9 = vpack.c.bf16 %v179_v3, %v179_v3  ;;  %v13047_v14 = vcombine.high %v342_v7, %v350_v8  ;;  %v358_v16 = vld [vmem:[#allocation2 + $0x480] sm:$0xff]  ;;  %v367_v19 = vld [vmem:[#allocation2 + $0x4c8] sm:$0xff]  ;;  %v13046_v20 = vcombine.low %v342_v7, %v350_v8 }
  0xc6   :  { %v366_v17 = vld [vmem:[#allocation2 + $0x4c0] sm:$0xff]  ;;  %v13065_v23 = vcombine.high %v359_v18, %v367_v19  ;;  %v375_v26 = vld [vmem:[#allocation2 + $0x508] sm:$0xff]  ;;  %v13064_v29 = vcombine.low %v359_v18, %v367_v19 }
  0xc7   :  { %6451 = vmatpush1.bf16.msra.mxu0 %v12982_v47  ;;  %6615 = vmatpush1.bf16.msra.mxu1 %v12984_v48  ;;  %v13063_v22 = vcombine.high %v358_v16, %v366_v17  ;;  %v374_v24 = vld [vmem:[#allocation2 + $0x500] sm:$0xff]  ;;  %v383_v27 = vld [vmem:[#allocation2 + $0x548] sm:$0xff]  ;;  %v13062_v28 = vcombine.low %v358_v16, %v366_v17 }
  0xc8   :  { %6452 = vmatprep.subr.bf16.mxu0 %v12999_v49  ;;  %6616 = vmatprep.subr.bf16.mxu1 %v13001_v50  ;;  %v382_v25 = vld [vmem:[#allocation2 + $0x540] sm:$0xff]  ;;  %v13081_v31 = vcombine.high %v375_v26, %v383_v27  ;;  %v391_v34 = vld [vmem:[#allocation2 + $0x588] sm:$0xff]  ;;  %v13080_v37 = vcombine.low %v375_v26, %v383_v27 }
  0xc9   :  { %6474 = vmatprep.mubr.bf16.mxu0 %v16198_v9  ;;  %6638 = vmatprep.mubr.bf16.mxu1 %v16198_v9  ;;  %v13079_v30 = vcombine.high %v374_v24, %v382_v25  ;;  %v390_v32 = vld [vmem:[#allocation2 + $0x580] sm:$0xff]  ;;  %v399_v35 = vld [vmem:[#allocation2 + $0x5c8] sm:$0xff]  ;;  %v13078_v36 = vcombine.low %v374_v24, %v382_v25  ;;  %v16211_v25 = vpack.c.bf16 %v16194_v63, %v16194_v63 }
  0xca   :  { %v398_v33 = vld [vmem:[#allocation2 + $0x5c0] sm:$0xff]  ;;  %v13097_v39 = vcombine.high %v391_v34, %v399_v35  ;;  %v407_v42 = vld [vmem:[#allocation2 + $0x608] sm:$0xff]  ;;  %v13096_v46 = vcombine.low %v391_v34, %v399_v35 }
  0xcb   :  { %6453 = vmatpush1.bf16.msra.mxu0 %v12998_v56  ;;  %6617 = vmatpush1.bf16.msra.mxu1 %v13000_v57  ;;  %v13095_v38 = vcombine.high %v390_v32, %v398_v33  ;;  %v406_v40 = vld [vmem:[#allocation2 + $0x600] sm:$0xff]  ;;  %v415_v43 = vld [vmem:[#allocation2 + $0x648] sm:$0xff]  ;;  %v13094_v45 = vcombine.low %v390_v32, %v398_v33 }
  0xcc   :  { %6454 = vmatprep.subr.bf16.mxu0 %v13015_v58  ;;  %6618 = vmatprep.subr.bf16.mxu1 %v13017_v60  ;;  %v414_v41 = vld [vmem:[#allocation2 + $0x640] sm:$0xff]  ;;  %v13113_v48 = vcombine.high %v407_v42, %v415_v43  ;;  %v423_v51 = vld [vmem:[#allocation2 + $0x688] sm:$0xff]  ;;  %v13112_v55 = vcombine.low %v407_v42, %v415_v43 }
  0xcd   :  { %v13111_v47 = vcombine.high %v406_v40, %v414_v41  ;;  %v422_v49 = vld [vmem:[#allocation2 + $0x680] sm:$0xff]  ;;  %v431_v52 = vld [vmem:[#allocation2 + $0x6c8] sm:$0xff]  ;;  %v13110_v54 = vcombine.low %v406_v40, %v414_v41 }
  0xce   :  { %v430_v50 = vld [vmem:[#allocation2 + $0x6c0] sm:$0xff]  ;;  %v13129_v57 = vcombine.high %v423_v51, %v431_v52  ;;  %v439_v61 = vld [vmem:[#allocation2 + $0x708] sm:$0xff]  ;;  %v13128_v1 = vcombine.low %v423_v51, %v431_v52 }
  0xcf   :  { %6455 = vmatpush1.bf16.msra.mxu0 %v13014_v2  ;;  %6619 = vmatpush1.bf16.msra.mxu1 %v13016_v4  ;;  %v13127_v56 = vcombine.high %v422_v49, %v430_v50  ;;  %v438_v58 = vld [vmem:[#allocation2 + $0x700] sm:$0xff]  ;;  %v447_v62 = vld [vmem:[#allocation2 + $0x748] sm:$0xff]  ;;  %v13126_v0 = vcombine.low %v422_v49, %v430_v50 }
  0xd0   :  { %6456 = vmatprep.subr.bf16.mxu0 %v13031_v5  ;;  %6620 = vmatprep.subr.bf16.mxu1 %v13033_v6  ;;  %v446_v60 = vld [vmem:[#allocation2 + $0x740] sm:$0xff]  ;;  %v13145_v3 = vcombine.high %v439_v61, %v447_v62  ;;  %v164_v6 = vcombine.high %v16190_v59, %v16190_v59  ;;  %v455_v7 = vld [vmem:[#allocation2 + $0x788] sm:$0xff]  ;;  %v13144_v11 = vcombine.low %v439_v61, %v447_v62 }
  0xd1   :  { %v13143_v2 = vcombine.high %v438_v58, %v446_v60  ;;  %v454_v4 = vld [vmem:[#allocation2 + $0x780] sm:$0xff]  ;;  %v463_v8 = vld [vmem:[#allocation2 + $0x7c8] sm:$0xff]  ;;  %v13142_v10 = vcombine.low %v438_v58, %v446_v60 }
  0xd2   :  { %v462_v5 = vld [vmem:[#allocation2 + $0x7c0] sm:$0xff]  ;;  %v16205_v16 = vrot.slane %v164_v6, %v16185_v53  ;;  %v471_v17 = vld [vmem:[#allocation2 + $0x808] sm:$0xff]  ;;  %v13160_v59 = vcombine.low %v455_v7, %v463_v8 }
  0xd3   :  { %6457 = vmatpush1.bf16.msra.mxu0 %v13030_v12  ;;  %6621 = vmatpush1.bf16.msra.mxu1 %v13032_v13  ;;  %v13159_v12 = vcombine.high %v454_v4, %v462_v5  ;;  %v13161_v13 = vcombine.high %v455_v7, %v463_v8  ;;  %v479_v18 = vld [vmem:[#allocation2 + $0x848] sm:$0xff]  ;;  %v13158_v19 = vcombine.low %v454_v4, %v462_v5  ;;  %v510_v32 = vld [vmem:[#allocation2 + $0x940] sm:$0xff] }
  0xd4   :  { %6458 = vmatprep.subr.bf16.mxu0 %v13047_v14  ;;  %6622 = vmatprep.subr.bf16.mxu1 %v13049_v15  ;;  %v470_v14 = vld [vmem:[#allocation2 + $0x800] sm:$0xff]  ;;  %v180_v24 = vcombine.high %v16205_v16, %v16205_v16  ;;  %v487_v26 = vld [vmem:[#allocation2 + $0x888] sm:$0xff] }
  0xd5   :  { %v478_v15 = vld [vmem:[#allocation2 + $0x840] sm:$0xff]  ;;  %v495_v27 = vld [vmem:[#allocation2 + $0x8c8] sm:$0xff] }
  0xd6   :  { %v503_v33 = vld [vmem:[#allocation2 + $0x908] sm:$0xff]  ;;  %v13193_v34 = vcombine.high %v487_v26, %v495_v27  ;;  %v526_v40 = vld [vmem:[#allocation2 + $0x9c0] sm:$0xff] }
  0xd7   :  { %6459 = vmatpush1.bf16.msra.mxu0 %v13046_v20  ;;  %6623 = vmatpush1.bf16.msra.mxu1 %v13048_v21  ;;  %v13175_v20 = vcombine.high %v470_v14, %v478_v15  ;;  %v13177_v21 = vcombine.high %v471_v17, %v479_v18  ;;  %v511_v35 = vld [vmem:[#allocation2 + $0x948] sm:$0xff]  ;;  %v542_v49 = vld [vmem:[#allocation2 + $0xa40] sm:$0xff] }
  0xd8   :  { %6460 = vmatprep.subr.bf16.mxu0 %v13063_v22  ;;  %6624 = vmatprep.subr.bf16.mxu1 %v13065_v23  ;;  %v486_v22 = vld [vmem:[#allocation2 + $0x880] sm:$0xff]  ;;  %v519_v41 = vld [vmem:[#allocation2 + $0x988] sm:$0xff]  ;;  %v13209_v42 = vcombine.high %v503_v33, %v511_v35 }
  0xd9   :  { %v494_v23 = vld [vmem:[#allocation2 + $0x8c0] sm:$0xff]  ;;  %v527_v43 = vld [vmem:[#allocation2 + $0x9c8] sm:$0xff] }
  0xda   :  { %v13190_v63 = vcombine.low %v486_v22, %v494_v23  ;;  %v535_v50 = vld [vmem:[#allocation2 + $0xa08] sm:$0xff]  ;;  %v13225_v51 = vcombine.high %v519_v41, %v527_v43  ;;  %v558_v58 = vld [vmem:[#allocation2 + $0xac0] sm:$0xff] }
  0xdb   :  { %6461 = vmatpush1.bf16.msra.mxu0 %v13062_v28  ;;  %6625 = vmatpush1.bf16.msra.mxu1 %v13064_v29  ;;  %v13174_v28 = vcombine.low %v470_v14, %v478_v15  ;;  %v13176_v29 = vcombine.low %v471_v17, %v479_v18  ;;  %v543_v52 = vld [vmem:[#allocation2 + $0xa48] sm:$0xff]  ;;  %v574_v4 = vld [vmem:[#allocation2 + $0xb40] sm:$0xff] }
  0xdc   :  { %6462 = vmatprep.subr.bf16.mxu0 %v13079_v30  ;;  %6626 = vmatprep.subr.bf16.mxu1 %v13081_v31  ;;  %v13191_v30 = vcombine.high %v486_v22, %v494_v23  ;;  %v502_v31 = vld [vmem:[#allocation2 + $0x900] sm:$0xff]  ;;  %v551_v60 = vld [vmem:[#allocation2 + $0xa88] sm:$0xff]  ;;  %v13241_v61 = vcombine.high %v535_v50, %v543_v52 }
  0xdd   :  { %v559_v62 = vld [vmem:[#allocation2 + $0xac8] sm:$0xff] }
  0xde   :  { %v567_v5 = vld [vmem:[#allocation2 + $0xb08] sm:$0xff]  ;;  %v13257_v6 = vcombine.high %v551_v60, %v559_v62 }
  0xdf   :  { %6463 = vmatpush1.bf16.msra.mxu0 %v13078_v36  ;;  %6627 = vmatpush1.bf16.msra.mxu1 %v13080_v37  ;;  %v16213_v36 = vpack.c.bf16 %v180_v24, %v180_v24  ;;  %v13192_v37 = vcombine.low %v487_v26, %v495_v27  ;;  %v575_v7 = vld [vmem:[#allocation2 + $0xb48] sm:$0xff] }
  0xe0   :  { %6464 = vmatprep.subr.bf16.mxu0 %v13095_v38  ;;  %6628 = vmatprep.subr.bf16.mxu1 %v13097_v39  ;;  %v13207_v38 = vcombine.high %v502_v31, %v510_v32  ;;  %v518_v39 = vld [vmem:[#allocation2 + $0x980] sm:$0xff]  ;;  %v583_v14 = vld [vmem:[#allocation2 + $0xb88] sm:$0xff]  ;;  %v13273_v15 = vcombine.high %v567_v5, %v575_v7 }
  0xe1   :  { %v591_v17 = vld [vmem:[#allocation2 + $0xbc8] sm:$0xff] }
  0xe2   :  { %v599_v22 = vld [vmem:[#allocation2 + $0xc08] sm:$0xff]  ;;  %v13289_v23 = vcombine.high %v583_v14, %v591_v17  ;;  %v13288_v27 = vcombine.low %v583_v14, %v591_v17  ;;  %v710_v17 = vld [vmem:[#allocation2 + $0xf80] sm:$0xff] }
  0xe3   :  { %6465 = vmatpush1.bf16.msra.mxu0 %v13094_v45  ;;  %6629 = vmatpush1.bf16.msra.mxu1 %v13096_v46  ;;  %v13206_v45 = vcombine.low %v502_v31, %v510_v32  ;;  %v13208_v46 = vcombine.low %v503_v33, %v511_v35  ;;  %v607_v24 = vld [vmem:[#allocation2 + $0xc48] sm:$0xff] }
  0xe4   :  { %6466 = vmatprep.subr.bf16.mxu0 %v13111_v47  ;;  %6630 = vmatprep.subr.bf16.mxu1 %v13113_v48  ;;  %v13223_v47 = vcombine.high %v518_v39, %v526_v40  ;;  %v534_v48 = vld [vmem:[#allocation2 + $0xa00] sm:$0xff]  ;;  %v615_v31 = vld [vmem:[#allocation2 + $0xc88] sm:$0xff]  ;;  %v13305_v32 = vcombine.high %v599_v22, %v607_v24  ;;  %v13304_v35 = vcombine.low %v599_v22, %v607_v24 }
  0xe5   :  { %v623_v33 = vld [vmem:[#allocation2 + $0xcc8] sm:$0xff] }
  0xe6   :  { %v703_v14 = vld [vmem:[#allocation2 + $0xf48] sm:$0xff] }
  0xe7   :  { %6467 = vmatpush1.bf16.msra.mxu0 %v13110_v54  ;;  %6631 = vmatpush1.bf16.msra.mxu1 %v13112_v55  ;;  %v13222_v54 = vcombine.low %v518_v39, %v526_v40  ;;  %v13224_v55 = vcombine.low %v519_v41, %v527_v43  ;;  %v631_v39 = vld [vmem:[#allocation2 + $0xd08] sm:$0xff]  ;;  %v13321_v40 = vcombine.high %v615_v31, %v623_v33 }
  0xe8   :  { %6468 = vmatprep.subr.bf16.mxu0 %v13127_v56  ;;  %6632 = vmatprep.subr.bf16.mxu1 %v13129_v57  ;;  %v13239_v56 = vcombine.high %v534_v48, %v542_v49  ;;  %v550_v57 = vld [vmem:[#allocation2 + $0xa80] sm:$0xff]  ;;  %v639_v41 = vld [vmem:[#allocation2 + $0xd48] sm:$0xff]  ;;  %v13320_v43 = vcombine.low %v615_v31, %v623_v33 }
  0xe9   :  { %v13254_v8 = vcombine.low %v550_v57, %v558_v58 }
  0xeb   :  { %6469 = vmatpush1.bf16.msra.mxu0 %v13126_v0  ;;  %6633 = vmatpush1.bf16.msra.mxu1 %v13128_v1  ;;  %v13238_v0 = vcombine.low %v534_v48, %v542_v49  ;;  %v13240_v1 = vcombine.low %v535_v50, %v543_v52  ;;  %v647_v48 = vld [vmem:[#allocation2 + $0xd88] sm:$0xff]  ;;  %v13337_v49 = vcombine.high %v631_v39, %v639_v41 }
  0xec   :  { %6470 = vmatprep.subr.bf16.mxu0 %v13143_v2  ;;  %6634 = vmatprep.subr.bf16.mxu1 %v13145_v3  ;;  %v13255_v2 = vcombine.high %v550_v57, %v558_v58  ;;  %v566_v3 = vld [vmem:[#allocation2 + $0xb00] sm:$0xff]  ;;  %v655_v50 = vld [vmem:[#allocation2 + $0xdc8] sm:$0xff]  ;;  %v13336_v52 = vcombine.low %v631_v39, %v639_v41 }
  0xed   :  { %v13270_v18 = vcombine.low %v566_v3, %v574_v4  ;;  %v663_v57 = vld [vmem:[#allocation2 + $0xe08] sm:$0xff]  ;;  %v13353_v58 = vcombine.high %v647_v48, %v655_v50 }
  0xee   :  { %v743_v39 = vld [vmem:[#allocation2 + $0x1088] sm:$0xff] }
  0xef   :  { %6471 = vmatpush1.bf16.msra.mxu0 %v13142_v10  ;;  %6635 = vmatpush1.bf16.msra.mxu1 %v13144_v11  ;;  %v13256_v10 = vcombine.low %v551_v60, %v559_v62  ;;  %v13271_v11 = vcombine.high %v566_v3, %v574_v4  ;;  %v671_v60 = vld [vmem:[#allocation2 + $0xe48] sm:$0xff]  ;;  %v13352_v62 = vcombine.low %v647_v48, %v655_v50  ;;  %v758_v48 = vld [vmem:[#allocation2 + $0x1100] sm:$0xff] }
  0xf0   :  { %6472 = vmatprep.subr.bf16.mxu0 %v13159_v12  ;;  %6636 = vmatprep.subr.bf16.mxu1 %v13161_v13  ;;  %v582_v12 = vld [vmem:[#allocation2 + $0xb80] sm:$0xff]  ;;  %v679_v3 = vld [vmem:[#allocation2 + $0xe88] sm:$0xff]  ;;  %v13369_v4 = vcombine.high %v663_v57, %v671_v60 }
  0xf1   :  { %v590_v13 = vld [vmem:[#allocation2 + $0xbc0] sm:$0xff]  ;;  %v751_v41 = vld [vmem:[#allocation2 + $0x10c8] sm:$0xff] }
  0xf2   :  { %v13286_v26 = vcombine.low %v582_v12, %v590_v13  ;;  %v759_v50 = vld [vmem:[#allocation2 + $0x1108] sm:$0xff] }
  0xf3   :  { %6473 = vmatpush1.bf16.msra.mxu0 %v13158_v19  ;;  %6637 = vmatpush1.bf16.msra.mxu1 %v13160_v59  ;;  %v13272_v19 = vcombine.low %v567_v5, %v575_v7  ;;  %v13287_v59 = vcombine.high %v582_v12, %v590_v13  ;;  %v687_v5 = vld [vmem:[#allocation2 + $0xec8] sm:$0xff]  ;;  %v13368_v7 = vcombine.low %v663_v57, %v671_v60  ;;  %v774_v57 = vld [vmem:[#allocation2 + $0x1180] sm:$0xff] }
  0xf4   :  { %6483 = vmatprep.subr.bf16.mxu0 %v13175_v20  ;;  %6647 = vmatprep.subr.bf16.mxu1 %v13177_v21  ;;  %v598_v20 = vld [vmem:[#allocation2 + $0xc00] sm:$0xff]  ;;  %v695_v12 = vld [vmem:[#allocation2 + $0xf08] sm:$0xff]  ;;  %v13385_v13 = vcombine.high %v679_v3, %v687_v5 }
  0xf5   :  { %v606_v21 = vld [vmem:[#allocation2 + $0xc40] sm:$0xff]  ;;  %v13401_v22 = vcombine.high %v695_v12, %v703_v14  ;;  %v775_v60 = vld [vmem:[#allocation2 + $0x1188] sm:$0xff] }
  0xf6   :  { %6475 = vmatmul.mubr.bf16.vlgmr.msra.gmra.mrb[0].mxu0 %v16211_v25  ;;  %6639 = vmatmul.mubr.bf16.vlgmr.msra.gmra.mrb[0].mxu1 %v16211_v25 }
  0xf7   :  { %6484 = vmatpush1.bf16.msra.mxu0 %v13174_v28  ;;  %6648 = vmatpush1.bf16.msra.mxu1 %v13176_v29  ;;  %v13303_v28 = vcombine.high %v598_v20, %v606_v21  ;;  %v614_v29 = vld [vmem:[#allocation2 + $0xc80] sm:$0xff] }
  0xf8   :  { %6485 = vmatprep.subr.bf16.mxu0 %v13191_v30  ;;  %6649 = vmatprep.subr.bf16.mxu1 %v13193_v34  ;;  %v622_v30 = vld [vmem:[#allocation2 + $0xcc0] sm:$0xff]  ;;  %v13302_v34 = vcombine.low %v598_v20, %v606_v21  ;;  %v711_v20 = vld [vmem:[#allocation2 + $0xf88] sm:$0xff] }
  0xf9   :  { %6515 = vmatprep.mubr.bf16.mxu0 %v16213_v36  ;;  %6679 = vmatprep.mubr.bf16.mxu1 %v16213_v36  ;;  %v719_v21 = vld [vmem:[#allocation2 + $0xfc8] sm:$0xff] }
  0xfa   :  { %v13417_v31 = vcombine.high %v711_v20, %v719_v21 }
  0xfb   :  { %6486 = vmatpush1.bf16.msra.mxu0 %v13190_v63  ;;  %6650 = vmatpush1.bf16.msra.mxu1 %v13192_v37  ;;  %v13319_v63 = vcombine.high %v614_v29, %v622_v30  ;;  %v630_v37 = vld [vmem:[#allocation2 + $0xd00] sm:$0xff] }
  0xfc   :  { %6487 = vmatprep.subr.bf16.mxu0 %v13207_v38  ;;  %6651 = vmatprep.subr.bf16.mxu1 %v13209_v42  ;;  %v638_v38 = vld [vmem:[#allocation2 + $0xd40] sm:$0xff]  ;;  %v13318_v42 = vcombine.low %v614_v29, %v622_v30  ;;  %v727_v30 = vld [vmem:[#allocation2 + $0x1008] sm:$0xff] }
  0xfd   :  { %v734_v29 = vld [vmem:[#allocation2 + $0x1040] sm:$0xff] }
  0xff   :  { %6488 = vmatpush1.bf16.msra.mxu0 %v13206_v45  ;;  %6652 = vmatpush1.bf16.msra.mxu1 %v13208_v46  ;;  %v13335_v45 = vcombine.high %v630_v37, %v638_v38  ;;  %v646_v46 = vld [vmem:[#allocation2 + $0xd80] sm:$0xff] }
 0x100   :  { %6489 = vmatprep.subr.bf16.mxu0 %v13223_v47  ;;  %6653 = vmatprep.subr.bf16.mxu1 %v13225_v51  ;;  %v654_v47 = vld [vmem:[#allocation2 + $0xdc0] sm:$0xff]  ;;  %v13334_v51 = vcombine.low %v630_v37, %v638_v38 }
 0x101   :  { %v742_v37 = vld [vmem:[#allocation2 + $0x1080] sm:$0xff] }
 0x102   :  { %v750_v38 = vld [vmem:[#allocation2 + $0x10c0] sm:$0xff] }
 0x103   :  { %6490 = vmatpush1.bf16.msra.mxu0 %v13222_v54  ;;  %6654 = vmatpush1.bf16.msra.mxu1 %v13224_v55  ;;  %v13351_v54 = vcombine.high %v646_v46, %v654_v47  ;;  %v662_v55 = vld [vmem:[#allocation2 + $0xe00] sm:$0xff] }
 0x104   :  { %6491 = vmatprep.subr.bf16.mxu0 %v13239_v56  ;;  %6655 = vmatprep.subr.bf16.mxu1 %v13241_v61  ;;  %v670_v56 = vld [vmem:[#allocation2 + $0xe40] sm:$0xff]  ;;  %v13350_v61 = vcombine.low %v646_v46, %v654_v47  ;;  %v13447_v47 = vcombine.high %v742_v37, %v750_v38 }
 0x107   :  { %6492 = vmatpush1.bf16.msra.mxu0 %v13238_v0  ;;  %6656 = vmatpush1.bf16.msra.mxu1 %v13240_v1  ;;  %v13367_v0 = vcombine.high %v662_v55, %v670_v56  ;;  %v678_v1 = vld [vmem:[#allocation2 + $0xe80] sm:$0xff] }
 0x108   :  { %6493 = vmatprep.subr.bf16.mxu0 %v13255_v2  ;;  %6657 = vmatprep.subr.bf16.mxu1 %v13257_v6  ;;  %v686_v2 = vld [vmem:[#allocation2 + $0xec0] sm:$0xff]  ;;  %v13366_v6 = vcombine.low %v662_v55, %v670_v56  ;;  %v13448_v55 = vcombine.low %v743_v39, %v751_v41 }
 0x10b   :  { %6494 = vmatpush1.bf16.msra.mxu0 %v13254_v8  ;;  %6658 = vmatpush1.bf16.msra.mxu1 %v13256_v10  ;;  %v13383_v8 = vcombine.high %v678_v1, %v686_v2  ;;  %v694_v10 = vld [vmem:[#allocation2 + $0xf00] sm:$0xff] }
 0x10c   :  { %6495 = vmatprep.subr.bf16.mxu0 %v13271_v11  ;;  %6659 = vmatprep.subr.bf16.mxu1 %v13273_v15  ;;  %v702_v11 = vld [vmem:[#allocation2 + $0xf40] sm:$0xff]  ;;  %v13382_v15 = vcombine.low %v678_v1, %v686_v2 }
 0x10d   :  { %v13398_v24 = vcombine.low %v694_v10, %v702_v11 }
 0x10f   :  { %6496 = vmatpush1.bf16.msra.mxu0 %v13270_v18  ;;  %6660 = vmatpush1.bf16.msra.mxu1 %v13272_v19  ;;  %v13384_v18 = vcombine.low %v679_v3, %v687_v5  ;;  %v13399_v19 = vcombine.high %v694_v10, %v702_v11  ;;  %v790_v3 = vld [vmem:[#allocation2 + $0x1200] sm:$0xff]  ;;  %v791_v5 = vld [vmem:[#allocation2 + $0x1208] sm:$0xff] }
 0x110   :  { %6497 = vmatprep.subr.bf16.mxu0 %v13287_v59  ;;  %6661 = vmatprep.subr.bf16.mxu1 %v13289_v23  ;;  %v718_v59 = vld [vmem:[#allocation2 + $0xfc0] sm:$0xff]  ;;  %v16222_v23 = vld [vmem:[%s16744_s0 + $0x8] sm:$0xff] }
 0x111   :  { %v16226_v33 = vrot.slane %v16222_v23, %v16185_v53 }
 0x113   :  { %6498 = vmatpush1.bf16.msra.mxu0 %v13286_v26  ;;  %6662 = vmatpush1.bf16.msra.mxu1 %v13288_v27  ;;  %v13400_v26 = vcombine.low %v695_v12, %v703_v14  ;;  %v13415_v27 = vcombine.high %v710_v17, %v718_v59  ;;  %v806_v12 = vld [vmem:[#allocation2 + $0x1280] sm:$0xff]  ;;  %v807_v14 = vld [vmem:[#allocation2 + $0x1288] sm:$0xff] }
 0x114   :  { %6499 = vmatprep.subr.bf16.mxu0 %v13303_v28  ;;  %6663 = vmatprep.subr.bf16.mxu1 %v13305_v32  ;;  %v726_v28 = vld [vmem:[#allocation2 + $0x1000] sm:$0xff]  ;;  %v735_v32 = vld [vmem:[#allocation2 + $0x1048] sm:$0xff] }
 0x115   :  { %v13432_v46 = vcombine.low %v727_v30, %v735_v32 }
 0x117   :  { %6500 = vmatpush1.bf16.msra.mxu0 %v13302_v34  ;;  %6664 = vmatpush1.bf16.msra.mxu1 %v13304_v35  ;;  %v13414_v34 = vcombine.low %v710_v17, %v718_v59  ;;  %v13416_v35 = vcombine.low %v711_v20, %v719_v21  ;;  %v815_v17 = vld [vmem:[#allocation2 + $0x12c8] sm:$0xff]  ;;  %v822_v20 = vld [vmem:[#allocation2 + $0x1300] sm:$0xff] }
 0x118   :  { %6501 = vmatprep.subr.bf16.mxu0 %v13319_v63  ;;  %6665 = vmatprep.subr.bf16.mxu1 %v13321_v40  ;;  %v13431_v63 = vcombine.high %v726_v28, %v734_v29  ;;  %v13433_v40 = vcombine.high %v727_v30, %v735_v32  ;;  %v830_v21 = vld [vmem:[#allocation2 + $0x1340] sm:$0xff]  ;;  %v839_v32 = vld [vmem:[#allocation2 + $0x1388] sm:$0xff] }
 0x119   :  { %v838_v30 = vld [vmem:[#allocation2 + $0x1380] sm:$0xff] }
 0x11b   :  { %6502 = vmatpush1.bf16.msra.mxu0 %v13318_v42  ;;  %6666 = vmatpush1.bf16.msra.mxu1 %v13320_v43  ;;  %v196_v42 = vcombine.high %v16226_v33, %v16226_v33  ;;  %v16232_v43 = vpack.c.bf16 %v16205_v16, %v16205_v16  ;;  %v13446_v16 = vcombine.low %v742_v37, %v750_v38 }
 0x11c   :  { %6503 = vmatprep.subr.bf16.mxu0 %v13335_v45  ;;  %6667 = vmatprep.subr.bf16.mxu1 %v13337_v49  ;;  %v13430_v45 = vcombine.low %v726_v28, %v734_v29  ;;  %v766_v49 = vld [vmem:[#allocation2 + $0x1140] sm:$0xff]  ;;  %v13512_v28 = vcombine.low %v807_v14, %v815_v17  ;;  %v13527_v29 = vcombine.high %v822_v20, %v830_v21 }
 0x11d   :  { %v13463_v56 = vcombine.high %v758_v48, %v766_v49 }
 0x11f   :  { %6504 = vmatpush1.bf16.msra.mxu0 %v13334_v51  ;;  %6668 = vmatpush1.bf16.msra.mxu1 %v13336_v52  ;;  %v13449_v51 = vcombine.high %v743_v39, %v751_v41  ;;  %v767_v52 = vld [vmem:[#allocation2 + $0x1148] sm:$0xff]  ;;  %v854_v39 = vld [vmem:[#allocation2 + $0x1400] sm:$0xff] }
 0x120   :  { %6505 = vmatprep.subr.bf16.mxu0 %v13351_v54  ;;  %6669 = vmatprep.subr.bf16.mxu1 %v13353_v58  ;;  %v16234_v54 = vpack.c.bf16 %v196_v42, %v196_v42  ;;  %v782_v58 = vld [vmem:[#allocation2 + $0x11c0] sm:$0xff]  ;;  %v13464_v1 = vcombine.low %v759_v50, %v767_v52  ;;  %v855_v41 = vld [vmem:[#allocation2 + $0x1408] sm:$0xff] }
 0x121   :  { %v13479_v2 = vcombine.high %v774_v57, %v782_v58 }
 0x123   :  { %6506 = vmatpush1.bf16.msra.mxu0 %v13350_v61  ;;  %6670 = vmatpush1.bf16.msra.mxu1 %v13352_v62  ;;  %v13465_v61 = vcombine.high %v759_v50, %v767_v52  ;;  %v783_v62 = vld [vmem:[#allocation2 + $0x11c8] sm:$0xff]  ;;  %v878_v50 = vld [vmem:[#allocation2 + $0x14c0] sm:$0xff] }
 0x124   :  { %6507 = vmatprep.subr.bf16.mxu0 %v13367_v0  ;;  %6671 = vmatprep.subr.bf16.mxu1 %v13369_v4  ;;  %v13462_v0 = vcombine.low %v758_v48, %v766_v49  ;;  %v798_v4 = vld [vmem:[#allocation2 + $0x1240] sm:$0xff]  ;;  %v13480_v10 = vcombine.low %v775_v60, %v783_v62 }
 0x125   :  { %v13495_v11 = vcombine.high %v790_v3, %v798_v4  ;;  %v870_v49 = vld [vmem:[#allocation2 + $0x1480] sm:$0xff] }
 0x127   :  { %6508 = vmatpush1.bf16.msra.mxu0 %v13366_v6  ;;  %6672 = vmatpush1.bf16.msra.mxu1 %v13368_v7  ;;  %v13481_v6 = vcombine.high %v775_v60, %v783_v62  ;;  %v799_v7 = vld [vmem:[#allocation2 + $0x1248] sm:$0xff]  ;;  %v894_v60 = vld [vmem:[#allocation2 + $0x1540] sm:$0xff] }
 0x128   :  { %6509 = vmatprep.subr.bf16.mxu0 %v13383_v8  ;;  %6673 = vmatprep.subr.bf16.mxu1 %v13385_v13  ;;  %v13478_v8 = vcombine.low %v774_v57, %v782_v58  ;;  %v814_v13 = vld [vmem:[#allocation2 + $0x12c0] sm:$0xff]  ;;  %v13575_v57 = vcombine.high %v870_v49, %v878_v50 }
 0x129   :  { %v13511_v59 = vcombine.high %v806_v12, %v814_v13  ;;  %v886_v58 = vld [vmem:[#allocation2 + $0x1500] sm:$0xff] }
 0x12b   :  { %6510 = vmatpush1.bf16.msra.mxu0 %v13382_v15  ;;  %6674 = vmatpush1.bf16.msra.mxu1 %v13384_v18  ;;  %v13497_v15 = vcombine.high %v791_v5, %v799_v7  ;;  %v13494_v18 = vcombine.low %v790_v3, %v798_v4  ;;  %v13591_v3 = vcombine.high %v886_v58, %v894_v60  ;;  %v902_v4 = vld [vmem:[#allocation2 + $0x1580] sm:$0xff] }
 0x12c   :  { %6511 = vmatprep.subr.bf16.mxu0 %v13399_v19  ;;  %6675 = vmatprep.subr.bf16.mxu1 %v13401_v22  ;;  %v13496_v19 = vcombine.low %v791_v5, %v799_v7  ;;  %v823_v22 = vld [vmem:[#allocation2 + $0x1308] sm:$0xff]  ;;  %v910_v5 = vld [vmem:[#allocation2 + $0x15c0] sm:$0xff] }
 0x12f   :  { %6512 = vmatpush1.bf16.msra.mxu0 %v13398_v24  ;;  %6676 = vmatpush1.bf16.msra.mxu1 %v13400_v26  ;;  %v13513_v24 = vcombine.high %v807_v14, %v815_v17  ;;  %v831_v26 = vld [vmem:[#allocation2 + $0x1348] sm:$0xff]  ;;  %v926_v14 = vld [vmem:[#allocation2 + $0x1640] sm:$0xff] }
 0x130   :  { %6513 = vmatprep.subr.bf16.mxu0 %v13415_v27  ;;  %6677 = vmatprep.subr.bf16.mxu1 %v13417_v31  ;;  %v13510_v27 = vcombine.low %v806_v12, %v814_v13  ;;  %v846_v31 = vld [vmem:[#allocation2 + $0x13c0] sm:$0xff]  ;;  %v13528_v37 = vcombine.low %v823_v22, %v831_v26  ;;  %v13607_v12 = vcombine.high %v902_v4, %v910_v5 }
 0x131   :  { %v13543_v38 = vcombine.high %v838_v30, %v846_v31  ;;  %v918_v13 = vld [vmem:[#allocation2 + $0x1600] sm:$0xff] }
 0x133   :  { %6514 = vmatpush1.bf16.msra.mxu0 %v13414_v34  ;;  %6678 = vmatpush1.bf16.msra.mxu1 %v13416_v35  ;;  %v13529_v34 = vcombine.high %v823_v22, %v831_v26  ;;  %v847_v35 = vld [vmem:[#allocation2 + $0x13c8] sm:$0xff]  ;;  %v942_v22 = vld [vmem:[#allocation2 + $0x16c0] sm:$0xff] }
 0x134   :  { %6524 = vmatprep.subr.bf16.mxu0 %v13431_v63  ;;  %6688 = vmatprep.subr.bf16.mxu1 %v13433_v40  ;;  %v13526_v63 = vcombine.low %v822_v20, %v830_v21  ;;  %v862_v40 = vld [vmem:[#allocation2 + $0x1440] sm:$0xff]  ;;  %v13545_v42 = vcombine.high %v839_v32, %v847_v35  ;;  %v13623_v20 = vcombine.high %v918_v13, %v926_v14 }
 0x135   :  { %v13559_v48 = vcombine.high %v854_v39, %v862_v40  ;;  %v934_v21 = vld [vmem:[#allocation2 + $0x1680] sm:$0xff] }
 0x136   :  { %6516 = vmatmul.mubr.bf16.vlgmr.msra.gmra.mrb[0].mxu0 %v16232_v43  ;;  %6680 = vmatmul.mubr.bf16.vlgmr.msra.gmra.mrb[0].mxu1 %v16232_v43 }
 0x137   :  { %6525 = vmatpush1.bf16.msra.mxu0 %v13430_v45  ;;  %6689 = vmatpush1.bf16.msra.mxu1 %v13432_v46  ;;  %v863_v45 = vld [vmem:[#allocation2 + $0x1448] sm:$0xff]  ;;  %v13542_v46 = vcombine.low %v838_v30, %v846_v31  ;;  %v13639_v30 = vcombine.high %v934_v21, %v942_v22  ;;  %v950_v31 = vld [vmem:[#allocation2 + $0x1700] sm:$0xff] }
 0x138   :  { %6526 = vmatprep.subr.bf16.mxu0 %v13447_v47  ;;  %6690 = vmatprep.subr.bf16.mxu1 %v13449_v51  ;;  %v13544_v47 = vcombine.low %v839_v32, %v847_v35  ;;  %v871_v51 = vld [vmem:[#allocation2 + $0x1488] sm:$0xff]  ;;  %v13561_v52 = vcombine.high %v855_v41, %v863_v45  ;;  %v958_v32 = vld [vmem:[#allocation2 + $0x1740] sm:$0xff] }
 0x139   :  { %6556 = vmatprep.mubr.bf16.mxu0 %v16234_v54  ;;  %6720 = vmatprep.mubr.bf16.mxu1 %v16234_v54 }
 0x13b   :  { %6527 = vmatpush1.bf16.msra.mxu0 %v13446_v16  ;;  %6691 = vmatpush1.bf16.msra.mxu1 %v13448_v55  ;;  %v879_v16 = vld [vmem:[#allocation2 + $0x14c8] sm:$0xff]  ;;  %v13558_v55 = vcombine.low %v854_v39, %v862_v40  ;;  %v13655_v39 = vcombine.high %v950_v31, %v958_v32  ;;  %v966_v40 = vld [vmem:[#allocation2 + $0x1780] sm:$0xff] }
 0x13c   :  { %6528 = vmatprep.subr.bf16.mxu0 %v13463_v56  ;;  %6692 = vmatprep.subr.bf16.mxu1 %v13465_v61  ;;  %v13560_v56 = vcombine.low %v855_v41, %v863_v45  ;;  %v887_v61 = vld [vmem:[#allocation2 + $0x1508] sm:$0xff]  ;;  %v13577_v62 = vcombine.high %v871_v51, %v879_v16  ;;  %v974_v41 = vld [vmem:[#allocation2 + $0x17c0] sm:$0xff] }
 0x13f   :  { %6529 = vmatpush1.bf16.msra.mxu0 %v13462_v0  ;;  %6693 = vmatpush1.bf16.msra.mxu1 %v13464_v1  ;;  %v895_v0 = vld [vmem:[#allocation2 + $0x1548] sm:$0xff]  ;;  %v13574_v1 = vcombine.low %v870_v49, %v878_v50  ;;  %v13671_v50 = vcombine.high %v966_v40, %v974_v41 }
 0x140   :  { %6530 = vmatprep.subr.bf16.mxu0 %v13479_v2  ;;  %6694 = vmatprep.subr.bf16.mxu1 %v13481_v6  ;;  %v13576_v2 = vcombine.low %v871_v51, %v879_v16  ;;  %v903_v6 = vld [vmem:[#allocation2 + $0x1588] sm:$0xff]  ;;  %v13593_v7 = vcombine.high %v887_v61, %v895_v0  ;;  %v982_v51 = vld [vmem:[#allocation2 + $0x1800] sm:$0xff] }
 0x141   :  { %v983_v16 = vld [vmem:[#allocation2 + $0x1808] sm:$0xff] }
 0x143   :  { %6531 = vmatpush1.bf16.msra.mxu0 %v13478_v8  ;;  %6695 = vmatpush1.bf16.msra.mxu1 %v13480_v10  ;;  %v911_v8 = vld [vmem:[#allocation2 + $0x15c8] sm:$0xff]  ;;  %v13590_v10 = vcombine.low %v886_v58, %v894_v60  ;;  %v13670_v58 = vcombine.low %v966_v40, %v974_v41 }
 0x144   :  { %6532 = vmatprep.subr.bf16.mxu0 %v13495_v11  ;;  %6696 = vmatprep.subr.bf16.mxu1 %v13497_v15  ;;  %v13592_v11 = vcombine.low %v887_v61, %v895_v0  ;;  %v919_v15 = vld [vmem:[#allocation2 + $0x1608] sm:$0xff]  ;;  %v13609_v17 = vcombine.high %v903_v6, %v911_v8  ;;  %v998_v61 = vld [vmem:[#allocation2 + $0x1880] sm:$0xff] }
 0x145   :  { %v999_v0 = vld [vmem:[#allocation2 + $0x1888] sm:$0xff] }
 0x146   :  { %v1071_v40 = vld [vmem:[#allocation2 + $0x1ac8] sm:$0xff] }
 0x147   :  { %6533 = vmatpush1.bf16.msra.mxu0 %v13494_v18  ;;  %6697 = vmatpush1.bf16.msra.mxu1 %v13496_v19  ;;  %v927_v18 = vld [vmem:[#allocation2 + $0x1648] sm:$0xff]  ;;  %v13606_v19 = vcombine.low %v902_v4, %v910_v5  ;;  %v16249_v4 = vpack.c.bf16 %v16226_v33, %v16226_v33 }
 0x148   :  { %6534 = vmatprep.subr.bf16.mxu0 %v13511_v59  ;;  %6698 = vmatprep.subr.bf16.mxu1 %v13513_v24  ;;  %v13608_v59 = vcombine.low %v903_v6, %v911_v8  ;;  %v935_v24 = vld [vmem:[#allocation2 + $0x1688] sm:$0xff]  ;;  %v13625_v26 = vcombine.high %v919_v15, %v927_v18  ;;  %v1014_v8 = vld [vmem:[#allocation2 + $0x1900] sm:$0xff] }
 0x14b   :  { %6535 = vmatpush1.bf16.msra.mxu0 %v13510_v27  ;;  %6699 = vmatpush1.bf16.msra.mxu1 %v13512_v28  ;;  %v943_v27 = vld [vmem:[#allocation2 + $0x16c8] sm:$0xff]  ;;  %v13622_v28 = vcombine.low %v918_v13, %v926_v14 }
 0x14c   :  { %6536 = vmatprep.subr.bf16.mxu0 %v13527_v29  ;;  %6700 = vmatprep.subr.bf16.mxu1 %v13529_v34  ;;  %v13624_v29 = vcombine.low %v919_v15, %v927_v18  ;;  %v951_v34 = vld [vmem:[#allocation2 + $0x1708] sm:$0xff]  ;;  %v13641_v35 = vcombine.high %v935_v24, %v943_v27  ;;  %v1030_v18 = vld [vmem:[#allocation2 + $0x1980] sm:$0xff] }
 0x14d   :  { %v1023_v13 = vld [vmem:[#allocation2 + $0x1948] sm:$0xff] }
 0x14f   :  { %6537 = vmatpush1.bf16.msra.mxu0 %v13526_v63  ;;  %6701 = vmatpush1.bf16.msra.mxu1 %v13528_v37  ;;  %v959_v63 = vld [vmem:[#allocation2 + $0x1748] sm:$0xff]  ;;  %v13638_v37 = vcombine.low %v934_v21, %v942_v22 }
 0x150   :  { %6538 = vmatprep.subr.bf16.mxu0 %v13543_v38  ;;  %6702 = vmatprep.subr.bf16.mxu1 %v13545_v42  ;;  %v13640_v38 = vcombine.low %v935_v24, %v943_v27  ;;  %v967_v42 = vld [vmem:[#allocation2 + $0x1788] sm:$0xff]  ;;  %v13657_v45 = vcombine.high %v951_v34, %v959_v63  ;;  %v13656_v49 = vcombine.low %v951_v34, %v959_v63  ;;  %v1046_v27 = vld [vmem:[#allocation2 + $0x1a00] sm:$0xff] }
 0x151   :  { %v1039_v21 = vld [vmem:[#allocation2 + $0x19c8] sm:$0xff]  ;;  %v1062_v63 = vld [vmem:[#allocation2 + $0x1a80] sm:$0xff] }
 0x153   :  { %6539 = vmatpush1.bf16.msra.mxu0 %v13542_v46  ;;  %6703 = vmatpush1.bf16.msra.mxu1 %v13544_v47  ;;  %v975_v46 = vld [vmem:[#allocation2 + $0x17c8] sm:$0xff]  ;;  %v181_v47 = vcombine.high %v16222_v23, %v16222_v23 }
 0x154   :  { %6540 = vmatprep.subr.bf16.mxu0 %v13559_v48  ;;  %6704 = vmatprep.subr.bf16.mxu1 %v13561_v52  ;;  %v13654_v48 = vcombine.low %v950_v31, %v958_v32  ;;  %v990_v52 = vld [vmem:[#allocation2 + $0x1840] sm:$0xff]  ;;  %v13672_v23 = vcombine.low %v967_v42, %v975_v46  ;;  %v1055_v31 = vld [vmem:[#allocation2 + $0x1a48] sm:$0xff] }
 0x155   :  { %v13687_v60 = vcombine.high %v982_v51, %v990_v52  ;;  %v13686_v5 = vcombine.low %v982_v51, %v990_v52 }
 0x157   :  { %6541 = vmatpush1.bf16.msra.mxu0 %v13558_v55  ;;  %6705 = vmatpush1.bf16.msra.mxu1 %v13560_v56  ;;  %v13673_v55 = vcombine.high %v967_v42, %v975_v46  ;;  %v991_v56 = vld [vmem:[#allocation2 + $0x1848] sm:$0xff]  ;;  %v1078_v46 = vld [vmem:[#allocation2 + $0x1b00] sm:$0xff] }
 0x158   :  { %6542 = vmatprep.subr.bf16.mxu0 %v13575_v57  ;;  %6706 = vmatprep.subr.bf16.mxu1 %v13577_v62  ;;  %v16243_v57 = vrot.slane %v181_v47, %v16185_v53  ;;  %v1006_v62 = vld [vmem:[#allocation2 + $0x18c0] sm:$0xff]  ;;  %v13688_v6 = vcombine.low %v983_v16, %v991_v56 }
 0x159   :  { %v13702_v33 = vcombine.low %v998_v61, %v1006_v62  ;;  %v1086_v47 = vld [vmem:[#allocation2 + $0x1b40] sm:$0xff] }
 0x15b   :  { %6543 = vmatpush1.bf16.msra.mxu0 %v13574_v1  ;;  %6707 = vmatpush1.bf16.msra.mxu1 %v13576_v2  ;;  %v13689_v1 = vcombine.high %v983_v16, %v991_v56  ;;  %v1007_v2 = vld [vmem:[#allocation2 + $0x18c8] sm:$0xff]  ;;  %v13783_v16 = vcombine.high %v1078_v46, %v1086_v47  ;;  %v1102_v56 = vld [vmem:[#allocation2 + $0x1bc0] sm:$0xff] }
 0x15c   :  { %6544 = vmatprep.subr.bf16.mxu0 %v13591_v3  ;;  %6708 = vmatprep.subr.bf16.mxu1 %v13593_v7  ;;  %v197_v3 = vcombine.high %v16243_v57, %v16243_v57  ;;  %v13703_v7 = vcombine.high %v998_v61, %v1006_v62  ;;  %v13704_v15 = vcombine.low %v999_v0, %v1007_v2 }
 0x15d   :  { %v13782_v61 = vcombine.low %v1078_v46, %v1086_v47 }
 0x15e   :  { %v16251_v14 = vpack.c.bf16 %v197_v3, %v197_v3  ;;  %v1111_v3 = vld [vmem:[#allocation2 + $0x1c08] sm:$0xff] }
 0x15f   :  { %6545 = vmatpush1.bf16.msra.mxu0 %v13590_v10  ;;  %6709 = vmatpush1.bf16.msra.mxu1 %v13592_v11  ;;  %v1022_v10 = vld [vmem:[#allocation2 + $0x1940] sm:$0xff]  ;;  %v1015_v11 = vld [vmem:[#allocation2 + $0x1908] sm:$0xff] }
 0x160   :  { %6546 = vmatprep.subr.bf16.mxu0 %v13607_v12  ;;  %6710 = vmatprep.subr.bf16.mxu1 %v13609_v17  ;;  %v13705_v12 = vcombine.high %v999_v0, %v1007_v2  ;;  %v13719_v17 = vcombine.high %v1014_v8, %v1022_v10  ;;  %v13718_v22 = vcombine.low %v1014_v8, %v1022_v10  ;;  %v1118_v2 = vld [vmem:[#allocation2 + $0x1c40] sm:$0xff] }
 0x161   :  { %v13720_v24 = vcombine.low %v1015_v11, %v1023_v13 }
 0x163   :  { %6547 = vmatpush1.bf16.msra.mxu0 %v13606_v19  ;;  %6711 = vmatpush1.bf16.msra.mxu1 %v13608_v59  ;;  %v1038_v19 = vld [vmem:[#allocation2 + $0x19c0] sm:$0xff]  ;;  %v1031_v59 = vld [vmem:[#allocation2 + $0x1988] sm:$0xff] }
 0x164   :  { %6548 = vmatprep.subr.bf16.mxu0 %v13623_v20  ;;  %6712 = vmatprep.subr.bf16.mxu1 %v13625_v26  ;;  %v13721_v20 = vcombine.high %v1015_v11, %v1023_v13  ;;  %v13735_v26 = vcombine.high %v1030_v18, %v1038_v19  ;;  %v13734_v32 = vcombine.low %v1030_v18, %v1038_v19  ;;  %v1126_v11 = vld [vmem:[#allocation2 + $0x1c80] sm:$0xff]  ;;  %v1127_v13 = vld [vmem:[#allocation2 + $0x1c88] sm:$0xff] }
 0x165   :  { %v13736_v34 = vcombine.low %v1031_v59, %v1039_v21 }
 0x167   :  { %6549 = vmatpush1.bf16.msra.mxu0 %v13622_v28  ;;  %6713 = vmatpush1.bf16.msra.mxu1 %v13624_v29  ;;  %v1054_v28 = vld [vmem:[#allocation2 + $0x1a40] sm:$0xff]  ;;  %v1047_v29 = vld [vmem:[#allocation2 + $0x1a08] sm:$0xff] }
 0x168   :  { %6550 = vmatprep.subr.bf16.mxu0 %v13639_v30  ;;  %6714 = vmatprep.subr.bf16.mxu1 %v13641_v35  ;;  %v13737_v30 = vcombine.high %v1031_v59, %v1039_v21  ;;  %v13751_v35 = vcombine.high %v1046_v27, %v1054_v28  ;;  %v13750_v41 = vcombine.low %v1046_v27, %v1054_v28  ;;  %v1142_v59 = vld [vmem:[#allocation2 + $0x1d00] sm:$0xff]  ;;  %v1143_v21 = vld [vmem:[#allocation2 + $0x1d08] sm:$0xff] }
 0x169   :  { %v13752_v42 = vcombine.low %v1047_v29, %v1055_v31 }
 0x16b   :  { %6551 = vmatpush1.bf16.msra.mxu0 %v13638_v37  ;;  %6715 = vmatpush1.bf16.msra.mxu1 %v13640_v38  ;;  %v1070_v37 = vld [vmem:[#allocation2 + $0x1ac0] sm:$0xff]  ;;  %v1063_v38 = vld [vmem:[#allocation2 + $0x1a88] sm:$0xff] }
 0x16c   :  { %6552 = vmatprep.subr.bf16.mxu0 %v13655_v39  ;;  %6716 = vmatprep.subr.bf16.mxu1 %v13657_v45  ;;  %v13753_v39 = vcombine.high %v1047_v29, %v1055_v31  ;;  %v13767_v45 = vcombine.high %v1062_v63, %v1070_v37  ;;  %v13766_v51 = vcombine.low %v1062_v63, %v1070_v37  ;;  %v1158_v29 = vld [vmem:[#allocation2 + $0x1d80] sm:$0xff]  ;;  %v1159_v31 = vld [vmem:[#allocation2 + $0x1d88] sm:$0xff] }
 0x16d   :  { %v13768_v52 = vcombine.low %v1063_v38, %v1071_v40 }
 0x16f   :  { %6553 = vmatpush1.bf16.msra.mxu0 %v13654_v48  ;;  %6717 = vmatpush1.bf16.msra.mxu1 %v13656_v49  ;;  %v1079_v48 = vld [vmem:[#allocation2 + $0x1b08] sm:$0xff]  ;;  %v13769_v49 = vcombine.high %v1063_v38, %v1071_v40  ;;  %v1174_v38 = vld [vmem:[#allocation2 + $0x1e00] sm:$0xff] }
 0x170   :  { %6554 = vmatprep.subr.bf16.mxu0 %v13671_v50  ;;  %6718 = vmatprep.subr.bf16.mxu1 %v13673_v55  ;;  %v1087_v50 = vld [vmem:[#allocation2 + $0x1b48] sm:$0xff]  ;;  %v1094_v55 = vld [vmem:[#allocation2 + $0x1b80] sm:$0xff] }
 0x171   :  { %v13784_v62 = vcombine.low %v1079_v48, %v1087_v50  ;;  %v13799_v0 = vcombine.high %v1094_v55, %v1102_v56  ;;  %v1175_v40 = vld [vmem:[#allocation2 + $0x1e08] sm:$0xff] }
 0x173   :  { %6555 = vmatpush1.bf16.msra.mxu0 %v13670_v58  ;;  %6719 = vmatpush1.bf16.msra.mxu1 %v13672_v23  ;;  %v1095_v58 = vld [vmem:[#allocation2 + $0x1b88] sm:$0xff]  ;;  %v13785_v23 = vcombine.high %v1079_v48, %v1087_v50  ;;  %v1190_v48 = vld [vmem:[#allocation2 + $0x1e80] sm:$0xff] }
 0x174   :  { %6565 = vmatprep.subr.bf16.mxu0 %v13687_v60  ;;  %6729 = vmatprep.subr.bf16.mxu1 %v13689_v1  ;;  %v1103_v60 = vld [vmem:[#allocation2 + $0x1bc8] sm:$0xff]  ;;  %v1110_v1 = vld [vmem:[#allocation2 + $0x1c00] sm:$0xff] }
 0x175   :  { %v13800_v8 = vcombine.low %v1095_v58, %v1103_v60  ;;  %v13815_v10 = vcombine.high %v1110_v1, %v1118_v2  ;;  %v1191_v50 = vld [vmem:[#allocation2 + $0x1e88] sm:$0xff] }
 0x176   :  { %6557 = vmatmul.mubr.bf16.vlgmr.msra.gmra.mrb[0].mxu0 %v16249_v4  ;;  %6721 = vmatmul.mubr.bf16.vlgmr.msra.gmra.mrb[0].mxu1 %v16249_v4 }
 0x177   :  { %6566 = vmatpush1.bf16.msra.mxu0 %v13686_v5  ;;  %6730 = vmatpush1.bf16.msra.mxu1 %v13688_v6  ;;  %v13801_v5 = vcombine.high %v1095_v58, %v1103_v60  ;;  %v1119_v6 = vld [vmem:[#allocation2 + $0x1c48] sm:$0xff]  ;;  %v1206_v58 = vld [vmem:[#allocation2 + $0x1f00] sm:$0xff] }
 0x178   :  { %6567 = vmatprep.subr.bf16.mxu0 %v13703_v7  ;;  %6731 = vmatprep.subr.bf16.mxu1 %v13705_v12  ;;  %v13798_v7 = vcombine.low %v1094_v55, %v1102_v56  ;;  %v1134_v12 = vld [vmem:[#allocation2 + $0x1cc0] sm:$0xff]  ;;  %v13816_v18 = vcombine.low %v1111_v3, %v1119_v6  ;;  %v1207_v60 = vld [vmem:[#allocation2 + $0x1f08] sm:$0xff] }
 0x179   :  { %6597 = vmatprep.mubr.bf16.mxu0 %v16251_v14  ;;  %6761 = vmatprep.mubr.bf16.mxu1 %v16251_v14  ;;  %v13831_v19 = vcombine.high %v1126_v11, %v1134_v12 }
 0x17b   :  { %6568 = vmatpush1.bf16.msra.mxu0 %v13702_v33  ;;  %6732 = vmatpush1.bf16.msra.mxu1 %v13704_v15  ;;  %v13817_v33 = vcombine.high %v1111_v3, %v1119_v6  ;;  %v1135_v15 = vld [vmem:[#allocation2 + $0x1cc8] sm:$0xff]  ;;  %v1222_v3 = vld [vmem:[#allocation2 + $0x1f80] sm:$0xff] }
 0x17c   :  { %6569 = vmatprep.subr.bf16.mxu0 %v13719_v17  ;;  %6733 = vmatprep.subr.bf16.mxu1 %v13721_v20  ;;  %v13814_v17 = vcombine.low %v1110_v1, %v1118_v2  ;;  %v1150_v20 = vld [vmem:[#allocation2 + $0x1d40] sm:$0xff]  ;;  %v13832_v27 = vcombine.low %v1127_v13, %v1135_v15  ;;  %v1223_v6 = vld [vmem:[#allocation2 + $0x1f88] sm:$0xff] }
 0x17d   :  { %v13847_v28 = vcombine.high %v1142_v59, %v1150_v20 }
 0x17f   :  { %6570 = vmatpush1.bf16.msra.mxu0 %v13718_v22  ;;  %6734 = vmatpush1.bf16.msra.mxu1 %v13720_v24  ;;  %v13833_v22 = vcombine.high %v1127_v13, %v1135_v15  ;;  %v1151_v24 = vld [vmem:[#allocation2 + $0x1d48] sm:$0xff]  ;;  %v216_v13 = vld [vmem:[#allocation2 + $0x10] sm:$0xff]  ;;  %v217_v15 = vld [vmem:[#allocation2 + $0x18] sm:$0xff] }
 0x180   :  { %6571 = vmatprep.subr.bf16.mxu0 %v13735_v26  ;;  %6735 = vmatprep.subr.bf16.mxu1 %v13737_v30  ;;  %v13830_v26 = vcombine.low %v1126_v11, %v1134_v12  ;;  %v1166_v30 = vld [vmem:[#allocation2 + $0x1dc0] sm:$0xff]  ;;  %v13848_v63 = vcombine.low %v1143_v21, %v1151_v24 }
 0x181   :  { %v13863_v37 = vcombine.high %v1158_v29, %v1166_v30 }
 0x183   :  { %6572 = vmatpush1.bf16.msra.mxu0 %v13734_v32  ;;  %6736 = vmatpush1.bf16.msra.mxu1 %v13736_v34  ;;  %v13849_v32 = vcombine.high %v1143_v21, %v1151_v24  ;;  %v1167_v34 = vld [vmem:[#allocation2 + $0x1dc8] sm:$0xff]  ;;  %v232_v21 = vld [vmem:[#allocation2 + $0x90] sm:$0xff]  ;;  %v233_v24 = vld [vmem:[#allocation2 + $0x98] sm:$0xff] }
 0x184   :  { %6573 = vmatprep.subr.bf16.mxu0 %v13751_v35  ;;  %6737 = vmatprep.subr.bf16.mxu1 %v13753_v39  ;;  %v13846_v35 = vcombine.low %v1142_v59, %v1150_v20  ;;  %v1182_v39 = vld [vmem:[#allocation2 + $0x1e40] sm:$0xff]  ;;  %v13864_v46 = vcombine.low %v1159_v31, %v1167_v34 }
 0x185   :  { %v13879_v47 = vcombine.high %v1174_v38, %v1182_v39 }
 0x187   :  { %6574 = vmatpush1.bf16.msra.mxu0 %v13750_v41  ;;  %6738 = vmatpush1.bf16.msra.mxu1 %v13752_v42  ;;  %v13865_v41 = vcombine.high %v1159_v31, %v1167_v34  ;;  %v1183_v42 = vld [vmem:[#allocation2 + $0x1e48] sm:$0xff]  ;;  %v256_v34 = vld [vmem:[#allocation2 + $0x150] sm:$0xff] }
 0x188   :  { %6575 = vmatprep.subr.bf16.mxu0 %v13767_v45  ;;  %6739 = vmatprep.subr.bf16.mxu1 %v13769_v49  ;;  %v13862_v45 = vcombine.low %v1158_v29, %v1166_v30  ;;  %v1198_v49 = vld [vmem:[#allocation2 + $0x1ec0] sm:$0xff]  ;;  %v13880_v55 = vcombine.low %v1175_v40, %v1183_v42 }
 0x189   :  { %v13895_v56 = vcombine.high %v1190_v48, %v1198_v49 }
 0x18b   :  { %6576 = vmatpush1.bf16.msra.mxu0 %v13766_v51  ;;  %6740 = vmatpush1.bf16.msra.mxu1 %v13768_v52  ;;  %v13881_v51 = vcombine.high %v1175_v40, %v1183_v42  ;;  %v1199_v52 = vld [vmem:[#allocation2 + $0x1ec8] sm:$0xff]  ;;  %v264_v40 = vld [vmem:[#allocation2 + $0x190] sm:$0xff]  ;;  %v265_v42 = vld [vmem:[#allocation2 + $0x198] sm:$0xff] }
 0x18c   :  { %6577 = vmatprep.subr.bf16.mxu0 %v13783_v16  ;;  %6741 = vmatprep.subr.bf16.mxu1 %v13785_v23  ;;  %v13878_v16 = vcombine.low %v1174_v38, %v1182_v39  ;;  %v1214_v23 = vld [vmem:[#allocation2 + $0x1f40] sm:$0xff]  ;;  %v13896_v1 = vcombine.low %v1191_v50, %v1199_v52 }
 0x18d   :  { %v13911_v2 = vcombine.high %v1206_v58, %v1214_v23 }
 0x18f   :  { %6578 = vmatpush1.bf16.msra.mxu0 %v13782_v61  ;;  %6742 = vmatpush1.bf16.msra.mxu1 %v13784_v62  ;;  %v13897_v61 = vcombine.high %v1191_v50, %v1199_v52  ;;  %v1215_v62 = vld [vmem:[#allocation2 + $0x1f48] sm:$0xff]  ;;  %v280_v50 = vld [vmem:[#allocation2 + $0x210] sm:$0xff]  ;;  %v281_v52 = vld [vmem:[#allocation2 + $0x218] sm:$0xff] }
 0x190   :  { %6579 = vmatprep.subr.bf16.mxu0 %v13799_v0  ;;  %6743 = vmatprep.subr.bf16.mxu1 %v13801_v5  ;;  %v13894_v0 = vcombine.low %v1190_v48, %v1198_v49  ;;  %v1230_v5 = vld [vmem:[#allocation2 + $0x1fc0] sm:$0xff]  ;;  %v13912_v11 = vcombine.low %v1207_v60, %v1215_v62 }
 0x191   :  { %v13927_v12 = vcombine.high %v1222_v3, %v1230_v5 }
 0x193   :  { %6580 = vmatpush1.bf16.msra.mxu0 %v13798_v7  ;;  %6744 = vmatpush1.bf16.msra.mxu1 %v13800_v8  ;;  %v13913_v7 = vcombine.high %v1207_v60, %v1215_v62  ;;  %v1231_v8 = vld [vmem:[#allocation2 + $0x1fc8] sm:$0xff]  ;;  %v296_v60 = vld [vmem:[#allocation2 + $0x290] sm:$0xff]  ;;  %v297_v62 = vld [vmem:[#allocation2 + $0x298] sm:$0xff] }
 0x194   :  { %6581 = vmatprep.subr.bf16.mxu0 %v13815_v10  ;;  %6745 = vmatprep.subr.bf16.mxu1 %v13817_v33  ;;  %v13910_v10 = vcombine.low %v1206_v58, %v1214_v23  ;;  %v224_v33 = vld [vmem:[#allocation2 + $0x50] sm:$0xff]  ;;  %v13928_v59 = vcombine.low %v1223_v6, %v1231_v8 }
 0x195   :  { %v12923_v20 = vcombine.high %v216_v13, %v224_v33  ;;  %v12922_v29 = vcombine.low %v216_v13, %v224_v33 }
 0x197   :  { %6582 = vmatpush1.bf16.msra.mxu0 %v13814_v17  ;;  %6746 = vmatpush1.bf16.msra.mxu1 %v13816_v18  ;;  %v13929_v17 = vcombine.high %v1223_v6, %v1231_v8  ;;  %v225_v18 = vld [vmem:[#allocation2 + $0x58] sm:$0xff]  ;;  %v312_v6 = vld [vmem:[#allocation2 + $0x310] sm:$0xff] }
 0x198   :  { %6583 = vmatprep.subr.bf16.mxu0 %v13831_v19  ;;  %6747 = vmatprep.subr.bf16.mxu1 %v13833_v22  ;;  %v13926_v19 = vcombine.low %v1222_v3, %v1230_v5  ;;  %v240_v22 = vld [vmem:[#allocation2 + $0xd0] sm:$0xff]  ;;  %v12924_v30 = vcombine.low %v217_v15, %v225_v18  ;;  %v313_v8 = vld [vmem:[#allocation2 + $0x318] sm:$0xff] }
 0x199   :  { %v12939_v31 = vcombine.high %v232_v21, %v240_v22  ;;  %v12938_v38 = vcombine.low %v232_v21, %v240_v22 }
 0x19b   :  { %6584 = vmatpush1.bf16.msra.mxu0 %v13830_v26  ;;  %6748 = vmatpush1.bf16.msra.mxu1 %v13832_v27  ;;  %v12925_v26 = vcombine.high %v217_v15, %v225_v18  ;;  %v241_v27 = vld [vmem:[#allocation2 + $0xd8] sm:$0xff]  ;;  %v328_v15 = vld [vmem:[#allocation2 + $0x390] sm:$0xff] }
 0x19c   :  { %6585 = vmatprep.subr.bf16.mxu0 %v13847_v28  ;;  %6749 = vmatprep.subr.bf16.mxu1 %v13849_v32  ;;  %v16259_v28 = vpack.c.bf16 %v16243_v57, %v16243_v57  ;;  %v248_v32 = vld [vmem:[#allocation2 + $0x110] sm:$0xff]  ;;  %v12940_v57 = vcombine.low %v233_v24, %v241_v27  ;;  %v329_v18 = vld [vmem:[#allocation2 + $0x398] sm:$0xff] }
 0x19d   :  { %v12955_v39 = vcombine.high %v248_v32, %v256_v34 }
 0x19f   :  { %6586 = vmatpush1.bf16.msra.mxu0 %v13846_v35  ;;  %6750 = vmatpush1.bf16.msra.mxu1 %v13848_v63  ;;  %v249_v35 = vld [vmem:[#allocation2 + $0x118] sm:$0xff]  ;;  %v12941_v63 = vcombine.high %v233_v24, %v241_v27  ;;  %v344_v24 = vld [vmem:[#allocation2 + $0x410] sm:$0xff] }
 0x1a0   :  { %6587 = vmatprep.subr.bf16.mxu0 %v13863_v37  ;;  %6751 = vmatprep.subr.bf16.mxu1 %v13865_v41  ;;  %v257_v37 = vld [vmem:[#allocation2 + $0x158] sm:$0xff]  ;;  %v272_v41 = vld [vmem:[#allocation2 + $0x1d0] sm:$0xff] }
 0x1a1   :  { %v12956_v48 = vcombine.low %v249_v35, %v257_v37  ;;  %v12971_v49 = vcombine.high %v264_v40, %v272_v41  ;;  %v345_v27 = vld [vmem:[#allocation2 + $0x418] sm:$0xff] }
 0x1a3   :  { %6588 = vmatpush1.bf16.msra.mxu0 %v13862_v45  ;;  %6752 = vmatpush1.bf16.msra.mxu1 %v13864_v46  ;;  %v12957_v45 = vcombine.high %v249_v35, %v257_v37  ;;  %v273_v46 = vld [vmem:[#allocation2 + $0x1d8] sm:$0xff]  ;;  %v360_v35 = vld [vmem:[#allocation2 + $0x490] sm:$0xff] }
 0x1a4   :  { %6589 = vmatprep.subr.bf16.mxu0 %v13879_v47  ;;  %6753 = vmatprep.subr.bf16.mxu1 %v13881_v51  ;;  %v12954_v47 = vcombine.low %v248_v32, %v256_v34  ;;  %v288_v51 = vld [vmem:[#allocation2 + $0x250] sm:$0xff]  ;;  %v12972_v58 = vcombine.low %v265_v42, %v273_v46  ;;  %v361_v37 = vld [vmem:[#allocation2 + $0x498] sm:$0xff] }
 0x1a5   :  { %v12987_v23 = vcombine.high %v280_v50, %v288_v51 }
 0x1a7   :  { %6590 = vmatpush1.bf16.msra.mxu0 %v13878_v16  ;;  %6754 = vmatpush1.bf16.msra.mxu1 %v13880_v55  ;;  %v12973_v16 = vcombine.high %v265_v42, %v273_v46  ;;  %v289_v55 = vld [vmem:[#allocation2 + $0x258] sm:$0xff]  ;;  %v376_v42 = vld [vmem:[#allocation2 + $0x510] sm:$0xff] }
 0x1a8   :  { %6591 = vmatprep.subr.bf16.mxu0 %v13895_v56  ;;  %6755 = vmatprep.subr.bf16.mxu1 %v13897_v61  ;;  %v12970_v56 = vcombine.low %v264_v40, %v272_v41  ;;  %v304_v61 = vld [vmem:[#allocation2 + $0x2d0] sm:$0xff]  ;;  %v12988_v3 = vcombine.low %v281_v52, %v289_v55  ;;  %v377_v46 = vld [vmem:[#allocation2 + $0x518] sm:$0xff] }
 0x1a9   :  { %v13003_v5 = vcombine.high %v296_v60, %v304_v61 }
 0x1ab   :  { %6592 = vmatpush1.bf16.msra.mxu0 %v13894_v0  ;;  %6756 = vmatpush1.bf16.msra.mxu1 %v13896_v1  ;;  %v12989_v0 = vcombine.high %v281_v52, %v289_v55  ;;  %v305_v1 = vld [vmem:[#allocation2 + $0x2d8] sm:$0xff]  ;;  %v392_v52 = vld [vmem:[#allocation2 + $0x590] sm:$0xff] }
 0x1ac   :  { %6593 = vmatprep.subr.bf16.mxu0 %v13911_v2  ;;  %6757 = vmatprep.subr.bf16.mxu1 %v13913_v7  ;;  %v12986_v2 = vcombine.low %v280_v50, %v288_v51  ;;  %v320_v7 = vld [vmem:[#allocation2 + $0x350] sm:$0xff]  ;;  %v13004_v13 = vcombine.low %v297_v62, %v305_v1  ;;  %v393_v55 = vld [vmem:[#allocation2 + $0x598] sm:$0xff] }
 0x1ad   :  { %v13019_v33 = vcombine.high %v312_v6, %v320_v7 }
 0x1af   :  { %6594 = vmatpush1.bf16.msra.mxu0 %v13910_v10  ;;  %6758 = vmatpush1.bf16.msra.mxu1 %v13912_v11  ;;  %v13005_v10 = vcombine.high %v297_v62, %v305_v1  ;;  %v321_v11 = vld [vmem:[#allocation2 + $0x358] sm:$0xff]  ;;  %v408_v62 = vld [vmem:[#allocation2 + $0x610] sm:$0xff] }
 0x1b0   :  { %6595 = vmatprep.subr.bf16.mxu0 %v13927_v12  ;;  %6759 = vmatprep.subr.bf16.mxu1 %v13929_v17  ;;  %v13002_v12 = vcombine.low %v296_v60, %v304_v61  ;;  %v336_v17 = vld [vmem:[#allocation2 + $0x3d0] sm:$0xff]  ;;  %v13020_v21 = vcombine.low %v313_v8, %v321_v11  ;;  %v409_v1 = vld [vmem:[#allocation2 + $0x618] sm:$0xff] }
 0x1b1   :  { %v13035_v22 = vcombine.high %v328_v15, %v336_v17 }
 0x1b3   :  { %6596 = vmatpush1.bf16.msra.mxu0 %v13926_v19  ;;  %6760 = vmatpush1.bf16.msra.mxu1 %v13928_v59  ;;  %v13021_v19 = vcombine.high %v313_v8, %v321_v11  ;;  %v337_v59 = vld [vmem:[#allocation2 + $0x3d8] sm:$0xff]  ;;  %v424_v8 = vld [vmem:[#allocation2 + $0x690] sm:$0xff] }
 0x1b4   :  { %6770 = vmatprep.subr.bf16.mxu0 %v12923_v20  ;;  %6934 = vmatprep.subr.bf16.mxu1 %v12925_v26  ;;  %v13018_v20 = vcombine.low %v312_v6, %v320_v7  ;;  %v352_v26 = vld [vmem:[#allocation2 + $0x450] sm:$0xff]  ;;  %v13036_v32 = vcombine.low %v329_v18, %v337_v59  ;;  %v425_v11 = vld [vmem:[#allocation2 + $0x698] sm:$0xff] }
 0x1b5   :  { %v13051_v34 = vcombine.high %v344_v24, %v352_v26 }
 0x1b6   :  { %6598 = vmatmul.mubr.bf16.vlgmr.msra.gmra.mrb[0].mxu0 %v16259_v28  ;;  %6762 = vmatmul.mubr.bf16.vlgmr.msra.gmra.mrb[0].mxu1 %v16259_v28 }
 0x1b7   :  { %6771 = vmatpush1.bf16.msra.mxu0 %v12922_v29  ;;  %6935 = vmatpush1.bf16.msra.mxu1 %v12924_v30  ;;  %v13037_v29 = vcombine.high %v329_v18, %v337_v59  ;;  %v353_v30 = vld [vmem:[#allocation2 + $0x458] sm:$0xff]  ;;  %v440_v18 = vld [vmem:[#allocation2 + $0x710] sm:$0xff] }
 0x1b8   :  { %6772 = vmatprep.subr.bf16.mxu0 %v12939_v31  ;;  %6936 = vmatprep.subr.bf16.mxu1 %v12941_v63  ;;  %v13034_v31 = vcombine.low %v328_v15, %v336_v17  ;;  %v368_v63 = vld [vmem:[#allocation2 + $0x4d0] sm:$0xff]  ;;  %v13052_v40 = vcombine.low %v345_v27, %v353_v30  ;;  %v441_v59 = vld [vmem:[#allocation2 + $0x718] sm:$0xff] }
 0x1b9   :  { %6802 = vmatprep.mubr.bf16.mxu0 %v16198_v9  ;;  %6966 = vmatprep.mubr.bf16.mxu1 %v16198_v9  ;;  %v13067_v41 = vcombine.high %v360_v35, %v368_v63 }
 0x1bb   :  { %6773 = vmatpush1.bf16.msra.mxu0 %v12938_v38  ;;  %6937 = vmatpush1.bf16.msra.mxu1 %v12940_v57  ;;  %v13053_v38 = vcombine.high %v345_v27, %v353_v30  ;;  %v369_v57 = vld [vmem:[#allocation2 + $0x4d8] sm:$0xff]  ;;  %v456_v27 = vld [vmem:[#allocation2 + $0x790] sm:$0xff] }
 0x1bc   :  { %6774 = vmatprep.subr.bf16.mxu0 %v12955_v39  ;;  %6938 = vmatprep.subr.bf16.mxu1 %v12957_v45  ;;  %v13050_v39 = vcombine.low %v344_v24, %v352_v26  ;;  %v384_v45 = vld [vmem:[#allocation2 + $0x550] sm:$0xff]  ;;  %v13068_v50 = vcombine.low %v361_v37, %v369_v57  ;;  %v457_v30 = vld [vmem:[#allocation2 + $0x798] sm:$0xff] }
 0x1bd   :  { %v13083_v51 = vcombine.high %v376_v42, %v384_v45 }
 0x1bf   :  { %6775 = vmatpush1.bf16.msra.mxu0 %v12954_v47  ;;  %6939 = vmatpush1.bf16.msra.mxu1 %v12956_v48  ;;  %v13069_v47 = vcombine.high %v361_v37, %v369_v57  ;;  %v385_v48 = vld [vmem:[#allocation2 + $0x558] sm:$0xff]  ;;  %v472_v37 = vld [vmem:[#allocation2 + $0x810] sm:$0xff] }
 0x1c0   :  { %6776 = vmatprep.subr.bf16.mxu0 %v12971_v49  ;;  %6940 = vmatprep.subr.bf16.mxu1 %v12973_v16  ;;  %v13066_v49 = vcombine.low %v360_v35, %v368_v63  ;;  %v400_v16 = vld [vmem:[#allocation2 + $0x5d0] sm:$0xff]  ;;  %v13084_v60 = vcombine.low %v377_v46, %v385_v48  ;;  %v473_v57 = vld [vmem:[#allocation2 + $0x818] sm:$0xff] }
 0x1c1   :  { %v13099_v61 = vcombine.high %v392_v52, %v400_v16 }
 0x1c3   :  { %6777 = vmatpush1.bf16.msra.mxu0 %v12970_v56  ;;  %6941 = vmatpush1.bf16.msra.mxu1 %v12972_v58  ;;  %v13085_v56 = vcombine.high %v377_v46, %v385_v48  ;;  %v401_v58 = vld [vmem:[#allocation2 + $0x5d8] sm:$0xff]  ;;  %v488_v46 = vld [vmem:[#allocation2 + $0x890] sm:$0xff] }
 0x1c4   :  { %6778 = vmatprep.subr.bf16.mxu0 %v12987_v23  ;;  %6942 = vmatprep.subr.bf16.mxu1 %v12989_v0  ;;  %v13082_v23 = vcombine.low %v376_v42, %v384_v45  ;;  %v416_v0 = vld [vmem:[#allocation2 + $0x650] sm:$0xff]  ;;  %v13100_v6 = vcombine.low %v393_v55, %v401_v58  ;;  %v489_v48 = vld [vmem:[#allocation2 + $0x898] sm:$0xff] }
 0x1c5   :  { %v13115_v7 = vcombine.high %v408_v62, %v416_v0 }
 0x1c7   :  { %6779 = vmatpush1.bf16.msra.mxu0 %v12986_v2  ;;  %6943 = vmatpush1.bf16.msra.mxu1 %v12988_v3  ;;  %v13101_v2 = vcombine.high %v393_v55, %v401_v58  ;;  %v417_v3 = vld [vmem:[#allocation2 + $0x658] sm:$0xff]  ;;  %v504_v55 = vld [vmem:[#allocation2 + $0x910] sm:$0xff] }
 0x1c8   :  { %6780 = vmatprep.subr.bf16.mxu0 %v13003_v5  ;;  %6944 = vmatprep.subr.bf16.mxu1 %v13005_v10  ;;  %v13098_v5 = vcombine.low %v392_v52, %v400_v16  ;;  %v432_v10 = vld [vmem:[#allocation2 + $0x6d0] sm:$0xff]  ;;  %v13116_v15 = vcombine.low %v409_v1, %v417_v3  ;;  %v505_v58 = vld [vmem:[#allocation2 + $0x918] sm:$0xff] }
 0x1c9   :  { %v13131_v17 = vcombine.high %v424_v8, %v432_v10 }
 0x1cb   :  { %6781 = vmatpush1.bf16.msra.mxu0 %v13002_v12  ;;  %6945 = vmatpush1.bf16.msra.mxu1 %v13004_v13  ;;  %v13117_v12 = vcombine.high %v409_v1, %v417_v3  ;;  %v433_v13 = vld [vmem:[#allocation2 + $0x6d8] sm:$0xff]  ;;  %v520_v1 = vld [vmem:[#allocation2 + $0x990] sm:$0xff] }
 0x1cc   :  { %6782 = vmatprep.subr.bf16.mxu0 %v13019_v33  ;;  %6946 = vmatprep.subr.bf16.mxu1 %v13021_v19  ;;  %v13114_v33 = vcombine.low %v408_v62, %v416_v0  ;;  %v448_v19 = vld [vmem:[#allocation2 + $0x750] sm:$0xff]  ;;  %v13132_v24 = vcombine.low %v425_v11, %v433_v13  ;;  %v521_v3 = vld [vmem:[#allocation2 + $0x998] sm:$0xff] }
 0x1cd   :  { %v13147_v26 = vcombine.high %v440_v18, %v448_v19 }
 0x1cf   :  { %6783 = vmatpush1.bf16.msra.mxu0 %v13018_v20  ;;  %6947 = vmatpush1.bf16.msra.mxu1 %v13020_v21  ;;  %v13133_v20 = vcombine.high %v425_v11, %v433_v13  ;;  %v449_v21 = vld [vmem:[#allocation2 + $0x758] sm:$0xff]  ;;  %v536_v11 = vld [vmem:[#allocation2 + $0xa10] sm:$0xff] }
 0x1d0   :  { %6784 = vmatprep.subr.bf16.mxu0 %v13035_v22  ;;  %6948 = vmatprep.subr.bf16.mxu1 %v13037_v29  ;;  %v13130_v22 = vcombine.low %v424_v8, %v432_v10  ;;  %v464_v29 = vld [vmem:[#allocation2 + $0x7d0] sm:$0xff]  ;;  %v13148_v35 = vcombine.low %v441_v59, %v449_v21  ;;  %v537_v13 = vld [vmem:[#allocation2 + $0xa18] sm:$0xff] }
 0x1d1   :  { %v13163_v63 = vcombine.high %v456_v27, %v464_v29 }
 0x1d3   :  { %6785 = vmatpush1.bf16.msra.mxu0 %v13034_v31  ;;  %6949 = vmatpush1.bf16.msra.mxu1 %v13036_v32  ;;  %v13149_v31 = vcombine.high %v441_v59, %v449_v21  ;;  %v465_v32 = vld [vmem:[#allocation2 + $0x7d8] sm:$0xff]  ;;  %v552_v59 = vld [vmem:[#allocation2 + $0xa90] sm:$0xff] }
 0x1d4   :  { %6786 = vmatprep.subr.bf16.mxu0 %v13051_v34  ;;  %6950 = vmatprep.subr.bf16.mxu1 %v13053_v38  ;;  %v13146_v34 = vcombine.low %v440_v18, %v448_v19  ;;  %v480_v38 = vld [vmem:[#allocation2 + $0x850] sm:$0xff]  ;;  %v13164_v42 = vcombine.low %v457_v30, %v465_v32  ;;  %v553_v21 = vld [vmem:[#allocation2 + $0xa98] sm:$0xff] }
 0x1d5   :  { %v13179_v45 = vcombine.high %v472_v37, %v480_v38 }
 0x1d7   :  { %6787 = vmatpush1.bf16.msra.mxu0 %v13050_v39  ;;  %6951 = vmatpush1.bf16.msra.mxu1 %v13052_v40  ;;  %v13165_v39 = vcombine.high %v457_v30, %v465_v32  ;;  %v481_v40 = vld [vmem:[#allocation2 + $0x858] sm:$0xff]  ;;  %v568_v30 = vld [vmem:[#allocation2 + $0xb10] sm:$0xff] }
 0x1d8   :  { %6788 = vmatprep.subr.bf16.mxu0 %v13067_v41  ;;  %6952 = vmatprep.subr.bf16.mxu1 %v13069_v47  ;;  %v13162_v41 = vcombine.low %v456_v27, %v464_v29  ;;  %v496_v47 = vld [vmem:[#allocation2 + $0x8d0] sm:$0xff]  ;;  %v13180_v52 = vcombine.low %v473_v57, %v481_v40  ;;  %v569_v32 = vld [vmem:[#allocation2 + $0xb18] sm:$0xff] }
 0x1d9   :  { %v13195_v16 = vcombine.high %v488_v46, %v496_v47 }
 0x1db   :  { %6789 = vmatpush1.bf16.msra.mxu0 %v13066_v49  ;;  %6953 = vmatpush1.bf16.msra.mxu1 %v13068_v50  ;;  %v13181_v49 = vcombine.high %v473_v57, %v481_v40  ;;  %v497_v50 = vld [vmem:[#allocation2 + $0x8d8] sm:$0xff]  ;;  %v584_v57 = vld [vmem:[#allocation2 + $0xb90] sm:$0xff] }
 0x1dc   :  { %6790 = vmatprep.subr.bf16.mxu0 %v13083_v51  ;;  %6954 = vmatprep.subr.bf16.mxu1 %v13085_v56  ;;  %v13178_v51 = vcombine.low %v472_v37, %v480_v38  ;;  %v512_v56 = vld [vmem:[#allocation2 + $0x950] sm:$0xff]  ;;  %v13196_v62 = vcombine.low %v489_v48, %v497_v50 }
 0x1dd   :  { %v13211_v0 = vcombine.high %v504_v55, %v512_v56 }
 0x1df   :  { %6791 = vmatpush1.bf16.msra.mxu0 %v13082_v23  ;;  %6955 = vmatpush1.bf16.msra.mxu1 %v13084_v60  ;;  %v13197_v23 = vcombine.high %v489_v48, %v497_v50  ;;  %v513_v60 = vld [vmem:[#allocation2 + $0x958] sm:$0xff]  ;;  %v600_v48 = vld [vmem:[#allocation2 + $0xc10] sm:$0xff] }
 0x1e0   :  { %6792 = vmatprep.subr.bf16.mxu0 %v13099_v61  ;;  %6956 = vmatprep.subr.bf16.mxu1 %v13101_v2  ;;  %v13194_v61 = vcombine.low %v488_v46, %v496_v47  ;;  %v528_v2 = vld [vmem:[#allocation2 + $0x9d0] sm:$0xff]  ;;  %v13212_v8 = vcombine.low %v505_v58, %v513_v60  ;;  %v601_v50 = vld [vmem:[#allocation2 + $0xc18] sm:$0xff] }
 0x1e1   :  { %v13227_v10 = vcombine.high %v520_v1, %v528_v2 }
 0x1e3   :  { %6793 = vmatpush1.bf16.msra.mxu0 %v13098_v5  ;;  %6957 = vmatpush1.bf16.msra.mxu1 %v13100_v6  ;;  %v13213_v5 = vcombine.high %v505_v58, %v513_v60  ;;  %v529_v6 = vld [vmem:[#allocation2 + $0x9d8] sm:$0xff]  ;;  %v616_v58 = vld [vmem:[#allocation2 + $0xc90] sm:$0xff] }
 0x1e4   :  { %6794 = vmatprep.subr.bf16.mxu0 %v13115_v7  ;;  %6958 = vmatprep.subr.bf16.mxu1 %v13117_v12  ;;  %v13210_v7 = vcombine.low %v504_v55, %v512_v56  ;;  %v544_v12 = vld [vmem:[#allocation2 + $0xa50] sm:$0xff]  ;;  %v13228_v18 = vcombine.low %v521_v3, %v529_v6  ;;  %v617_v60 = vld [vmem:[#allocation2 + $0xc98] sm:$0xff] }
 0x1e5   :  { %v13243_v19 = vcombine.high %v536_v11, %v544_v12 }
 0x1e7   :  { %6795 = vmatpush1.bf16.msra.mxu0 %v13114_v33  ;;  %6959 = vmatpush1.bf16.msra.mxu1 %v13116_v15  ;;  %v13229_v33 = vcombine.high %v521_v3, %v529_v6  ;;  %v545_v15 = vld [vmem:[#allocation2 + $0xa58] sm:$0xff]  ;;  %v632_v3 = vld [vmem:[#allocation2 + $0xd10] sm:$0xff] }
 0x1e8   :  { %6796 = vmatprep.subr.bf16.mxu0 %v13131_v17  ;;  %6960 = vmatprep.subr.bf16.mxu1 %v13133_v20  ;;  %v13226_v17 = vcombine.low %v520_v1, %v528_v2  ;;  %v560_v20 = vld [vmem:[#allocation2 + $0xad0] sm:$0xff]  ;;  %v13244_v27 = vcombine.low %v537_v13, %v545_v15  ;;  %v633_v6 = vld [vmem:[#allocation2 + $0xd18] sm:$0xff] }
 0x1e9   :  { %v13259_v29 = vcombine.high %v552_v59, %v560_v20 }
 0x1eb   :  { %6797 = vmatpush1.bf16.msra.mxu0 %v13130_v22  ;;  %6961 = vmatpush1.bf16.msra.mxu1 %v13132_v24  ;;  %v13245_v22 = vcombine.high %v537_v13, %v545_v15  ;;  %v561_v24 = vld [vmem:[#allocation2 + $0xad8] sm:$0xff]  ;;  %v648_v13 = vld [vmem:[#allocation2 + $0xd90] sm:$0xff] }
 0x1ec   :  { %6798 = vmatprep.subr.bf16.mxu0 %v13147_v26  ;;  %6962 = vmatprep.subr.bf16.mxu1 %v13149_v31  ;;  %v13242_v26 = vcombine.low %v536_v11, %v544_v12  ;;  %v576_v31 = vld [vmem:[#allocation2 + $0xb50] sm:$0xff]  ;;  %v13260_v37 = vcombine.low %v553_v21, %v561_v24  ;;  %v649_v15 = vld [vmem:[#allocation2 + $0xd98] sm:$0xff] }
 0x1ed   :  { %v13275_v38 = vcombine.high %v568_v30, %v576_v31 }
 0x1ef   :  { %6799 = vmatpush1.bf16.msra.mxu0 %v13146_v34  ;;  %6963 = vmatpush1.bf16.msra.mxu1 %v13148_v35  ;;  %v13261_v34 = vcombine.high %v553_v21, %v561_v24  ;;  %v577_v35 = vld [vmem:[#allocation2 + $0xb58] sm:$0xff]  ;;  %v664_v21 = vld [vmem:[#allocation2 + $0xe10] sm:$0xff] }
 0x1f0   :  { %6800 = vmatprep.subr.bf16.mxu0 %v13163_v63  ;;  %6964 = vmatprep.subr.bf16.mxu1 %v13165_v39  ;;  %v13258_v63 = vcombine.low %v552_v59, %v560_v20  ;;  %v592_v39 = vld [vmem:[#allocation2 + $0xbd0] sm:$0xff]  ;;  %v13277_v40 = vcombine.high %v569_v32, %v577_v35  ;;  %v13276_v46 = vcombine.low %v569_v32, %v577_v35  ;;  %v665_v24 = vld [vmem:[#allocation2 + $0xe18] sm:$0xff] }
 0x1f1   :  { %v13291_v47 = vcombine.high %v584_v57, %v592_v39  ;;  %v680_v32 = vld [vmem:[#allocation2 + $0xe90] sm:$0xff]  ;;  %v681_v35 = vld [vmem:[#allocation2 + $0xe98] sm:$0xff] }
 0x1f3   :  { %6801 = vmatpush1.bf16.msra.mxu0 %v13162_v41  ;;  %6965 = vmatpush1.bf16.msra.mxu1 %v13164_v42  ;;  %v585_v41 = vld [vmem:[#allocation2 + $0xb98] sm:$0xff] }
 0x1f4   :  { %6811 = vmatprep.subr.bf16.mxu0 %v13179_v45  ;;  %6975 = vmatprep.subr.bf16.mxu1 %v13181_v49  ;;  %v593_v42 = vld [vmem:[#allocation2 + $0xbd8] sm:$0xff]  ;;  %v13274_v45 = vcombine.low %v568_v30, %v576_v31  ;;  %v608_v49 = vld [vmem:[#allocation2 + $0xc50] sm:$0xff] }
 0x1f5   :  { %v13292_v55 = vcombine.low %v585_v41, %v593_v42  ;;  %v13307_v56 = vcombine.high %v600_v48, %v608_v49 }
 0x1f6   :  { %6803 = vmatmul.mubr.bf16.vlgmr.msra.gmra.mrb[4].mxu0 %v16211_v25  ;;  %6967 = vmatmul.mubr.bf16.vlgmr.msra.gmra.mrb[4].mxu1 %v16211_v25 }
 0x1f7   :  { %6812 = vmatpush1.bf16.msra.mxu0 %v13178_v51  ;;  %6976 = vmatpush1.bf16.msra.mxu1 %v13180_v52  ;;  %v13293_v51 = vcombine.high %v585_v41, %v593_v42  ;;  %v609_v52 = vld [vmem:[#allocation2 + $0xc58] sm:$0xff]  ;;  %v704_v41 = vld [vmem:[#allocation2 + $0xf50] sm:$0xff] }
 0x1f8   :  { %6813 = vmatprep.subr.bf16.mxu0 %v13195_v16  ;;  %6977 = vmatprep.subr.bf16.mxu1 %v13197_v23  ;;  %v13290_v16 = vcombine.low %v584_v57, %v592_v39  ;;  %v624_v23 = vld [vmem:[#allocation2 + $0xcd0] sm:$0xff]  ;;  %v13308_v1 = vcombine.low %v601_v50, %v609_v52  ;;  %v697_v42 = vld [vmem:[#allocation2 + $0xf18] sm:$0xff] }
 0x1f9   :  { %6843 = vmatprep.mubr.bf16.mxu0 %v16213_v36  ;;  %7007 = vmatprep.mubr.bf16.mxu1 %v16213_v36  ;;  %v13323_v2 = vcombine.high %v616_v58, %v624_v23 }
 0x1fb   :  { %6814 = vmatpush1.bf16.msra.mxu0 %v13194_v61  ;;  %6978 = vmatpush1.bf16.msra.mxu1 %v13196_v62  ;;  %v13309_v61 = vcombine.high %v601_v50, %v609_v52  ;;  %v625_v62 = vld [vmem:[#allocation2 + $0xcd8] sm:$0xff]  ;;  %v712_v50 = vld [vmem:[#allocation2 + $0xf90] sm:$0xff] }
 0x1fc   :  { %6815 = vmatprep.subr.bf16.mxu0 %v13211_v0  ;;  %6979 = vmatprep.subr.bf16.mxu1 %v13213_v5  ;;  %v13306_v0 = vcombine.low %v600_v48, %v608_v49  ;;  %v640_v5 = vld [vmem:[#allocation2 + $0xd50] sm:$0xff]  ;;  %v13324_v11 = vcombine.low %v617_v60, %v625_v62  ;;  %v713_v52 = vld [vmem:[#allocation2 + $0xf98] sm:$0xff] }
 0x1fd   :  { %v13339_v12 = vcombine.high %v632_v3, %v640_v5 }
 0x1ff   :  { %6816 = vmatpush1.bf16.msra.mxu0 %v13210_v7  ;;  %6980 = vmatpush1.bf16.msra.mxu1 %v13212_v8  ;;  %v13325_v7 = vcombine.high %v617_v60, %v625_v62  ;;  %v641_v8 = vld [vmem:[#allocation2 + $0xd58] sm:$0xff]  ;;  %v728_v60 = vld [vmem:[#allocation2 + $0x1010] sm:$0xff] }
 0x200   :  { %6817 = vmatprep.subr.bf16.mxu0 %v13227_v10  ;;  %6981 = vmatprep.subr.bf16.mxu1 %v13229_v33  ;;  %v13322_v10 = vcombine.low %v616_v58, %v624_v23  ;;  %v656_v33 = vld [vmem:[#allocation2 + $0xdd0] sm:$0xff]  ;;  %v13340_v59 = vcombine.low %v633_v6, %v641_v8  ;;  %v729_v62 = vld [vmem:[#allocation2 + $0x1018] sm:$0xff] }
 0x201   :  { %v13355_v20 = vcombine.high %v648_v13, %v656_v33 }
 0x203   :  { %6818 = vmatpush1.bf16.msra.mxu0 %v13226_v17  ;;  %6982 = vmatpush1.bf16.msra.mxu1 %v13228_v18  ;;  %v13341_v17 = vcombine.high %v633_v6, %v641_v8  ;;  %v657_v18 = vld [vmem:[#allocation2 + $0xdd8] sm:$0xff]  ;;  %v744_v6 = vld [vmem:[#allocation2 + $0x1090] sm:$0xff] }
 0x204   :  { %6819 = vmatprep.subr.bf16.mxu0 %v13243_v19  ;;  %6983 = vmatprep.subr.bf16.mxu1 %v13245_v22  ;;  %v13338_v19 = vcombine.low %v632_v3, %v640_v5  ;;  %v672_v22 = vld [vmem:[#allocation2 + $0xe50] sm:$0xff]  ;;  %v13356_v30 = vcombine.low %v649_v15, %v657_v18  ;;  %v745_v8 = vld [vmem:[#allocation2 + $0x1098] sm:$0xff] }
 0x205   :  { %v13371_v31 = vcombine.high %v664_v21, %v672_v22 }
 0x207   :  { %6820 = vmatpush1.bf16.msra.mxu0 %v13242_v26  ;;  %6984 = vmatpush1.bf16.msra.mxu1 %v13244_v27  ;;  %v13357_v26 = vcombine.high %v649_v15, %v657_v18  ;;  %v673_v27 = vld [vmem:[#allocation2 + $0xe58] sm:$0xff]  ;;  %v768_v18 = vld [vmem:[#allocation2 + $0x1150] sm:$0xff] }
 0x208   :  { %6821 = vmatprep.subr.bf16.mxu0 %v13259_v29  ;;  %6985 = vmatprep.subr.bf16.mxu1 %v13261_v34  ;;  %v13354_v29 = vcombine.low %v648_v13, %v656_v33  ;;  %v688_v34 = vld [vmem:[#allocation2 + $0xed0] sm:$0xff]  ;;  %v13372_v57 = vcombine.low %v665_v24, %v673_v27 }
 0x209   :  { %v13387_v39 = vcombine.high %v680_v32, %v688_v34 }
 0x20b   :  { %6822 = vmatpush1.bf16.msra.mxu0 %v13258_v63  ;;  %6986 = vmatpush1.bf16.msra.mxu1 %v13260_v37  ;;  %v13373_v63 = vcombine.high %v665_v24, %v673_v27  ;;  %v689_v37 = vld [vmem:[#allocation2 + $0xed8] sm:$0xff]  ;;  %v784_v27 = vld [vmem:[#allocation2 + $0x11d0] sm:$0xff] }
 0x20c   :  { %6823 = vmatprep.subr.bf16.mxu0 %v13275_v38  ;;  %6987 = vmatprep.subr.bf16.mxu1 %v13277_v40  ;;  %v13370_v38 = vcombine.low %v664_v21, %v672_v22  ;;  %v696_v40 = vld [vmem:[#allocation2 + $0xf10] sm:$0xff]  ;;  %v13388_v48 = vcombine.low %v681_v35, %v689_v37 }
 0x20d   :  { %v13403_v49 = vcombine.high %v696_v40, %v704_v41 }
 0x20f   :  { %6824 = vmatpush1.bf16.msra.mxu0 %v13274_v45  ;;  %6988 = vmatpush1.bf16.msra.mxu1 %v13276_v46  ;;  %v13389_v45 = vcombine.high %v681_v35, %v689_v37  ;;  %v705_v46 = vld [vmem:[#allocation2 + $0xf58] sm:$0xff]  ;;  %v800_v37 = vld [vmem:[#allocation2 + $0x1250] sm:$0xff] }
 0x210   :  { %6825 = vmatprep.subr.bf16.mxu0 %v13291_v47  ;;  %6989 = vmatprep.subr.bf16.mxu1 %v13293_v51  ;;  %v13386_v47 = vcombine.low %v680_v32, %v688_v34  ;;  %v720_v51 = vld [vmem:[#allocation2 + $0xfd0] sm:$0xff]  ;;  %v13404_v58 = vcombine.low %v697_v42, %v705_v46 }
 0x211   :  { %v13419_v23 = vcombine.high %v712_v50, %v720_v51 }
 0x213   :  { %6826 = vmatpush1.bf16.msra.mxu0 %v13290_v16  ;;  %6990 = vmatpush1.bf16.msra.mxu1 %v13292_v55  ;;  %v13405_v16 = vcombine.high %v697_v42, %v705_v46  ;;  %v721_v55 = vld [vmem:[#allocation2 + $0xfd8] sm:$0xff]  ;;  %v816_v46 = vld [vmem:[#allocation2 + $0x12d0] sm:$0xff] }
 0x214   :  { %6827 = vmatprep.subr.bf16.mxu0 %v13307_v56  ;;  %6991 = vmatprep.subr.bf16.mxu1 %v13309_v61  ;;  %v13402_v56 = vcombine.low %v696_v40, %v704_v41  ;;  %v736_v61 = vld [vmem:[#allocation2 + $0x1050] sm:$0xff]  ;;  %v13420_v3 = vcombine.low %v713_v52, %v721_v55 }
 0x215   :  { %v13435_v5 = vcombine.high %v728_v60, %v736_v61 }
 0x217   :  { %6828 = vmatpush1.bf16.msra.mxu0 %v13306_v0  ;;  %6992 = vmatpush1.bf16.msra.mxu1 %v13308_v1  ;;  %v13421_v0 = vcombine.high %v713_v52, %v721_v55  ;;  %v737_v1 = vld [vmem:[#allocation2 + $0x1058] sm:$0xff]  ;;  %v832_v55 = vld [vmem:[#allocation2 + $0x1350] sm:$0xff] }
 0x218   :  { %6829 = vmatprep.subr.bf16.mxu0 %v13323_v2  ;;  %6993 = vmatprep.subr.bf16.mxu1 %v13325_v7  ;;  %v13418_v2 = vcombine.low %v712_v50, %v720_v51  ;;  %v752_v7 = vld [vmem:[#allocation2 + $0x10d0] sm:$0xff]  ;;  %v13436_v13 = vcombine.low %v729_v62, %v737_v1 }
 0x219   :  { %v13451_v33 = vcombine.high %v744_v6, %v752_v7 }
 0x21b   :  { %6830 = vmatpush1.bf16.msra.mxu0 %v13322_v10  ;;  %6994 = vmatpush1.bf16.msra.mxu1 %v13324_v11  ;;  %v13437_v10 = vcombine.high %v729_v62, %v737_v1  ;;  %v753_v11 = vld [vmem:[#allocation2 + $0x10d8] sm:$0xff]  ;;  %v848_v1 = vld [vmem:[#allocation2 + $0x13d0] sm:$0xff] }
 0x21c   :  { %6831 = vmatprep.subr.bf16.mxu0 %v13339_v12  ;;  %6995 = vmatprep.subr.bf16.mxu1 %v13341_v17  ;;  %v13434_v12 = vcombine.low %v728_v60, %v736_v61  ;;  %v13453_v15 = vcombine.high %v745_v8, %v753_v11  ;;  %v760_v17 = vld [vmem:[#allocation2 + $0x1110] sm:$0xff]  ;;  %v13452_v21 = vcombine.low %v745_v8, %v753_v11 }
 0x21d   :  { %v13467_v22 = vcombine.high %v760_v17, %v768_v18  ;;  %v864_v11 = vld [vmem:[#allocation2 + $0x1450] sm:$0xff] }
 0x21f   :  { %6832 = vmatpush1.bf16.msra.mxu0 %v13338_v19  ;;  %6996 = vmatpush1.bf16.msra.mxu1 %v13340_v59  ;;  %v761_v19 = vld [vmem:[#allocation2 + $0x1118] sm:$0xff] }
 0x220   :  { %6833 = vmatprep.subr.bf16.mxu0 %v13355_v20  ;;  %6997 = vmatprep.subr.bf16.mxu1 %v13357_v26  ;;  %v769_v59 = vld [vmem:[#allocation2 + $0x1158] sm:$0xff]  ;;  %v13450_v20 = vcombine.low %v744_v6, %v752_v7  ;;  %v776_v26 = vld [vmem:[#allocation2 + $0x1190] sm:$0xff] }
 0x221   :  { %v13469_v24 = vcombine.high %v761_v19, %v769_v59  ;;  %v13468_v32 = vcombine.low %v761_v19, %v769_v59  ;;  %v13483_v34 = vcombine.high %v776_v26, %v784_v27  ;;  %v872_v19 = vld [vmem:[#allocation2 + $0x1490] sm:$0xff] }
 0x222   :  { %v880_v59 = vld [vmem:[#allocation2 + $0x14d0] sm:$0xff] }
 0x223   :  { %6834 = vmatpush1.bf16.msra.mxu0 %v13354_v29  ;;  %6998 = vmatpush1.bf16.msra.mxu1 %v13356_v30  ;;  %v777_v29 = vld [vmem:[#allocation2 + $0x1198] sm:$0xff] }
 0x224   :  { %6835 = vmatprep.subr.bf16.mxu0 %v13371_v31  ;;  %6999 = vmatprep.subr.bf16.mxu1 %v13373_v63  ;;  %v785_v30 = vld [vmem:[#allocation2 + $0x11d8] sm:$0xff]  ;;  %v13466_v31 = vcombine.low %v760_v17, %v768_v18  ;;  %v792_v63 = vld [vmem:[#allocation2 + $0x1210] sm:$0xff] }
 0x225   :  { %v13485_v35 = vcombine.high %v777_v29, %v785_v30  ;;  %v13484_v40 = vcombine.low %v777_v29, %v785_v30  ;;  %v13499_v41 = vcombine.high %v792_v63, %v800_v37  ;;  %v888_v29 = vld [vmem:[#allocation2 + $0x1510] sm:$0xff] }
 0x226   :  { %v896_v30 = vld [vmem:[#allocation2 + $0x1550] sm:$0xff] }
 0x227   :  { %6836 = vmatpush1.bf16.msra.mxu0 %v13370_v38  ;;  %7000 = vmatpush1.bf16.msra.mxu1 %v13372_v57  ;;  %v793_v38 = vld [vmem:[#allocation2 + $0x1218] sm:$0xff] }
 0x228   :  { %6837 = vmatprep.subr.bf16.mxu0 %v13387_v39  ;;  %7001 = vmatprep.subr.bf16.mxu1 %v13389_v45  ;;  %v801_v57 = vld [vmem:[#allocation2 + $0x1258] sm:$0xff]  ;;  %v13482_v39 = vcombine.low %v776_v26, %v784_v27  ;;  %v808_v45 = vld [vmem:[#allocation2 + $0x1290] sm:$0xff]  ;;  %v13579_v26 = vcombine.high %v872_v19, %v880_v59 }
 0x229   :  { %v13501_v42 = vcombine.high %v793_v38, %v801_v57  ;;  %v13500_v50 = vcombine.low %v793_v38, %v801_v57  ;;  %v13515_v51 = vcombine.high %v808_v45, %v816_v46  ;;  %v904_v38 = vld [vmem:[#allocation2 + $0x1590] sm:$0xff] }
 0x22a   :  { %v912_v57 = vld [vmem:[#allocation2 + $0x15d0] sm:$0xff] }
 0x22b   :  { %6838 = vmatpush1.bf16.msra.mxu0 %v13386_v47  ;;  %7002 = vmatpush1.bf16.msra.mxu1 %v13388_v48  ;;  %v809_v47 = vld [vmem:[#allocation2 + $0x1298] sm:$0xff] }
 0x22c   :  { %6839 = vmatprep.subr.bf16.mxu0 %v13403_v49  ;;  %7003 = vmatprep.subr.bf16.mxu1 %v13405_v16  ;;  %v817_v48 = vld [vmem:[#allocation2 + $0x12d8] sm:$0xff]  ;;  %v13498_v49 = vcombine.low %v792_v63, %v800_v37  ;;  %v824_v16 = vld [vmem:[#allocation2 + $0x1310] sm:$0xff]  ;;  %v13595_v63 = vcombine.high %v888_v29, %v896_v30 }
 0x22d   :  { %v13517_v52 = vcombine.high %v809_v47, %v817_v48  ;;  %v13516_v60 = vcombine.low %v809_v47, %v817_v48  ;;  %v13531_v61 = vcombine.high %v824_v16, %v832_v55  ;;  %v920_v47 = vld [vmem:[#allocation2 + $0x1610] sm:$0xff] }
 0x22e   :  { %v928_v48 = vld [vmem:[#allocation2 + $0x1650] sm:$0xff] }
 0x22f   :  { %6840 = vmatpush1.bf16.msra.mxu0 %v13402_v56  ;;  %7004 = vmatpush1.bf16.msra.mxu1 %v13404_v58  ;;  %v825_v56 = vld [vmem:[#allocation2 + $0x1318] sm:$0xff] }
 0x230   :  { %6841 = vmatprep.subr.bf16.mxu0 %v13419_v23  ;;  %7005 = vmatprep.subr.bf16.mxu1 %v13421_v0  ;;  %v833_v58 = vld [vmem:[#allocation2 + $0x1358] sm:$0xff]  ;;  %v13514_v23 = vcombine.low %v808_v45, %v816_v46  ;;  %v840_v0 = vld [vmem:[#allocation2 + $0x1390] sm:$0xff]  ;;  %v13611_v45 = vcombine.high %v904_v38, %v912_v57 }
 0x231   :  { %v13533_v62 = vcombine.high %v825_v56, %v833_v58  ;;  %v13532_v6 = vcombine.low %v825_v56, %v833_v58  ;;  %v13547_v7 = vcombine.high %v840_v0, %v848_v1  ;;  %v936_v56 = vld [vmem:[#allocation2 + $0x1690] sm:$0xff] }
 0x232   :  { %v944_v58 = vld [vmem:[#allocation2 + $0x16d0] sm:$0xff] }
 0x233   :  { %6842 = vmatpush1.bf16.msra.mxu0 %v13418_v2  ;;  %7006 = vmatpush1.bf16.msra.mxu1 %v13420_v3  ;;  %v841_v2 = vld [vmem:[#allocation2 + $0x1398] sm:$0xff] }
 0x234   :  { %6852 = vmatprep.subr.bf16.mxu0 %v13435_v5  ;;  %7016 = vmatprep.subr.bf16.mxu1 %v13437_v10  ;;  %v849_v3 = vld [vmem:[#allocation2 + $0x13d8] sm:$0xff]  ;;  %v13530_v5 = vcombine.low %v824_v16, %v832_v55  ;;  %v856_v10 = vld [vmem:[#allocation2 + $0x1410] sm:$0xff]  ;;  %v13627_v16 = vcombine.high %v920_v47, %v928_v48 }
 0x235   :  { %v13549_v8 = vcombine.high %v841_v2, %v849_v3  ;;  %v13563_v17 = vcombine.high %v856_v10, %v864_v11 }
 0x236   :  { %6844 = vmatmul.mubr.bf16.vlgmr.msra.gmra.mrb[4].mxu0 %v16232_v43  ;;  %7008 = vmatmul.mubr.bf16.vlgmr.msra.gmra.mrb[4].mxu1 %v16232_v43 }
 0x237   :  { %6853 = vmatpush1.bf16.msra.mxu0 %v13434_v12  ;;  %7017 = vmatpush1.bf16.msra.mxu1 %v13436_v13  ;;  %v857_v12 = vld [vmem:[#allocation2 + $0x1418] sm:$0xff] }
 0x238   :  { %6854 = vmatprep.subr.bf16.mxu0 %v13451_v33  ;;  %7018 = vmatprep.subr.bf16.mxu1 %v13453_v15  ;;  %v865_v13 = vld [vmem:[#allocation2 + $0x1458] sm:$0xff]  ;;  %v13546_v33 = vcombine.low %v840_v0, %v848_v1  ;;  %v13548_v15 = vcombine.low %v841_v2, %v849_v3  ;;  %v13643_v0 = vcombine.high %v936_v56, %v944_v58  ;;  %v952_v2 = vld [vmem:[#allocation2 + $0x1710] sm:$0xff] }
 0x239   :  { %6884 = vmatprep.mubr.bf16.mxu0 %v16234_v54  ;;  %7048 = vmatprep.mubr.bf16.mxu1 %v16234_v54  ;;  %v13565_v18 = vcombine.high %v857_v12, %v865_v13  ;;  %v960_v3 = vld [vmem:[#allocation2 + $0x1750] sm:$0xff] }
 0x23b   :  { %6855 = vmatpush1.bf16.msra.mxu0 %v13450_v20  ;;  %7019 = vmatpush1.bf16.msra.mxu1 %v13452_v21  ;;  %v873_v20 = vld [vmem:[#allocation2 + $0x1498] sm:$0xff] }
 0x23c   :  { %6856 = vmatprep.subr.bf16.mxu0 %v13467_v22  ;;  %7020 = vmatprep.subr.bf16.mxu1 %v13469_v24  ;;  %v881_v21 = vld [vmem:[#allocation2 + $0x14d8] sm:$0xff]  ;;  %v13562_v22 = vcombine.low %v856_v10, %v864_v11  ;;  %v13564_v24 = vcombine.low %v857_v12, %v865_v13  ;;  %v13659_v10 = vcombine.high %v952_v2, %v960_v3  ;;  %v968_v12 = vld [vmem:[#allocation2 + $0x1790] sm:$0xff] }
 0x23d   :  { %v13581_v27 = vcombine.high %v873_v20, %v881_v21  ;;  %v976_v13 = vld [vmem:[#allocation2 + $0x17d0] sm:$0xff] }
 0x23f   :  { %6857 = vmatpush1.bf16.msra.mxu0 %v13466_v31  ;;  %7021 = vmatpush1.bf16.msra.mxu1 %v13468_v32  ;;  %v889_v31 = vld [vmem:[#allocation2 + $0x1518] sm:$0xff] }
 0x240   :  { %6858 = vmatprep.subr.bf16.mxu0 %v13483_v34  ;;  %7022 = vmatprep.subr.bf16.mxu1 %v13485_v35  ;;  %v897_v32 = vld [vmem:[#allocation2 + $0x1558] sm:$0xff]  ;;  %v13578_v34 = vcombine.low %v872_v19, %v880_v59  ;;  %v13580_v35 = vcombine.low %v873_v20, %v881_v21  ;;  %v13675_v19 = vcombine.high %v968_v12, %v976_v13  ;;  %v984_v20 = vld [vmem:[#allocation2 + $0x1810] sm:$0xff] }
 0x241   :  { %v13597_v37 = vcombine.high %v889_v31, %v897_v32  ;;  %v992_v21 = vld [vmem:[#allocation2 + $0x1850] sm:$0xff] }
 0x243   :  { %6859 = vmatpush1.bf16.msra.mxu0 %v13482_v39  ;;  %7023 = vmatpush1.bf16.msra.mxu1 %v13484_v40  ;;  %v905_v39 = vld [vmem:[#allocation2 + $0x1598] sm:$0xff] }
 0x244   :  { %6860 = vmatprep.subr.bf16.mxu0 %v13499_v41  ;;  %7024 = vmatprep.subr.bf16.mxu1 %v13501_v42  ;;  %v913_v40 = vld [vmem:[#allocation2 + $0x15d8] sm:$0xff]  ;;  %v13594_v41 = vcombine.low %v888_v29, %v896_v30  ;;  %v13596_v42 = vcombine.low %v889_v31, %v897_v32  ;;  %v13691_v29 = vcombine.high %v984_v20, %v992_v21  ;;  %v1000_v31 = vld [vmem:[#allocation2 + $0x1890] sm:$0xff] }
 0x245   :  { %v13613_v46 = vcombine.high %v905_v39, %v913_v40  ;;  %v1008_v32 = vld [vmem:[#allocation2 + $0x18d0] sm:$0xff] }
 0x247   :  { %6861 = vmatpush1.bf16.msra.mxu0 %v13498_v49  ;;  %7025 = vmatpush1.bf16.msra.mxu1 %v13500_v50  ;;  %v921_v49 = vld [vmem:[#allocation2 + $0x1618] sm:$0xff] }
 0x248   :  { %6862 = vmatprep.subr.bf16.mxu0 %v13515_v51  ;;  %7026 = vmatprep.subr.bf16.mxu1 %v13517_v52  ;;  %v929_v50 = vld [vmem:[#allocation2 + $0x1658] sm:$0xff]  ;;  %v13610_v51 = vcombine.low %v904_v38, %v912_v57  ;;  %v13612_v52 = vcombine.low %v905_v39, %v913_v40  ;;  %v13707_v38 = vcombine.high %v1000_v31, %v1008_v32  ;;  %v1016_v39 = vld [vmem:[#allocation2 + $0x1910] sm:$0xff] }
 0x249   :  { %v13629_v55 = vcombine.high %v921_v49, %v929_v50  ;;  %v1024_v40 = vld [vmem:[#allocation2 + $0x1950] sm:$0xff] }
 0x24b   :  { %6863 = vmatpush1.bf16.msra.mxu0 %v13514_v23  ;;  %7027 = vmatpush1.bf16.msra.mxu1 %v13516_v60  ;;  %v937_v23 = vld [vmem:[#allocation2 + $0x1698] sm:$0xff] }
 0x24c   :  { %6864 = vmatprep.subr.bf16.mxu0 %v13531_v61  ;;  %7028 = vmatprep.subr.bf16.mxu1 %v13533_v62  ;;  %v945_v60 = vld [vmem:[#allocation2 + $0x16d8] sm:$0xff]  ;;  %v13626_v61 = vcombine.low %v920_v47, %v928_v48  ;;  %v13628_v62 = vcombine.low %v921_v49, %v929_v50  ;;  %v13723_v47 = vcombine.high %v1016_v39, %v1024_v40  ;;  %v1032_v49 = vld [vmem:[#allocation2 + $0x1990] sm:$0xff] }
 0x24d   :  { %v13645_v1 = vcombine.high %v937_v23, %v945_v60  ;;  %v1040_v50 = vld [vmem:[#allocation2 + $0x19d0] sm:$0xff] }
 0x24f   :  { %6865 = vmatpush1.bf16.msra.mxu0 %v13530_v5  ;;  %7029 = vmatpush1.bf16.msra.mxu1 %v13532_v6  ;;  %v953_v5 = vld [vmem:[#allocation2 + $0x1718] sm:$0xff] }
 0x250   :  { %6866 = vmatprep.subr.bf16.mxu0 %v13547_v7  ;;  %7030 = vmatprep.subr.bf16.mxu1 %v13549_v8  ;;  %v961_v6 = vld [vmem:[#allocation2 + $0x1758] sm:$0xff]  ;;  %v13642_v7 = vcombine.low %v936_v56, %v944_v58  ;;  %v13644_v8 = vcombine.low %v937_v23, %v945_v60  ;;  %v13739_v56 = vcombine.high %v1032_v49, %v1040_v50  ;;  %v1048_v23 = vld [vmem:[#allocation2 + $0x1a10] sm:$0xff] }
 0x251   :  { %v13661_v11 = vcombine.high %v953_v5, %v961_v6  ;;  %v1056_v60 = vld [vmem:[#allocation2 + $0x1a50] sm:$0xff] }
 0x253   :  { %6867 = vmatpush1.bf16.msra.mxu0 %v13546_v33  ;;  %7031 = vmatpush1.bf16.msra.mxu1 %v13548_v15  ;;  %v969_v33 = vld [vmem:[#allocation2 + $0x1798] sm:$0xff] }
 0x254   :  { %6868 = vmatprep.subr.bf16.mxu0 %v13563_v17  ;;  %7032 = vmatprep.subr.bf16.mxu1 %v13565_v18  ;;  %v977_v15 = vld [vmem:[#allocation2 + $0x17d8] sm:$0xff]  ;;  %v13658_v17 = vcombine.low %v952_v2, %v960_v3  ;;  %v13660_v18 = vcombine.low %v953_v5, %v961_v6  ;;  %v13755_v2 = vcombine.high %v1048_v23, %v1056_v60  ;;  %v1064_v5 = vld [vmem:[#allocation2 + $0x1a90] sm:$0xff] }
 0x255   :  { %v13677_v59 = vcombine.high %v969_v33, %v977_v15  ;;  %v1072_v6 = vld [vmem:[#allocation2 + $0x1ad0] sm:$0xff] }
 0x257   :  { %6869 = vmatpush1.bf16.msra.mxu0 %v13562_v22  ;;  %7033 = vmatpush1.bf16.msra.mxu1 %v13564_v24  ;;  %v985_v22 = vld [vmem:[#allocation2 + $0x1818] sm:$0xff] }
 0x258   :  { %6870 = vmatprep.subr.bf16.mxu0 %v13579_v26  ;;  %7034 = vmatprep.subr.bf16.mxu1 %v13581_v27  ;;  %v993_v24 = vld [vmem:[#allocation2 + $0x1858] sm:$0xff]  ;;  %v13674_v26 = vcombine.low %v968_v12, %v976_v13  ;;  %v13676_v27 = vcombine.low %v969_v33, %v977_v15  ;;  %v13771_v12 = vcombine.high %v1064_v5, %v1072_v6  ;;  %v1080_v33 = vld [vmem:[#allocation2 + $0x1b10] sm:$0xff] }
 0x259   :  { %v13693_v30 = vcombine.high %v985_v22, %v993_v24  ;;  %v1088_v15 = vld [vmem:[#allocation2 + $0x1b50] sm:$0xff] }
 0x25b   :  { %6871 = vmatpush1.bf16.msra.mxu0 %v13578_v34  ;;  %7035 = vmatpush1.bf16.msra.mxu1 %v13580_v35  ;;  %v1001_v34 = vld [vmem:[#allocation2 + $0x1898] sm:$0xff] }
 0x25c   :  { %6872 = vmatprep.subr.bf16.mxu0 %v13595_v63  ;;  %7036 = vmatprep.subr.bf16.mxu1 %v13597_v37  ;;  %v1009_v35 = vld [vmem:[#allocation2 + $0x18d8] sm:$0xff]  ;;  %v13690_v63 = vcombine.low %v984_v20, %v992_v21  ;;  %v13692_v37 = vcombine.low %v985_v22, %v993_v24  ;;  %v13787_v20 = vcombine.high %v1080_v33, %v1088_v15  ;;  %v1096_v24 = vld [vmem:[#allocation2 + $0x1b90] sm:$0xff] }
 0x25d   :  { %v13709_v57 = vcombine.high %v1001_v34, %v1009_v35 }
 0x25f   :  { %6873 = vmatpush1.bf16.msra.mxu0 %v13594_v41  ;;  %7037 = vmatpush1.bf16.msra.mxu1 %v13596_v42  ;;  %v1017_v41 = vld [vmem:[#allocation2 + $0x1918] sm:$0xff] }
 0x260   :  { %6874 = vmatprep.subr.bf16.mxu0 %v13611_v45  ;;  %7038 = vmatprep.subr.bf16.mxu1 %v13613_v46  ;;  %v1025_v42 = vld [vmem:[#allocation2 + $0x1958] sm:$0xff]  ;;  %v13706_v45 = vcombine.low %v1000_v31, %v1008_v32  ;;  %v13708_v46 = vcombine.low %v1001_v34, %v1009_v35  ;;  %v13786_v35 = vcombine.low %v1080_v33, %v1088_v15 }
 0x261   :  { %v13725_v48 = vcombine.high %v1017_v41, %v1025_v42  ;;  %v1105_v31 = vld [vmem:[#allocation2 + $0x1bd8] sm:$0xff] }
 0x263   :  { %6875 = vmatpush1.bf16.msra.mxu0 %v13610_v51  ;;  %7039 = vmatpush1.bf16.msra.mxu1 %v13612_v52  ;;  %v1033_v51 = vld [vmem:[#allocation2 + $0x1998] sm:$0xff] }
 0x264   :  { %6876 = vmatprep.subr.bf16.mxu0 %v13627_v16  ;;  %7040 = vmatprep.subr.bf16.mxu1 %v13629_v55  ;;  %v1041_v52 = vld [vmem:[#allocation2 + $0x19d8] sm:$0xff]  ;;  %v13722_v16 = vcombine.low %v1016_v39, %v1024_v40  ;;  %v13724_v55 = vcombine.low %v1017_v41, %v1025_v42  ;;  %v1112_v41 = vld [vmem:[#allocation2 + $0x1c10] sm:$0xff] }
 0x265   :  { %v13741_v58 = vcombine.high %v1033_v51, %v1041_v52  ;;  %v1120_v42 = vld [vmem:[#allocation2 + $0x1c50] sm:$0xff] }
 0x267   :  { %6877 = vmatpush1.bf16.msra.mxu0 %v13626_v61  ;;  %7041 = vmatpush1.bf16.msra.mxu1 %v13628_v62  ;;  %v1049_v61 = vld [vmem:[#allocation2 + $0x1a18] sm:$0xff] }
 0x268   :  { %6878 = vmatprep.subr.bf16.mxu0 %v13643_v0  ;;  %7042 = vmatprep.subr.bf16.mxu1 %v13645_v1  ;;  %v1057_v62 = vld [vmem:[#allocation2 + $0x1a58] sm:$0xff]  ;;  %v13738_v0 = vcombine.low %v1032_v49, %v1040_v50  ;;  %v13740_v1 = vcombine.low %v1033_v51, %v1041_v52  ;;  %v13819_v49 = vcombine.high %v1112_v41, %v1120_v42  ;;  %v1128_v51 = vld [vmem:[#allocation2 + $0x1c90] sm:$0xff] }
 0x269   :  { %v13757_v3 = vcombine.high %v1049_v61, %v1057_v62  ;;  %v1136_v52 = vld [vmem:[#allocation2 + $0x1cd0] sm:$0xff] }
 0x26b   :  { %6879 = vmatpush1.bf16.msra.mxu0 %v13642_v7  ;;  %7043 = vmatpush1.bf16.msra.mxu1 %v13644_v8  ;;  %v1065_v7 = vld [vmem:[#allocation2 + $0x1a98] sm:$0xff] }
 0x26c   :  { %6880 = vmatprep.subr.bf16.mxu0 %v13659_v10  ;;  %7044 = vmatprep.subr.bf16.mxu1 %v13661_v11  ;;  %v1073_v8 = vld [vmem:[#allocation2 + $0x1ad8] sm:$0xff]  ;;  %v13754_v10 = vcombine.low %v1048_v23, %v1056_v60  ;;  %v13756_v11 = vcombine.low %v1049_v61, %v1057_v62  ;;  %v13835_v23 = vcombine.high %v1128_v51, %v1136_v52  ;;  %v1144_v61 = vld [vmem:[#allocation2 + $0x1d10] sm:$0xff] }
 0x26d   :  { %v13773_v13 = vcombine.high %v1065_v7, %v1073_v8  ;;  %v1152_v62 = vld [vmem:[#allocation2 + $0x1d50] sm:$0xff] }
 0x26f   :  { %6881 = vmatpush1.bf16.msra.mxu0 %v13658_v17  ;;  %7045 = vmatpush1.bf16.msra.mxu1 %v13660_v18  ;;  %v1081_v17 = vld [vmem:[#allocation2 + $0x1b18] sm:$0xff] }
 0x270   :  { %6882 = vmatprep.subr.bf16.mxu0 %v13675_v19  ;;  %7046 = vmatprep.subr.bf16.mxu1 %v13677_v59  ;;  %v1089_v18 = vld [vmem:[#allocation2 + $0x1b58] sm:$0xff]  ;;  %v13770_v19 = vcombine.low %v1064_v5, %v1072_v6  ;;  %v13772_v59 = vcombine.low %v1065_v7, %v1073_v8  ;;  %v13851_v5 = vcombine.high %v1144_v61, %v1152_v62  ;;  %v1160_v7 = vld [vmem:[#allocation2 + $0x1d90] sm:$0xff] }
 0x271   :  { %v13789_v22 = vcombine.high %v1081_v17, %v1089_v18  ;;  %v1168_v8 = vld [vmem:[#allocation2 + $0x1dd0] sm:$0xff] }
 0x272   :  { %v13867_v33 = vcombine.high %v1160_v7, %v1168_v8 }
 0x273   :  { %6883 = vmatpush1.bf16.msra.mxu0 %v13674_v26  ;;  %7047 = vmatpush1.bf16.msra.mxu1 %v13676_v27  ;;  %v1104_v26 = vld [vmem:[#allocation2 + $0x1bd0] sm:$0xff] }
 0x274   :  { %6893 = vmatprep.subr.bf16.mxu0 %v13691_v29  ;;  %7057 = vmatprep.subr.bf16.mxu1 %v13693_v30  ;;  %v1097_v30 = vld [vmem:[#allocation2 + $0x1b98] sm:$0xff] }
 0x275   :  { %v13805_v40 = vcombine.high %v1097_v30, %v1105_v31 }
 0x276   :  { %6885 = vmatmul.mubr.bf16.vlgmr.msra.gmra.mrb[4].mxu0 %v16249_v4  ;;  %7049 = vmatmul.mubr.bf16.vlgmr.msra.gmra.mrb[4].mxu1 %v16249_v4 }
 0x277   :  { %6894 = vmatpush1.bf16.msra.mxu0 %v13690_v63  ;;  %7058 = vmatpush1.bf16.msra.mxu1 %v13692_v37 }
 0x278   :  { %6895 = vmatprep.subr.bf16.mxu0 %v13707_v38  ;;  %7059 = vmatprep.subr.bf16.mxu1 %v13709_v57  ;;  %v13788_v38 = vcombine.low %v1081_v17, %v1089_v18  ;;  %v13803_v57 = vcombine.high %v1096_v24, %v1104_v26  ;;  %v1176_v17 = vld [vmem:[#allocation2 + $0x1e10] sm:$0xff] }
 0x279   :  { %6925 = vmatprep.mubr.bf16.mxu0 %v16251_v14  ;;  %7089 = vmatprep.mubr.bf16.mxu1 %v16251_v14  ;;  %v1184_v18 = vld [vmem:[#allocation2 + $0x1e50] sm:$0xff] }
 0x27b   :  { %6896 = vmatpush1.bf16.msra.mxu0 %v13706_v45  ;;  %7060 = vmatpush1.bf16.msra.mxu1 %v13708_v46  ;;  %v1113_v45 = vld [vmem:[#allocation2 + $0x1c18] sm:$0xff] }
 0x27c   :  { %6897 = vmatprep.subr.bf16.mxu0 %v13723_v47  ;;  %7061 = vmatprep.subr.bf16.mxu1 %v13725_v48  ;;  %v1121_v46 = vld [vmem:[#allocation2 + $0x1c58] sm:$0xff]  ;;  %v13802_v47 = vcombine.low %v1096_v24, %v1104_v26  ;;  %v13804_v48 = vcombine.low %v1097_v30, %v1105_v31  ;;  %v13883_v24 = vcombine.high %v1176_v17, %v1184_v18  ;;  %v1192_v30 = vld [vmem:[#allocation2 + $0x1e90] sm:$0xff] }
 0x27d   :  { %v13821_v50 = vcombine.high %v1113_v45, %v1121_v46  ;;  %v1200_v31 = vld [vmem:[#allocation2 + $0x1ed0] sm:$0xff] }
 0x27f   :  { %6898 = vmatpush1.bf16.msra.mxu0 %v13722_v16  ;;  %7062 = vmatpush1.bf16.msra.mxu1 %v13724_v55  ;;  %v1129_v16 = vld [vmem:[#allocation2 + $0x1c98] sm:$0xff] }
 0x280   :  { %6899 = vmatprep.subr.bf16.mxu0 %v13739_v56  ;;  %7063 = vmatprep.subr.bf16.mxu1 %v13741_v58  ;;  %v1137_v55 = vld [vmem:[#allocation2 + $0x1cd8] sm:$0xff]  ;;  %v13818_v56 = vcombine.low %v1112_v41, %v1120_v42  ;;  %v13820_v58 = vcombine.low %v1113_v45, %v1121_v46  ;;  %v13898_v45 = vcombine.low %v1192_v30, %v1200_v31 }
 0x281   :  { %v13837_v60 = vcombine.high %v1129_v16, %v1137_v55  ;;  %v1209_v41 = vld [vmem:[#allocation2 + $0x1f18] sm:$0xff] }
 0x282   :  { %v1217_v42 = vld [vmem:[#allocation2 + $0x1f58] sm:$0xff] }
 0x283   :  { %6900 = vmatpush1.bf16.msra.mxu0 %v13738_v0  ;;  %7064 = vmatpush1.bf16.msra.mxu1 %v13740_v1  ;;  %v1145_v0 = vld [vmem:[#allocation2 + $0x1d18] sm:$0xff] }
 0x284   :  { %6901 = vmatprep.subr.bf16.mxu0 %v13755_v2  ;;  %7065 = vmatprep.subr.bf16.mxu1 %v13757_v3  ;;  %v1153_v1 = vld [vmem:[#allocation2 + $0x1d58] sm:$0xff]  ;;  %v13834_v2 = vcombine.low %v1128_v51, %v1136_v52  ;;  %v13836_v3 = vcombine.low %v1129_v16, %v1137_v55  ;;  %v13916_v55 = vcombine.low %v1209_v41, %v1217_v42 }
 0x285   :  { %v13853_v6 = vcombine.high %v1145_v0, %v1153_v1  ;;  %v1225_v51 = vld [vmem:[#allocation2 + $0x1f98] sm:$0xff] }
 0x286   :  { %v1233_v52 = vld [vmem:[#allocation2 + $0x1fd8] sm:$0xff] }
 0x287   :  { %6902 = vmatpush1.bf16.msra.mxu0 %v13754_v10  ;;  %7066 = vmatpush1.bf16.msra.mxu1 %v13756_v11  ;;  %v1161_v10 = vld [vmem:[#allocation2 + $0x1d98] sm:$0xff] }
 0x288   :  { %6903 = vmatprep.subr.bf16.mxu0 %v13771_v12  ;;  %7067 = vmatprep.subr.bf16.mxu1 %v13773_v13  ;;  %v1169_v11 = vld [vmem:[#allocation2 + $0x1dd8] sm:$0xff]  ;;  %v13850_v12 = vcombine.low %v1144_v61, %v1152_v62  ;;  %v13852_v13 = vcombine.low %v1145_v0, %v1153_v1  ;;  %v219_v61 = vld [vmem:[#allocation2 + $0x28] sm:$0xff]  ;;  %v13932_v1 = vcombine.low %v1225_v51, %v1233_v52 }
 0x289   :  { %v16277_v21 = vpop.f32.mrb[0].mxu0  ;;  %v16279_v27 = vpop.f32.mrb[0].mxu1  ;;  %v13869_v15 = vcombine.high %v1161_v10, %v1169_v11  ;;  %v227_v62 = vld [vmem:[#allocation2 + $0x68] sm:$0xff] }
 0x28a   :  { %v16281_v29 = vpop.f32.mrb[1].mxu0  ;;  %v16283_v32 = vpop.f32.mrb[1].mxu1 }
 0x28b   :  { %v6603_v34 = vpop.f32.mrb[2].mxu0  ;;  %6904 = vmatpush1.bf16.msra.mxu0 %v13770_v19  ;;  %v6767_v63 = vpop.f32.mrb[2].mxu1  ;;  %7068 = vmatpush1.bf16.msra.mxu1 %v13772_v59  ;;  %v1177_v19 = vld [vmem:[#allocation2 + $0x1e18] sm:$0xff] }
 0x28c   :  { %v6604_v37 = vpop.f32.mrb[3].mxu0  ;;  %6905 = vmatprep.subr.bf16.mxu0 %v13787_v20  ;;  %v6768_v39 = vpop.f32.mrb[3].mxu1  ;;  %7069 = vmatprep.subr.bf16.mxu1 %v13789_v22  ;;  %v1185_v59 = vld [vmem:[#allocation2 + $0x1e58] sm:$0xff]  ;;  %v13866_v20 = vcombine.low %v1160_v7, %v1168_v8  ;;  %v13868_v22 = vcombine.low %v1161_v10, %v1169_v11  ;;  %v13882_v63 = vcombine.low %v1176_v17, %v1184_v18  ;;  %v235_v7 = vld [vmem:[#allocation2 + $0xa8] sm:$0xff] }
 0x28d   :  { %v13885_v26 = vcombine.high %v1177_v19, %v1185_v59  ;;  %v1193_v34 = vld [vmem:[#allocation2 + $0x1e98] sm:$0xff]  ;;  %v13884_v37 = vcombine.low %v1177_v19, %v1185_v59  ;;  %v1208_v39 = vld [vmem:[#allocation2 + $0x1f10] sm:$0xff]  ;;  %v243_v8 = vld [vmem:[#allocation2 + $0xe8] sm:$0xff]  ;;  %v12928_v11 = vcombine.low %v219_v61, %v227_v62 }
 0x28e   :  { %v251_v17 = vld [vmem:[#allocation2 + $0x128] sm:$0xff]  ;;  %v12944_v59 = vcombine.low %v235_v7, %v243_v8 }
 0x28f   :  { %6906 = vmatpush1.bf16.msra.mxu0 %v13786_v35  ;;  %7070 = vmatpush1.bf16.msra.mxu1 %v13788_v38  ;;  %v1201_v35 = vld [vmem:[#allocation2 + $0x1ed8] sm:$0xff]  ;;  %v13899_v38 = vcombine.high %v1192_v30, %v1200_v31  ;;  %v259_v18 = vld [vmem:[#allocation2 + $0x168] sm:$0xff] }
 0x290   :  { %6907 = vmatprep.subr.bf16.mxu0 %v13803_v57  ;;  %7071 = vmatprep.subr.bf16.mxu1 %v13805_v40  ;;  %v13901_v57 = vcombine.high %v1193_v34, %v1201_v35  ;;  %v1216_v40 = vld [vmem:[#allocation2 + $0x1f50] sm:$0xff]  ;;  %v13900_v46 = vcombine.low %v1193_v34, %v1201_v35  ;;  %v267_v30 = vld [vmem:[#allocation2 + $0x1a8] sm:$0xff]  ;;  %v12960_v35 = vcombine.low %v251_v17, %v259_v18 }
 0x291   :  { %v13914_v16 = vcombine.low %v1208_v39, %v1216_v40  ;;  %v275_v31 = vld [vmem:[#allocation2 + $0x1e8] sm:$0xff] }
 0x293   :  { %6908 = vmatpush1.bf16.msra.mxu0 %v13802_v47  ;;  %7072 = vmatpush1.bf16.msra.mxu1 %v13804_v48  ;;  %v13915_v47 = vcombine.high %v1208_v39, %v1216_v40  ;;  %v13917_v48 = vcombine.high %v1209_v41, %v1217_v42  ;;  %v283_v39 = vld [vmem:[#allocation2 + $0x228] sm:$0xff]  ;;  %v12976_v42 = vcombine.low %v267_v30, %v275_v31 }
 0x294   :  { %6909 = vmatprep.subr.bf16.mxu0 %v13819_v49  ;;  %7073 = vmatprep.subr.bf16.mxu1 %v13821_v50  ;;  %v1224_v49 = vld [vmem:[#allocation2 + $0x1f90] sm:$0xff]  ;;  %v291_v40 = vld [vmem:[#allocation2 + $0x268] sm:$0xff] }
 0x295   :  { %v1232_v50 = vld [vmem:[#allocation2 + $0x1fd0] sm:$0xff] }
 0x296   :  { %v13930_v0 = vcombine.low %v1224_v49, %v1232_v50 }
 0x297   :  { %6910 = vmatpush1.bf16.msra.mxu0 %v13818_v56  ;;  %7074 = vmatpush1.bf16.msra.mxu1 %v13820_v58  ;;  %v13931_v56 = vcombine.high %v1224_v49, %v1232_v50  ;;  %v13933_v58 = vcombine.high %v1225_v51, %v1233_v52  ;;  %v299_v49 = vld [vmem:[#allocation2 + $0x2a8] sm:$0xff]  ;;  %v12992_v52 = vcombine.low %v283_v39, %v291_v40 }
 0x298   :  { %6911 = vmatprep.subr.bf16.mxu0 %v13835_v23  ;;  %7075 = vmatprep.subr.bf16.mxu1 %v13837_v60  ;;  %v218_v23 = vld [vmem:[#allocation2 + $0x20] sm:$0xff]  ;;  %v307_v50 = vld [vmem:[#allocation2 + $0x2e8] sm:$0xff] }
 0x299   :  { %v226_v60 = vld [vmem:[#allocation2 + $0x60] sm:$0xff] }
 0x29a   :  { %v12926_v10 = vcombine.low %v218_v23, %v226_v60 }
 0x29b   :  { %6912 = vmatpush1.bf16.msra.mxu0 %v13834_v2  ;;  %7076 = vmatpush1.bf16.msra.mxu1 %v13836_v3  ;;  %v12927_v2 = vcombine.high %v218_v23, %v226_v60  ;;  %v12929_v3 = vcombine.high %v219_v61, %v227_v62  ;;  %v315_v23 = vld [vmem:[#allocation2 + $0x328] sm:$0xff]  ;;  %v13008_v62 = vcombine.low %v299_v49, %v307_v50 }
 0x29c   :  { %6913 = vmatprep.subr.bf16.mxu0 %v13851_v5  ;;  %7077 = vmatprep.subr.bf16.mxu1 %v13853_v6  ;;  %v234_v5 = vld [vmem:[#allocation2 + $0xa0] sm:$0xff]  ;;  %v323_v60 = vld [vmem:[#allocation2 + $0x368] sm:$0xff] }
 0x29d   :  { %v242_v6 = vld [vmem:[#allocation2 + $0xe0] sm:$0xff] }
 0x29e   :  { %v12942_v19 = vcombine.low %v234_v5, %v242_v6 }
 0x29f   :  { %6914 = vmatpush1.bf16.msra.mxu0 %v13850_v12  ;;  %7078 = vmatpush1.bf16.msra.mxu1 %v13852_v13  ;;  %v12943_v12 = vcombine.high %v234_v5, %v242_v6  ;;  %v12945_v13 = vcombine.high %v235_v7, %v243_v8  ;;  %v331_v5 = vld [vmem:[#allocation2 + $0x3a8] sm:$0xff]  ;;  %v13024_v8 = vcombine.low %v315_v23, %v323_v60 }
 0x2a0   :  { %6915 = vmatprep.subr.bf16.mxu0 %v13867_v33  ;;  %7079 = vmatprep.subr.bf16.mxu1 %v13869_v15  ;;  %v250_v33 = vld [vmem:[#allocation2 + $0x120] sm:$0xff]  ;;  %v339_v6 = vld [vmem:[#allocation2 + $0x3e8] sm:$0xff] }
 0x2a1   :  { %v258_v15 = vld [vmem:[#allocation2 + $0x160] sm:$0xff] }
 0x2a2   :  { %v12958_v34 = vcombine.low %v250_v33, %v258_v15 }
 0x2a3   :  { %6916 = vmatpush1.bf16.msra.mxu0 %v13866_v20  ;;  %7080 = vmatpush1.bf16.msra.mxu1 %v13868_v22  ;;  %v12959_v20 = vcombine.high %v250_v33, %v258_v15  ;;  %v12961_v22 = vcombine.high %v251_v17, %v259_v18  ;;  %v347_v33 = vld [vmem:[#allocation2 + $0x428] sm:$0xff]  ;;  %v13040_v18 = vcombine.low %v331_v5, %v339_v6 }
 0x2a4   :  { %6917 = vmatprep.subr.bf16.mxu0 %v13883_v24  ;;  %7081 = vmatprep.subr.bf16.mxu1 %v13885_v26  ;;  %v266_v24 = vld [vmem:[#allocation2 + $0x1a0] sm:$0xff]  ;;  %v355_v15 = vld [vmem:[#allocation2 + $0x468] sm:$0xff] }
 0x2a5   :  { %v274_v26 = vld [vmem:[#allocation2 + $0x1e0] sm:$0xff] }
 0x2a6   :  { %v12974_v41 = vcombine.low %v266_v24, %v274_v26 }
 0x2a7   :  { %6918 = vmatpush1.bf16.msra.mxu0 %v13882_v63  ;;  %7082 = vmatpush1.bf16.msra.mxu1 %v13884_v37  ;;  %v12975_v63 = vcombine.high %v266_v24, %v274_v26  ;;  %v12977_v37 = vcombine.high %v267_v30, %v275_v31  ;;  %v363_v24 = vld [vmem:[#allocation2 + $0x4a8] sm:$0xff]  ;;  %v13056_v31 = vcombine.low %v347_v33, %v355_v15 }
 0x2a8   :  { %6919 = vmatprep.subr.bf16.mxu0 %v13899_v38  ;;  %7083 = vmatprep.subr.bf16.mxu1 %v13901_v57  ;;  %v282_v38 = vld [vmem:[#allocation2 + $0x220] sm:$0xff]  ;;  %v371_v26 = vld [vmem:[#allocation2 + $0x4e8] sm:$0xff] }
 0x2a9   :  { %v290_v57 = vld [vmem:[#allocation2 + $0x260] sm:$0xff] }
 0x2aa   :  { %v12990_v51 = vcombine.low %v282_v38, %v290_v57 }
 0x2ab   :  { %6920 = vmatpush1.bf16.msra.mxu0 %v13898_v45  ;;  %7084 = vmatpush1.bf16.msra.mxu1 %v13900_v46  ;;  %v12991_v45 = vcombine.high %v282_v38, %v290_v57  ;;  %v12993_v46 = vcombine.high %v283_v39, %v291_v40  ;;  %v379_v38 = vld [vmem:[#allocation2 + $0x528] sm:$0xff]  ;;  %v13072_v40 = vcombine.low %v363_v24, %v371_v26 }
 0x2ac   :  { %6921 = vmatprep.subr.bf16.mxu0 %v13915_v47  ;;  %7085 = vmatprep.subr.bf16.mxu1 %v13917_v48  ;;  %v298_v47 = vld [vmem:[#allocation2 + $0x2a0] sm:$0xff]  ;;  %v387_v57 = vld [vmem:[#allocation2 + $0x568] sm:$0xff] }
 0x2ad   :  { %v306_v48 = vld [vmem:[#allocation2 + $0x2e0] sm:$0xff] }
 0x2ae   :  { %v13006_v61 = vcombine.low %v298_v47, %v306_v48 }
 0x2af   :  { %6922 = vmatpush1.bf16.msra.mxu0 %v13914_v16  ;;  %7086 = vmatpush1.bf16.msra.mxu1 %v13916_v55  ;;  %v13007_v16 = vcombine.high %v298_v47, %v306_v48  ;;  %v13009_v55 = vcombine.high %v299_v49, %v307_v50  ;;  %v395_v47 = vld [vmem:[#allocation2 + $0x5a8] sm:$0xff]  ;;  %v13088_v50 = vcombine.low %v379_v38, %v387_v57 }
 0x2b0   :  { %6923 = vmatprep.subr.bf16.mxu0 %v13931_v56  ;;  %7087 = vmatprep.subr.bf16.mxu1 %v13933_v58  ;;  %v314_v56 = vld [vmem:[#allocation2 + $0x320] sm:$0xff]  ;;  %v403_v48 = vld [vmem:[#allocation2 + $0x5e8] sm:$0xff] }
 0x2b1   :  { %v322_v58 = vld [vmem:[#allocation2 + $0x360] sm:$0xff] }
 0x2b2   :  { %v13022_v7 = vcombine.low %v314_v56, %v322_v58 }
 0x2b3   :  { %6924 = vmatpush1.bf16.msra.mxu0 %v13930_v0  ;;  %7088 = vmatpush1.bf16.msra.mxu1 %v13932_v1  ;;  %v13023_v0 = vcombine.high %v314_v56, %v322_v58  ;;  %v13025_v1 = vcombine.high %v315_v23, %v323_v60  ;;  %v411_v56 = vld [vmem:[#allocation2 + $0x628] sm:$0xff]  ;;  %v13104_v60 = vcombine.low %v395_v47, %v403_v48 }
 0x2b4   :  { %7098 = vmatprep.subr.bf16.mxu0 %v12927_v2  ;;  %7262 = vmatprep.subr.bf16.mxu1 %v12929_v3  ;;  %v330_v2 = vld [vmem:[#allocation2 + $0x3a0] sm:$0xff]  ;;  %v419_v58 = vld [vmem:[#allocation2 + $0x668] sm:$0xff] }
 0x2b5   :  { %v338_v3 = vld [vmem:[#allocation2 + $0x3e0] sm:$0xff] }
 0x2b6   :  { %6926 = vmatmul.mubr.bf16.vlgmr.msra.gmra.mrb[4].mxu0 %v16259_v28  ;;  %7090 = vmatmul.mubr.bf16.vlgmr.msra.gmra.mrb[4].mxu1 %v16259_v28  ;;  %v13038_v17 = vcombine.low %v330_v2, %v338_v3 }
 0x2b7   :  { %7099 = vmatpush1.bf16.msra.mxu0 %v12926_v10  ;;  %7263 = vmatpush1.bf16.msra.mxu1 %v12928_v11  ;;  %v13039_v10 = vcombine.high %v330_v2, %v338_v3  ;;  %v13041_v11 = vcombine.high %v331_v5, %v339_v6  ;;  %v427_v2 = vld [vmem:[#allocation2 + $0x6a8] sm:$0xff]  ;;  %v13120_v6 = vcombine.low %v411_v56, %v419_v58 }
 0x2b8   :  { %7100 = vmatprep.subr.bf16.mxu0 %v12943_v12  ;;  %7264 = vmatprep.subr.bf16.mxu1 %v12945_v13  ;;  %v346_v12 = vld [vmem:[#allocation2 + $0x420] sm:$0xff]  ;;  %v435_v3 = vld [vmem:[#allocation2 + $0x6e8] sm:$0xff] }
 0x2b9   :  { %7130 = vmatprep.mubr.bf16.mxu0 %v16198_v9  ;;  %7294 = vmatprep.mubr.bf16.mxu1 %v16198_v9  ;;  %v354_v13 = vld [vmem:[#allocation2 + $0x460] sm:$0xff] }
 0x2ba   :  { %v13054_v30 = vcombine.low %v346_v12, %v354_v13 }
 0x2bb   :  { %7101 = vmatpush1.bf16.msra.mxu0 %v12942_v19  ;;  %7265 = vmatpush1.bf16.msra.mxu1 %v12944_v59  ;;  %v13055_v19 = vcombine.high %v346_v12, %v354_v13  ;;  %v13057_v59 = vcombine.high %v347_v33, %v355_v15  ;;  %v443_v12 = vld [vmem:[#allocation2 + $0x728] sm:$0xff]  ;;  %v13136_v15 = vcombine.low %v427_v2, %v435_v3 }
 0x2bc   :  { %7102 = vmatprep.subr.bf16.mxu0 %v12959_v20  ;;  %7266 = vmatprep.subr.bf16.mxu1 %v12961_v22  ;;  %v362_v20 = vld [vmem:[#allocation2 + $0x4a0] sm:$0xff]  ;;  %v451_v13 = vld [vmem:[#allocation2 + $0x768] sm:$0xff] }
 0x2bd   :  { %v370_v22 = vld [vmem:[#allocation2 + $0x4e0] sm:$0xff] }
 0x2be   :  { %v13070_v39 = vcombine.low %v362_v20, %v370_v22 }
 0x2bf   :  { %7103 = vmatpush1.bf16.msra.mxu0 %v12958_v34  ;;  %7267 = vmatpush1.bf16.msra.mxu1 %v12960_v35  ;;  %v13071_v34 = vcombine.high %v362_v20, %v370_v22  ;;  %v13073_v35 = vcombine.high %v363_v24, %v371_v26  ;;  %v459_v20 = vld [vmem:[#allocation2 + $0x7a8] sm:$0xff]  ;;  %v13152_v26 = vcombine.low %v443_v12, %v451_v13 }
 0x2c0   :  { %7104 = vmatprep.subr.bf16.mxu0 %v12975_v63  ;;  %7268 = vmatprep.subr.bf16.mxu1 %v12977_v37  ;;  %v378_v63 = vld [vmem:[#allocation2 + $0x520] sm:$0xff]  ;;  %v467_v22 = vld [vmem:[#allocation2 + $0x7e8] sm:$0xff] }
 0x2c1   :  { %v386_v37 = vld [vmem:[#allocation2 + $0x560] sm:$0xff] }
 0x2c2   :  { %v13086_v49 = vcombine.low %v378_v63, %v386_v37 }
 0x2c3   :  { %7105 = vmatpush1.bf16.msra.mxu0 %v12974_v41  ;;  %7269 = vmatpush1.bf16.msra.mxu1 %v12976_v42  ;;  %v13087_v41 = vcombine.high %v378_v63, %v386_v37  ;;  %v13089_v42 = vcombine.high %v379_v38, %v387_v57  ;;  %v475_v63 = vld [vmem:[#allocation2 + $0x828] sm:$0xff]  ;;  %v13168_v57 = vcombine.low %v459_v20, %v467_v22 }
 0x2c4   :  { %7106 = vmatprep.subr.bf16.mxu0 %v12991_v45  ;;  %7270 = vmatprep.subr.bf16.mxu1 %v12993_v46  ;;  %v394_v45 = vld [vmem:[#allocation2 + $0x5a0] sm:$0xff]  ;;  %v483_v37 = vld [vmem:[#allocation2 + $0x868] sm:$0xff] }
 0x2c5   :  { %v402_v46 = vld [vmem:[#allocation2 + $0x5e0] sm:$0xff] }
 0x2c6   :  { %v13102_v23 = vcombine.low %v394_v45, %v402_v46 }
 0x2c7   :  { %7107 = vmatpush1.bf16.msra.mxu0 %v12990_v51  ;;  %7271 = vmatpush1.bf16.msra.mxu1 %v12992_v52  ;;  %v13103_v51 = vcombine.high %v394_v45, %v402_v46  ;;  %v13105_v52 = vcombine.high %v395_v47, %v403_v48  ;;  %v491_v45 = vld [vmem:[#allocation2 + $0x8a8] sm:$0xff]  ;;  %v13184_v48 = vcombine.low %v475_v63, %v483_v37 }
 0x2c8   :  { %7108 = vmatprep.subr.bf16.mxu0 %v13007_v16  ;;  %7272 = vmatprep.subr.bf16.mxu1 %v13009_v55  ;;  %v410_v16 = vld [vmem:[#allocation2 + $0x620] sm:$0xff]  ;;  %v499_v46 = vld [vmem:[#allocation2 + $0x8e8] sm:$0xff] }
 0x2c9   :  { %v418_v55 = vld [vmem:[#allocation2 + $0x660] sm:$0xff] }
 0x2ca   :  { %v13118_v5 = vcombine.low %v410_v16, %v418_v55 }
 0x2cb   :  { %7109 = vmatpush1.bf16.msra.mxu0 %v13006_v61  ;;  %7273 = vmatpush1.bf16.msra.mxu1 %v13008_v62  ;;  %v13119_v61 = vcombine.high %v410_v16, %v418_v55  ;;  %v13121_v62 = vcombine.high %v411_v56, %v419_v58  ;;  %v507_v16 = vld [vmem:[#allocation2 + $0x928] sm:$0xff]  ;;  %v13200_v58 = vcombine.low %v491_v45, %v499_v46 }
 0x2cc   :  { %7110 = vmatprep.subr.bf16.mxu0 %v13023_v0  ;;  %7274 = vmatprep.subr.bf16.mxu1 %v13025_v1  ;;  %v426_v0 = vld [vmem:[#allocation2 + $0x6a0] sm:$0xff]  ;;  %v515_v55 = vld [vmem:[#allocation2 + $0x968] sm:$0xff] }
 0x2cd   :  { %v434_v1 = vld [vmem:[#allocation2 + $0x6e0] sm:$0xff] }
 0x2ce   :  { %v13134_v33 = vcombine.low %v426_v0, %v434_v1 }
 0x2cf   :  { %7111 = vmatpush1.bf16.msra.mxu0 %v13022_v7  ;;  %7275 = vmatpush1.bf16.msra.mxu1 %v13024_v8  ;;  %v13135_v7 = vcombine.high %v426_v0, %v434_v1  ;;  %v13137_v8 = vcombine.high %v427_v2, %v435_v3  ;;  %v523_v0 = vld [vmem:[#allocation2 + $0x9a8] sm:$0xff]  ;;  %v13216_v3 = vcombine.low %v507_v16, %v515_v55 }
 0x2d0   :  { %7112 = vmatprep.subr.bf16.mxu0 %v13039_v10  ;;  %7276 = vmatprep.subr.bf16.mxu1 %v13041_v11  ;;  %v442_v10 = vld [vmem:[#allocation2 + $0x720] sm:$0xff]  ;;  %v531_v1 = vld [vmem:[#allocation2 + $0x9e8] sm:$0xff] }
 0x2d1   :  { %v450_v11 = vld [vmem:[#allocation2 + $0x760] sm:$0xff] }
 0x2d2   :  { %v13150_v24 = vcombine.low %v442_v10, %v450_v11 }
 0x2d3   :  { %7113 = vmatpush1.bf16.msra.mxu0 %v13038_v17  ;;  %7277 = vmatpush1.bf16.msra.mxu1 %v13040_v18  ;;  %v13151_v17 = vcombine.high %v442_v10, %v450_v11  ;;  %v13153_v18 = vcombine.high %v443_v12, %v451_v13  ;;  %v539_v10 = vld [vmem:[#allocation2 + $0xa28] sm:$0xff]  ;;  %v13232_v13 = vcombine.low %v523_v0, %v531_v1 }
 0x2d4   :  { %7114 = vmatprep.subr.bf16.mxu0 %v13055_v19  ;;  %7278 = vmatprep.subr.bf16.mxu1 %v13057_v59  ;;  %v458_v19 = vld [vmem:[#allocation2 + $0x7a0] sm:$0xff]  ;;  %v547_v11 = vld [vmem:[#allocation2 + $0xa68] sm:$0xff] }
 0x2d5   :  { %v466_v59 = vld [vmem:[#allocation2 + $0x7e0] sm:$0xff] }
 0x2d6   :  { %v13166_v38 = vcombine.low %v458_v19, %v466_v59 }
 0x2d7   :  { %7115 = vmatpush1.bf16.msra.mxu0 %v13054_v30  ;;  %7279 = vmatpush1.bf16.msra.mxu1 %v13056_v31  ;;  %v13167_v30 = vcombine.high %v458_v19, %v466_v59  ;;  %v13169_v31 = vcombine.high %v459_v20, %v467_v22  ;;  %v555_v19 = vld [vmem:[#allocation2 + $0xaa8] sm:$0xff]  ;;  %v13248_v22 = vcombine.low %v539_v10, %v547_v11 }
 0x2d8   :  { %7116 = vmatprep.subr.bf16.mxu0 %v13071_v34  ;;  %7280 = vmatprep.subr.bf16.mxu1 %v13073_v35  ;;  %v474_v34 = vld [vmem:[#allocation2 + $0x820] sm:$0xff]  ;;  %v563_v59 = vld [vmem:[#allocation2 + $0xae8] sm:$0xff] }
 0x2d9   :  { %v482_v35 = vld [vmem:[#allocation2 + $0x860] sm:$0xff] }
 0x2da   :  { %v13182_v47 = vcombine.low %v474_v34, %v482_v35 }
 0x2db   :  { %7117 = vmatpush1.bf16.msra.mxu0 %v13070_v39  ;;  %7281 = vmatpush1.bf16.msra.mxu1 %v13072_v40  ;;  %v13183_v39 = vcombine.high %v474_v34, %v482_v35  ;;  %v13185_v40 = vcombine.high %v475_v63, %v483_v37  ;;  %v571_v34 = vld [vmem:[#allocation2 + $0xb28] sm:$0xff]  ;;  %v13264_v37 = vcombine.low %v555_v19, %v563_v59 }
 0x2dc   :  { %7118 = vmatprep.subr.bf16.mxu0 %v13087_v41  ;;  %7282 = vmatprep.subr.bf16.mxu1 %v13089_v42  ;;  %v490_v41 = vld [vmem:[#allocation2 + $0x8a0] sm:$0xff]  ;;  %v579_v35 = vld [vmem:[#allocation2 + $0xb68] sm:$0xff] }
 0x2dd   :  { %v498_v42 = vld [vmem:[#allocation2 + $0x8e0] sm:$0xff] }
 0x2de   :  { %v13198_v56 = vcombine.low %v490_v41, %v498_v42 }
 0x2df   :  { %7119 = vmatpush1.bf16.msra.mxu0 %v13086_v49  ;;  %7283 = vmatpush1.bf16.msra.mxu1 %v13088_v50  ;;  %v13199_v49 = vcombine.high %v490_v41, %v498_v42  ;;  %v13201_v50 = vcombine.high %v491_v45, %v499_v46  ;;  %v587_v41 = vld [vmem:[#allocation2 + $0xba8] sm:$0xff]  ;;  %v13280_v46 = vcombine.low %v571_v34, %v579_v35 }
 0x2e0   :  { %7120 = vmatprep.subr.bf16.mxu0 %v13103_v51  ;;  %7284 = vmatprep.subr.bf16.mxu1 %v13105_v52  ;;  %v506_v51 = vld [vmem:[#allocation2 + $0x920] sm:$0xff]  ;;  %v595_v42 = vld [vmem:[#allocation2 + $0xbe8] sm:$0xff] }
 0x2e1   :  { %v514_v52 = vld [vmem:[#allocation2 + $0x960] sm:$0xff] }
 0x2e2   :  { %v13214_v2 = vcombine.low %v506_v51, %v514_v52 }
 0x2e3   :  { %7121 = vmatpush1.bf16.msra.mxu0 %v13102_v23  ;;  %7285 = vmatpush1.bf16.msra.mxu1 %v13104_v60  ;;  %v13215_v23 = vcombine.high %v506_v51, %v514_v52  ;;  %v13217_v60 = vcombine.high %v507_v16, %v515_v55  ;;  %v603_v51 = vld [vmem:[#allocation2 + $0xc28] sm:$0xff]  ;;  %v13296_v55 = vcombine.low %v587_v41, %v595_v42 }
 0x2e4   :  { %7122 = vmatprep.subr.bf16.mxu0 %v13119_v61  ;;  %7286 = vmatprep.subr.bf16.mxu1 %v13121_v62  ;;  %v522_v61 = vld [vmem:[#allocation2 + $0x9a0] sm:$0xff]  ;;  %v611_v52 = vld [vmem:[#allocation2 + $0xc68] sm:$0xff] }
 0x2e5   :  { %v530_v62 = vld [vmem:[#allocation2 + $0x9e0] sm:$0xff] }
 0x2e6   :  { %v13230_v12 = vcombine.low %v522_v61, %v530_v62 }
 0x2e7   :  { %7123 = vmatpush1.bf16.msra.mxu0 %v13118_v5  ;;  %7287 = vmatpush1.bf16.msra.mxu1 %v13120_v6  ;;  %v13231_v5 = vcombine.high %v522_v61, %v530_v62  ;;  %v13233_v6 = vcombine.high %v523_v0, %v531_v1  ;;  %v619_v61 = vld [vmem:[#allocation2 + $0xca8] sm:$0xff]  ;;  %v13312_v1 = vcombine.low %v603_v51, %v611_v52 }
 0x2e8   :  { %7124 = vmatprep.subr.bf16.mxu0 %v13135_v7  ;;  %7288 = vmatprep.subr.bf16.mxu1 %v13137_v8  ;;  %v538_v7 = vld [vmem:[#allocation2 + $0xa20] sm:$0xff]  ;;  %v627_v62 = vld [vmem:[#allocation2 + $0xce8] sm:$0xff] }
 0x2e9   :  { %v546_v8 = vld [vmem:[#allocation2 + $0xa60] sm:$0xff] }
 0x2ea   :  { %v13246_v20 = vcombine.low %v538_v7, %v546_v8 }
 0x2eb   :  { %7125 = vmatpush1.bf16.msra.mxu0 %v13134_v33  ;;  %7289 = vmatpush1.bf16.msra.mxu1 %v13136_v15  ;;  %v13247_v33 = vcombine.high %v538_v7, %v546_v8  ;;  %v13249_v15 = vcombine.high %v539_v10, %v547_v11  ;;  %v635_v7 = vld [vmem:[#allocation2 + $0xd28] sm:$0xff]  ;;  %v13328_v11 = vcombine.low %v619_v61, %v627_v62 }
 0x2ec   :  { %7126 = vmatprep.subr.bf16.mxu0 %v13151_v17  ;;  %7290 = vmatprep.subr.bf16.mxu1 %v13153_v18  ;;  %v554_v17 = vld [vmem:[#allocation2 + $0xaa0] sm:$0xff]  ;;  %v643_v8 = vld [vmem:[#allocation2 + $0xd68] sm:$0xff] }
 0x2ed   :  { %v562_v18 = vld [vmem:[#allocation2 + $0xae0] sm:$0xff] }
 0x2ee   :  { %v13262_v63 = vcombine.low %v554_v17, %v562_v18 }
 0x2ef   :  { %7127 = vmatpush1.bf16.msra.mxu0 %v13150_v24  ;;  %7291 = vmatpush1.bf16.msra.mxu1 %v13152_v26  ;;  %v13263_v24 = vcombine.high %v554_v17, %v562_v18  ;;  %v13265_v26 = vcombine.high %v555_v19, %v563_v59  ;;  %v651_v17 = vld [vmem:[#allocation2 + $0xda8] sm:$0xff]  ;;  %v13344_v59 = vcombine.low %v635_v7, %v643_v8 }
 0x2f0   :  { %7128 = vmatprep.subr.bf16.mxu0 %v13167_v30  ;;  %7292 = vmatprep.subr.bf16.mxu1 %v13169_v31  ;;  %v570_v30 = vld [vmem:[#allocation2 + $0xb20] sm:$0xff]  ;;  %v659_v18 = vld [vmem:[#allocation2 + $0xde8] sm:$0xff] }
 0x2f1   :  { %v578_v31 = vld [vmem:[#allocation2 + $0xb60] sm:$0xff] }
 0x2f2   :  { %v13278_v45 = vcombine.low %v570_v30, %v578_v31 }
 0x2f3   :  { %7129 = vmatpush1.bf16.msra.mxu0 %v13166_v38  ;;  %7293 = vmatpush1.bf16.msra.mxu1 %v13168_v57  ;;  %v13279_v38 = vcombine.high %v570_v30, %v578_v31  ;;  %v13281_v57 = vcombine.high %v571_v34, %v579_v35  ;;  %v667_v30 = vld [vmem:[#allocation2 + $0xe28] sm:$0xff]  ;;  %v13360_v35 = vcombine.low %v651_v17, %v659_v18 }
 0x2f4   :  { %7139 = vmatprep.subr.bf16.mxu0 %v13183_v39  ;;  %7303 = vmatprep.subr.bf16.mxu1 %v13185_v40  ;;  %v586_v39 = vld [vmem:[#allocation2 + $0xba0] sm:$0xff]  ;;  %v675_v31 = vld [vmem:[#allocation2 + $0xe68] sm:$0xff] }
 0x2f5   :  { %v594_v40 = vld [vmem:[#allocation2 + $0xbe0] sm:$0xff] }
 0x2f6   :  { %7131 = vmatmul.mubr.bf16.vlgmr.msra.gmra.mrb[8].mxu0 %v16211_v25  ;;  %7295 = vmatmul.mubr.bf16.vlgmr.msra.gmra.mrb[8].mxu1 %v16211_v25  ;;  %v13294_v16 = vcombine.low %v586_v39, %v594_v40 }
 0x2f7   :  { %7140 = vmatpush1.bf16.msra.mxu0 %v13182_v47  ;;  %7304 = vmatpush1.bf16.msra.mxu1 %v13184_v48  ;;  %v13295_v47 = vcombine.high %v586_v39, %v594_v40  ;;  %v13297_v48 = vcombine.high %v587_v41, %v595_v42  ;;  %v683_v39 = vld [vmem:[#allocation2 + $0xea8] sm:$0xff]  ;;  %v13376_v42 = vcombine.low %v667_v30, %v675_v31 }
 0x2f8   :  { %7141 = vmatprep.subr.bf16.mxu0 %v13199_v49  ;;  %7305 = vmatprep.subr.bf16.mxu1 %v13201_v50  ;;  %v602_v49 = vld [vmem:[#allocation2 + $0xc20] sm:$0xff]  ;;  %v691_v40 = vld [vmem:[#allocation2 + $0xee8] sm:$0xff] }
 0x2f9   :  { %7171 = vmatprep.mubr.bf16.mxu0 %v16213_v36  ;;  %7335 = vmatprep.mubr.bf16.mxu1 %v16213_v36  ;;  %v610_v50 = vld [vmem:[#allocation2 + $0xc60] sm:$0xff] }
 0x2fa   :  { %v13310_v0 = vcombine.low %v602_v49, %v610_v50 }
 0x2fb   :  { %7142 = vmatpush1.bf16.msra.mxu0 %v13198_v56  ;;  %7306 = vmatpush1.bf16.msra.mxu1 %v13200_v58  ;;  %v13311_v56 = vcombine.high %v602_v49, %v610_v50  ;;  %v13313_v58 = vcombine.high %v603_v51, %v611_v52  ;;  %v699_v49 = vld [vmem:[#allocation2 + $0xf28] sm:$0xff]  ;;  %v13392_v52 = vcombine.low %v683_v39, %v691_v40 }
 0x2fc   :  { %7143 = vmatprep.subr.bf16.mxu0 %v13215_v23  ;;  %7307 = vmatprep.subr.bf16.mxu1 %v13217_v60  ;;  %v618_v23 = vld [vmem:[#allocation2 + $0xca0] sm:$0xff]  ;;  %v707_v50 = vld [vmem:[#allocation2 + $0xf68] sm:$0xff] }
 0x2fd   :  { %v626_v60 = vld [vmem:[#allocation2 + $0xce0] sm:$0xff] }
 0x2fe   :  { %v13326_v10 = vcombine.low %v618_v23, %v626_v60 }
 0x2ff   :  { %7144 = vmatpush1.bf16.msra.mxu0 %v13214_v2  ;;  %7308 = vmatpush1.bf16.msra.mxu1 %v13216_v3  ;;  %v13327_v2 = vcombine.high %v618_v23, %v626_v60  ;;  %v13329_v3 = vcombine.high %v619_v61, %v627_v62  ;;  %v715_v23 = vld [vmem:[#allocation2 + $0xfa8] sm:$0xff]  ;;  %v13408_v62 = vcombine.low %v699_v49, %v707_v50 }
 0x300   :  { %7145 = vmatprep.subr.bf16.mxu0 %v13231_v5  ;;  %7309 = vmatprep.subr.bf16.mxu1 %v13233_v6  ;;  %v634_v5 = vld [vmem:[#allocation2 + $0xd20] sm:$0xff]  ;;  %v723_v60 = vld [vmem:[#allocation2 + $0xfe8] sm:$0xff] }
 0x301   :  { %v642_v6 = vld [vmem:[#allocation2 + $0xd60] sm:$0xff] }
 0x302   :  { %v13342_v19 = vcombine.low %v634_v5, %v642_v6 }
 0x303   :  { %7146 = vmatpush1.bf16.msra.mxu0 %v13230_v12  ;;  %7310 = vmatpush1.bf16.msra.mxu1 %v13232_v13  ;;  %v13343_v12 = vcombine.high %v634_v5, %v642_v6  ;;  %v13345_v13 = vcombine.high %v635_v7, %v643_v8  ;;  %v731_v5 = vld [vmem:[#allocation2 + $0x1028] sm:$0xff]  ;;  %v13424_v8 = vcombine.low %v715_v23, %v723_v60 }
 0x304   :  { %7147 = vmatprep.subr.bf16.mxu0 %v13247_v33  ;;  %7311 = vmatprep.subr.bf16.mxu1 %v13249_v15  ;;  %v650_v33 = vld [vmem:[#allocation2 + $0xda0] sm:$0xff]  ;;  %v739_v6 = vld [vmem:[#allocation2 + $0x1068] sm:$0xff] }
 0x305   :  { %v658_v15 = vld [vmem:[#allocation2 + $0xde0] sm:$0xff] }
 0x306   :  { %v13358_v34 = vcombine.low %v650_v33, %v658_v15 }
 0x307   :  { %7148 = vmatpush1.bf16.msra.mxu0 %v13246_v20  ;;  %7312 = vmatpush1.bf16.msra.mxu1 %v13248_v22  ;;  %v13359_v20 = vcombine.high %v650_v33, %v658_v15  ;;  %v13361_v22 = vcombine.high %v651_v17, %v659_v18  ;;  %v747_v33 = vld [vmem:[#allocation2 + $0x10a8] sm:$0xff]  ;;  %v13440_v18 = vcombine.low %v731_v5, %v739_v6 }
 0x308   :  { %7149 = vmatprep.subr.bf16.mxu0 %v13263_v24  ;;  %7313 = vmatprep.subr.bf16.mxu1 %v13265_v26  ;;  %v666_v24 = vld [vmem:[#allocation2 + $0xe20] sm:$0xff]  ;;  %v755_v15 = vld [vmem:[#allocation2 + $0x10e8] sm:$0xff] }
 0x309   :  { %v674_v26 = vld [vmem:[#allocation2 + $0xe60] sm:$0xff] }
 0x30a   :  { %v13374_v41 = vcombine.low %v666_v24, %v674_v26 }
 0x30b   :  { %7150 = vmatpush1.bf16.msra.mxu0 %v13262_v63  ;;  %7314 = vmatpush1.bf16.msra.mxu1 %v13264_v37  ;;  %v13375_v63 = vcombine.high %v666_v24, %v674_v26  ;;  %v13377_v37 = vcombine.high %v667_v30, %v675_v31  ;;  %v763_v24 = vld [vmem:[#allocation2 + $0x1128] sm:$0xff]  ;;  %v13456_v31 = vcombine.low %v747_v33, %v755_v15 }
 0x30c   :  { %7151 = vmatprep.subr.bf16.mxu0 %v13279_v38  ;;  %7315 = vmatprep.subr.bf16.mxu1 %v13281_v57  ;;  %v682_v38 = vld [vmem:[#allocation2 + $0xea0] sm:$0xff]  ;;  %v771_v26 = vld [vmem:[#allocation2 + $0x1168] sm:$0xff] }
 0x30d   :  { %v690_v57 = vld [vmem:[#allocation2 + $0xee0] sm:$0xff] }
 0x30e   :  { %v13390_v51 = vcombine.low %v682_v38, %v690_v57 }
 0x30f   :  { %7152 = vmatpush1.bf16.msra.mxu0 %v13278_v45  ;;  %7316 = vmatpush1.bf16.msra.mxu1 %v13280_v46  ;;  %v13391_v45 = vcombine.high %v682_v38, %v690_v57  ;;  %v13393_v46 = vcombine.high %v683_v39, %v691_v40  ;;  %v779_v38 = vld [vmem:[#allocation2 + $0x11a8] sm:$0xff]  ;;  %v13472_v40 = vcombine.low %v763_v24, %v771_v26 }
 0x310   :  { %7153 = vmatprep.subr.bf16.mxu0 %v13295_v47  ;;  %7317 = vmatprep.subr.bf16.mxu1 %v13297_v48  ;;  %v698_v47 = vld [vmem:[#allocation2 + $0xf20] sm:$0xff]  ;;  %v787_v57 = vld [vmem:[#allocation2 + $0x11e8] sm:$0xff] }
 0x311   :  { %v706_v48 = vld [vmem:[#allocation2 + $0xf60] sm:$0xff] }
 0x312   :  { %v13406_v61 = vcombine.low %v698_v47, %v706_v48 }
 0x313   :  { %7154 = vmatpush1.bf16.msra.mxu0 %v13294_v16  ;;  %7318 = vmatpush1.bf16.msra.mxu1 %v13296_v55  ;;  %v13407_v16 = vcombine.high %v698_v47, %v706_v48  ;;  %v13409_v55 = vcombine.high %v699_v49, %v707_v50  ;;  %v795_v47 = vld [vmem:[#allocation2 + $0x1228] sm:$0xff]  ;;  %v13488_v50 = vcombine.low %v779_v38, %v787_v57 }
 0x314   :  { %7155 = vmatprep.subr.bf16.mxu0 %v13311_v56  ;;  %7319 = vmatprep.subr.bf16.mxu1 %v13313_v58  ;;  %v714_v56 = vld [vmem:[#allocation2 + $0xfa0] sm:$0xff]  ;;  %v803_v48 = vld [vmem:[#allocation2 + $0x1268] sm:$0xff] }
 0x315   :  { %v722_v58 = vld [vmem:[#allocation2 + $0xfe0] sm:$0xff] }
 0x316   :  { %v13422_v7 = vcombine.low %v714_v56, %v722_v58 }
 0x317   :  { %7156 = vmatpush1.bf16.msra.mxu0 %v13310_v0  ;;  %7320 = vmatpush1.bf16.msra.mxu1 %v13312_v1  ;;  %v13423_v0 = vcombine.high %v714_v56, %v722_v58  ;;  %v13425_v1 = vcombine.high %v715_v23, %v723_v60  ;;  %v811_v56 = vld [vmem:[#allocation2 + $0x12a8] sm:$0xff]  ;;  %v13504_v60 = vcombine.low %v795_v47, %v803_v48 }
 0x318   :  { %7157 = vmatprep.subr.bf16.mxu0 %v13327_v2  ;;  %7321 = vmatprep.subr.bf16.mxu1 %v13329_v3  ;;  %v730_v2 = vld [vmem:[#allocation2 + $0x1020] sm:$0xff]  ;;  %v819_v58 = vld [vmem:[#allocation2 + $0x12e8] sm:$0xff] }
 0x319   :  { %v738_v3 = vld [vmem:[#allocation2 + $0x1060] sm:$0xff] }
 0x31a   :  { %v13438_v17 = vcombine.low %v730_v2, %v738_v3 }
 0x31b   :  { %7158 = vmatpush1.bf16.msra.mxu0 %v13326_v10  ;;  %7322 = vmatpush1.bf16.msra.mxu1 %v13328_v11  ;;  %v13439_v10 = vcombine.high %v730_v2, %v738_v3  ;;  %v13441_v11 = vcombine.high %v731_v5, %v739_v6  ;;  %v827_v2 = vld [vmem:[#allocation2 + $0x1328] sm:$0xff]  ;;  %v13520_v6 = vcombine.low %v811_v56, %v819_v58 }
 0x31c   :  { %7159 = vmatprep.subr.bf16.mxu0 %v13343_v12  ;;  %7323 = vmatprep.subr.bf16.mxu1 %v13345_v13  ;;  %v746_v12 = vld [vmem:[#allocation2 + $0x10a0] sm:$0xff]  ;;  %v835_v3 = vld [vmem:[#allocation2 + $0x1368] sm:$0xff] }
 0x31d   :  { %v754_v13 = vld [vmem:[#allocation2 + $0x10e0] sm:$0xff] }
 0x31e   :  { %v13454_v30 = vcombine.low %v746_v12, %v754_v13 }
 0x31f   :  { %7160 = vmatpush1.bf16.msra.mxu0 %v13342_v19  ;;  %7324 = vmatpush1.bf16.msra.mxu1 %v13344_v59  ;;  %v13455_v19 = vcombine.high %v746_v12, %v754_v13  ;;  %v13457_v59 = vcombine.high %v747_v33, %v755_v15  ;;  %v843_v12 = vld [vmem:[#allocation2 + $0x13a8] sm:$0xff]  ;;  %v13536_v15 = vcombine.low %v827_v2, %v835_v3 }
 0x320   :  { %7161 = vmatprep.subr.bf16.mxu0 %v13359_v20  ;;  %7325 = vmatprep.subr.bf16.mxu1 %v13361_v22  ;;  %v762_v20 = vld [vmem:[#allocation2 + $0x1120] sm:$0xff]  ;;  %v851_v13 = vld [vmem:[#allocation2 + $0x13e8] sm:$0xff] }
 0x321   :  { %v770_v22 = vld [vmem:[#allocation2 + $0x1160] sm:$0xff] }
 0x322   :  { %v13470_v39 = vcombine.low %v762_v20, %v770_v22 }
 0x323   :  { %7162 = vmatpush1.bf16.msra.mxu0 %v13358_v34  ;;  %7326 = vmatpush1.bf16.msra.mxu1 %v13360_v35  ;;  %v13471_v34 = vcombine.high %v762_v20, %v770_v22  ;;  %v13473_v35 = vcombine.high %v763_v24, %v771_v26  ;;  %v859_v20 = vld [vmem:[#allocation2 + $0x1428] sm:$0xff]  ;;  %v13552_v26 = vcombine.low %v843_v12, %v851_v13 }
 0x324   :  { %7163 = vmatprep.subr.bf16.mxu0 %v13375_v63  ;;  %7327 = vmatprep.subr.bf16.mxu1 %v13377_v37  ;;  %v778_v63 = vld [vmem:[#allocation2 + $0x11a0] sm:$0xff]  ;;  %v867_v22 = vld [vmem:[#allocation2 + $0x1468] sm:$0xff] }
 0x325   :  { %v786_v37 = vld [vmem:[#allocation2 + $0x11e0] sm:$0xff] }
 0x326   :  { %v13486_v49 = vcombine.low %v778_v63, %v786_v37 }
 0x327   :  { %7164 = vmatpush1.bf16.msra.mxu0 %v13374_v41  ;;  %7328 = vmatpush1.bf16.msra.mxu1 %v13376_v42  ;;  %v13487_v41 = vcombine.high %v778_v63, %v786_v37  ;;  %v13489_v42 = vcombine.high %v779_v38, %v787_v57  ;;  %v875_v63 = vld [vmem:[#allocation2 + $0x14a8] sm:$0xff]  ;;  %v13568_v57 = vcombine.low %v859_v20, %v867_v22 }
 0x328   :  { %7165 = vmatprep.subr.bf16.mxu0 %v13391_v45  ;;  %7329 = vmatprep.subr.bf16.mxu1 %v13393_v46  ;;  %v794_v45 = vld [vmem:[#allocation2 + $0x1220] sm:$0xff]  ;;  %v883_v37 = vld [vmem:[#allocation2 + $0x14e8] sm:$0xff] }
 0x329   :  { %v802_v46 = vld [vmem:[#allocation2 + $0x1260] sm:$0xff] }
 0x32a   :  { %v13502_v23 = vcombine.low %v794_v45, %v802_v46 }
 0x32b   :  { %7166 = vmatpush1.bf16.msra.mxu0 %v13390_v51  ;;  %7330 = vmatpush1.bf16.msra.mxu1 %v13392_v52  ;;  %v13503_v51 = vcombine.high %v794_v45, %v802_v46  ;;  %v13505_v52 = vcombine.high %v795_v47, %v803_v48  ;;  %v891_v45 = vld [vmem:[#allocation2 + $0x1528] sm:$0xff]  ;;  %v13584_v48 = vcombine.low %v875_v63, %v883_v37 }
 0x32c   :  { %7167 = vmatprep.subr.bf16.mxu0 %v13407_v16  ;;  %7331 = vmatprep.subr.bf16.mxu1 %v13409_v55  ;;  %v810_v16 = vld [vmem:[#allocation2 + $0x12a0] sm:$0xff]  ;;  %v899_v46 = vld [vmem:[#allocation2 + $0x1568] sm:$0xff] }
 0x32d   :  { %v818_v55 = vld [vmem:[#allocation2 + $0x12e0] sm:$0xff] }
 0x32e   :  { %v13518_v5 = vcombine.low %v810_v16, %v818_v55 }
 0x32f   :  { %7168 = vmatpush1.bf16.msra.mxu0 %v13406_v61  ;;  %7332 = vmatpush1.bf16.msra.mxu1 %v13408_v62  ;;  %v13519_v61 = vcombine.high %v810_v16, %v818_v55  ;;  %v13521_v62 = vcombine.high %v811_v56, %v819_v58  ;;  %v907_v16 = vld [vmem:[#allocation2 + $0x15a8] sm:$0xff]  ;;  %v13600_v58 = vcombine.low %v891_v45, %v899_v46 }
 0x330   :  { %7169 = vmatprep.subr.bf16.mxu0 %v13423_v0  ;;  %7333 = vmatprep.subr.bf16.mxu1 %v13425_v1  ;;  %v826_v0 = vld [vmem:[#allocation2 + $0x1320] sm:$0xff]  ;;  %v915_v55 = vld [vmem:[#allocation2 + $0x15e8] sm:$0xff] }
 0x331   :  { %v834_v1 = vld [vmem:[#allocation2 + $0x1360] sm:$0xff] }
 0x332   :  { %v13534_v33 = vcombine.low %v826_v0, %v834_v1 }
 0x333   :  { %7170 = vmatpush1.bf16.msra.mxu0 %v13422_v7  ;;  %7334 = vmatpush1.bf16.msra.mxu1 %v13424_v8  ;;  %v13535_v7 = vcombine.high %v826_v0, %v834_v1  ;;  %v13537_v8 = vcombine.high %v827_v2, %v835_v3  ;;  %v923_v0 = vld [vmem:[#allocation2 + $0x1628] sm:$0xff]  ;;  %v13616_v3 = vcombine.low %v907_v16, %v915_v55 }
 0x334   :  { %7180 = vmatprep.subr.bf16.mxu0 %v13439_v10  ;;  %7344 = vmatprep.subr.bf16.mxu1 %v13441_v11  ;;  %v842_v10 = vld [vmem:[#allocation2 + $0x13a0] sm:$0xff]  ;;  %v931_v1 = vld [vmem:[#allocation2 + $0x1668] sm:$0xff] }
 0x335   :  { %v850_v11 = vld [vmem:[#allocation2 + $0x13e0] sm:$0xff] }
 0x336   :  { %7172 = vmatmul.mubr.bf16.vlgmr.msra.gmra.mrb[8].mxu0 %v16232_v43  ;;  %7336 = vmatmul.mubr.bf16.vlgmr.msra.gmra.mrb[8].mxu1 %v16232_v43  ;;  %v13550_v24 = vcombine.low %v842_v10, %v850_v11 }
 0x337   :  { %7181 = vmatpush1.bf16.msra.mxu0 %v13438_v17  ;;  %7345 = vmatpush1.bf16.msra.mxu1 %v13440_v18  ;;  %v13551_v17 = vcombine.high %v842_v10, %v850_v11  ;;  %v13553_v18 = vcombine.high %v843_v12, %v851_v13  ;;  %v939_v10 = vld [vmem:[#allocation2 + $0x16a8] sm:$0xff]  ;;  %v13632_v13 = vcombine.low %v923_v0, %v931_v1 }
 0x338   :  { %7182 = vmatprep.subr.bf16.mxu0 %v13455_v19  ;;  %7346 = vmatprep.subr.bf16.mxu1 %v13457_v59  ;;  %v858_v19 = vld [vmem:[#allocation2 + $0x1420] sm:$0xff]  ;;  %v947_v11 = vld [vmem:[#allocation2 + $0x16e8] sm:$0xff] }
 0x339   :  { %7212 = vmatprep.mubr.bf16.mxu0 %v16234_v54  ;;  %7376 = vmatprep.mubr.bf16.mxu1 %v16234_v54  ;;  %v866_v59 = vld [vmem:[#allocation2 + $0x1460] sm:$0xff] }
 0x33a   :  { %v13566_v38 = vcombine.low %v858_v19, %v866_v59 }
 0x33b   :  { %7183 = vmatpush1.bf16.msra.mxu0 %v13454_v30  ;;  %7347 = vmatpush1.bf16.msra.mxu1 %v13456_v31  ;;  %v13567_v30 = vcombine.high %v858_v19, %v866_v59  ;;  %v13569_v31 = vcombine.high %v859_v20, %v867_v22  ;;  %v955_v19 = vld [vmem:[#allocation2 + $0x1728] sm:$0xff]  ;;  %v13648_v22 = vcombine.low %v939_v10, %v947_v11 }
 0x33c   :  { %7184 = vmatprep.subr.bf16.mxu0 %v13471_v34  ;;  %7348 = vmatprep.subr.bf16.mxu1 %v13473_v35  ;;  %v874_v34 = vld [vmem:[#allocation2 + $0x14a0] sm:$0xff]  ;;  %v963_v59 = vld [vmem:[#allocation2 + $0x1768] sm:$0xff] }
 0x33d   :  { %v882_v35 = vld [vmem:[#allocation2 + $0x14e0] sm:$0xff] }
 0x33e   :  { %v13582_v47 = vcombine.low %v874_v34, %v882_v35 }
 0x33f   :  { %7185 = vmatpush1.bf16.msra.mxu0 %v13470_v39  ;;  %7349 = vmatpush1.bf16.msra.mxu1 %v13472_v40  ;;  %v13583_v39 = vcombine.high %v874_v34, %v882_v35  ;;  %v13585_v40 = vcombine.high %v875_v63, %v883_v37  ;;  %v971_v34 = vld [vmem:[#allocation2 + $0x17a8] sm:$0xff]  ;;  %v13664_v37 = vcombine.low %v955_v19, %v963_v59 }
 0x340   :  { %7186 = vmatprep.subr.bf16.mxu0 %v13487_v41  ;;  %7350 = vmatprep.subr.bf16.mxu1 %v13489_v42  ;;  %v890_v41 = vld [vmem:[#allocation2 + $0x1520] sm:$0xff]  ;;  %v979_v35 = vld [vmem:[#allocation2 + $0x17e8] sm:$0xff] }
 0x341   :  { %v898_v42 = vld [vmem:[#allocation2 + $0x1560] sm:$0xff] }
 0x342   :  { %v13598_v56 = vcombine.low %v890_v41, %v898_v42 }
 0x343   :  { %7187 = vmatpush1.bf16.msra.mxu0 %v13486_v49  ;;  %7351 = vmatpush1.bf16.msra.mxu1 %v13488_v50  ;;  %v13599_v49 = vcombine.high %v890_v41, %v898_v42  ;;  %v13601_v50 = vcombine.high %v891_v45, %v899_v46  ;;  %v987_v41 = vld [vmem:[#allocation2 + $0x1828] sm:$0xff]  ;;  %v13680_v46 = vcombine.low %v971_v34, %v979_v35 }
 0x344   :  { %7188 = vmatprep.subr.bf16.mxu0 %v13503_v51  ;;  %7352 = vmatprep.subr.bf16.mxu1 %v13505_v52  ;;  %v906_v51 = vld [vmem:[#allocation2 + $0x15a0] sm:$0xff]  ;;  %v995_v42 = vld [vmem:[#allocation2 + $0x1868] sm:$0xff] }
 0x345   :  { %v914_v52 = vld [vmem:[#allocation2 + $0x15e0] sm:$0xff] }
 0x346   :  { %v13614_v2 = vcombine.low %v906_v51, %v914_v52 }
 0x347   :  { %7189 = vmatpush1.bf16.msra.mxu0 %v13502_v23  ;;  %7353 = vmatpush1.bf16.msra.mxu1 %v13504_v60  ;;  %v13615_v23 = vcombine.high %v906_v51, %v914_v52  ;;  %v13617_v60 = vcombine.high %v907_v16, %v915_v55  ;;  %v1003_v51 = vld [vmem:[#allocation2 + $0x18a8] sm:$0xff]  ;;  %v13696_v55 = vcombine.low %v987_v41, %v995_v42 }
 0x348   :  { %7190 = vmatprep.subr.bf16.mxu0 %v13519_v61  ;;  %7354 = vmatprep.subr.bf16.mxu1 %v13521_v62  ;;  %v922_v61 = vld [vmem:[#allocation2 + $0x1620] sm:$0xff]  ;;  %v1011_v52 = vld [vmem:[#allocation2 + $0x18e8] sm:$0xff] }
 0x349   :  { %v930_v62 = vld [vmem:[#allocation2 + $0x1660] sm:$0xff] }
 0x34a   :  { %v13630_v12 = vcombine.low %v922_v61, %v930_v62 }
 0x34b   :  { %7191 = vmatpush1.bf16.msra.mxu0 %v13518_v5  ;;  %7355 = vmatpush1.bf16.msra.mxu1 %v13520_v6  ;;  %v13631_v5 = vcombine.high %v922_v61, %v930_v62  ;;  %v13633_v6 = vcombine.high %v923_v0, %v931_v1  ;;  %v1019_v61 = vld [vmem:[#allocation2 + $0x1928] sm:$0xff]  ;;  %v13712_v1 = vcombine.low %v1003_v51, %v1011_v52 }
 0x34c   :  { %7192 = vmatprep.subr.bf16.mxu0 %v13535_v7  ;;  %7356 = vmatprep.subr.bf16.mxu1 %v13537_v8  ;;  %v938_v7 = vld [vmem:[#allocation2 + $0x16a0] sm:$0xff]  ;;  %v1027_v62 = vld [vmem:[#allocation2 + $0x1968] sm:$0xff] }
 0x34d   :  { %v946_v8 = vld [vmem:[#allocation2 + $0x16e0] sm:$0xff] }
 0x34e   :  { %v13646_v20 = vcombine.low %v938_v7, %v946_v8 }
 0x34f   :  { %7193 = vmatpush1.bf16.msra.mxu0 %v13534_v33  ;;  %7357 = vmatpush1.bf16.msra.mxu1 %v13536_v15  ;;  %v13647_v33 = vcombine.high %v938_v7, %v946_v8  ;;  %v13649_v15 = vcombine.high %v939_v10, %v947_v11  ;;  %v1035_v7 = vld [vmem:[#allocation2 + $0x19a8] sm:$0xff]  ;;  %v13728_v11 = vcombine.low %v1019_v61, %v1027_v62 }
 0x350   :  { %7194 = vmatprep.subr.bf16.mxu0 %v13551_v17  ;;  %7358 = vmatprep.subr.bf16.mxu1 %v13553_v18  ;;  %v954_v17 = vld [vmem:[#allocation2 + $0x1720] sm:$0xff]  ;;  %v1043_v8 = vld [vmem:[#allocation2 + $0x19e8] sm:$0xff] }
 0x351   :  { %v962_v18 = vld [vmem:[#allocation2 + $0x1760] sm:$0xff] }
 0x352   :  { %v13662_v63 = vcombine.low %v954_v17, %v962_v18 }
 0x353   :  { %7195 = vmatpush1.bf16.msra.mxu0 %v13550_v24  ;;  %7359 = vmatpush1.bf16.msra.mxu1 %v13552_v26  ;;  %v13663_v24 = vcombine.high %v954_v17, %v962_v18  ;;  %v13665_v26 = vcombine.high %v955_v19, %v963_v59  ;;  %v1051_v17 = vld [vmem:[#allocation2 + $0x1a28] sm:$0xff]  ;;  %v13744_v59 = vcombine.low %v1035_v7, %v1043_v8 }
 0x354   :  { %7196 = vmatprep.subr.bf16.mxu0 %v13567_v30  ;;  %7360 = vmatprep.subr.bf16.mxu1 %v13569_v31  ;;  %v970_v30 = vld [vmem:[#allocation2 + $0x17a0] sm:$0xff]  ;;  %v1059_v18 = vld [vmem:[#allocation2 + $0x1a68] sm:$0xff] }
 0x355   :  { %v978_v31 = vld [vmem:[#allocation2 + $0x17e0] sm:$0xff] }
 0x356   :  { %v13678_v45 = vcombine.low %v970_v30, %v978_v31 }
 0x357   :  { %7197 = vmatpush1.bf16.msra.mxu0 %v13566_v38  ;;  %7361 = vmatpush1.bf16.msra.mxu1 %v13568_v57  ;;  %v13679_v38 = vcombine.high %v970_v30, %v978_v31  ;;  %v13681_v57 = vcombine.high %v971_v34, %v979_v35  ;;  %v1067_v30 = vld [vmem:[#allocation2 + $0x1aa8] sm:$0xff]  ;;  %v13760_v35 = vcombine.low %v1051_v17, %v1059_v18 }
 0x358   :  { %7198 = vmatprep.subr.bf16.mxu0 %v13583_v39  ;;  %7362 = vmatprep.subr.bf16.mxu1 %v13585_v40  ;;  %v986_v39 = vld [vmem:[#allocation2 + $0x1820] sm:$0xff]  ;;  %v1075_v31 = vld [vmem:[#allocation2 + $0x1ae8] sm:$0xff] }
 0x359   :  { %v994_v40 = vld [vmem:[#allocation2 + $0x1860] sm:$0xff] }
 0x35a   :  { %v13694_v16 = vcombine.low %v986_v39, %v994_v40 }
 0x35b   :  { %7199 = vmatpush1.bf16.msra.mxu0 %v13582_v47  ;;  %7363 = vmatpush1.bf16.msra.mxu1 %v13584_v48  ;;  %v13695_v47 = vcombine.high %v986_v39, %v994_v40  ;;  %v13697_v48 = vcombine.high %v987_v41, %v995_v42  ;;  %v1083_v39 = vld [vmem:[#allocation2 + $0x1b28] sm:$0xff]  ;;  %v13776_v42 = vcombine.low %v1067_v30, %v1075_v31 }
 0x35c   :  { %7200 = vmatprep.subr.bf16.mxu0 %v13599_v49  ;;  %7364 = vmatprep.subr.bf16.mxu1 %v13601_v50  ;;  %v1002_v49 = vld [vmem:[#allocation2 + $0x18a0] sm:$0xff]  ;;  %v1091_v40 = vld [vmem:[#allocation2 + $0x1b68] sm:$0xff] }
 0x35d   :  { %v1010_v50 = vld [vmem:[#allocation2 + $0x18e0] sm:$0xff] }
 0x35e   :  { %v13710_v0 = vcombine.low %v1002_v49, %v1010_v50 }
 0x35f   :  { %7201 = vmatpush1.bf16.msra.mxu0 %v13598_v56  ;;  %7365 = vmatpush1.bf16.msra.mxu1 %v13600_v58  ;;  %v13711_v56 = vcombine.high %v1002_v49, %v1010_v50  ;;  %v13713_v58 = vcombine.high %v1003_v51, %v1011_v52  ;;  %v1106_v49 = vld [vmem:[#allocation2 + $0x1be0] sm:$0xff]  ;;  %v1099_v52 = vld [vmem:[#allocation2 + $0x1ba8] sm:$0xff] }
 0x360   :  { %7202 = vmatprep.subr.bf16.mxu0 %v13615_v23  ;;  %7366 = vmatprep.subr.bf16.mxu1 %v13617_v60  ;;  %v1018_v23 = vld [vmem:[#allocation2 + $0x1920] sm:$0xff] }
 0x361   :  { %v1026_v60 = vld [vmem:[#allocation2 + $0x1960] sm:$0xff] }
 0x362   :  { %v13726_v10 = vcombine.low %v1018_v23, %v1026_v60 }
 0x363   :  { %7203 = vmatpush1.bf16.msra.mxu0 %v13614_v2  ;;  %7367 = vmatpush1.bf16.msra.mxu1 %v13616_v3  ;;  %v13727_v2 = vcombine.high %v1018_v23, %v1026_v60  ;;  %v13729_v3 = vcombine.high %v1019_v61, %v1027_v62  ;;  %v13792_v61 = vcombine.low %v1083_v39, %v1091_v40 }
 0x364   :  { %7204 = vmatprep.subr.bf16.mxu0 %v13631_v5  ;;  %7368 = vmatprep.subr.bf16.mxu1 %v13633_v6  ;;  %v1034_v5 = vld [vmem:[#allocation2 + $0x19a0] sm:$0xff] }
 0x365   :  { %v1042_v6 = vld [vmem:[#allocation2 + $0x19e0] sm:$0xff] }
 0x366   :  { %v13742_v19 = vcombine.low %v1034_v5, %v1042_v6 }
 0x367   :  { %7205 = vmatpush1.bf16.msra.mxu0 %v13630_v12  ;;  %7369 = vmatpush1.bf16.msra.mxu1 %v13632_v13  ;;  %v13743_v12 = vcombine.high %v1034_v5, %v1042_v6  ;;  %v13745_v13 = vcombine.high %v1035_v7, %v1043_v8  ;;  %v1115_v5 = vld [vmem:[#allocation2 + $0x1c28] sm:$0xff] }
 0x368   :  { %7206 = vmatprep.subr.bf16.mxu0 %v13647_v33  ;;  %7370 = vmatprep.subr.bf16.mxu1 %v13649_v15  ;;  %v1050_v33 = vld [vmem:[#allocation2 + $0x1a20] sm:$0xff]  ;;  %v1123_v6 = vld [vmem:[#allocation2 + $0x1c68] sm:$0xff] }
 0x369   :  { %v1058_v15 = vld [vmem:[#allocation2 + $0x1a60] sm:$0xff] }
 0x36a   :  { %v13758_v34 = vcombine.low %v1050_v33, %v1058_v15 }
 0x36b   :  { %7207 = vmatpush1.bf16.msra.mxu0 %v13646_v20  ;;  %7371 = vmatpush1.bf16.msra.mxu1 %v13648_v22  ;;  %v13759_v20 = vcombine.high %v1050_v33, %v1058_v15  ;;  %v13761_v22 = vcombine.high %v1051_v17, %v1059_v18  ;;  %v1131_v33 = vld [vmem:[#allocation2 + $0x1ca8] sm:$0xff]  ;;  %v13824_v18 = vcombine.low %v1115_v5, %v1123_v6 }
 0x36c   :  { %7208 = vmatprep.subr.bf16.mxu0 %v13663_v24  ;;  %7372 = vmatprep.subr.bf16.mxu1 %v13665_v26  ;;  %v1066_v24 = vld [vmem:[#allocation2 + $0x1aa0] sm:$0xff]  ;;  %v1139_v15 = vld [vmem:[#allocation2 + $0x1ce8] sm:$0xff] }
 0x36d   :  { %v1074_v26 = vld [vmem:[#allocation2 + $0x1ae0] sm:$0xff] }
 0x36e   :  { %v13774_v41 = vcombine.low %v1066_v24, %v1074_v26 }
 0x36f   :  { %7209 = vmatpush1.bf16.msra.mxu0 %v13662_v63  ;;  %7373 = vmatpush1.bf16.msra.mxu1 %v13664_v37  ;;  %v13775_v63 = vcombine.high %v1066_v24, %v1074_v26  ;;  %v13777_v37 = vcombine.high %v1067_v30, %v1075_v31  ;;  %v1147_v24 = vld [vmem:[#allocation2 + $0x1d28] sm:$0xff]  ;;  %v13840_v31 = vcombine.low %v1131_v33, %v1139_v15 }
 0x370   :  { %7210 = vmatprep.subr.bf16.mxu0 %v13679_v38  ;;  %7374 = vmatprep.subr.bf16.mxu1 %v13681_v57  ;;  %v1082_v38 = vld [vmem:[#allocation2 + $0x1b20] sm:$0xff]  ;;  %v1155_v26 = vld [vmem:[#allocation2 + $0x1d68] sm:$0xff] }
 0x371   :  { %v1090_v57 = vld [vmem:[#allocation2 + $0x1b60] sm:$0xff] }
 0x373   :  { %7211 = vmatpush1.bf16.msra.mxu0 %v13678_v45  ;;  %7375 = vmatpush1.bf16.msra.mxu1 %v13680_v46  ;;  %v13791_v45 = vcombine.high %v1082_v38, %v1090_v57 }
 0x374   :  { %7221 = vmatprep.subr.bf16.mxu0 %v13695_v47  ;;  %7385 = vmatprep.subr.bf16.mxu1 %v13697_v48  ;;  %v13793_v47 = vcombine.high %v1083_v39, %v1091_v40  ;;  %v1098_v48 = vld [vmem:[#allocation2 + $0x1ba0] sm:$0xff]  ;;  %v13856_v40 = vcombine.low %v1147_v24, %v1155_v26 }
 0x375   :  { %v13807_v62 = vcombine.high %v1098_v48, %v1106_v49  ;;  %v13806_v7 = vcombine.low %v1098_v48, %v1106_v49  ;;  %v1179_v48 = vld [vmem:[#allocation2 + $0x1e28] sm:$0xff] }
 0x376   :  { %7213 = vmatmul.mubr.bf16.vlgmr.msra.gmra.mrb[8].mxu0 %v16249_v4  ;;  %7377 = vmatmul.mubr.bf16.vlgmr.msra.gmra.mrb[8].mxu1 %v16249_v4  ;;  %v1187_v49 = vld [vmem:[#allocation2 + $0x1e68] sm:$0xff] }
 0x377   :  { %7222 = vmatpush1.bf16.msra.mxu0 %v13694_v16  ;;  %7386 = vmatpush1.bf16.msra.mxu1 %v13696_v55  ;;  %v1107_v16 = vld [vmem:[#allocation2 + $0x1be8] sm:$0xff] }
 0x378   :  { %7223 = vmatprep.subr.bf16.mxu0 %v13711_v56  ;;  %7387 = vmatprep.subr.bf16.mxu1 %v13713_v58  ;;  %v13790_v58 = vcombine.low %v1082_v38, %v1090_v57  ;;  %v13808_v8 = vcombine.low %v1099_v52, %v1107_v16  ;;  %v1163_v38 = vld [vmem:[#allocation2 + $0x1da8] sm:$0xff] }
 0x379   :  { %7253 = vmatprep.mubr.bf16.mxu0 %v16251_v14  ;;  %7417 = vmatprep.mubr.bf16.mxu1 %v16251_v14  ;;  %v1171_v57 = vld [vmem:[#allocation2 + $0x1de8] sm:$0xff] }
 0x37b   :  { %7224 = vmatpush1.bf16.msra.mxu0 %v13710_v0  ;;  %7388 = vmatpush1.bf16.msra.mxu1 %v13712_v1  ;;  %v13809_v1 = vcombine.high %v1099_v52, %v1107_v16  ;;  %v13872_v16 = vcombine.low %v1163_v38, %v1171_v57 }
 0x37c   :  { %7225 = vmatprep.subr.bf16.mxu0 %v13727_v2  ;;  %7389 = vmatprep.subr.bf16.mxu1 %v13729_v3  ;;  %v1114_v2 = vld [vmem:[#allocation2 + $0x1c20] sm:$0xff] }
 0x37d   :  { %v1122_v3 = vld [vmem:[#allocation2 + $0x1c60] sm:$0xff] }
 0x37e   :  { %v13822_v17 = vcombine.low %v1114_v2, %v1122_v3 }
 0x37f   :  { %7226 = vmatpush1.bf16.msra.mxu0 %v13726_v10  ;;  %7390 = vmatpush1.bf16.msra.mxu1 %v13728_v11  ;;  %v13823_v10 = vcombine.high %v1114_v2, %v1122_v3  ;;  %v13825_v11 = vcombine.high %v1115_v5, %v1123_v6  ;;  %v1210_v5 = vld [vmem:[#allocation2 + $0x1f20] sm:$0xff] }
 0x380   :  { %7227 = vmatprep.subr.bf16.mxu0 %v13743_v12  ;;  %7391 = vmatprep.subr.bf16.mxu1 %v13745_v13  ;;  %v1130_v12 = vld [vmem:[#allocation2 + $0x1ca0] sm:$0xff] }
 0x381   :  { %v1138_v13 = vld [vmem:[#allocation2 + $0x1ce0] sm:$0xff] }
 0x382   :  { %v13838_v30 = vcombine.low %v1130_v12, %v1138_v13  ;;  %v1218_v6 = vld [vmem:[#allocation2 + $0x1f60] sm:$0xff] }
 0x383   :  { %7228 = vmatpush1.bf16.msra.mxu0 %v13742_v19  ;;  %7392 = vmatpush1.bf16.msra.mxu1 %v13744_v59  ;;  %v13839_v19 = vcombine.high %v1130_v12, %v1138_v13  ;;  %v13841_v59 = vcombine.high %v1131_v33, %v1139_v15  ;;  %v13919_v12 = vcombine.high %v1210_v5, %v1218_v6  ;;  %v1226_v33 = vld [vmem:[#allocation2 + $0x1fa0] sm:$0xff] }
 0x384   :  { %7229 = vmatprep.subr.bf16.mxu0 %v13759_v20  ;;  %7393 = vmatprep.subr.bf16.mxu1 %v13761_v22  ;;  %v1146_v20 = vld [vmem:[#allocation2 + $0x1d20] sm:$0xff] }
 0x385   :  { %v1154_v22 = vld [vmem:[#allocation2 + $0x1d60] sm:$0xff] }
 0x386   :  { %v13854_v39 = vcombine.low %v1146_v20, %v1154_v22  ;;  %v1234_v15 = vld [vmem:[#allocation2 + $0x1fe0] sm:$0xff] }
 0x387   :  { %7230 = vmatpush1.bf16.msra.mxu0 %v13758_v34  ;;  %7394 = vmatpush1.bf16.msra.mxu1 %v13760_v35  ;;  %v13855_v34 = vcombine.high %v1146_v20, %v1154_v22  ;;  %v13857_v35 = vcombine.high %v1147_v24, %v1155_v26  ;;  %v13935_v20 = vcombine.high %v1226_v33, %v1234_v15  ;;  %v220_v24 = vld [vmem:[#allocation2 + $0x30] sm:$0xff] }
 0x388   :  { %7231 = vmatprep.subr.bf16.mxu0 %v13775_v63  ;;  %7395 = vmatprep.subr.bf16.mxu1 %v13777_v37  ;;  %v1162_v63 = vld [vmem:[#allocation2 + $0x1da0] sm:$0xff]  ;;  %v228_v26 = vld [vmem:[#allocation2 + $0x70] sm:$0xff] }
 0x389   :  { %v16301_v46 = vpop.f32.mrb[4].mxu0  ;;  %v16303_v50 = vpop.f32.mrb[4].mxu1  ;;  %v1170_v37 = vld [vmem:[#allocation2 + $0x1de0] sm:$0xff] }
 0x38a   :  { %v16305_v51 = vpop.f32.mrb[5].mxu0  ;;  %v16307_v55 = vpop.f32.mrb[5].mxu1  ;;  %v13870_v52 = vcombine.low %v1162_v63, %v1170_v37 }
 0x38b   :  { %v6931_v56 = vpop.f32.mrb[6].mxu0  ;;  %7232 = vmatpush1.bf16.msra.mxu0 %v13774_v41  ;;  %v7095_v23 = vpop.f32.mrb[6].mxu1  ;;  %7396 = vmatpush1.bf16.msra.mxu1 %v13776_v42  ;;  %v13871_v41 = vcombine.high %v1162_v63, %v1170_v37  ;;  %v13873_v42 = vcombine.high %v1163_v38, %v1171_v57  ;;  %v12931_v63 = vcombine.high %v220_v24, %v228_v26  ;;  %v236_v38 = vld [vmem:[#allocation2 + $0xb0] sm:$0xff] }
 0x38c   :  { %v6932_v60 = vpop.f32.mrb[7].mxu0  ;;  %7233 = vmatprep.subr.bf16.mxu0 %v13791_v45  ;;  %v7096_v0 = vpop.f32.mrb[7].mxu1  ;;  %7397 = vmatprep.subr.bf16.mxu1 %v13793_v47  ;;  %v1178_v45 = vld [vmem:[#allocation2 + $0x1e20] sm:$0xff]  ;;  %v244_v57 = vld [vmem:[#allocation2 + $0xf0] sm:$0xff] }
 0x38d   :  { %v1186_v47 = vld [vmem:[#allocation2 + $0x1e60] sm:$0xff] }
 0x38e   :  { %v13887_v56 = vcombine.high %v1178_v45, %v1186_v47  ;;  %v1194_v23 = vld [vmem:[#allocation2 + $0x1ea0] sm:$0xff]  ;;  %v13886_v0 = vcombine.low %v1178_v45, %v1186_v47  ;;  %v12947_v45 = vcombine.high %v236_v38, %v244_v57 }
 0x38f   :  { %7234 = vmatpush1.bf16.msra.mxu0 %v13790_v58  ;;  %7398 = vmatpush1.bf16.msra.mxu1 %v13792_v61  ;;  %v13889_v58 = vcombine.high %v1179_v48, %v1187_v49  ;;  %v1202_v60 = vld [vmem:[#allocation2 + $0x1ee0] sm:$0xff]  ;;  %v1195_v61 = vld [vmem:[#allocation2 + $0x1ea8] sm:$0xff] }
 0x390   :  { %7235 = vmatprep.subr.bf16.mxu0 %v13807_v62  ;;  %7399 = vmatprep.subr.bf16.mxu1 %v13809_v1  ;;  %v1203_v62 = vld [vmem:[#allocation2 + $0x1ee8] sm:$0xff]  ;;  %v13888_v1 = vcombine.low %v1179_v48, %v1187_v49  ;;  %v13903_v2 = vcombine.high %v1194_v23, %v1202_v60  ;;  %v252_v48 = vld [vmem:[#allocation2 + $0x130] sm:$0xff] }
 0x391   :  { %v13905_v3 = vcombine.high %v1195_v61, %v1203_v62  ;;  %v260_v49 = vld [vmem:[#allocation2 + $0x170] sm:$0xff] }
 0x393   :  { %7236 = vmatpush1.bf16.msra.mxu0 %v13806_v7  ;;  %7400 = vmatpush1.bf16.msra.mxu1 %v13808_v8  ;;  %v1211_v7 = vld [vmem:[#allocation2 + $0x1f28] sm:$0xff] }
 0x394   :  { %7237 = vmatprep.subr.bf16.mxu0 %v13823_v10  ;;  %7401 = vmatprep.subr.bf16.mxu1 %v13825_v11  ;;  %v1219_v8 = vld [vmem:[#allocation2 + $0x1f68] sm:$0xff]  ;;  %v13902_v10 = vcombine.low %v1194_v23, %v1202_v60  ;;  %v13904_v11 = vcombine.low %v1195_v61, %v1203_v62  ;;  %v12963_v23 = vcombine.high %v252_v48, %v260_v49  ;;  %v268_v61 = vld [vmem:[#allocation2 + $0x1b0] sm:$0xff] }
 0x395   :  { %v13921_v13 = vcombine.high %v1211_v7, %v1219_v8  ;;  %v276_v62 = vld [vmem:[#allocation2 + $0x1f0] sm:$0xff] }
 0x397   :  { %7238 = vmatpush1.bf16.msra.mxu0 %v13822_v17  ;;  %7402 = vmatpush1.bf16.msra.mxu1 %v13824_v18  ;;  %v1227_v17 = vld [vmem:[#allocation2 + $0x1fa8] sm:$0xff] }
 0x398   :  { %7239 = vmatprep.subr.bf16.mxu0 %v13839_v19  ;;  %7403 = vmatprep.subr.bf16.mxu1 %v13841_v59  ;;  %v1235_v18 = vld [vmem:[#allocation2 + $0x1fe8] sm:$0xff]  ;;  %v13918_v19 = vcombine.low %v1210_v5, %v1218_v6  ;;  %v13920_v59 = vcombine.low %v1211_v7, %v1219_v8  ;;  %v12979_v5 = vcombine.high %v268_v61, %v276_v62  ;;  %v284_v7 = vld [vmem:[#allocation2 + $0x230] sm:$0xff] }
 0x399   :  { %v13937_v22 = vcombine.high %v1227_v17, %v1235_v18  ;;  %v292_v8 = vld [vmem:[#allocation2 + $0x270] sm:$0xff] }
 0x39b   :  { %7240 = vmatpush1.bf16.msra.mxu0 %v13838_v30  ;;  %7404 = vmatpush1.bf16.msra.mxu1 %v13840_v31  ;;  %v221_v30 = vld [vmem:[#allocation2 + $0x38] sm:$0xff] }
 0x39c   :  { %7241 = vmatprep.subr.bf16.mxu0 %v13855_v34  ;;  %7405 = vmatprep.subr.bf16.mxu1 %v13857_v35  ;;  %v229_v31 = vld [vmem:[#allocation2 + $0x78] sm:$0xff]  ;;  %v13934_v34 = vcombine.low %v1226_v33, %v1234_v15  ;;  %v13936_v35 = vcombine.low %v1227_v17, %v1235_v18  ;;  %v12995_v33 = vcombine.high %v284_v7, %v292_v8  ;;  %v300_v15 = vld [vmem:[#allocation2 + $0x2b0] sm:$0xff] }
 0x39d   :  { %v12933_v37 = vcombine.high %v221_v30, %v229_v31  ;;  %v308_v17 = vld [vmem:[#allocation2 + $0x2f0] sm:$0xff]  ;;  %v301_v18 = vld [vmem:[#allocation2 + $0x2b8] sm:$0xff] }
 0x39f   :  { %7242 = vmatpush1.bf16.msra.mxu0 %v13854_v39  ;;  %7406 = vmatpush1.bf16.msra.mxu1 %v13856_v40  ;;  %v237_v39 = vld [vmem:[#allocation2 + $0xb8] sm:$0xff] }
 0x3a0   :  { %7243 = vmatprep.subr.bf16.mxu0 %v13871_v41  ;;  %7407 = vmatprep.subr.bf16.mxu1 %v13873_v42  ;;  %v245_v40 = vld [vmem:[#allocation2 + $0xf8] sm:$0xff]  ;;  %v12930_v41 = vcombine.low %v220_v24, %v228_v26  ;;  %v12932_v42 = vcombine.low %v221_v30, %v229_v31  ;;  %v316_v26 = vld [vmem:[#allocation2 + $0x330] sm:$0xff] }
 0x3a1   :  { %v12949_v47 = vcombine.high %v237_v39, %v245_v40  ;;  %v324_v30 = vld [vmem:[#allocation2 + $0x370] sm:$0xff]  ;;  %v317_v31 = vld [vmem:[#allocation2 + $0x338] sm:$0xff] }
 0x3a3   :  { %7244 = vmatpush1.bf16.msra.mxu0 %v13870_v52  ;;  %7408 = vmatpush1.bf16.msra.mxu1 %v13872_v16  ;;  %v253_v52 = vld [vmem:[#allocation2 + $0x138] sm:$0xff] }
 0x3a4   :  { %7245 = vmatprep.subr.bf16.mxu0 %v13887_v56  ;;  %7409 = vmatprep.subr.bf16.mxu1 %v13889_v58  ;;  %v261_v16 = vld [vmem:[#allocation2 + $0x178] sm:$0xff]  ;;  %v12946_v56 = vcombine.low %v236_v38, %v244_v57  ;;  %v12948_v58 = vcombine.low %v237_v39, %v245_v40  ;;  %v332_v57 = vld [vmem:[#allocation2 + $0x3b0] sm:$0xff] }
 0x3a5   :  { %v12965_v60 = vcombine.high %v253_v52, %v261_v16  ;;  %v340_v39 = vld [vmem:[#allocation2 + $0x3f0] sm:$0xff]  ;;  %v333_v40 = vld [vmem:[#allocation2 + $0x3b8] sm:$0xff] }
 0x3a7   :  { %7246 = vmatpush1.bf16.msra.mxu0 %v13886_v0  ;;  %7410 = vmatpush1.bf16.msra.mxu1 %v13888_v1  ;;  %v269_v0 = vld [vmem:[#allocation2 + $0x1b8] sm:$0xff] }
 0x3a8   :  { %7247 = vmatprep.subr.bf16.mxu0 %v13903_v2  ;;  %7411 = vmatprep.subr.bf16.mxu1 %v13905_v3  ;;  %v277_v1 = vld [vmem:[#allocation2 + $0x1f8] sm:$0xff]  ;;  %v12962_v2 = vcombine.low %v252_v48, %v260_v49  ;;  %v12964_v3 = vcombine.low %v253_v52, %v261_v16  ;;  %v348_v49 = vld [vmem:[#allocation2 + $0x430] sm:$0xff] }
 0x3a9   :  { %v12981_v6 = vcombine.high %v269_v0, %v277_v1  ;;  %v356_v52 = vld [vmem:[#allocation2 + $0x470] sm:$0xff]  ;;  %v349_v16 = vld [vmem:[#allocation2 + $0x438] sm:$0xff] }
 0x3ab   :  { %7248 = vmatpush1.bf16.msra.mxu0 %v13902_v10  ;;  %7412 = vmatpush1.bf16.msra.mxu1 %v13904_v11  ;;  %v285_v10 = vld [vmem:[#allocation2 + $0x238] sm:$0xff] }
 0x3ac   :  { %7249 = vmatprep.subr.bf16.mxu0 %v13919_v12  ;;  %7413 = vmatprep.subr.bf16.mxu1 %v13921_v13  ;;  %v293_v11 = vld [vmem:[#allocation2 + $0x278] sm:$0xff]  ;;  %v12978_v12 = vcombine.low %v268_v61, %v276_v62  ;;  %v12980_v13 = vcombine.low %v269_v0, %v277_v1  ;;  %v364_v62 = vld [vmem:[#allocation2 + $0x4b0] sm:$0xff] }
 0x3ad   :  { %v372_v0 = vld [vmem:[#allocation2 + $0x4f0] sm:$0xff]  ;;  %v365_v1 = vld [vmem:[#allocation2 + $0x4b8] sm:$0xff] }
 0x3af   :  { %7250 = vmatpush1.bf16.msra.mxu0 %v13918_v19  ;;  %7414 = vmatpush1.bf16.msra.mxu1 %v13920_v59  ;;  %v309_v19 = vld [vmem:[#allocation2 + $0x2f8] sm:$0xff]  ;;  %v12994_v59 = vcombine.low %v284_v7, %v292_v8  ;;  %v380_v8 = vld [vmem:[#allocation2 + $0x530] sm:$0xff] }
 0x3b0   :  { %7251 = vmatprep.subr.bf16.mxu0 %v13935_v20  ;;  %7415 = vmatprep.subr.bf16.mxu1 %v13937_v22  ;;  %v12996_v20 = vcombine.low %v285_v10, %v293_v11  ;;  %v13011_v22 = vcombine.high %v300_v15, %v308_v17  ;;  %v13013_v24 = vcombine.high %v301_v18, %v309_v19 }
 0x3b3   :  { %7252 = vmatpush1.bf16.msra.mxu0 %v13934_v34  ;;  %7416 = vmatpush1.bf16.msra.mxu1 %v13936_v35  ;;  %v325_v34 = vld [vmem:[#allocation2 + $0x378] sm:$0xff]  ;;  %v13010_v35 = vcombine.low %v300_v15, %v308_v17  ;;  %v396_v17 = vld [vmem:[#allocation2 + $0x5b0] sm:$0xff] }
 0x3b4   :  { %7426 = vmatprep.subr.bf16.mxu0 %v12931_v63  ;;  %7590 = vmatprep.subr.bf16.mxu1 %v12933_v37  ;;  %v13012_v63 = vcombine.low %v301_v18, %v309_v19  ;;  %v13027_v37 = vcombine.high %v316_v26, %v324_v30  ;;  %v13029_v38 = vcombine.high %v317_v31, %v325_v34  ;;  %v404_v18 = vld [vmem:[#allocation2 + $0x5f0] sm:$0xff]  ;;  %v397_v19 = vld [vmem:[#allocation2 + $0x5b8] sm:$0xff] }
 0x3b6   :  { %7254 = vmatmul.mubr.bf16.vlgmr.msra.gmra.mrb[8].mxu0 %v16259_v28  ;;  %7418 = vmatmul.mubr.bf16.vlgmr.msra.gmra.mrb[8].mxu1 %v16259_v28 }
 0x3b7   :  { %7427 = vmatpush1.bf16.msra.mxu0 %v12930_v41  ;;  %7591 = vmatpush1.bf16.msra.mxu1 %v12932_v42  ;;  %v341_v41 = vld [vmem:[#allocation2 + $0x3f8] sm:$0xff]  ;;  %v13026_v42 = vcombine.low %v316_v26, %v324_v30  ;;  %v412_v30 = vld [vmem:[#allocation2 + $0x630] sm:$0xff] }
 0x3b8   :  { %7428 = vmatprep.subr.bf16.mxu0 %v12947_v45  ;;  %7592 = vmatprep.subr.bf16.mxu1 %v12949_v47  ;;  %v13028_v45 = vcombine.low %v317_v31, %v325_v34  ;;  %v13043_v47 = vcombine.high %v332_v57, %v340_v39  ;;  %v13045_v48 = vcombine.high %v333_v40, %v341_v41  ;;  %v420_v31 = vld [vmem:[#allocation2 + $0x670] sm:$0xff]  ;;  %v413_v34 = vld [vmem:[#allocation2 + $0x638] sm:$0xff] }
 0x3b9   :  { %7458 = vmatprep.mubr.bf16.mxu0 %v16198_v9  ;;  %7622 = vmatprep.mubr.bf16.mxu1 %v16198_v9  ;;  %v12997_v9 = vcombine.high %v285_v10, %v293_v11  ;;  %v388_v10 = vld [vmem:[#allocation2 + $0x570] sm:$0xff]  ;;  %v381_v11 = vld [vmem:[#allocation2 + $0x538] sm:$0xff] }
 0x3bb   :  { %7429 = vmatpush1.bf16.msra.mxu0 %v12946_v56  ;;  %7593 = vmatpush1.bf16.msra.mxu1 %v12948_v58  ;;  %v357_v56 = vld [vmem:[#allocation2 + $0x478] sm:$0xff]  ;;  %v13042_v58 = vcombine.low %v332_v57, %v340_v39  ;;  %v428_v39 = vld [vmem:[#allocation2 + $0x6b0] sm:$0xff] }
 0x3bc   :  { %7430 = vmatprep.subr.bf16.mxu0 %v12963_v23  ;;  %7594 = vmatprep.subr.bf16.mxu1 %v12965_v60  ;;  %v13044_v23 = vcombine.low %v333_v40, %v341_v41  ;;  %v13059_v60 = vcombine.high %v348_v49, %v356_v52  ;;  %v13061_v61 = vcombine.high %v349_v16, %v357_v56  ;;  %v436_v40 = vld [vmem:[#allocation2 + $0x6f0] sm:$0xff]  ;;  %v429_v41 = vld [vmem:[#allocation2 + $0x6b8] sm:$0xff] }
 0x3bf   :  { %7431 = vmatpush1.bf16.msra.mxu0 %v12962_v2  ;;  %7595 = vmatpush1.bf16.msra.mxu1 %v12964_v3  ;;  %v373_v2 = vld [vmem:[#allocation2 + $0x4f8] sm:$0xff]  ;;  %v13058_v3 = vcombine.low %v348_v49, %v356_v52  ;;  %v444_v52 = vld [vmem:[#allocation2 + $0x730] sm:$0xff] }
 0x3c0   :  { %7432 = vmatprep.subr.bf16.mxu0 %v12979_v5  ;;  %7596 = vmatprep.subr.bf16.mxu1 %v12981_v6  ;;  %v13060_v5 = vcombine.low %v349_v16, %v357_v56  ;;  %v13075_v6 = vcombine.high %v364_v62, %v372_v0  ;;  %v13077_v7 = vcombine.high %v365_v1, %v373_v2  ;;  %v452_v16 = vld [vmem:[#allocation2 + $0x770] sm:$0xff]  ;;  %v445_v56 = vld [vmem:[#allocation2 + $0x738] sm:$0xff] }
 0x3c3   :  { %7433 = vmatpush1.bf16.msra.mxu0 %v12978_v12  ;;  %7597 = vmatpush1.bf16.msra.mxu1 %v12980_v13  ;;  %v389_v12 = vld [vmem:[#allocation2 + $0x578] sm:$0xff]  ;;  %v13074_v13 = vcombine.low %v364_v62, %v372_v0  ;;  %v460_v0 = vld [vmem:[#allocation2 + $0x7b0] sm:$0xff] }
 0x3c4   :  { %7434 = vmatprep.subr.bf16.mxu0 %v12995_v33  ;;  %7598 = vmatprep.subr.bf16.mxu1 %v12997_v9  ;;  %v13076_v33 = vcombine.low %v365_v1, %v373_v2  ;;  %v13091_v9 = vcombine.high %v380_v8, %v388_v10  ;;  %v13093_v15 = vcombine.high %v381_v11, %v389_v12  ;;  %v468_v1 = vld [vmem:[#allocation2 + $0x7f0] sm:$0xff]  ;;  %v461_v2 = vld [vmem:[#allocation2 + $0x7b8] sm:$0xff] }
 0x3c7   :  { %7435 = vmatpush1.bf16.msra.mxu0 %v12994_v59  ;;  %7599 = vmatpush1.bf16.msra.mxu1 %v12996_v20  ;;  %v405_v59 = vld [vmem:[#allocation2 + $0x5f8] sm:$0xff]  ;;  %v13090_v20 = vcombine.low %v380_v8, %v388_v10  ;;  %v476_v10 = vld [vmem:[#allocation2 + $0x830] sm:$0xff] }
 0x3c8   :  { %7436 = vmatprep.subr.bf16.mxu0 %v13011_v22  ;;  %7600 = vmatprep.subr.bf16.mxu1 %v13013_v24  ;;  %v13092_v22 = vcombine.low %v381_v11, %v389_v12  ;;  %v13107_v24 = vcombine.high %v396_v17, %v404_v18  ;;  %v13109_v26 = vcombine.high %v397_v19, %v405_v59  ;;  %v484_v11 = vld [vmem:[#allocation2 + $0x870] sm:$0xff]  ;;  %v477_v12 = vld [vmem:[#allocation2 + $0x838] sm:$0xff] }
 0x3cb   :  { %7437 = vmatpush1.bf16.msra.mxu0 %v13010_v35  ;;  %7601 = vmatpush1.bf16.msra.mxu1 %v13012_v63  ;;  %v421_v35 = vld [vmem:[#allocation2 + $0x678] sm:$0xff]  ;;  %v13106_v63 = vcombine.low %v396_v17, %v404_v18  ;;  %v492_v18 = vld [vmem:[#allocation2 + $0x8b0] sm:$0xff] }
 0x3cc   :  { %7438 = vmatprep.subr.bf16.mxu0 %v13027_v37  ;;  %7602 = vmatprep.subr.bf16.mxu1 %v13029_v38  ;;  %v13108_v37 = vcombine.low %v397_v19, %v405_v59  ;;  %v13123_v38 = vcombine.high %v412_v30, %v420_v31  ;;  %v13125_v57 = vcombine.high %v413_v34, %v421_v35  ;;  %v500_v19 = vld [vmem:[#allocation2 + $0x8f0] sm:$0xff]  ;;  %v493_v59 = vld [vmem:[#allocation2 + $0x8b8] sm:$0xff] }
 0x3cf   :  { %7439 = vmatpush1.bf16.msra.mxu0 %v13026_v42  ;;  %7603 = vmatpush1.bf16.msra.mxu1 %v13028_v45  ;;  %v437_v42 = vld [vmem:[#allocation2 + $0x6f8] sm:$0xff]  ;;  %v13122_v45 = vcombine.low %v412_v30, %v420_v31  ;;  %v508_v31 = vld [vmem:[#allocation2 + $0x930] sm:$0xff] }
 0x3d0   :  { %7440 = vmatprep.subr.bf16.mxu0 %v13043_v47  ;;  %7604 = vmatprep.subr.bf16.mxu1 %v13045_v48  ;;  %v13124_v47 = vcombine.low %v413_v34, %v421_v35  ;;  %v13139_v48 = vcombine.high %v428_v39, %v436_v40  ;;  %v13141_v49 = vcombine.high %v429_v41, %v437_v42  ;;  %v516_v34 = vld [vmem:[#allocation2 + $0x970] sm:$0xff]  ;;  %v509_v35 = vld [vmem:[#allocation2 + $0x938] sm:$0xff] }
 0x3d3   :  { %7441 = vmatpush1.bf16.msra.mxu0 %v13042_v58  ;;  %7605 = vmatpush1.bf16.msra.mxu1 %v13044_v23  ;;  %v453_v58 = vld [vmem:[#allocation2 + $0x778] sm:$0xff]  ;;  %v13138_v23 = vcombine.low %v428_v39, %v436_v40  ;;  %v524_v40 = vld [vmem:[#allocation2 + $0x9b0] sm:$0xff] }
 0x3d4   :  { %7442 = vmatprep.subr.bf16.mxu0 %v13059_v60  ;;  %7606 = vmatprep.subr.bf16.mxu1 %v13061_v61  ;;  %v13140_v60 = vcombine.low %v429_v41, %v437_v42  ;;  %v13155_v61 = vcombine.high %v444_v52, %v452_v16  ;;  %v13157_v62 = vcombine.high %v445_v56, %v453_v58  ;;  %v532_v41 = vld [vmem:[#allocation2 + $0x9f0] sm:$0xff]  ;;  %v525_v42 = vld [vmem:[#allocation2 + $0x9b8] sm:$0xff] }
 0x3d7   :  { %7443 = vmatpush1.bf16.msra.mxu0 %v13058_v3  ;;  %7607 = vmatpush1.bf16.msra.mxu1 %v13060_v5  ;;  %v469_v3 = vld [vmem:[#allocation2 + $0x7f8] sm:$0xff]  ;;  %v13154_v5 = vcombine.low %v444_v52, %v452_v16  ;;  %v540_v52 = vld [vmem:[#allocation2 + $0xa30] sm:$0xff] }
 0x3d8   :  { %7444 = vmatprep.subr.bf16.mxu0 %v13075_v6  ;;  %7608 = vmatprep.subr.bf16.mxu1 %v13077_v7  ;;  %v13156_v6 = vcombine.low %v445_v56, %v453_v58  ;;  %v13171_v7 = vcombine.high %v460_v0, %v468_v1  ;;  %v13173_v8 = vcombine.high %v461_v2, %v469_v3  ;;  %v548_v16 = vld [vmem:[#allocation2 + $0xa70] sm:$0xff]  ;;  %v541_v56 = vld [vmem:[#allocation2 + $0xa38] sm:$0xff] }
 0x3d9   :  { %v549_v58 = vld [vmem:[#allocation2 + $0xa78] sm:$0xff] }
 0x3db   :  { %7445 = vmatpush1.bf16.msra.mxu0 %v13074_v13  ;;  %7609 = vmatpush1.bf16.msra.mxu1 %v13076_v33  ;;  %v485_v13 = vld [vmem:[#allocation2 + $0x878] sm:$0xff]  ;;  %v13170_v33 = vcombine.low %v460_v0, %v468_v1  ;;  %v564_v0 = vld [vmem:[#allocation2 + $0xaf0] sm:$0xff] }
 0x3dc   :  { %7446 = vmatprep.subr.bf16.mxu0 %v13091_v9  ;;  %7610 = vmatprep.subr.bf16.mxu1 %v13093_v15  ;;  %v13172_v9 = vcombine.low %v461_v2, %v469_v3  ;;  %v13187_v15 = vcombine.high %v476_v10, %v484_v11  ;;  %v13189_v17 = vcombine.high %v477_v12, %v485_v13  ;;  %v557_v1 = vld [vmem:[#allocation2 + $0xab8] sm:$0xff] }
 0x3dd   :  { %v565_v2 = vld [vmem:[#allocation2 + $0xaf8] sm:$0xff]  ;;  %v13250_v3 = vcombine.low %v540_v52, %v548_v16 }
 0x3df   :  { %7447 = vmatpush1.bf16.msra.mxu0 %v13090_v20  ;;  %7611 = vmatpush1.bf16.msra.mxu1 %v13092_v22  ;;  %v501_v20 = vld [vmem:[#allocation2 + $0x8f8] sm:$0xff]  ;;  %v13186_v22 = vcombine.low %v476_v10, %v484_v11  ;;  %v580_v10 = vld [vmem:[#allocation2 + $0xb70] sm:$0xff] }
 0x3e0   :  { %7448 = vmatprep.subr.bf16.mxu0 %v13107_v24  ;;  %7612 = vmatprep.subr.bf16.mxu1 %v13109_v26  ;;  %v13188_v24 = vcombine.low %v477_v12, %v485_v13  ;;  %v13203_v26 = vcombine.high %v492_v18, %v500_v19  ;;  %v13205_v30 = vcombine.high %v493_v59, %v501_v20  ;;  %v573_v11 = vld [vmem:[#allocation2 + $0xb38] sm:$0xff] }
 0x3e1   :  { %v581_v12 = vld [vmem:[#allocation2 + $0xb78] sm:$0xff] }
 0x3e3   :  { %7449 = vmatpush1.bf16.msra.mxu0 %v13106_v63  ;;  %7613 = vmatpush1.bf16.msra.mxu1 %v13108_v37  ;;  %v517_v63 = vld [vmem:[#allocation2 + $0x978] sm:$0xff]  ;;  %v13202_v37 = vcombine.low %v492_v18, %v500_v19  ;;  %v596_v18 = vld [vmem:[#allocation2 + $0xbf0] sm:$0xff] }
 0x3e4   :  { %7450 = vmatprep.subr.bf16.mxu0 %v13123_v38  ;;  %7614 = vmatprep.subr.bf16.mxu1 %v13125_v57  ;;  %v13204_v38 = vcombine.low %v493_v59, %v501_v20  ;;  %v13219_v57 = vcombine.high %v508_v31, %v516_v34  ;;  %v13221_v39 = vcombine.high %v509_v35, %v517_v63  ;;  %v589_v19 = vld [vmem:[#allocation2 + $0xbb8] sm:$0xff] }
 0x3e5   :  { %v597_v59 = vld [vmem:[#allocation2 + $0xbf8] sm:$0xff] }
 0x3e7   :  { %7451 = vmatpush1.bf16.msra.mxu0 %v13122_v45  ;;  %7615 = vmatpush1.bf16.msra.mxu1 %v13124_v47  ;;  %v533_v45 = vld [vmem:[#allocation2 + $0x9f8] sm:$0xff]  ;;  %v13218_v47 = vcombine.low %v508_v31, %v516_v34  ;;  %v612_v31 = vld [vmem:[#allocation2 + $0xc70] sm:$0xff] }
 0x3e8   :  { %7452 = vmatprep.subr.bf16.mxu0 %v13139_v48  ;;  %7616 = vmatprep.subr.bf16.mxu1 %v13141_v49  ;;  %v13235_v48 = vcombine.high %v524_v40, %v532_v41  ;;  %v13237_v49 = vcombine.high %v525_v42, %v533_v45  ;;  %v605_v34 = vld [vmem:[#allocation2 + $0xc38] sm:$0xff] }
 0x3eb   :  { %7453 = vmatpush1.bf16.msra.mxu0 %v13138_v23  ;;  %7617 = vmatpush1.bf16.msra.mxu1 %v13140_v60  ;;  %v13234_v23 = vcombine.low %v524_v40, %v532_v41  ;;  %v13236_v60 = vcombine.low %v525_v42, %v533_v45  ;;  %v628_v40 = vld [vmem:[#allocation2 + $0xcf0] sm:$0xff]  ;;  %v621_v41 = vld [vmem:[#allocation2 + $0xcb8] sm:$0xff] }
 0x3ec   :  { %7454 = vmatprep.subr.bf16.mxu0 %v13155_v61  ;;  %7618 = vmatprep.subr.bf16.mxu1 %v13157_v62  ;;  %v13251_v61 = vcombine.high %v540_v52, %v548_v16  ;;  %v556_v62 = vld [vmem:[#allocation2 + $0xab0] sm:$0xff]  ;;  %v629_v42 = vld [vmem:[#allocation2 + $0xcf8] sm:$0xff] }
 0x3ed   :  { %v13266_v13 = vcombine.low %v556_v62, %v564_v0  ;;  %v644_v52 = vld [vmem:[#allocation2 + $0xd70] sm:$0xff]  ;;  %v637_v16 = vld [vmem:[#allocation2 + $0xd38] sm:$0xff] }
 0x3ef   :  { %7455 = vmatpush1.bf16.msra.mxu0 %v13154_v5  ;;  %7619 = vmatpush1.bf16.msra.mxu1 %v13156_v6  ;;  %v13252_v5 = vcombine.low %v541_v56, %v549_v58  ;;  %v13267_v6 = vcombine.high %v556_v62, %v564_v0  ;;  %v660_v62 = vld [vmem:[#allocation2 + $0xdf0] sm:$0xff]  ;;  %v653_v0 = vld [vmem:[#allocation2 + $0xdb8] sm:$0xff] }
 0x3f0   :  { %7456 = vmatprep.subr.bf16.mxu0 %v13171_v7  ;;  %7620 = vmatprep.subr.bf16.mxu1 %v13173_v8  ;;  %v13269_v7 = vcombine.high %v557_v1, %v565_v2  ;;  %v572_v8 = vld [vmem:[#allocation2 + $0xb30] sm:$0xff] }
 0x3f1   :  { %v13282_v20 = vcombine.low %v572_v8, %v580_v10 }
 0x3f3   :  { %7457 = vmatpush1.bf16.msra.mxu0 %v13170_v33  ;;  %7621 = vmatpush1.bf16.msra.mxu1 %v13172_v9  ;;  %v13268_v33 = vcombine.low %v557_v1, %v565_v2  ;;  %v13283_v9 = vcombine.high %v572_v8, %v580_v10  ;;  %v661_v1 = vld [vmem:[#allocation2 + $0xdf8] sm:$0xff]  ;;  %v676_v8 = vld [vmem:[#allocation2 + $0xe70] sm:$0xff] }
 0x3f4   :  { %7467 = vmatprep.subr.bf16.mxu0 %v13187_v15  ;;  %7631 = vmatprep.subr.bf16.mxu1 %v13189_v17  ;;  %v13285_v15 = vcombine.high %v573_v11, %v581_v12  ;;  %v588_v17 = vld [vmem:[#allocation2 + $0xbb0] sm:$0xff]  ;;  %v669_v10 = vld [vmem:[#allocation2 + $0xe38] sm:$0xff] }
 0x3f6   :  { %7459 = vmatmul.mubr.bf16.vlgmr.msra.gmra.mrb[12].mxu0 %v16211_v25  ;;  %7623 = vmatmul.mubr.bf16.vlgmr.msra.gmra.mrb[12].mxu1 %v16211_v25  ;;  %v13220_v25 = vcombine.low %v509_v35, %v517_v63  ;;  %v613_v35 = vld [vmem:[#allocation2 + $0xc78] sm:$0xff]  ;;  %v13298_v63 = vcombine.low %v588_v17, %v596_v18 }
 0x3f7   :  { %7468 = vmatpush1.bf16.msra.mxu0 %v13186_v22  ;;  %7632 = vmatpush1.bf16.msra.mxu1 %v13188_v24  ;;  %v13284_v22 = vcombine.low %v573_v11, %v581_v12  ;;  %v13299_v24 = vcombine.high %v588_v17, %v596_v18  ;;  %v677_v11 = vld [vmem:[#allocation2 + $0xe78] sm:$0xff]  ;;  %v692_v17 = vld [vmem:[#allocation2 + $0xef0] sm:$0xff] }
 0x3f8   :  { %7469 = vmatprep.subr.bf16.mxu0 %v13203_v26  ;;  %7633 = vmatprep.subr.bf16.mxu1 %v13205_v30  ;;  %v13301_v26 = vcombine.high %v589_v19, %v597_v59  ;;  %v604_v30 = vld [vmem:[#allocation2 + $0xc30] sm:$0xff]  ;;  %v685_v18 = vld [vmem:[#allocation2 + $0xeb8] sm:$0xff] }
 0x3f9   :  { %7499 = vmatprep.mubr.bf16.mxu0 %v16213_v36  ;;  %7663 = vmatprep.mubr.bf16.mxu1 %v16213_v36  ;;  %v13253_v36 = vcombine.high %v541_v56, %v549_v58  ;;  %v13314_v45 = vcombine.low %v604_v30, %v612_v31  ;;  %v645_v56 = vld [vmem:[#allocation2 + $0xd78] sm:$0xff] }
 0x3fb   :  { %7470 = vmatpush1.bf16.msra.mxu0 %v13202_v37  ;;  %7634 = vmatpush1.bf16.msra.mxu1 %v13204_v38  ;;  %v13300_v37 = vcombine.low %v589_v19, %v597_v59  ;;  %v13315_v38 = vcombine.high %v604_v30, %v612_v31  ;;  %v693_v19 = vld [vmem:[#allocation2 + $0xef8] sm:$0xff]  ;;  %v708_v30 = vld [vmem:[#allocation2 + $0xf70] sm:$0xff] }
 0x3fc   :  { %7471 = vmatprep.subr.bf16.mxu0 %v13219_v57  ;;  %7635 = vmatprep.subr.bf16.mxu1 %v13221_v39  ;;  %v13317_v57 = vcombine.high %v605_v34, %v613_v35  ;;  %v620_v39 = vld [vmem:[#allocation2 + $0xcb0] sm:$0xff]  ;;  %v701_v31 = vld [vmem:[#allocation2 + $0xf38] sm:$0xff] }
 0x3fd   :  { %v13330_v58 = vcombine.low %v620_v39, %v628_v40 }
 0x3ff   :  { %7472 = vmatpush1.bf16.msra.mxu0 %v13218_v47  ;;  %7636 = vmatpush1.bf16.msra.mxu1 %v13220_v25  ;;  %v13316_v47 = vcombine.low %v605_v34, %v613_v35  ;;  %v13331_v25 = vcombine.high %v620_v39, %v628_v40  ;;  %v709_v34 = vld [vmem:[#allocation2 + $0xf78] sm:$0xff]  ;;  %v724_v39 = vld [vmem:[#allocation2 + $0xff0] sm:$0xff] }
 0x400   :  { %7473 = vmatprep.subr.bf16.mxu0 %v13235_v48  ;;  %7637 = vmatprep.subr.bf16.mxu1 %v13237_v49  ;;  %v13333_v48 = vcombine.high %v621_v41, %v629_v42  ;;  %v636_v49 = vld [vmem:[#allocation2 + $0xd30] sm:$0xff]  ;;  %v717_v40 = vld [vmem:[#allocation2 + $0xfb8] sm:$0xff] }
 0x401   :  { %v13346_v2 = vcombine.low %v636_v49, %v644_v52 }
 0x403   :  { %7474 = vmatpush1.bf16.msra.mxu0 %v13234_v23  ;;  %7638 = vmatpush1.bf16.msra.mxu1 %v13236_v60  ;;  %v13332_v23 = vcombine.low %v621_v41, %v629_v42  ;;  %v13347_v60 = vcombine.high %v636_v49, %v644_v52  ;;  %v725_v41 = vld [vmem:[#allocation2 + $0xff8] sm:$0xff]  ;;  %v740_v49 = vld [vmem:[#allocation2 + $0x1070] sm:$0xff] }
 0x404   :  { %7475 = vmatprep.subr.bf16.mxu0 %v13251_v61  ;;  %7639 = vmatprep.subr.bf16.mxu1 %v13253_v36  ;;  %v13349_v61 = vcombine.high %v637_v16, %v645_v56  ;;  %v652_v36 = vld [vmem:[#allocation2 + $0xdb0] sm:$0xff]  ;;  %v733_v52 = vld [vmem:[#allocation2 + $0x1038] sm:$0xff] }
 0x405   :  { %v13362_v12 = vcombine.low %v652_v36, %v660_v62 }
 0x407   :  { %7476 = vmatpush1.bf16.msra.mxu0 %v13250_v3  ;;  %7640 = vmatpush1.bf16.msra.mxu1 %v13252_v5  ;;  %v13348_v3 = vcombine.low %v637_v16, %v645_v56  ;;  %v13363_v5 = vcombine.high %v652_v36, %v660_v62  ;;  %v741_v16 = vld [vmem:[#allocation2 + $0x1078] sm:$0xff]  ;;  %v756_v36 = vld [vmem:[#allocation2 + $0x10f0] sm:$0xff] }
 0x408   :  { %7477 = vmatprep.subr.bf16.mxu0 %v13267_v6  ;;  %7641 = vmatprep.subr.bf16.mxu1 %v13269_v7  ;;  %v13365_v6 = vcombine.high %v653_v0, %v661_v1  ;;  %v668_v7 = vld [vmem:[#allocation2 + $0xe30] sm:$0xff]  ;;  %v749_v62 = vld [vmem:[#allocation2 + $0x10b8] sm:$0xff] }
 0x409   :  { %v13378_v59 = vcombine.low %v668_v7, %v676_v8 }
 0x40b   :  { %7478 = vmatpush1.bf16.msra.mxu0 %v13266_v13  ;;  %7642 = vmatpush1.bf16.msra.mxu1 %v13268_v33  ;;  %v13364_v13 = vcombine.low %v653_v0, %v661_v1  ;;  %v13379_v33 = vcombine.high %v668_v7, %v676_v8  ;;  %v757_v0 = vld [vmem:[#allocation2 + $0x10f8] sm:$0xff]  ;;  %v772_v7 = vld [vmem:[#allocation2 + $0x1170] sm:$0xff] }
 0x40c   :  { %7479 = vmatprep.subr.bf16.mxu0 %v13283_v9  ;;  %7643 = vmatprep.subr.bf16.mxu1 %v13285_v15  ;;  %v13381_v9 = vcombine.high %v669_v10, %v677_v11  ;;  %v684_v15 = vld [vmem:[#allocation2 + $0xeb0] sm:$0xff]  ;;  %v765_v8 = vld [vmem:[#allocation2 + $0x1138] sm:$0xff] }
 0x40d   :  { %v13394_v35 = vcombine.low %v684_v15, %v692_v17 }
 0x40f   :  { %7480 = vmatpush1.bf16.msra.mxu0 %v13282_v20  ;;  %7644 = vmatpush1.bf16.msra.mxu1 %v13284_v22  ;;  %v13380_v20 = vcombine.low %v669_v10, %v677_v11  ;;  %v13395_v22 = vcombine.high %v684_v15, %v692_v17  ;;  %v773_v10 = vld [vmem:[#allocation2 + $0x1178] sm:$0xff]  ;;  %v788_v15 = vld [vmem:[#allocation2 + $0x11f0] sm:$0xff] }
 0x410   :  { %7481 = vmatprep.subr.bf16.mxu0 %v13299_v24  ;;  %7645 = vmatprep.subr.bf16.mxu1 %v13301_v26  ;;  %v13397_v24 = vcombine.high %v685_v18, %v693_v19  ;;  %v700_v26 = vld [vmem:[#allocation2 + $0xf30] sm:$0xff]  ;;  %v781_v17 = vld [vmem:[#allocation2 + $0x11b8] sm:$0xff] }
 0x411   :  { %v13410_v42 = vcombine.low %v700_v26, %v708_v30 }
 0x413   :  { %7482 = vmatpush1.bf16.msra.mxu0 %v13298_v63  ;;  %7646 = vmatpush1.bf16.msra.mxu1 %v13300_v37  ;;  %v13396_v63 = vcombine.low %v685_v18, %v693_v19  ;;  %v13411_v37 = vcombine.high %v700_v26, %v708_v30  ;;  %v789_v18 = vld [vmem:[#allocation2 + $0x11f8] sm:$0xff] }
 0x414   :  { %7483 = vmatprep.subr.bf16.mxu0 %v13315_v38  ;;  %7647 = vmatprep.subr.bf16.mxu1 %v13317_v57  ;;  %v13413_v38 = vcombine.high %v701_v31, %v709_v34  ;;  %v716_v57 = vld [vmem:[#allocation2 + $0xfb0] sm:$0xff]  ;;  %v797_v26 = vld [vmem:[#allocation2 + $0x1238] sm:$0xff] }
 0x415   :  { %v13426_v56 = vcombine.low %v716_v57, %v724_v39  ;;  %v805_v30 = vld [vmem:[#allocation2 + $0x1278] sm:$0xff] }
 0x417   :  { %7484 = vmatpush1.bf16.msra.mxu0 %v13314_v45  ;;  %7648 = vmatpush1.bf16.msra.mxu1 %v13316_v47  ;;  %v13412_v45 = vcombine.low %v701_v31, %v709_v34  ;;  %v13427_v47 = vcombine.high %v716_v57, %v724_v39  ;;  %v13492_v34 = vcombine.low %v781_v17, %v789_v18  ;;  %v821_v57 = vld [vmem:[#allocation2 + $0x12f8] sm:$0xff] }
 0x418   :  { %7485 = vmatprep.subr.bf16.mxu0 %v13331_v25  ;;  %7649 = vmatprep.subr.bf16.mxu1 %v13333_v48  ;;  %v13429_v25 = vcombine.high %v717_v40, %v725_v41  ;;  %v732_v48 = vld [vmem:[#allocation2 + $0x1030] sm:$0xff] }
 0x419   :  { %v13442_v1 = vcombine.low %v732_v48, %v740_v49 }
 0x41b   :  { %7486 = vmatpush1.bf16.msra.mxu0 %v13330_v58  ;;  %7650 = vmatpush1.bf16.msra.mxu1 %v13332_v23  ;;  %v13428_v58 = vcombine.low %v717_v40, %v725_v41  ;;  %v13443_v23 = vcombine.high %v732_v48, %v740_v49  ;;  %v13508_v40 = vcombine.low %v797_v26, %v805_v30  ;;  %v837_v48 = vld [vmem:[#allocation2 + $0x1378] sm:$0xff] }
 0x41c   :  { %7487 = vmatprep.subr.bf16.mxu0 %v13347_v60  ;;  %7651 = vmatprep.subr.bf16.mxu1 %v13349_v61  ;;  %v13445_v60 = vcombine.high %v733_v52, %v741_v16  ;;  %v748_v61 = vld [vmem:[#allocation2 + $0x10b0] sm:$0xff] }
 0x41d   :  { %v13458_v11 = vcombine.low %v748_v61, %v756_v36 }
 0x41f   :  { %7488 = vmatpush1.bf16.msra.mxu0 %v13346_v2  ;;  %7652 = vmatpush1.bf16.msra.mxu1 %v13348_v3  ;;  %v13444_v2 = vcombine.low %v733_v52, %v741_v16  ;;  %v13459_v3 = vcombine.high %v748_v61, %v756_v36  ;;  %v853_v61 = vld [vmem:[#allocation2 + $0x13f8] sm:$0xff] }
 0x420   :  { %7489 = vmatprep.subr.bf16.mxu0 %v13363_v5  ;;  %7653 = vmatprep.subr.bf16.mxu1 %v13365_v6  ;;  %v13461_v5 = vcombine.high %v749_v62, %v757_v0  ;;  %v764_v6 = vld [vmem:[#allocation2 + $0x1130] sm:$0xff] }
 0x421   :  { %v13474_v19 = vcombine.low %v764_v6, %v772_v7 }
 0x423   :  { %7490 = vmatpush1.bf16.msra.mxu0 %v13362_v12  ;;  %7654 = vmatpush1.bf16.msra.mxu1 %v13364_v13  ;;  %v13460_v12 = vcombine.low %v749_v62, %v757_v0  ;;  %v13475_v13 = vcombine.high %v764_v6, %v772_v7  ;;  %v869_v6 = vld [vmem:[#allocation2 + $0x1478] sm:$0xff] }
 0x424   :  { %7491 = vmatprep.subr.bf16.mxu0 %v13379_v33  ;;  %7655 = vmatprep.subr.bf16.mxu1 %v13381_v9  ;;  %v13477_v33 = vcombine.high %v765_v8, %v773_v10  ;;  %v780_v9 = vld [vmem:[#allocation2 + $0x11b0] sm:$0xff] }
 0x425   :  { %v13490_v31 = vcombine.low %v780_v9, %v788_v15 }
 0x427   :  { %7492 = vmatpush1.bf16.msra.mxu0 %v13378_v59  ;;  %7656 = vmatpush1.bf16.msra.mxu1 %v13380_v20  ;;  %v13491_v59 = vcombine.high %v780_v9, %v788_v15  ;;  %v13493_v20 = vcombine.high %v781_v17, %v789_v18  ;;  %v885_v9 = vld [vmem:[#allocation2 + $0x14f8] sm:$0xff] }
 0x428   :  { %7493 = vmatprep.subr.bf16.mxu0 %v13395_v22  ;;  %7657 = vmatprep.subr.bf16.mxu1 %v13397_v24  ;;  %v796_v22 = vld [vmem:[#allocation2 + $0x1230] sm:$0xff] }
 0x429   :  { %v804_v24 = vld [vmem:[#allocation2 + $0x1270] sm:$0xff] }
 0x42a   :  { %v13506_v39 = vcombine.low %v796_v22, %v804_v24 }
 0x42b   :  { %7494 = vmatpush1.bf16.msra.mxu0 %v13394_v35  ;;  %7658 = vmatpush1.bf16.msra.mxu1 %v13396_v63  ;;  %v13507_v35 = vcombine.high %v796_v22, %v804_v24  ;;  %v812_v63 = vld [vmem:[#allocation2 + $0x12b0] sm:$0xff]  ;;  %v901_v22 = vld [vmem:[#allocation2 + $0x1578] sm:$0xff] }
 0x42c   :  { %7495 = vmatprep.subr.bf16.mxu0 %v13411_v37  ;;  %7659 = vmatprep.subr.bf16.mxu1 %v13413_v38  ;;  %v820_v37 = vld [vmem:[#allocation2 + $0x12f0] sm:$0xff]  ;;  %v813_v38 = vld [vmem:[#allocation2 + $0x12b8] sm:$0xff] }
 0x42d   :  { %v13523_v41 = vcombine.high %v812_v63, %v820_v37  ;;  %v13522_v49 = vcombine.low %v812_v63, %v820_v37  ;;  %v13524_v52 = vcombine.low %v813_v38, %v821_v57  ;;  %v917_v63 = vld [vmem:[#allocation2 + $0x15f8] sm:$0xff] }
 0x42f   :  { %7496 = vmatpush1.bf16.msra.mxu0 %v13410_v42  ;;  %7660 = vmatpush1.bf16.msra.mxu1 %v13412_v45  ;;  %v13525_v42 = vcombine.high %v813_v38, %v821_v57  ;;  %v828_v45 = vld [vmem:[#allocation2 + $0x1330] sm:$0xff] }
 0x430   :  { %7497 = vmatprep.subr.bf16.mxu0 %v13427_v47  ;;  %7661 = vmatprep.subr.bf16.mxu1 %v13429_v25  ;;  %v836_v47 = vld [vmem:[#allocation2 + $0x1370] sm:$0xff]  ;;  %v829_v25 = vld [vmem:[#allocation2 + $0x1338] sm:$0xff] }
 0x431   :  { %v13539_v16 = vcombine.high %v828_v45, %v836_v47  ;;  %v13538_v36 = vcombine.low %v828_v45, %v836_v47  ;;  %v13540_v62 = vcombine.low %v829_v25, %v837_v48  ;;  %v933_v45 = vld [vmem:[#allocation2 + $0x1678] sm:$0xff] }
 0x433   :  { %7498 = vmatpush1.bf16.msra.mxu0 %v13426_v56  ;;  %7662 = vmatpush1.bf16.msra.mxu1 %v13428_v58  ;;  %v13541_v56 = vcombine.high %v829_v25, %v837_v48  ;;  %v844_v58 = vld [vmem:[#allocation2 + $0x13b0] sm:$0xff] }
 0x434   :  { %7508 = vmatprep.subr.bf16.mxu0 %v13443_v23  ;;  %7672 = vmatprep.subr.bf16.mxu1 %v13445_v60  ;;  %v852_v23 = vld [vmem:[#allocation2 + $0x13f0] sm:$0xff]  ;;  %v845_v60 = vld [vmem:[#allocation2 + $0x13b8] sm:$0xff] }
 0x435   :  { %v13555_v0 = vcombine.high %v844_v58, %v852_v23  ;;  %v13554_v7 = vcombine.low %v844_v58, %v852_v23  ;;  %v949_v58 = vld [vmem:[#allocation2 + $0x16f8] sm:$0xff] }
 0x436   :  { %7500 = vmatmul.mubr.bf16.vlgmr.msra.gmra.mrb[12].mxu0 %v16232_v43  ;;  %7664 = vmatmul.mubr.bf16.vlgmr.msra.gmra.mrb[12].mxu1 %v16232_v43  ;;  %v13476_v43 = vcombine.low %v765_v8, %v773_v10  ;;  %v13556_v8 = vcombine.low %v845_v60, %v853_v61 }
 0x437   :  { %7509 = vmatpush1.bf16.msra.mxu0 %v13442_v1  ;;  %7673 = vmatpush1.bf16.msra.mxu1 %v13444_v2  ;;  %v13557_v1 = vcombine.high %v845_v60, %v853_v61  ;;  %v860_v2 = vld [vmem:[#allocation2 + $0x1430] sm:$0xff] }
 0x438   :  { %7510 = vmatprep.subr.bf16.mxu0 %v13459_v3  ;;  %7674 = vmatprep.subr.bf16.mxu1 %v13461_v5  ;;  %v868_v3 = vld [vmem:[#allocation2 + $0x1470] sm:$0xff]  ;;  %v861_v5 = vld [vmem:[#allocation2 + $0x1438] sm:$0xff] }
 0x439   :  { %7540 = vmatprep.mubr.bf16.mxu0 %v16234_v54  ;;  %7704 = vmatprep.mubr.bf16.mxu1 %v16234_v54  ;;  %v13509_v54 = vcombine.high %v797_v26, %v805_v30  ;;  %v13571_v10 = vcombine.high %v860_v2, %v868_v3  ;;  %v13570_v15 = vcombine.low %v860_v2, %v868_v3  ;;  %v965_v2 = vld [vmem:[#allocation2 + $0x1778] sm:$0xff] }
 0x43a   :  { %v13572_v17 = vcombine.low %v861_v5, %v869_v6 }
 0x43b   :  { %7511 = vmatpush1.bf16.msra.mxu0 %v13458_v11  ;;  %7675 = vmatpush1.bf16.msra.mxu1 %v13460_v12  ;;  %v13573_v11 = vcombine.high %v861_v5, %v869_v6  ;;  %v876_v12 = vld [vmem:[#allocation2 + $0x14b0] sm:$0xff] }
 0x43c   :  { %7512 = vmatprep.subr.bf16.mxu0 %v13475_v13  ;;  %7676 = vmatprep.subr.bf16.mxu1 %v13477_v33  ;;  %v884_v13 = vld [vmem:[#allocation2 + $0x14f0] sm:$0xff]  ;;  %v877_v33 = vld [vmem:[#allocation2 + $0x14b8] sm:$0xff] }
 0x43d   :  { %v13587_v18 = vcombine.high %v876_v12, %v884_v13  ;;  %v13586_v24 = vcombine.low %v876_v12, %v884_v13  ;;  %v13588_v26 = vcombine.low %v877_v33, %v885_v9  ;;  %v981_v12 = vld [vmem:[#allocation2 + $0x17f8] sm:$0xff] }
 0x43f   :  { %7513 = vmatpush1.bf16.msra.mxu0 %v13474_v19  ;;  %7677 = vmatpush1.bf16.msra.mxu1 %v13476_v43  ;;  %v13589_v19 = vcombine.high %v877_v33, %v885_v9  ;;  %v892_v43 = vld [vmem:[#allocation2 + $0x1530] sm:$0xff] }
 0x440   :  { %7514 = vmatprep.subr.bf16.mxu0 %v13491_v59  ;;  %7678 = vmatprep.subr.bf16.mxu1 %v13493_v20  ;;  %v900_v59 = vld [vmem:[#allocation2 + $0x1570] sm:$0xff]  ;;  %v893_v20 = vld [vmem:[#allocation2 + $0x1538] sm:$0xff] }
 0x441   :  { %v13603_v30 = vcombine.high %v892_v43, %v900_v59  ;;  %v13602_v37 = vcombine.low %v892_v43, %v900_v59  ;;  %v13604_v38 = vcombine.low %v893_v20, %v901_v22  ;;  %v997_v43 = vld [vmem:[#allocation2 + $0x1878] sm:$0xff] }
 0x443   :  { %7515 = vmatpush1.bf16.msra.mxu0 %v13490_v31  ;;  %7679 = vmatpush1.bf16.msra.mxu1 %v13492_v34  ;;  %v13605_v31 = vcombine.high %v893_v20, %v901_v22  ;;  %v908_v34 = vld [vmem:[#allocation2 + $0x15b0] sm:$0xff] }
 0x444   :  { %7516 = vmatprep.subr.bf16.mxu0 %v13507_v35  ;;  %7680 = vmatprep.subr.bf16.mxu1 %v13509_v54  ;;  %v916_v35 = vld [vmem:[#allocation2 + $0x15f0] sm:$0xff]  ;;  %v909_v54 = vld [vmem:[#allocation2 + $0x15b8] sm:$0xff] }
 0x445   :  { %v13619_v57 = vcombine.high %v908_v34, %v916_v35  ;;  %v13618_v47 = vcombine.low %v908_v34, %v916_v35  ;;  %v13620_v25 = vcombine.low %v909_v54, %v917_v63  ;;  %v1013_v34 = vld [vmem:[#allocation2 + $0x18f8] sm:$0xff] }
 0x447   :  { %7517 = vmatpush1.bf16.msra.mxu0 %v13506_v39  ;;  %7681 = vmatpush1.bf16.msra.mxu1 %v13508_v40  ;;  %v13621_v39 = vcombine.high %v909_v54, %v917_v63  ;;  %v924_v40 = vld [vmem:[#allocation2 + $0x1630] sm:$0xff] }
 0x448   :  { %7518 = vmatprep.subr.bf16.mxu0 %v13523_v41  ;;  %7682 = vmatprep.subr.bf16.mxu1 %v13525_v42  ;;  %v932_v41 = vld [vmem:[#allocation2 + $0x1670] sm:$0xff]  ;;  %v925_v42 = vld [vmem:[#allocation2 + $0x1638] sm:$0xff] }
 0x449   :  { %v13635_v48 = vcombine.high %v924_v40, %v932_v41  ;;  %v13634_v23 = vcombine.low %v924_v40, %v932_v41  ;;  %v13636_v60 = vcombine.low %v925_v42, %v933_v45  ;;  %v1029_v40 = vld [vmem:[#allocation2 + $0x1978] sm:$0xff] }
 0x44b   :  { %7519 = vmatpush1.bf16.msra.mxu0 %v13522_v49  ;;  %7683 = vmatpush1.bf16.msra.mxu1 %v13524_v52  ;;  %v13637_v49 = vcombine.high %v925_v42, %v933_v45  ;;  %v940_v52 = vld [vmem:[#allocation2 + $0x16b0] sm:$0xff] }
 0x44c   :  { %7520 = vmatprep.subr.bf16.mxu0 %v13539_v16  ;;  %7684 = vmatprep.subr.bf16.mxu1 %v13541_v56  ;;  %v948_v16 = vld [vmem:[#allocation2 + $0x16f0] sm:$0xff]  ;;  %v941_v56 = vld [vmem:[#allocation2 + $0x16b8] sm:$0xff] }
 0x44d   :  { %v13651_v61 = vcombine.high %v940_v52, %v948_v16  ;;  %v13650_v3 = vcombine.low %v940_v52, %v948_v16  ;;  %v13652_v5 = vcombine.low %v941_v56, %v949_v58  ;;  %v1045_v52 = vld [vmem:[#allocation2 + $0x19f8] sm:$0xff] }
 0x44f   :  { %7521 = vmatpush1.bf16.msra.mxu0 %v13538_v36  ;;  %7685 = vmatpush1.bf16.msra.mxu1 %v13540_v62  ;;  %v13653_v36 = vcombine.high %v941_v56, %v949_v58  ;;  %v956_v62 = vld [vmem:[#allocation2 + $0x1730] sm:$0xff] }
 0x450   :  { %7522 = vmatprep.subr.bf16.mxu0 %v13555_v0  ;;  %7686 = vmatprep.subr.bf16.mxu1 %v13557_v1  ;;  %v964_v0 = vld [vmem:[#allocation2 + $0x1770] sm:$0xff]  ;;  %v957_v1 = vld [vmem:[#allocation2 + $0x1738] sm:$0xff] }
 0x451   :  { %v13667_v6 = vcombine.high %v956_v62, %v964_v0  ;;  %v13666_v13 = vcombine.low %v956_v62, %v964_v0  ;;  %v13668_v33 = vcombine.low %v957_v1, %v965_v2 }
 0x453   :  { %7523 = vmatpush1.bf16.msra.mxu0 %v13554_v7  ;;  %7687 = vmatpush1.bf16.msra.mxu1 %v13556_v8  ;;  %v13669_v7 = vcombine.high %v957_v1, %v965_v2  ;;  %v972_v8 = vld [vmem:[#allocation2 + $0x17b0] sm:$0xff] }
 0x454   :  { %7524 = vmatprep.subr.bf16.mxu0 %v13571_v10  ;;  %7688 = vmatprep.subr.bf16.mxu1 %v13573_v11  ;;  %v980_v10 = vld [vmem:[#allocation2 + $0x17f0] sm:$0xff]  ;;  %v973_v11 = vld [vmem:[#allocation2 + $0x17b8] sm:$0xff] }
 0x455   :  { %v13683_v9 = vcombine.high %v972_v8, %v980_v10  ;;  %v13682_v59 = vcombine.low %v972_v8, %v980_v10  ;;  %v13684_v20 = vcombine.low %v973_v11, %v981_v12  ;;  %v1068_v2 = vld [vmem:[#allocation2 + $0x1ab0] sm:$0xff] }
 0x457   :  { %7525 = vmatpush1.bf16.msra.mxu0 %v13570_v15  ;;  %7689 = vmatpush1.bf16.msra.mxu1 %v13572_v17  ;;  %v13685_v15 = vcombine.high %v973_v11, %v981_v12  ;;  %v988_v17 = vld [vmem:[#allocation2 + $0x1830] sm:$0xff] }
 0x458   :  { %7526 = vmatprep.subr.bf16.mxu0 %v13587_v18  ;;  %7690 = vmatprep.subr.bf16.mxu1 %v13589_v19  ;;  %v996_v18 = vld [vmem:[#allocation2 + $0x1870] sm:$0xff]  ;;  %v989_v19 = vld [vmem:[#allocation2 + $0x1838] sm:$0xff] }
 0x459   :  { %v13699_v22 = vcombine.high %v988_v17, %v996_v18  ;;  %v13698_v35 = vcombine.low %v988_v17, %v996_v18  ;;  %v13700_v54 = vcombine.low %v989_v19, %v997_v43  ;;  %v1084_v12 = vld [vmem:[#allocation2 + $0x1b30] sm:$0xff] }
 0x45b   :  { %7527 = vmatpush1.bf16.msra.mxu0 %v13586_v24  ;;  %7691 = vmatpush1.bf16.msra.mxu1 %v13588_v26  ;;  %v13701_v24 = vcombine.high %v989_v19, %v997_v43  ;;  %v1004_v26 = vld [vmem:[#allocation2 + $0x18b0] sm:$0xff] }
 0x45c   :  { %7528 = vmatprep.subr.bf16.mxu0 %v13603_v30  ;;  %7692 = vmatprep.subr.bf16.mxu1 %v13605_v31  ;;  %v1012_v30 = vld [vmem:[#allocation2 + $0x18f0] sm:$0xff]  ;;  %v1005_v31 = vld [vmem:[#allocation2 + $0x18b8] sm:$0xff] }
 0x45d   :  { %v13715_v63 = vcombine.high %v1004_v26, %v1012_v30  ;;  %v13714_v41 = vcombine.low %v1004_v26, %v1012_v30  ;;  %v13716_v42 = vcombine.low %v1005_v31, %v1013_v34  ;;  %v1101_v26 = vld [vmem:[#allocation2 + $0x1bb8] sm:$0xff] }
 0x45e   :  { %v1109_v30 = vld [vmem:[#allocation2 + $0x1bf8] sm:$0xff] }
 0x45f   :  { %7529 = vmatpush1.bf16.msra.mxu0 %v13602_v37  ;;  %7693 = vmatpush1.bf16.msra.mxu1 %v13604_v38  ;;  %v13717_v37 = vcombine.high %v1005_v31, %v1013_v34  ;;  %v1020_v38 = vld [vmem:[#allocation2 + $0x1930] sm:$0xff] }
 0x460   :  { %7530 = vmatprep.subr.bf16.mxu0 %v13619_v57  ;;  %7694 = vmatprep.subr.bf16.mxu1 %v13621_v39  ;;  %v1028_v57 = vld [vmem:[#allocation2 + $0x1970] sm:$0xff]  ;;  %v1021_v39 = vld [vmem:[#allocation2 + $0x1938] sm:$0xff] }
 0x461   :  { %v13731_v45 = vcombine.high %v1020_v38, %v1028_v57  ;;  %v13730_v16 = vcombine.low %v1020_v38, %v1028_v57 }
 0x463   :  { %7531 = vmatpush1.bf16.msra.mxu0 %v13618_v47  ;;  %7695 = vmatpush1.bf16.msra.mxu1 %v13620_v25  ;;  %v13733_v47 = vcombine.high %v1021_v39, %v1029_v40  ;;  %v1036_v25 = vld [vmem:[#allocation2 + $0x19b0] sm:$0xff] }
 0x464   :  { %7532 = vmatprep.subr.bf16.mxu0 %v13635_v48  ;;  %7696 = vmatprep.subr.bf16.mxu1 %v13637_v49  ;;  %v1044_v48 = vld [vmem:[#allocation2 + $0x19f0] sm:$0xff]  ;;  %v1037_v49 = vld [vmem:[#allocation2 + $0x19b8] sm:$0xff] }
 0x465   :  { %v13747_v56 = vcombine.high %v1036_v25, %v1044_v48  ;;  %v13749_v58 = vcombine.high %v1037_v49, %v1045_v52  ;;  %v13746_v62 = vcombine.low %v1036_v25, %v1044_v48  ;;  %v13748_v0 = vcombine.low %v1037_v49, %v1045_v52  ;;  %v1132_v52 = vld [vmem:[#allocation2 + $0x1cb0] sm:$0xff] }
 0x466   :  { %v13812_v25 = vcombine.low %v1101_v26, %v1109_v30 }
 0x467   :  { %7533 = vmatpush1.bf16.msra.mxu0 %v13634_v23  ;;  %7697 = vmatpush1.bf16.msra.mxu1 %v13636_v60  ;;  %v1052_v23 = vld [vmem:[#allocation2 + $0x1a30] sm:$0xff] }
 0x468   :  { %7534 = vmatprep.subr.bf16.mxu0 %v13651_v61  ;;  %7698 = vmatprep.subr.bf16.mxu1 %v13653_v36  ;;  %v1060_v60 = vld [vmem:[#allocation2 + $0x1a70] sm:$0xff]  ;;  %v1053_v61 = vld [vmem:[#allocation2 + $0x1a38] sm:$0xff] }
 0x469   :  { %v1061_v36 = vld [vmem:[#allocation2 + $0x1a78] sm:$0xff]  ;;  %v13763_v1 = vcombine.high %v1052_v23, %v1060_v60 }
 0x46a   :  { %v13764_v8 = vcombine.low %v1053_v61, %v1061_v36 }
 0x46b   :  { %7535 = vmatpush1.bf16.msra.mxu0 %v13650_v3  ;;  %7699 = vmatpush1.bf16.msra.mxu1 %v13652_v5  ;;  %v1076_v3 = vld [vmem:[#allocation2 + $0x1af0] sm:$0xff]  ;;  %v1069_v5 = vld [vmem:[#allocation2 + $0x1ab8] sm:$0xff] }
 0x46c   :  { %7536 = vmatprep.subr.bf16.mxu0 %v13667_v6  ;;  %7700 = vmatprep.subr.bf16.mxu1 %v13669_v7  ;;  %v1077_v6 = vld [vmem:[#allocation2 + $0x1af8] sm:$0xff]  ;;  %v13762_v7 = vcombine.low %v1052_v23, %v1060_v60  ;;  %v13779_v10 = vcombine.high %v1068_v2, %v1076_v3 }
 0x46d   :  { %v13781_v11 = vcombine.high %v1069_v5, %v1077_v6  ;;  %v13780_v17 = vcombine.low %v1069_v5, %v1077_v6  ;;  %v1164_v6 = vld [vmem:[#allocation2 + $0x1db0] sm:$0xff] }
 0x46f   :  { %7537 = vmatpush1.bf16.msra.mxu0 %v13666_v13  ;;  %7701 = vmatpush1.bf16.msra.mxu1 %v13668_v33  ;;  %v1092_v13 = vld [vmem:[#allocation2 + $0x1b70] sm:$0xff]  ;;  %v1085_v33 = vld [vmem:[#allocation2 + $0x1b38] sm:$0xff] }
 0x470   :  { %7538 = vmatprep.subr.bf16.mxu0 %v13683_v9  ;;  %7702 = vmatprep.subr.bf16.mxu1 %v13685_v15  ;;  %v1093_v9 = vld [vmem:[#allocation2 + $0x1b78] sm:$0xff]  ;;  %v13778_v15 = vcombine.low %v1068_v2, %v1076_v3  ;;  %v13795_v18 = vcombine.high %v1084_v12, %v1092_v13 }
 0x471   :  { %v13797_v43 = vcombine.high %v1085_v33, %v1093_v9 }
 0x473   :  { %7539 = vmatpush1.bf16.msra.mxu0 %v13682_v59  ;;  %7703 = vmatpush1.bf16.msra.mxu1 %v13684_v20  ;;  %v1100_v59 = vld [vmem:[#allocation2 + $0x1bb0] sm:$0xff] }
 0x474   :  { %7549 = vmatprep.subr.bf16.mxu0 %v13699_v22  ;;  %7713 = vmatprep.subr.bf16.mxu1 %v13701_v24  ;;  %v1108_v20 = vld [vmem:[#allocation2 + $0x1bf0] sm:$0xff] }
 0x475   :  { %v13811_v38 = vcombine.high %v1100_v59, %v1108_v20 }
 0x476   :  { %7541 = vmatmul.mubr.bf16.vlgmr.msra.gmra.mrb[12].mxu0 %v16249_v4  ;;  %7705 = vmatmul.mubr.bf16.vlgmr.msra.gmra.mrb[12].mxu1 %v16249_v4  ;;  %v13732_v4 = vcombine.low %v1021_v39, %v1029_v40  ;;  %v13813_v39 = vcombine.high %v1101_v26, %v1109_v30  ;;  %v1116_v40 = vld [vmem:[#allocation2 + $0x1c30] sm:$0xff] }
 0x477   :  { %7550 = vmatpush1.bf16.msra.mxu0 %v13698_v35  ;;  %7714 = vmatpush1.bf16.msra.mxu1 %v13700_v54  ;;  %v13794_v35 = vcombine.low %v1084_v12, %v1092_v13  ;;  %v1196_v30 = vld [vmem:[#allocation2 + $0x1eb0] sm:$0xff] }
 0x478   :  { %7551 = vmatprep.subr.bf16.mxu0 %v13715_v63  ;;  %7715 = vmatprep.subr.bf16.mxu1 %v13717_v37  ;;  %v13796_v37 = vcombine.low %v1085_v33, %v1093_v9  ;;  %v1180_v9 = vld [vmem:[#allocation2 + $0x1e30] sm:$0xff] }
 0x479   :  { %7581 = vmatprep.mubr.bf16.mxu0 %v16251_v14  ;;  %7745 = vmatprep.mubr.bf16.mxu1 %v16251_v14  ;;  %v13765_v14 = vcombine.high %v1053_v61, %v1061_v36  ;;  %v1148_v36 = vld [vmem:[#allocation2 + $0x1d30] sm:$0xff] }
 0x47b   :  { %7552 = vmatpush1.bf16.msra.mxu0 %v13714_v41  ;;  %7716 = vmatpush1.bf16.msra.mxu1 %v13716_v42  ;;  %v1124_v41 = vld [vmem:[#allocation2 + $0x1c70] sm:$0xff]  ;;  %v1117_v42 = vld [vmem:[#allocation2 + $0x1c38] sm:$0xff] }
 0x47c   :  { %7553 = vmatprep.subr.bf16.mxu0 %v13731_v45  ;;  %7717 = vmatprep.subr.bf16.mxu1 %v13733_v47  ;;  %v1125_v45 = vld [vmem:[#allocation2 + $0x1c78] sm:$0xff]  ;;  %v13810_v47 = vcombine.low %v1100_v59, %v1108_v20  ;;  %v13827_v48 = vcombine.high %v1116_v40, %v1124_v41 }
 0x47d   :  { %v13829_v49 = vcombine.high %v1117_v42, %v1125_v45  ;;  %v13828_v23 = vcombine.low %v1117_v42, %v1125_v45  ;;  %v1221_v42 = vld [vmem:[#allocation2 + $0x1f78] sm:$0xff] }
 0x47f   :  { %7554 = vmatpush1.bf16.msra.mxu0 %v13730_v16  ;;  %7718 = vmatpush1.bf16.msra.mxu1 %v13732_v4  ;;  %v1140_v16 = vld [vmem:[#allocation2 + $0x1cf0] sm:$0xff]  ;;  %v1133_v4 = vld [vmem:[#allocation2 + $0x1cb8] sm:$0xff] }
 0x480   :  { %7555 = vmatprep.subr.bf16.mxu0 %v13747_v56  ;;  %7719 = vmatprep.subr.bf16.mxu1 %v13749_v58  ;;  %v1141_v56 = vld [vmem:[#allocation2 + $0x1cf8] sm:$0xff]  ;;  %v13826_v58 = vcombine.low %v1116_v40, %v1124_v41  ;;  %v13843_v60 = vcombine.high %v1132_v52, %v1140_v16  ;;  %v1220_v40 = vld [vmem:[#allocation2 + $0x1f70] sm:$0xff] }
 0x481   :  { %v13845_v61 = vcombine.high %v1133_v4, %v1141_v56  ;;  %v13844_v2 = vcombine.low %v1133_v4, %v1141_v56  ;;  %v1213_v41 = vld [vmem:[#allocation2 + $0x1f38] sm:$0xff] }
 0x482   :  { %v1237_v4 = vld [vmem:[#allocation2 + $0x1ff8] sm:$0xff] }
 0x483   :  { %7556 = vmatpush1.bf16.msra.mxu0 %v13746_v62  ;;  %7720 = vmatpush1.bf16.msra.mxu1 %v13748_v0  ;;  %v1156_v62 = vld [vmem:[#allocation2 + $0x1d70] sm:$0xff]  ;;  %v1149_v0 = vld [vmem:[#allocation2 + $0x1d38] sm:$0xff] }
 0x484   :  { %7557 = vmatprep.subr.bf16.mxu0 %v13763_v1  ;;  %7721 = vmatprep.subr.bf16.mxu1 %v13765_v14  ;;  %v1157_v1 = vld [vmem:[#allocation2 + $0x1d78] sm:$0xff]  ;;  %v13842_v14 = vcombine.low %v1132_v52, %v1140_v16  ;;  %v13859_v3 = vcombine.high %v1148_v36, %v1156_v62  ;;  %v1236_v52 = vld [vmem:[#allocation2 + $0x1ff0] sm:$0xff] }
 0x485   :  { %v13861_v5 = vcombine.high %v1149_v0, %v1157_v1  ;;  %v13860_v12 = vcombine.low %v1149_v0, %v1157_v1  ;;  %v1229_v16 = vld [vmem:[#allocation2 + $0x1fb8] sm:$0xff]  ;;  %v16339_v0 = vsub.s32 1, %v16182_v44  ;;  %v1238_v1 = vld [vmem:[#allocation4] sm:$0xff] }
 0x487   :  { %7558 = vmatpush1.bf16.msra.mxu0 %v13762_v7  ;;  %7722 = vmatpush1.bf16.msra.mxu1 %v13764_v8  ;;  %v1172_v7 = vld [vmem:[#allocation2 + $0x1df0] sm:$0xff]  ;;  %v1165_v8 = vld [vmem:[#allocation2 + $0x1db8] sm:$0xff] }
 0x488   :  { %7559 = vmatprep.subr.bf16.mxu0 %v13779_v10  ;;  %7723 = vmatprep.subr.bf16.mxu1 %v13781_v11  ;;  %v1173_v10 = vld [vmem:[#allocation2 + $0x1df8] sm:$0xff]  ;;  %v13858_v11 = vcombine.low %v1148_v36, %v1156_v62  ;;  %v13875_v13 = vcombine.high %v1164_v6, %v1172_v7  ;;  %v13940_v36 = vcombine.low %v1229_v16, %v1237_v4  ;;  %v16336_v62 = vsub.s32 0, %v16182_v44 }
 0x489   :  { %v16325_v19 = vpop.f32.mrb[8].mxu0  ;;  %v16327_v22 = vpop.f32.mrb[8].mxu1  ;;  %v13877_v33 = vcombine.high %v1165_v8, %v1173_v10  ;;  %v13876_v59 = vcombine.low %v1165_v8, %v1173_v10  ;;  %v16357_v8 = vsub.s32 4, %v16182_v44 }
 0x48a   :  { %v16329_v24 = vpop.f32.mrb[9].mxu0  ;;  %v16331_v31 = vpop.f32.mrb[9].mxu1 }
 0x48b   :  { %v7259_v34 = vpop.f32.mrb[10].mxu0  ;;  %7560 = vmatpush1.bf16.msra.mxu0 %v13778_v15  ;;  %v7423_v54 = vpop.f32.mrb[10].mxu1  ;;  %7724 = vmatpush1.bf16.msra.mxu1 %v13780_v17  ;;  %v1188_v15 = vld [vmem:[#allocation2 + $0x1e70] sm:$0xff]  ;;  %v1181_v17 = vld [vmem:[#allocation2 + $0x1e38] sm:$0xff] }
 0x48c   :  { %v7260_v63 = vpop.f32.mrb[11].mxu0  ;;  %7561 = vmatprep.subr.bf16.mxu0 %v13795_v18  ;;  %v7424_v57 = vpop.f32.mrb[11].mxu1  ;;  %7725 = vmatprep.subr.bf16.mxu1 %v13797_v43  ;;  %v1189_v18 = vld [vmem:[#allocation2 + $0x1e78] sm:$0xff]  ;;  %v13874_v43 = vcombine.low %v1164_v6, %v1172_v7  ;;  %v13891_v20 = vcombine.high %v1180_v9, %v1188_v15  ;;  %v1204_v34 = vld [vmem:[#allocation2 + $0x1ef0] sm:$0xff]  ;;  %v16354_v7 = vsub.s32 3, %v16182_v44 }
 0x48d   :  { %v13893_v26 = vcombine.high %v1181_v17, %v1189_v18  ;;  %v1205_v54 = vld [vmem:[#allocation2 + $0x1ef8] sm:$0xff]  ;;  %v13890_v63 = vcombine.low %v1180_v9, %v1188_v15  ;;  %v13906_v45 = vcombine.low %v1196_v30, %v1204_v34 }
 0x48f   :  { %7562 = vmatpush1.bf16.msra.mxu0 %v13794_v35  ;;  %7726 = vmatpush1.bf16.msra.mxu1 %v13796_v37  ;;  %v1197_v35 = vld [vmem:[#allocation2 + $0x1eb8] sm:$0xff]  ;;  %v13892_v37 = vcombine.low %v1181_v17, %v1189_v18 }
 0x490   :  { %7563 = vmatprep.subr.bf16.mxu0 %v13811_v38  ;;  %7727 = vmatprep.subr.bf16.mxu1 %v13813_v39  ;;  %v13907_v38 = vcombine.high %v1196_v30, %v1204_v34  ;;  %v13909_v57 = vcombine.high %v1197_v35, %v1205_v54  ;;  %v1212_v39 = vld [vmem:[#allocation2 + $0x1f30] sm:$0xff] }
 0x491   :  { %v13922_v56 = vcombine.low %v1212_v39, %v1220_v40 }
 0x493   :  { %7564 = vmatpush1.bf16.msra.mxu0 %v13810_v47  ;;  %7728 = vmatpush1.bf16.msra.mxu1 %v13812_v25  ;;  %v13908_v47 = vcombine.low %v1197_v35, %v1205_v54  ;;  %v13923_v25 = vcombine.high %v1212_v39, %v1220_v40  ;;  %v1239_v35 = vld [vmem:[#allocation4 + $0x8] sm:$0xff] }
 0x494   :  { %7565 = vmatprep.subr.bf16.mxu0 %v13827_v48  ;;  %7729 = vmatprep.subr.bf16.mxu1 %v13829_v49  ;;  %v13925_v48 = vcombine.high %v1213_v41, %v1221_v42  ;;  %v1228_v49 = vld [vmem:[#allocation2 + $0x1fb0] sm:$0xff]  ;;  %v1281_v40 = vrot.slane %v1239_v35, %v16339_v0 }
 0x497   :  { %7566 = vmatpush1.bf16.msra.mxu0 %v13826_v58  ;;  %7730 = vmatpush1.bf16.msra.mxu1 %v13828_v23  ;;  %v13924_v58 = vcombine.low %v1213_v41, %v1221_v42  ;;  %v13939_v23 = vcombine.high %v1228_v49, %v1236_v52 }
 0x498   :  { %7567 = vmatprep.subr.bf16.mxu0 %v13843_v60  ;;  %7731 = vmatprep.subr.bf16.mxu1 %v13845_v61  ;;  %v13941_v60 = vcombine.high %v1229_v16, %v1237_v4  ;;  %v13938_v61 = vcombine.low %v1228_v49, %v1236_v52  ;;  %v1289_v49 = vrot.slane %v1239_v35, %v16354_v7 }
 0x49a   :  { %v16427_v4 = vadd.f32 %v16331_v31, %v1289_v49  ;;  %v14806_v49 = vld [vmem:[#allocation9 + $0x6c] ss:$16 sps:$4 sm:$0xff]  }
 0x49b   :  { %7568 = vmatpush1.bf16.msra.mxu0 %v13842_v14  ;;  %7732 = vmatpush1.bf16.msra.mxu1 %v13844_v2  ;;  %v1245_v14 = vrot.slane %v1238_v1, %v16336_v62  ;;  %v1249_v2 = vrot.slane %v1238_v1, %v16339_v0 }
 0x49c   :  { %7569 = vmatprep.subr.bf16.mxu0 %v13859_v3  ;;  %7733 = vmatprep.subr.bf16.mxu1 %v13861_v5  ;;  %v16344_v3 = vsub.s32 2, %v16182_v44 }
 0x49d   :  { %v16347_v5 = vadd.f32 %v16277_v21, %v1245_v14  ;;  %v16350_v6 = vadd.f32 %v16281_v29, %v1249_v2  ;;  %v1257_v29 = vrot.slane %v1238_v1, %v16354_v7 }
 0x49f   :  { %7570 = vmatpush1.bf16.msra.mxu0 %v13858_v11  ;;  %7734 = vmatpush1.bf16.msra.mxu1 %v13860_v12  ;;  %v7759_v10 = vsel %vm7758_vm0, %v16347_v5, 0.0  ;;  %v7760_v11 = vsel %vm7758_vm0, %v16350_v6, 0.0  ;;  %v1261_v12 = vrot.slane %v1238_v1, %v16357_v8  ;;  %v16374_v15 = vadd.f32 %v16283_v32, %v1257_v29 }
 0x4a0   :  { %7571 = vmatprep.subr.bf16.mxu0 %v13875_v13  ;;  %7735 = vmatprep.subr.bf16.mxu1 %v13877_v33  ;;  %v16369_v13 = vsub.s32 5, %v16182_v44  ;;  %v7761_v33 = vadd.f32 %v7760_v11, %v7759_v10 }
 0x4a1   :  { %v16377_v17 = vadd.f32 %v16301_v46, %v1261_v12  ;;  %v16392_v46 = vsub.s32 7, %v16182_v44 }
 0x4a3   :  { %7572 = vmatpush1.bf16.msra.mxu0 %v13874_v43  ;;  %7736 = vmatpush1.bf16.msra.mxu1 %v13876_v59  ;;  %v16381_v43 = vsub.s32 6, %v16182_v44  ;;  %v7764_v59 = vsel %vm7758_vm0, %v16374_v15, 0.0  ;;  %v1305_v14 = vrot.slane %v1239_v35, %v16392_v46 }
 0x4a4   :  { %7573 = vmatprep.subr.bf16.mxu0 %v13891_v20  ;;  %7737 = vmatprep.subr.bf16.mxu1 %v13893_v26  ;;  %v7766_v20 = vsel %vm7758_vm0, %v16377_v17, 0.0 }
 0x4a5   :  { %v1269_v30 = vrot.slane %v1238_v1, %v16381_v43 }
 0x4a7   :  { %7574 = vmatpush1.bf16.msra.mxu0 %v13890_v63  ;;  %7738 = vmatpush1.bf16.msra.mxu1 %v13892_v37  ;;  %v16397_v63 = vadd.f32 %v16303_v50, %v1269_v30  ;;  %v1273_v37 = vrot.slane %v1238_v1, %v16392_v46 }
 0x4a8   :  { %7575 = vmatprep.subr.bf16.mxu0 %v13907_v38  ;;  %7739 = vmatprep.subr.bf16.mxu1 %v13909_v57  ;;  %v1277_v38 = vrot.slane %v1239_v35, %v16336_v62 }
 0x4a9   :  { %v7770_v57 = vsel %vm7758_vm0, %v16397_v63, 0.0  ;;  %v16404_v39 = vadd.f32 %v16307_v55, %v1273_v37  ;;  %v14785_v37 = vld [vmem:[#allocation9 + $0x4] ss:$16 sps:$4 sm:$0xff]  }
 0x4aa   :  { %v16407_v44 = vadd.f32 %v16325_v19, %v1277_v38  ;;  %v14786_v38 = vld [vmem:[#allocation9 + $0x8] ss:$16 sps:$4 sm:$0xff]  }
 0x4ab   :  { %7576 = vmatpush1.bf16.msra.mxu0 %v13906_v45  ;;  %7740 = vmatpush1.bf16.msra.mxu1 %v13908_v47  ;;  %v7772_v50 = vsel %vm7758_vm0, %v16404_v39, 0.0  ;;  %v16415_v45 = vadd.f32 %v16329_v24, %v1281_v40  ;;  %v1293_v24 = vrot.slane %v1239_v35, %v16357_v8  ;;  %v14794_v40 = vld [vmem:[#allocation9 + $0x2c] ss:$16 sps:$4 sm:$0xff]  }
 0x4ac   :  { %7577 = vmatprep.subr.bf16.mxu0 %v13923_v25  ;;  %7741 = vmatprep.subr.bf16.mxu1 %v13925_v48  ;;  %v7774_v42 = vsel %vm7758_vm0, %v16407_v44, 0.0  ;;  %v1285_v25 = vrot.slane %v1239_v35, %v16344_v3 }
 0x4ad   :  { %v7776_v19 = vsel %vm7758_vm0, %v16415_v45, 0.0 }
 0x4ae   :  { %v16421_v48 = vadd.f32 %v16327_v22, %v1285_v25  ;;  %v7780_v22 = vsel %vm7758_vm0, %v16427_v4, 0.0  ;;  %v14795_v25 = vld [vmem:[#allocation9 + $0x40] ss:$16 sps:$4 sm:$0xff]  }
 0x4af   :  { %7578 = vmatpush1.bf16.msra.mxu0 %v13922_v56  ;;  %7742 = vmatpush1.bf16.msra.mxu1 %v13924_v58  ;;  %v1297_v58 = vrot.slane %v1239_v35, %v16369_v13 }
 0x4b0   :  { %7579 = vmatprep.subr.bf16.mxu0 %v13939_v23  ;;  %7743 = vmatprep.subr.bf16.mxu1 %v13941_v60  ;;  %v7778_v16 = vsel %vm7758_vm0, %v16421_v48, 0.0  ;;  %v1301_v23 = vrot.slane %v1239_v35, %v16381_v43 }
 0x4b3   :  { %7580 = vmatpush1.bf16.msra.mxu0 %v13938_v61  ;;  %7744 = vmatpush1.bf16.msra.mxu1 %v13940_v36 }
 0x4b4   :  { %11184 = vmatprep.subr.bf16.mxu0 %v14785_v37  ;;  %v14845_v37 = vld [vmem:[#allocation9 + $0x144] ss:$16 sps:$4 sm:$0xff]  }
 0x4b6   :  { %7582 = vmatmul.mubr.bf16.vlgmr.msra.gmra.mrb[12].mxu0 %v16259_v28  ;;  %7746 = vmatmul.mubr.bf16.vlgmr.msra.gmra.mrb[12].mxu1 %v16259_v28  ;;  %v1253_v28 = vrot.slane %v1238_v1, %v16344_v3 }
 0x4b8   :  { %v16364_v21 = vadd.f32 %v16279_v27, %v1253_v28  ;;  %v1265_v27 = vrot.slane %v1238_v1, %v16369_v13 }
 0x4ba   :  { %v7762_v9 = vsel %vm7758_vm0, %v16364_v21, 0.0  ;;  %v16388_v26 = vadd.f32 %v16305_v51, %v1265_v27 }
 0x4bb   :  { %v7763_v18 = vadd.f32 %v7762_v9, %v7761_v33 }
 0x4bc   :  { %v7768_v54 = vsel %vm7758_vm0, %v16388_v26, 0.0 }
 0x4bd   :  { %v7765_v32 = vadd.f32 %v7764_v59, %v7763_v18 }
 0x4bf   :  { %v7767_v34 = vadd.f32 %v7766_v20, %v7765_v32 }
 0x4c1   :  { %v7769_v51 = vadd.f32 %v7768_v54, %v7767_v34  ;;  %v14783_v54 = vld [vmem:[#allocation9] ss:$16 sps:$4 sm:$0xff]  }
 0x4c2   :  { %11185 = vmatpush1.bf16.msra.mxu0 %v14783_v54  ;;  %v14840_v54 = vld [vmem:[#allocation9 + $0x128] ss:$16 sps:$4 sm:$0xff]  }
 0x4c3   :  { %v7771_v41 = vadd.f32 %v7770_v57, %v7769_v51  ;;  %v14788_v51 = vld [vmem:[#allocation9 + $0xc] ss:$16 sps:$4 sm:$0xff]   ;;  %v14791_v57 = vld [vmem:[#allocation9 + $0x24] ss:$16 sps:$4 sm:$0xff]  }
 0x4c4   :  { %11512 = vmatprep.subr.bf16.mxu1 %v14788_v51  ;;  %11186 = vmatprep.subr.bf16.mxu0 %v14791_v57  ;;  %v14843_v51 = vld [vmem:[#allocation9 + $0x140] ss:$16 sps:$4 sm:$0xff]   ;;  %v14846_v57 = vld [vmem:[#allocation9 + $0x148] ss:$16 sps:$4 sm:$0xff]  }
 0x4c5   :  { %v7773_v47 = vadd.f32 %v7772_v50, %v7771_v41  ;;  %v14789_v41 = vld [vmem:[#allocation9 + $0x20] ss:$16 sps:$4 sm:$0xff]   ;;  %11513 = vmatpush1.bf16.msra.mxu1 %v14786_v38  ;;  %v14792_v50 = vld [vmem:[#allocation9 + $0x28] ss:$16 sps:$4 sm:$0xff]   ;;  %v14848_v38 = vld [vmem:[#allocation9 + $0x14c] ss:$16 sps:$4 sm:$0xff]  }
 0x4c6   :  { %11514 = vmatprep.subr.bf16.mxu1 %v14794_v40  ;;  %11187 = vmatpush1.bf16.msra.mxu0 %v14789_v41 }
 0x4c7   :  { %v7775_v55 = vadd.f32 %v7774_v42, %v7773_v47  ;;  %v14797_v42 = vld [vmem:[#allocation9 + $0x44] ss:$16 sps:$4 sm:$0xff]   ;;  %v14800_v47 = vld [vmem:[#allocation9 + $0x4c] ss:$16 sps:$4 sm:$0xff]  }
 0x4c8   :  { %11188 = vmatprep.subr.bf16.mxu0 %v14797_v42 }
 0x4c9   :  { %v7777_v52 = vadd.f32 %v7776_v19, %v7775_v55  ;;  %11515 = vmatpush1.bf16.msra.mxu1 %v14792_v50  ;;  %v14798_v55 = vld [vmem:[#allocation9 + $0x48] ss:$16 sps:$4 sm:$0xff]   ;;  %v14803_v19 = vld [vmem:[#allocation9 + $0x64] ss:$16 sps:$4 sm:$0xff]  }
 0x4ca   :  { %11516 = vmatprep.subr.bf16.mxu1 %v14800_v47  ;;  %11189 = vmatpush1.bf16.msra.mxu0 %v14795_v25 }
 0x4cb   :  { %v7779_v56 = vadd.f32 %v7778_v16, %v7777_v52  ;;  %v14801_v52 = vld [vmem:[#allocation9 + $0x60] ss:$16 sps:$4 sm:$0xff]   ;;  %11190 = vmatprep.subr.bf16.mxu0 %v14803_v19  ;;  %v14804_v16 = vld [vmem:[#allocation9 + $0x68] ss:$16 sps:$4 sm:$0xff]  }
 0x4cd   :  { %v7781_v2 = vadd.f32 %v7780_v22, %v7779_v56  ;;  %11517 = vmatpush1.bf16.msra.mxu1 %v14798_v55  ;;  %v14812_v56 = vld [vmem:[#allocation9 + $0x8c] ss:$16 sps:$4 sm:$0xff]  }
 0x4ce   :  { %11518 = vmatprep.subr.bf16.mxu1 %v14806_v49  ;;  %11191 = vmatpush1.bf16.msra.mxu0 %v14801_v52  ;;  %v14818_v22 = vld [vmem:[#allocation9 + $0xac] ss:$16 sps:$4 sm:$0xff]  }
 0x4d1   :  { %11519 = vmatpush1.bf16.msra.mxu1 %v14804_v16 }
 0x4d2   :  { %11520 = vmatprep.subr.bf16.mxu1 %v14812_v56 }
 0x589   :  { %v7583_v60 = vpop.f32.mrb[12].mxu0  ;;  %v7747_v36 = vpop.f32.mrb[12].mxu1 }
 0x58a   :  { %v16434_v61 = vadd.f32 %v7583_v60, %v1293_v24  ;;  %v7585_v1 = vpop.f32.mrb[13].mxu0  ;;  %v7749_v28 = vpop.f32.mrb[13].mxu1  ;;  %v16441_v29 = vadd.f32 %v7747_v36, %v1301_v23  ;;  %v14809_v24 = vld [vmem:[#allocation9 + $0x84] ss:$16 sps:$4 sm:$0xff]   ;;  %v14810_v23 = vld [vmem:[#allocation9 + $0x88] ss:$16 sps:$4 sm:$0xff]  }
 0x58b   :  { %v16437_v31 = vadd.f32 %v7585_v1, %v1297_v58  ;;  %v7587_v10 = vpop.f32.mrb[14].mxu0  ;;  %v7751_v12 = vpop.f32.mrb[14].mxu1  ;;  %v16445_v59 = vadd.f32 %v7749_v28, %v1305_v14  ;;  %v14807_v58 = vld [vmem:[#allocation9 + $0x80] ss:$16 sps:$4 sm:$0xff]   ;;  %11192 = vmatprep.subr.bf16.mxu0 %v14809_v24  ;;  %v14815_v60 = vld [vmem:[#allocation9 + $0xa4] ss:$16 sps:$4 sm:$0xff]   ;;  %11521 = vmatpush1.bf16.msra.mxu1 %v14810_v23 }
 0x58c   :  { %v7782_v11 = vsel %vm7758_vm0, %v16434_v61, 0.0  ;;  %v7588_v33 = vpop.f32.mrb[15].mxu0  ;;  %v7752_v18 = vpop.f32.mrb[15].mxu1  ;;  %v7786_v32 = vsel %vm7758_vm0, %v16441_v29, 0.0  ;;  %11193 = vmatpush1.bf16.msra.mxu0 %v14807_v58  ;;  %v14813_v36 = vld [vmem:[#allocation9 + $0xa0] ss:$16 sps:$4 sm:$0xff]   ;;  %11522 = vmatprep.subr.bf16.mxu1 %v14818_v22 }
 0x58d   :  { %v7783_v9 = vadd.f32 %v7782_v11, %v7781_v2  ;;  %v7784_v27 = vsel %vm7758_vm0, %v16437_v31, 0.0  ;;  %v7788_v34 = vsel %vm7758_vm0, %v16445_v59, 0.0  ;;  %11194 = vmatprep.subr.bf16.mxu0 %v14815_v60  ;;  %v14816_v1 = vld [vmem:[#allocation9 + $0xa8] ss:$16 sps:$4 sm:$0xff]   ;;  %v14821_v14 = vld [vmem:[#allocation9 + $0xc4] ss:$16 sps:$4 sm:$0xff]  }
 0x58e   :  { %v14824_v2 = vld [vmem:[#allocation9 + $0xcc] ss:$16 sps:$4 sm:$0xff]   ;;  %v14819_v28 = vld [vmem:[#allocation9 + $0xc0] ss:$16 sps:$4 sm:$0xff]   ;;  %v14822_v10 = vld [vmem:[#allocation9 + $0xc8] ss:$16 sps:$4 sm:$0xff]  }
 0x58f   :  { %v7785_v20 = vadd.f32 %v7784_v27, %v7783_v9  ;;  %11523 = vmatpush1.bf16.msra.mxu1 %v14816_v1  ;;  %v14827_v11 = vld [vmem:[#allocation9 + $0xe4] ss:$16 sps:$4 sm:$0xff]   ;;  %v14830_v12 = vld [vmem:[#allocation9 + $0xec] ss:$16 sps:$4 sm:$0xff]   ;;  %v14825_v33 = vld [vmem:[#allocation9 + $0xe0] ss:$16 sps:$4 sm:$0xff]  }
 0x590   :  { %11195 = vmatpush1.bf16.msra.mxu0 %v14813_v36  ;;  %11524 = vmatprep.subr.bf16.mxu1 %v14824_v2  ;;  %v14828_v9 = vld [vmem:[#allocation9 + $0xe8] ss:$16 sps:$4 sm:$0xff]   ;;  %v14833_v27 = vld [vmem:[#allocation9 + $0x104] ss:$16 sps:$4 sm:$0xff]   ;;  %v14836_v18 = vld [vmem:[#allocation9 + $0x10c] ss:$16 sps:$4 sm:$0xff]  }
 0x591   :  { %v7787_v30 = vadd.f32 %v7786_v32, %v7785_v20  ;;  %11196 = vmatprep.subr.bf16.mxu0 %v14821_v14  ;;  %v14831_v20 = vld [vmem:[#allocation9 + $0x100] ss:$16 sps:$4 sm:$0xff]   ;;  %v14834_v32 = vld [vmem:[#allocation9 + $0x108] ss:$16 sps:$4 sm:$0xff]  }
 0x593   :  { %v7789_v35 = vadd.f32 %v7788_v34, %v7787_v30  ;;  %11525 = vmatpush1.bf16.msra.mxu1 %v14822_v10  ;;  %v14839_v30 = vld [vmem:[#allocation9 + $0x124] ss:$16 sps:$4 sm:$0xff]   ;;  %v14842_v34 = vld [vmem:[#allocation9 + $0x12c] ss:$16 sps:$4 sm:$0xff]  }
 0x594   :  { %11197 = vmatpush1.bf16.msra.mxu0 %v14819_v28  ;;  %11526 = vmatprep.subr.bf16.mxu1 %v14830_v12 }
 0x595   :  { %7790 = vadd.xlane.f32.xlu0 %v7789_v35  ;;  %11198 = vmatprep.subr.bf16.mxu0 %v14827_v11  ;;  %v14837_v35 = vld [vmem:[#allocation9 + $0x120] ss:$16 sps:$4 sm:$0xff]  }
 0x597   :  { %11527 = vmatpush1.bf16.msra.mxu1 %v14828_v9 }
 0x598   :  { %11199 = vmatpush1.bf16.msra.mxu0 %v14825_v33  ;;  %11528 = vmatprep.subr.bf16.mxu1 %v14836_v18 }
 0x599   :  { %11200 = vmatprep.subr.bf16.mxu0 %v14833_v27 }
 0x59b   :  { %11529 = vmatpush1.bf16.msra.mxu1 %v14834_v32 }
 0x59c   :  { %11201 = vmatpush1.bf16.msra.mxu0 %v14831_v20  ;;  %11530 = vmatprep.subr.bf16.mxu1 %v14842_v34 }
 0x59d   :  { %11202 = vmatprep.subr.bf16.mxu0 %v14839_v30 }
 0x59f   :  { %11531 = vmatpush1.bf16.msra.mxu1 %v14840_v54 }
 0x5a0   :  { %11203 = vmatpush1.bf16.msra.mxu0 %v14837_v35  ;;  %11532 = vmatprep.subr.bf16.mxu1 %v14848_v38 }
 0x5a1   :  { %11204 = vmatprep.subr.bf16.mxu0 %v14845_v37 }
 0x5a3   :  { %11533 = vmatpush1.bf16.msra.mxu1 %v14846_v57 }
 0x5a4   :  { %11205 = vmatpush1.bf16.msra.mxu0 %v14843_v51 }
 0x622   :  { %v7791_v40 = vpop.xlane.xlu0 %7790 }
 0x623   :  { %v7793_v41 = vmul.f32 0.00048828125, %v7791_v40 }
 0x625   :  { %v16452_v50 = vsub.f32 %v16347_v5, %v7793_v41  ;;  %v16455_v42 = vsub.f32 %v16350_v6, %v7793_v41  ;;  %v16458_v47 = vsub.f32 %v16364_v21, %v7793_v41  ;;  %v16461_v25 = vsub.f32 %v16374_v15, %v7793_v41 }
 0x626   :  { %v16468_v49 = vsub.f32 %v16377_v17, %v7793_v41  ;;  %v16473_v6 = vsub.f32 %v16388_v26, %v7793_v41  ;;  %v16480_v24 = vsub.f32 %v16397_v63, %v7793_v41  ;;  %v16486_v26 = vsub.f32 %v16404_v39, %v7793_v41 }
 0x627   :  { %v7810_v55 = vmul.f32 %v16452_v50, %v16452_v50  ;;  %v7811_v19 = vmul.f32 %v16455_v42, %v16455_v42  ;;  %v7812_v5 = vmul.f32 %v16458_v47, %v16458_v47  ;;  %v7813_v21 = vmul.f32 %v16461_v25, %v16461_v25 }
 0x628   :  { %v7814_v17 = vmul.f32 %v16468_v49, %v16468_v49  ;;  %v7815_v23 = vmul.f32 %v16473_v6, %v16473_v6  ;;  %v16492_v36 = vsub.f32 %v16407_v44, %v7793_v41  ;;  %v7816_v63 = vmul.f32 %v16480_v24, %v16480_v24 }
 0x629   :  { %v7826_v15 = vsel %vm7758_vm0, %v7810_v55, 0.0  ;;  %v7827_v52 = vsel %vm7758_vm0, %v7811_v19, 0.0  ;;  %v7829_v56 = vsel %vm7758_vm0, %v7812_v5, 0.0  ;;  %v7831_v60 = vsel %vm7758_vm0, %v7813_v21, 0.0 }
 0x62a   :  { %v7828_v16 = vadd.f32 %v7827_v52, %v7826_v15  ;;  %v7833_v1 = vsel %vm7758_vm0, %v7814_v17, 0.0  ;;  %v16498_v2 = vsub.f32 %v16415_v45, %v7793_v41  ;;  %v7817_v39 = vmul.f32 %v16486_v26, %v16486_v26 }
 0x62b   :  { %v7835_v28 = vsel %vm7758_vm0, %v7815_v23, 0.0  ;;  %v16504_v11 = vsub.f32 %v16421_v48, %v7793_v41  ;;  %v7818_v44 = vmul.f32 %v16492_v36, %v16492_v36  ;;  %v7837_v12 = vsel %vm7758_vm0, %v7816_v63, 0.0  ;;  %v14852_v23 = vld [vmem:[#allocation9 + $0x168] ss:$16 sps:$4 sm:$0xff]   ;;  %v14860_v63 = vld [vmem:[#allocation9 + $0x18c] ss:$16 sps:$4 sm:$0xff]  }
 0x62c   :  { %v7830_v58 = vadd.f32 %v7829_v56, %v7828_v16  ;;  %v16510_v9 = vsub.f32 %v16427_v4, %v7793_v41  ;;  %v7819_v45 = vmul.f32 %v16498_v2, %v16498_v2  ;;  %v7839_v27 = vsel %vm7758_vm0, %v7817_v39, 0.0  ;;  %v14849_v56 = vld [vmem:[#allocation9 + $0x160] ss:$16 sps:$4 sm:$0xff]   ;;  %v14863_v39 = vld [vmem:[#allocation9 + $0x1a4] ss:$16 sps:$4 sm:$0xff]  }
 0x62d   :  { %v16516_v20 = vsub.f32 %v16434_v61, %v7793_v41  ;;  %v7820_v48 = vmul.f32 %v16504_v11, %v16504_v11  ;;  %v7841_v32 = vsel %vm7758_vm0, %v7818_v44, 0.0  ;;  %v16522_v34 = vsub.f32 %v16437_v31, %v7793_v41  ;;  %v14864_v44 = vld [vmem:[#allocation9 + $0x1a8] ss:$16 sps:$4 sm:$0xff]  }
 0x62e   :  { %v7832_v22 = vadd.f32 %v7831_v60, %v7830_v58  ;;  %v7821_v4 = vmul.f32 %v16510_v9, %v16510_v9  ;;  %v7843_v35 = vsel %vm7758_vm0, %v7819_v45, 0.0  ;;  %v16528_v37 = vsub.f32 %v16441_v29, %v7793_v41  ;;  %v14851_v58 = vld [vmem:[#allocation9 + $0x164] ss:$16 sps:$4 sm:$0xff]   ;;  %v14854_v60 = vld [vmem:[#allocation9 + $0x16c] ss:$16 sps:$4 sm:$0xff]  }
 0x62f   :  { %v7822_v61 = vmul.f32 %v16516_v20, %v16516_v20  ;;  %v7845_v38 = vsel %vm7758_vm0, %v7820_v48, 0.0  ;;  %v16534_v57 = vsub.f32 %v16445_v59, %v7793_v41  ;;  %v7823_v31 = vmul.f32 %v16522_v34, %v16522_v34  ;;  %11206 = vmatprep.subr.bf16.mxu0 %v14851_v58  ;;  %11534 = vmatprep.subr.bf16.mxu1 %v14854_v60  ;;  %v14867_v45 = vld [vmem:[#allocation9 + $0x1c0] ss:$16 sps:$4 sm:$0xff]   ;;  %v14878_v48 = vld [vmem:[#allocation9 + $0x1ec] ss:$16 sps:$4 sm:$0xff]  }
 0x630   :  { %v7834_v14 = vadd.f32 %v7833_v1, %v7832_v22  ;;  %v7847_v40 = vsel %vm7758_vm0, %v7821_v4, 0.0  ;;  %v7824_v19 = vmul.f32 %v16528_v37, %v16528_v37  ;;  %v14857_v22 = vld [vmem:[#allocation9 + $0x184] ss:$16 sps:$4 sm:$0xff]   ;;  %11207 = vmatpush1.bf16.msra.mxu0 %v14849_v56  ;;  %v14855_v1 = vld [vmem:[#allocation9 + $0x180] ss:$16 sps:$4 sm:$0xff]   ;;  %11535 = vmatpush1.bf16.msra.mxu1 %v14852_v23 }
 0x631   :  { %v7849_v29 = vsel %vm7758_vm0, %v7822_v61, 0.0  ;;  %v7825_v21 = vmul.f32 %v16534_v57, %v16534_v57  ;;  %v7851_v15 = vsel %vm7758_vm0, %v7823_v31, 0.0  ;;  %11208 = vmatprep.subr.bf16.mxu0 %v14857_v22  ;;  %11536 = vmatprep.subr.bf16.mxu1 %v14860_v63  ;;  %v14881_v4 = vld [vmem:[#allocation9 + $0x204] ss:$16 sps:$4 sm:$0xff]  }
 0x632   :  { %v7836_v10 = vadd.f32 %v7835_v28, %v7834_v14  ;;  %v7853_v59 = vsel %vm7758_vm0, %v7824_v19, 0.0  ;;  %v14858_v14 = vld [vmem:[#allocation9 + $0x188] ss:$16 sps:$4 sm:$0xff]   ;;  %v14866_v28 = vld [vmem:[#allocation9 + $0x1ac] ss:$16 sps:$4 sm:$0xff]   ;;  %v7756_v31 = vld [vmem:[#allocation7] sm:$0xff] }
 0x633   :  { %v7855_v16 = vsel %vm7758_vm0, %v7825_v21, 0.0  ;;  %v16552_v21 = vld [vmem:[#allocation6 + $0x8] sm:$0xff]  ;;  %v7989_v56 = vrot.slane %v7756_v31, %v16344_v3  ;;  %v8001_v58 = vrot.slane %v7756_v31, %v16369_v13  ;;  %v7997_v60 = vrot.slane %v7756_v31, %v16357_v8 }
 0x634   :  { %v7838_v33 = vadd.f32 %v7837_v12, %v7836_v10  ;;  %11209 = vmatpush1.bf16.msra.mxu0 %v14855_v1  ;;  %v14861_v10 = vld [vmem:[#allocation9 + $0x1a0] ss:$16 sps:$4 sm:$0xff]   ;;  %11537 = vmatpush1.bf16.msra.mxu1 %v14858_v14  ;;  %v14869_v12 = vld [vmem:[#allocation9 + $0x1c4] ss:$16 sps:$4 sm:$0xff]   ;;  %v8009_v22 = vrot.slane %v7756_v31, %v16392_v46  ;;  %v8005_v63 = vrot.slane %v7756_v31, %v16381_v43 }
 0x635   :  { %11210 = vmatprep.subr.bf16.mxu0 %v14863_v39  ;;  %11538 = vmatprep.subr.bf16.mxu1 %v14866_v28  ;;  %v7927_v1 = vrot.slane %v16552_v21, %v16354_v7 }
 0x636   :  { %v7840_v18 = vadd.f32 %v7839_v27, %v7838_v33  ;;  %v14872_v33 = vld [vmem:[#allocation9 + $0x1cc] ss:$16 sps:$4 sm:$0xff]   ;;  %v14870_v27 = vld [vmem:[#allocation9 + $0x1c8] ss:$16 sps:$4 sm:$0xff]  }
 0x638   :  { %v7842_v30 = vadd.f32 %v7841_v32, %v7840_v18  ;;  %11211 = vmatpush1.bf16.msra.mxu0 %v14861_v10  ;;  %11539 = vmatpush1.bf16.msra.mxu1 %v14864_v44  ;;  %v14875_v18 = vld [vmem:[#allocation9 + $0x1e4] ss:$16 sps:$4 sm:$0xff]   ;;  %v14873_v32 = vld [vmem:[#allocation9 + $0x1e0] ss:$16 sps:$4 sm:$0xff]  }
 0x639   :  { %11212 = vmatprep.subr.bf16.mxu0 %v14869_v12  ;;  %11540 = vmatprep.subr.bf16.mxu1 %v14872_v33 }
 0x63a   :  { %v7844_v54 = vadd.f32 %v7843_v35, %v7842_v30  ;;  %v14876_v30 = vld [vmem:[#allocation9 + $0x1e8] ss:$16 sps:$4 sm:$0xff]   ;;  %v14884_v35 = vld [vmem:[#allocation9 + $0x20c] ss:$16 sps:$4 sm:$0xff]  }
 0x63c   :  { %v7846_v51 = vadd.f32 %v7845_v38, %v7844_v54  ;;  %11213 = vmatpush1.bf16.msra.mxu0 %v14867_v45  ;;  %11541 = vmatpush1.bf16.msra.mxu1 %v14870_v27 }
 0x63d   :  { %11214 = vmatprep.subr.bf16.mxu0 %v14875_v18  ;;  %11542 = vmatprep.subr.bf16.mxu1 %v14878_v48 }
 0x63e   :  { %v7848_v55 = vadd.f32 %v7847_v40, %v7846_v51  ;;  %v7754_v51 = vld [vmem:[#allocation6] sm:$0xff] }
 0x63f   :  { %v7887_v40 = vrot.slane %v7754_v51, %v16339_v0  ;;  %v7883_v19 = vrot.slane %v7754_v51, %v16336_v62 }
 0x640   :  { %v7850_v5 = vadd.f32 %v7849_v29, %v7848_v55  ;;  %11215 = vmatpush1.bf16.msra.mxu0 %v14873_v32  ;;  %11543 = vmatpush1.bf16.msra.mxu1 %v14876_v30  ;;  %v7985_v55 = vrot.slane %v7756_v31, %v16339_v0  ;;  %v7895_v29 = vrot.slane %v7754_v51, %v16354_v7 }
 0x641   :  { %11225 = vmatprep.subr.bf16.mxu0 %v14881_v4  ;;  %11553 = vmatprep.subr.bf16.mxu1 %v14884_v35 }
 0x642   :  { %v7852_v52 = vadd.f32 %v7851_v15, %v7850_v5  ;;  %v7891_v5 = vrot.slane %v7754_v51, %v16344_v3  ;;  %v7903_v15 = vrot.slane %v7754_v51, %v16369_v13 }
 0x644   :  { %v7854_v41 = vadd.f32 %v7853_v59, %v7852_v52  ;;  %v7899_v52 = vrot.slane %v7754_v51, %v16357_v8  ;;  %v7911_v59 = vrot.slane %v7754_v51, %v16392_v46 }
 0x646   :  { %v7856_v17 = vadd.f32 %v7855_v16, %v7854_v41  ;;  %v7907_v41 = vrot.slane %v7754_v51, %v16381_v43  ;;  %v7981_v16 = vrot.slane %v7756_v31, %v16336_v62  ;;  %v14879_v51 = vld [vmem:[#allocation9 + $0x200] ss:$16 sps:$4 sm:$0xff]  }
 0x648   :  { %7857 = vadd.xlane.f32.xlu0 %v7856_v17  ;;  %v7993_v17 = vrot.slane %v7756_v31, %v16354_v7  ;;  %v14882_v31 = vld [vmem:[#allocation9 + $0x208] ss:$16 sps:$4 sm:$0xff]  }
 0x6d5   :  { %v7858_v54 = vpop.xlane.xlu0 %7857 }
 0x6d6   :  { %v7859_v61 = vmul.f32 0.00048828125, %v7858_v54 }
 0x6d8   :  { %v7860_v38 = vadd.f32 1e-05, %v7859_v61 }
 0x6da   :  { %15743 = vrsqrt.f32 %v7860_v38 }
 0x6e4   :  { %v16562_v23 = vpop.eup %15743 }
 0x6e5   :  { %v7863_v14 = vmul.f32 %v16562_v23, %v16455_v42  ;;  %v7862_v39 = vmul.f32 %v16562_v23, %v16452_v50  ;;  %v7865_v28 = vmul.f32 %v16562_v23, %v16461_v25  ;;  %v7864_v10 = vmul.f32 %v16562_v23, %v16458_v47 }
 0x6e6   :  { %v7867_v44 = vmul.f32 %v16562_v23, %v16473_v6  ;;  %v7866_v12 = vmul.f32 %v16562_v23, %v16468_v49  ;;  %v7869_v33 = vmul.f32 %v16562_v23, %v16486_v26  ;;  %v7868_v42 = vmul.f32 %v16562_v23, %v16480_v24  ;;  %v16587_v49 = vld [vmem:[#allocation7 + $0x8] sm:$0xff] }
 0x6e7   :  { %v7961_v45 = vmul.f32 %v7887_v40, %v7863_v14  ;;  %v7960_v50 = vmul.f32 %v7883_v19, %v7862_v39  ;;  %v7963_v27 = vmul.f32 %v7895_v29, %v7865_v28  ;;  %v7962_v18 = vmul.f32 %v7891_v5, %v7864_v10 }
 0x6e8   :  { %v7965_v25 = vmul.f32 %v7903_v15, %v7867_v44  ;;  %v7964_v48 = vmul.f32 %v7899_v52, %v7866_v12  ;;  %v7967_v32 = vmul.f32 %v7911_v59, %v7869_v33  ;;  %v7966_v47 = vmul.f32 %v7907_v41, %v7868_v42  ;;  %v14887_v41 = vld [vmem:[#allocation9 + $0x224] ss:$16 sps:$4 sm:$0xff]   ;;  %v14891_v33 = vld [vmem:[#allocation9 + $0x240] ss:$16 sps:$4 sm:$0xff]   ;;  %v14894_v42 = vld [vmem:[#allocation9 + $0x248] ss:$16 sps:$4 sm:$0xff]  }
 0x6e9   :  { %v8059_v30 = vadd.f32 %v7985_v55, %v7961_v45  ;;  %v8058_v4 = vadd.f32 %v7981_v16, %v7960_v50  ;;  %v8061_v6 = vadd.f32 %v7993_v17, %v7963_v27  ;;  %v16585_v35 = vadd.f32 %v7989_v56, %v7962_v18  ;;  %v14890_v16 = vld [vmem:[#allocation9 + $0x22c] ss:$16 sps:$4 sm:$0xff]   ;;  %v14899_v27 = vld [vmem:[#allocation9 + $0x264] ss:$16 sps:$4 sm:$0xff]  }
 0x6ea   :  { %v16589_v54 = vadd.f32 %v8001_v58, %v7965_v25  ;;  %v16591_v26 = vadd.f32 %v7997_v60, %v7964_v48  ;;  %v16593_v24 = vadd.f32 %v8009_v22, %v7967_v32  ;;  %v16595_v61 = vadd.f32 %v8005_v63, %v7966_v47  ;;  %v14885_v22 = vld [vmem:[#allocation9 + $0x220] ss:$16 sps:$4 sm:$0xff]   ;;  %v14888_v63 = vld [vmem:[#allocation9 + $0x228] ss:$16 sps:$4 sm:$0xff]   ;;  %v14902_v18 = vld [vmem:[#allocation9 + $0x26c] ss:$16 sps:$4 sm:$0xff]  }
 0x6eb   :  { %v8075_v38 = vpack.c.bf16 %v8059_v30, %v8059_v30  ;;  %v8074_v40 = vpack.c.bf16 %v8058_v4, %v8058_v4  ;;  %v7923_v55 = vrot.slane %v16552_v21, %v16344_v3  ;;  %v7935_v19 = vrot.slane %v16552_v21, %v16369_v13  ;;  %v14897_v32 = vld [vmem:[#allocation9 + $0x260] ss:$16 sps:$4 sm:$0xff]   ;;  %v14900_v47 = vld [vmem:[#allocation9 + $0x268] ss:$16 sps:$4 sm:$0xff]   ;;  %v14905_v4 = vld [vmem:[#allocation9 + $0x284] ss:$16 sps:$4 sm:$0xff]  }
 0x6ec   :  { %v8025_v29 = vrot.slane %v16587_v49, %v16354_v7  ;;  %v8021_v5 = vrot.slane %v16587_v49, %v16344_v3  ;;  %v8033_v15 = vrot.slane %v16587_v49, %v16369_v13  ;;  %v7931_v52 = vrot.slane %v16552_v21, %v16357_v8 }
 0x6ed   :  { %11216 = vmatprep.mubr.bf16.mxu0 %v8075_v38  ;;  %11544 = vmatprep.mubr.bf16.mxu1 %v8075_v38  ;;  %v8077_v59 = vpack.c.bf16 %v8061_v6, %v8061_v6  ;;  %v7873_v17 = vmul.f32 %v16562_v23, %v16510_v9  ;;  %v8029_v56 = vrot.slane %v16587_v49, %v16357_v8  ;;  %v14893_v9 = vld [vmem:[#allocation9 + $0x244] ss:$16 sps:$4 sm:$0xff]   ;;  %v14896_v8 = vld [vmem:[#allocation9 + $0x24c] ss:$16 sps:$4 sm:$0xff]  }
 0x6ee   :  { %11217 = vmatmul.mubr.bf16.vlgmr.msra.gmra.mrb[16].mxu0 %v8074_v40  ;;  %11545 = vmatmul.mubr.bf16.vlgmr.msra.gmra.mrb[16].mxu1 %v8074_v40  ;;  %v7872_v58 = vmul.f32 %v16562_v23, %v16504_v11  ;;  %v7875_v13 = vmul.f32 %v16562_v23, %v16522_v34  ;;  %v7874_v60 = vmul.f32 %v16562_v23, %v16516_v20  ;;  %v14908_v6 = vld [vmem:[#allocation9 + $0x28c] ss:$16 sps:$4 sm:$0xff]   ;;  %v14909_v40 = vld [vmem:[#allocation9 + $0x2a0] ss:$16 sps:$4 sm:$0xff]  }
 0x6ef   :  { %11226 = vmatpush1.bf16.msra.mxu0 %v14879_v51  ;;  %11554 = vmatpush1.bf16.msra.mxu1 %v14882_v31  ;;  %v7971_v14 = vmul.f32 %v7927_v1, %v7873_v17  ;;  %v7943_v34 = vrot.slane %v16552_v21, %v16392_v46  ;;  %v7877_v1 = vmul.f32 %v16562_v23, %v16534_v57  ;;  %v14903_v51 = vld [vmem:[#allocation9 + $0x280] ss:$16 sps:$4 sm:$0xff]   ;;  %v14914_v31 = vld [vmem:[#allocation9 + $0x2ac] ss:$16 sps:$4 sm:$0xff]   ;;  %v14929_v17 = vld [vmem:[#allocation9 + $0x304] ss:$16 sps:$4 sm:$0xff]  }
 0x6f0   :  { %11257 = vmatprep.mubr.bf16.mxu0 %v8077_v59  ;;  %11585 = vmatprep.mubr.bf16.mxu1 %v8077_v59  ;;  %v7970_v39 = vmul.f32 %v7923_v55, %v7872_v58  ;;  %v7973_v28 = vmul.f32 %v7935_v19, %v7875_v13  ;;  %v7972_v10 = vmul.f32 %v7931_v52, %v7874_v60  ;;  %v14912_v55 = vld [vmem:[#allocation9 + $0x2a8] ss:$16 sps:$4 sm:$0xff]   ;;  %v14917_v19 = vld [vmem:[#allocation9 + $0x2c4] ss:$16 sps:$4 sm:$0xff]   ;;  %v14926_v59 = vld [vmem:[#allocation9 + $0x2ec] ss:$16 sps:$4 sm:$0xff]  }
 0x6f1   :  { %11227 = vmatprep.subr.bf16.mxu0 %v14887_v41  ;;  %11555 = vmatprep.subr.bf16.mxu1 %v14890_v16  ;;  %v16619_v11 = vadd.f32 %v8025_v29, %v7971_v14  ;;  %v8041_v45 = vrot.slane %v16587_v49, %v16392_v46  ;;  %v7939_v50 = vrot.slane %v16552_v21, %v16381_v43  ;;  %v14920_v29 = vld [vmem:[#allocation9 + $0x2cc] ss:$16 sps:$4 sm:$0xff]   ;;  %v14923_v52 = vld [vmem:[#allocation9 + $0x2e4] ss:$16 sps:$4 sm:$0xff]   ;;  %v14921_v41 = vld [vmem:[#allocation9 + $0x2e0] ss:$16 sps:$4 sm:$0xff]  }
 0x6f2   :  { %v16623_v20 = vadd.f32 %v8021_v5, %v7970_v39  ;;  %v16625_v44 = vadd.f32 %v8033_v15, %v7973_v28  ;;  %v16627_v12 = vadd.f32 %v8029_v56, %v7972_v10  ;;  %v7975_v25 = vmul.f32 %v7943_v34, %v7877_v1  ;;  %v14915_v5 = vld [vmem:[#allocation9 + $0x2c0] ss:$16 sps:$4 sm:$0xff]   ;;  %v14918_v15 = vld [vmem:[#allocation9 + $0x2c8] ss:$16 sps:$4 sm:$0xff]   ;;  %v14932_v56 = vld [vmem:[#allocation9 + $0x30c] ss:$16 sps:$4 sm:$0xff]  }
 0x6f3   :  { %11228 = vmatpush1.bf16.msra.mxu0 %v14885_v22  ;;  %11556 = vmatpush1.bf16.msra.mxu1 %v14888_v63  ;;  %v7876_v48 = vmul.f32 %v16562_v23, %v16528_v37  ;;  %v8037_v57 = vrot.slane %v16587_v49, %v16381_v43  ;;  %v14906_v37 = vld [vmem:[#allocation9 + $0x288] ss:$16 sps:$4 sm:$0xff]   ;;  %v14911_v43 = vld [vmem:[#allocation9 + $0x2a4] ss:$16 sps:$4 sm:$0xff]   ;;  %v14927_v58 = vld [vmem:[#allocation9 + $0x300] ss:$16 sps:$4 sm:$0xff]  }
 0x6f4   :  { %11229 = vmatprep.subr.bf16.mxu0 %v14893_v9  ;;  %11557 = vmatprep.subr.bf16.mxu1 %v14896_v8  ;;  %v16639_v30 = vadd.f32 %v8041_v45, %v7975_v25  ;;  %v14924_v16 = vld [vmem:[#allocation9 + $0x2e8] ss:$16 sps:$4 sm:$0xff]   ;;  %v14935_v60 = vld [vmem:[#allocation9 + $0x324] ss:$16 sps:$4 sm:$0xff]   ;;  %v14938_v22 = vld [vmem:[#allocation9 + $0x32c] ss:$16 sps:$4 sm:$0xff]  }
 0x6f5   :  { %v7974_v46 = vmul.f32 %v7939_v50, %v7876_v48  ;;  %v14930_v13 = vld [vmem:[#allocation9 + $0x308] ss:$16 sps:$4 sm:$0xff]   ;;  %v14933_v63 = vld [vmem:[#allocation9 + $0x320] ss:$16 sps:$4 sm:$0xff]   ;;  %v14941_v9 = vld [vmem:[#allocation9 + $0x344] ss:$16 sps:$4 sm:$0xff]  }
 0x6f6   :  { %v14936_v14 = vld [vmem:[#allocation9 + $0x328] ss:$16 sps:$4 sm:$0xff]   ;;  %v14944_v8 = vld [vmem:[#allocation9 + $0x34c] ss:$16 sps:$4 sm:$0xff]   ;;  %v14939_v39 = vld [vmem:[#allocation9 + $0x340] ss:$16 sps:$4 sm:$0xff]  }
 0x6f7   :  { %11230 = vmatpush1.bf16.msra.mxu0 %v14891_v33  ;;  %11558 = vmatpush1.bf16.msra.mxu1 %v14894_v42  ;;  %v16641_v38 = vadd.f32 %v8037_v57, %v7974_v46  ;;  %v14942_v28 = vld [vmem:[#allocation9 + $0x348] ss:$16 sps:$4 sm:$0xff]   ;;  %v14947_v10 = vld [vmem:[#allocation9 + $0x364] ss:$16 sps:$4 sm:$0xff]   ;;  %v14950_v34 = vld [vmem:[#allocation9 + $0x36c] ss:$16 sps:$4 sm:$0xff]  }
 0x6f8   :  { %11231 = vmatprep.subr.bf16.mxu0 %v14899_v27  ;;  %11559 = vmatprep.subr.bf16.mxu1 %v14902_v18  ;;  %v14945_v1 = vld [vmem:[#allocation9 + $0x360] ss:$16 sps:$4 sm:$0xff]   ;;  %v14948_v33 = vld [vmem:[#allocation9 + $0x368] ss:$16 sps:$4 sm:$0xff]   ;;  %v14953_v42 = vld [vmem:[#allocation9 + $0x384] ss:$16 sps:$4 sm:$0xff]  }
 0x6f9   :  { %v14956_v45 = vld [vmem:[#allocation9 + $0x38c] ss:$16 sps:$4 sm:$0xff]   ;;  %v14951_v50 = vld [vmem:[#allocation9 + $0x380] ss:$16 sps:$4 sm:$0xff]   ;;  %v14954_v27 = vld [vmem:[#allocation9 + $0x388] ss:$16 sps:$4 sm:$0xff]  }
 0x6fa   :  { %v14959_v18 = vld [vmem:[#allocation9 + $0x3a4] ss:$16 sps:$4 sm:$0xff]   ;;  %v14962_v25 = vld [vmem:[#allocation9 + $0x3ac] ss:$16 sps:$4 sm:$0xff]   ;;  %v14957_v48 = vld [vmem:[#allocation9 + $0x3a0] ss:$16 sps:$4 sm:$0xff]  }
 0x6fb   :  { %11232 = vmatpush1.bf16.msra.mxu0 %v14897_v32  ;;  %11560 = vmatpush1.bf16.msra.mxu1 %v14900_v47  ;;  %v14960_v57 = vld [vmem:[#allocation9 + $0x3a8] ss:$16 sps:$4 sm:$0xff]   ;;  %v14965_v32 = vld [vmem:[#allocation9 + $0x3c4] ss:$16 sps:$4 sm:$0xff]   ;;  %v14968_v47 = vld [vmem:[#allocation9 + $0x3cc] ss:$16 sps:$4 sm:$0xff]  }
 0x6fc   :  { %11233 = vmatprep.subr.bf16.mxu0 %v14905_v4  ;;  %11561 = vmatprep.subr.bf16.mxu1 %v14908_v6  ;;  %v14963_v46 = vld [vmem:[#allocation9 + $0x3c0] ss:$16 sps:$4 sm:$0xff]   ;;  %v14966_v4 = vld [vmem:[#allocation9 + $0x3c8] ss:$16 sps:$4 sm:$0xff]   ;;  %v14971_v6 = vld [vmem:[#allocation9 + $0x3e4] ss:$16 sps:$4 sm:$0xff]  }
 0x6ff   :  { %11234 = vmatpush1.bf16.msra.mxu0 %v14903_v51  ;;  %11562 = vmatpush1.bf16.msra.mxu1 %v14906_v37  ;;  %v14974_v51 = vld [vmem:[#allocation9 + $0x3ec] ss:$16 sps:$4 sm:$0xff]   ;;  %v14969_v37 = vld [vmem:[#allocation9 + $0x3e0] ss:$16 sps:$4 sm:$0xff]  }
 0x700   :  { %11235 = vmatprep.subr.bf16.mxu0 %v14911_v43  ;;  %11563 = vmatprep.subr.bf16.mxu1 %v14914_v31  ;;  %v14972_v43 = vld [vmem:[#allocation9 + $0x3e8] ss:$16 sps:$4 sm:$0xff]   ;;  %v14977_v31 = vld [vmem:[#allocation9 + $0x404] ss:$16 sps:$4 sm:$0xff]  }
 0x703   :  { %11236 = vmatpush1.bf16.msra.mxu0 %v14909_v40  ;;  %11564 = vmatpush1.bf16.msra.mxu1 %v14912_v55  ;;  %v14980_v40 = vld [vmem:[#allocation9 + $0x40c] ss:$16 sps:$4 sm:$0xff]   ;;  %v14975_v55 = vld [vmem:[#allocation9 + $0x400] ss:$16 sps:$4 sm:$0xff]  }
 0x704   :  { %11237 = vmatprep.subr.bf16.mxu0 %v14917_v19  ;;  %11565 = vmatprep.subr.bf16.mxu1 %v14920_v29  ;;  %v8076_v19 = vpack.c.bf16 %v16585_v35, %v16585_v35  ;;  %v14978_v29 = vld [vmem:[#allocation9 + $0x408] ss:$16 sps:$4 sm:$0xff]   ;;  %v14992_v35 = vld [vmem:[#allocation9 + $0x44c] ss:$16 sps:$4 sm:$0xff]  }
 0x707   :  { %11238 = vmatpush1.bf16.msra.mxu0 %v14915_v5  ;;  %11566 = vmatpush1.bf16.msra.mxu1 %v14918_v15  ;;  %v8079_v5 = vpack.c.bf16 %v16589_v54, %v16589_v54  ;;  %v14983_v15 = vld [vmem:[#allocation9 + $0x424] ss:$16 sps:$4 sm:$0xff]  }
 0x708   :  { %11239 = vmatprep.subr.bf16.mxu0 %v14923_v52  ;;  %11567 = vmatprep.subr.bf16.mxu1 %v14926_v59  ;;  %v14986_v52 = vld [vmem:[#allocation9 + $0x42c] ss:$16 sps:$4 sm:$0xff]   ;;  %v14981_v59 = vld [vmem:[#allocation9 + $0x420] ss:$16 sps:$4 sm:$0xff]   ;;  %v14995_v54 = vld [vmem:[#allocation9 + $0x464] ss:$16 sps:$4 sm:$0xff]  }
 0x70b   :  { %11240 = vmatpush1.bf16.msra.mxu0 %v14921_v41  ;;  %11568 = vmatpush1.bf16.msra.mxu1 %v14924_v16  ;;  %v14984_v41 = vld [vmem:[#allocation9 + $0x428] ss:$16 sps:$4 sm:$0xff]   ;;  %v14989_v16 = vld [vmem:[#allocation9 + $0x444] ss:$16 sps:$4 sm:$0xff]  }
 0x70c   :  { %11241 = vmatprep.subr.bf16.mxu0 %v14929_v17  ;;  %11569 = vmatprep.subr.bf16.mxu1 %v14932_v56  ;;  %v14987_v17 = vld [vmem:[#allocation9 + $0x440] ss:$16 sps:$4 sm:$0xff]   ;;  %v14990_v56 = vld [vmem:[#allocation9 + $0x448] ss:$16 sps:$4 sm:$0xff]  }
 0x70f   :  { %11242 = vmatpush1.bf16.msra.mxu0 %v14927_v58  ;;  %11570 = vmatpush1.bf16.msra.mxu1 %v14930_v13  ;;  %v14998_v58 = vld [vmem:[#allocation9 + $0x46c] ss:$16 sps:$4 sm:$0xff]   ;;  %v14993_v13 = vld [vmem:[#allocation9 + $0x460] ss:$16 sps:$4 sm:$0xff]  }
 0x710   :  { %11243 = vmatprep.subr.bf16.mxu0 %v14935_v60  ;;  %11571 = vmatprep.subr.bf16.mxu1 %v14938_v22  ;;  %v14996_v60 = vld [vmem:[#allocation9 + $0x468] ss:$16 sps:$4 sm:$0xff]   ;;  %v15001_v22 = vld [vmem:[#allocation9 + $0x484] ss:$16 sps:$4 sm:$0xff]  }
 0x713   :  { %11244 = vmatpush1.bf16.msra.mxu0 %v14933_v63  ;;  %11572 = vmatpush1.bf16.msra.mxu1 %v14936_v14  ;;  %v15004_v63 = vld [vmem:[#allocation9 + $0x48c] ss:$16 sps:$4 sm:$0xff]   ;;  %v14999_v14 = vld [vmem:[#allocation9 + $0x480] ss:$16 sps:$4 sm:$0xff]  }
 0x714   :  { %11245 = vmatprep.subr.bf16.mxu0 %v14941_v9  ;;  %11573 = vmatprep.subr.bf16.mxu1 %v14944_v8  ;;  %v15002_v9 = vld [vmem:[#allocation9 + $0x488] ss:$16 sps:$4 sm:$0xff]   ;;  %v15007_v8 = vld [vmem:[#allocation9 + $0x4a4] ss:$16 sps:$4 sm:$0xff]  }
 0x717   :  { %11246 = vmatpush1.bf16.msra.mxu0 %v14939_v39  ;;  %11574 = vmatpush1.bf16.msra.mxu1 %v14942_v28  ;;  %v15010_v39 = vld [vmem:[#allocation9 + $0x4ac] ss:$16 sps:$4 sm:$0xff]   ;;  %v15005_v28 = vld [vmem:[#allocation9 + $0x4a0] ss:$16 sps:$4 sm:$0xff]  }
 0x718   :  { %11247 = vmatprep.subr.bf16.mxu0 %v14947_v10  ;;  %11575 = vmatprep.subr.bf16.mxu1 %v14950_v34  ;;  %v15008_v10 = vld [vmem:[#allocation9 + $0x4a8] ss:$16 sps:$4 sm:$0xff]   ;;  %v15013_v34 = vld [vmem:[#allocation9 + $0x4c4] ss:$16 sps:$4 sm:$0xff]  }
 0x71b   :  { %11248 = vmatpush1.bf16.msra.mxu0 %v14945_v1  ;;  %11576 = vmatpush1.bf16.msra.mxu1 %v14948_v33  ;;  %v15016_v1 = vld [vmem:[#allocation9 + $0x4cc] ss:$16 sps:$4 sm:$0xff]   ;;  %v15011_v33 = vld [vmem:[#allocation9 + $0x4c0] ss:$16 sps:$4 sm:$0xff]  }
 0x71c   :  { %11249 = vmatprep.subr.bf16.mxu0 %v14953_v42  ;;  %11577 = vmatprep.subr.bf16.mxu1 %v14956_v45  ;;  %v15014_v42 = vld [vmem:[#allocation9 + $0x4c8] ss:$16 sps:$4 sm:$0xff]   ;;  %v15019_v45 = vld [vmem:[#allocation9 + $0x4e4] ss:$16 sps:$4 sm:$0xff]  }
 0x71f   :  { %11250 = vmatpush1.bf16.msra.mxu0 %v14951_v50  ;;  %11578 = vmatpush1.bf16.msra.mxu1 %v14954_v27  ;;  %v15022_v50 = vld [vmem:[#allocation9 + $0x4ec] ss:$16 sps:$4 sm:$0xff]   ;;  %v15017_v27 = vld [vmem:[#allocation9 + $0x4e0] ss:$16 sps:$4 sm:$0xff]  }
 0x720   :  { %11251 = vmatprep.subr.bf16.mxu0 %v14959_v18  ;;  %11579 = vmatprep.subr.bf16.mxu1 %v14962_v25  ;;  %v15020_v18 = vld [vmem:[#allocation9 + $0x4e8] ss:$16 sps:$4 sm:$0xff]   ;;  %v15025_v25 = vld [vmem:[#allocation9 + $0x504] ss:$16 sps:$4 sm:$0xff]  }
 0x723   :  { %11252 = vmatpush1.bf16.msra.mxu0 %v14957_v48  ;;  %11580 = vmatpush1.bf16.msra.mxu1 %v14960_v57  ;;  %v15028_v48 = vld [vmem:[#allocation9 + $0x50c] ss:$16 sps:$4 sm:$0xff]   ;;  %v15023_v57 = vld [vmem:[#allocation9 + $0x500] ss:$16 sps:$4 sm:$0xff]  }
 0x724   :  { %11253 = vmatprep.subr.bf16.mxu0 %v14965_v32  ;;  %11581 = vmatprep.subr.bf16.mxu1 %v14968_v47  ;;  %v15026_v32 = vld [vmem:[#allocation9 + $0x508] ss:$16 sps:$4 sm:$0xff]   ;;  %v15031_v47 = vld [vmem:[#allocation9 + $0x524] ss:$16 sps:$4 sm:$0xff]  }
 0x727   :  { %11254 = vmatpush1.bf16.msra.mxu0 %v14963_v46  ;;  %11582 = vmatpush1.bf16.msra.mxu1 %v14966_v4  ;;  %v15034_v46 = vld [vmem:[#allocation9 + $0x52c] ss:$16 sps:$4 sm:$0xff]   ;;  %v15029_v4 = vld [vmem:[#allocation9 + $0x520] ss:$16 sps:$4 sm:$0xff]  }
 0x728   :  { %11255 = vmatprep.subr.bf16.mxu0 %v14971_v6  ;;  %11583 = vmatprep.subr.bf16.mxu1 %v14974_v51  ;;  %v15032_v6 = vld [vmem:[#allocation9 + $0x528] ss:$16 sps:$4 sm:$0xff]   ;;  %v15037_v51 = vld [vmem:[#allocation9 + $0x544] ss:$16 sps:$4 sm:$0xff]  }
 0x72b   :  { %11256 = vmatpush1.bf16.msra.mxu0 %v14969_v37  ;;  %11584 = vmatpush1.bf16.msra.mxu1 %v14972_v43  ;;  %v15040_v37 = vld [vmem:[#allocation9 + $0x54c] ss:$16 sps:$4 sm:$0xff]   ;;  %v15035_v43 = vld [vmem:[#allocation9 + $0x540] ss:$16 sps:$4 sm:$0xff]  }
 0x72c   :  { %11266 = vmatprep.subr.bf16.mxu0 %v14977_v31  ;;  %11594 = vmatprep.subr.bf16.mxu1 %v14980_v40  ;;  %v15038_v31 = vld [vmem:[#allocation9 + $0x548] ss:$16 sps:$4 sm:$0xff]   ;;  %v15043_v40 = vld [vmem:[#allocation9 + $0x564] ss:$16 sps:$4 sm:$0xff]  }
 0x72e   :  { %11258 = vmatmul.mubr.bf16.vlgmr.msra.gmra.mrb[16].mxu0 %v8076_v19  ;;  %11586 = vmatmul.mubr.bf16.vlgmr.msra.gmra.mrb[16].mxu1 %v8076_v19  ;;  %v15041_v19 = vld [vmem:[#allocation9 + $0x560] ss:$16 sps:$4 sm:$0xff]  }
 0x72f   :  { %11267 = vmatpush1.bf16.msra.mxu0 %v14975_v55  ;;  %11298 = vmatprep.mubr.bf16.mxu0 %v8079_v5  ;;  %v15046_v55 = vld [vmem:[#allocation9 + $0x56c] ss:$16 sps:$4 sm:$0xff]  }
 0x730   :  { %11595 = vmatpush1.bf16.msra.mxu1 %v14978_v29  ;;  %11626 = vmatprep.mubr.bf16.mxu1 %v8079_v5  ;;  %v15044_v29 = vld [vmem:[#allocation9 + $0x568] ss:$16 sps:$4 sm:$0xff]   ;;  %v15049_v5 = vld [vmem:[#allocation9 + $0x584] ss:$16 sps:$4 sm:$0xff]  }
 0x731   :  { %11268 = vmatprep.subr.bf16.mxu0 %v14983_v15  ;;  %11596 = vmatprep.subr.bf16.mxu1 %v14986_v52  ;;  %v15052_v15 = vld [vmem:[#allocation9 + $0x58c] ss:$16 sps:$4 sm:$0xff]   ;;  %v15047_v52 = vld [vmem:[#allocation9 + $0x580] ss:$16 sps:$4 sm:$0xff]  }
 0x733   :  { %11269 = vmatpush1.bf16.msra.mxu0 %v14981_v59  ;;  %v15050_v59 = vld [vmem:[#allocation9 + $0x588] ss:$16 sps:$4 sm:$0xff]  }
 0x734   :  { %11597 = vmatpush1.bf16.msra.mxu1 %v14984_v41  ;;  %11270 = vmatprep.subr.bf16.mxu0 %v14989_v16  ;;  %v15055_v41 = vld [vmem:[#allocation9 + $0x5a4] ss:$16 sps:$4 sm:$0xff]   ;;  %v15058_v16 = vld [vmem:[#allocation9 + $0x5ac] ss:$16 sps:$4 sm:$0xff]  }
 0x735   :  { %11598 = vmatprep.subr.bf16.mxu1 %v14992_v35  ;;  %v15053_v35 = vld [vmem:[#allocation9 + $0x5a0] ss:$16 sps:$4 sm:$0xff]  }
 0x737   :  { %11271 = vmatpush1.bf16.msra.mxu0 %v14987_v17  ;;  %v15056_v17 = vld [vmem:[#allocation9 + $0x5a8] ss:$16 sps:$4 sm:$0xff]  }
 0x738   :  { %11599 = vmatpush1.bf16.msra.mxu1 %v14990_v56  ;;  %11272 = vmatprep.subr.bf16.mxu0 %v14995_v54  ;;  %v15061_v56 = vld [vmem:[#allocation9 + $0x5c4] ss:$16 sps:$4 sm:$0xff]   ;;  %v15064_v54 = vld [vmem:[#allocation9 + $0x5cc] ss:$16 sps:$4 sm:$0xff]  }
 0x739   :  { %11600 = vmatprep.subr.bf16.mxu1 %v14998_v58  ;;  %v15059_v58 = vld [vmem:[#allocation9 + $0x5c0] ss:$16 sps:$4 sm:$0xff]  }
 0x73b   :  { %11273 = vmatpush1.bf16.msra.mxu0 %v14993_v13  ;;  %v15062_v13 = vld [vmem:[#allocation9 + $0x5c8] ss:$16 sps:$4 sm:$0xff]  }
 0x73c   :  { %11601 = vmatpush1.bf16.msra.mxu1 %v14996_v60  ;;  %11274 = vmatprep.subr.bf16.mxu0 %v15001_v22  ;;  %v15067_v60 = vld [vmem:[#allocation9 + $0x5e4] ss:$16 sps:$4 sm:$0xff]   ;;  %v15070_v22 = vld [vmem:[#allocation9 + $0x5ec] ss:$16 sps:$4 sm:$0xff]  }
 0x73d   :  { %11602 = vmatprep.subr.bf16.mxu1 %v15004_v63  ;;  %v15065_v63 = vld [vmem:[#allocation9 + $0x5e0] ss:$16 sps:$4 sm:$0xff]  }
 0x73f   :  { %11275 = vmatpush1.bf16.msra.mxu0 %v14999_v14  ;;  %v15068_v14 = vld [vmem:[#allocation9 + $0x5e8] ss:$16 sps:$4 sm:$0xff]  }
 0x740   :  { %11603 = vmatpush1.bf16.msra.mxu1 %v15002_v9  ;;  %11276 = vmatprep.subr.bf16.mxu0 %v15007_v8  ;;  %v15073_v9 = vld [vmem:[#allocation9 + $0x604] ss:$16 sps:$4 sm:$0xff]   ;;  %v15076_v8 = vld [vmem:[#allocation9 + $0x60c] ss:$16 sps:$4 sm:$0xff]  }
 0x741   :  { %11604 = vmatprep.subr.bf16.mxu1 %v15010_v39  ;;  %v15071_v39 = vld [vmem:[#allocation9 + $0x600] ss:$16 sps:$4 sm:$0xff]  }
 0x743   :  { %11277 = vmatpush1.bf16.msra.mxu0 %v15005_v28  ;;  %v8078_v28 = vpack.c.bf16 %v16591_v26, %v16591_v26  ;;  %v15083_v26 = vld [vmem:[#allocation9 + $0x640] ss:$16 sps:$4 sm:$0xff]  }
 0x744   :  { %11605 = vmatpush1.bf16.msra.mxu1 %v15008_v10  ;;  %11278 = vmatprep.subr.bf16.mxu0 %v15013_v34  ;;  %v15074_v10 = vld [vmem:[#allocation9 + $0x608] ss:$16 sps:$4 sm:$0xff]   ;;  %v15079_v34 = vld [vmem:[#allocation9 + $0x624] ss:$16 sps:$4 sm:$0xff]  }
 0x745   :  { %11606 = vmatprep.subr.bf16.mxu1 %v15016_v1  ;;  %v8081_v1 = vpack.c.bf16 %v16593_v24, %v16593_v24  ;;  %v15094_v24 = vld [vmem:[#allocation9 + $0x66c] ss:$16 sps:$4 sm:$0xff]  }
 0x747   :  { %11279 = vmatpush1.bf16.msra.mxu0 %v15011_v33  ;;  %v15082_v33 = vld [vmem:[#allocation9 + $0x62c] ss:$16 sps:$4 sm:$0xff]  }
 0x748   :  { %11607 = vmatpush1.bf16.msra.mxu1 %v15014_v42  ;;  %11280 = vmatprep.subr.bf16.mxu0 %v15019_v45  ;;  %v15077_v42 = vld [vmem:[#allocation9 + $0x620] ss:$16 sps:$4 sm:$0xff]   ;;  %v15080_v45 = vld [vmem:[#allocation9 + $0x628] ss:$16 sps:$4 sm:$0xff]  }
 0x749   :  { %11608 = vmatprep.subr.bf16.mxu1 %v15022_v50  ;;  %v15085_v50 = vld [vmem:[#allocation9 + $0x644] ss:$16 sps:$4 sm:$0xff]  }
 0x74b   :  { %11281 = vmatpush1.bf16.msra.mxu0 %v15017_v27  ;;  %v15088_v27 = vld [vmem:[#allocation9 + $0x64c] ss:$16 sps:$4 sm:$0xff]  }
 0x74c   :  { %11609 = vmatpush1.bf16.msra.mxu1 %v15020_v18  ;;  %11282 = vmatprep.subr.bf16.mxu0 %v15025_v25  ;;  %v15086_v18 = vld [vmem:[#allocation9 + $0x648] ss:$16 sps:$4 sm:$0xff]   ;;  %v15091_v25 = vld [vmem:[#allocation9 + $0x664] ss:$16 sps:$4 sm:$0xff]  }
 0x74d   :  { %11610 = vmatprep.subr.bf16.mxu1 %v15028_v48  ;;  %v15089_v48 = vld [vmem:[#allocation9 + $0x660] ss:$16 sps:$4 sm:$0xff]  }
 0x74f   :  { %11283 = vmatpush1.bf16.msra.mxu0 %v15023_v57  ;;  %v15092_v57 = vld [vmem:[#allocation9 + $0x668] ss:$16 sps:$4 sm:$0xff]  }
 0x750   :  { %11611 = vmatpush1.bf16.msra.mxu1 %v15026_v32  ;;  %11284 = vmatprep.subr.bf16.mxu0 %v15031_v47  ;;  %v15097_v32 = vld [vmem:[#allocation9 + $0x684] ss:$16 sps:$4 sm:$0xff]   ;;  %v15100_v47 = vld [vmem:[#allocation9 + $0x68c] ss:$16 sps:$4 sm:$0xff]  }
 0x751   :  { %11612 = vmatprep.subr.bf16.mxu1 %v15034_v46  ;;  %v15095_v46 = vld [vmem:[#allocation9 + $0x680] ss:$16 sps:$4 sm:$0xff]  }
 0x753   :  { %11285 = vmatpush1.bf16.msra.mxu0 %v15029_v4  ;;  %v15098_v4 = vld [vmem:[#allocation9 + $0x688] ss:$16 sps:$4 sm:$0xff]  }
 0x754   :  { %11613 = vmatpush1.bf16.msra.mxu1 %v15032_v6  ;;  %11286 = vmatprep.subr.bf16.mxu0 %v15037_v51  ;;  %v15103_v6 = vld [vmem:[#allocation9 + $0x6a4] ss:$16 sps:$4 sm:$0xff]   ;;  %v15106_v51 = vld [vmem:[#allocation9 + $0x6ac] ss:$16 sps:$4 sm:$0xff]  }
 0x755   :  { %11614 = vmatprep.subr.bf16.mxu1 %v15040_v37  ;;  %v15101_v37 = vld [vmem:[#allocation9 + $0x6a0] ss:$16 sps:$4 sm:$0xff]  }
 0x757   :  { %11287 = vmatpush1.bf16.msra.mxu0 %v15035_v43  ;;  %v15104_v43 = vld [vmem:[#allocation9 + $0x6a8] ss:$16 sps:$4 sm:$0xff]  }
 0x758   :  { %11615 = vmatpush1.bf16.msra.mxu1 %v15038_v31  ;;  %11288 = vmatprep.subr.bf16.mxu0 %v15043_v40  ;;  %v15109_v31 = vld [vmem:[#allocation9 + $0x6c4] ss:$16 sps:$4 sm:$0xff]   ;;  %v15112_v40 = vld [vmem:[#allocation9 + $0x6cc] ss:$16 sps:$4 sm:$0xff]  }
 0x759   :  { %11616 = vmatprep.subr.bf16.mxu1 %v15046_v55  ;;  %v15107_v55 = vld [vmem:[#allocation9 + $0x6c0] ss:$16 sps:$4 sm:$0xff]  }
 0x75b   :  { %11289 = vmatpush1.bf16.msra.mxu0 %v15041_v19  ;;  %v15110_v19 = vld [vmem:[#allocation9 + $0x6c8] ss:$16 sps:$4 sm:$0xff]  }
 0x75c   :  { %11617 = vmatpush1.bf16.msra.mxu1 %v15044_v29  ;;  %11290 = vmatprep.subr.bf16.mxu0 %v15049_v5  ;;  %v15115_v29 = vld [vmem:[#allocation9 + $0x6e4] ss:$16 sps:$4 sm:$0xff]   ;;  %v15118_v5 = vld [vmem:[#allocation9 + $0x6ec] ss:$16 sps:$4 sm:$0xff]  }
 0x75d   :  { %11618 = vmatprep.subr.bf16.mxu1 %v15052_v15  ;;  %v15113_v15 = vld [vmem:[#allocation9 + $0x6e0] ss:$16 sps:$4 sm:$0xff]  }
 0x75f   :  { %11291 = vmatpush1.bf16.msra.mxu0 %v15047_v52  ;;  %v15116_v52 = vld [vmem:[#allocation9 + $0x6e8] ss:$16 sps:$4 sm:$0xff]  }
 0x760   :  { %11619 = vmatpush1.bf16.msra.mxu1 %v15050_v59  ;;  %11292 = vmatprep.subr.bf16.mxu0 %v15055_v41  ;;  %v15121_v59 = vld [vmem:[#allocation9 + $0x704] ss:$16 sps:$4 sm:$0xff]   ;;  %v15124_v41 = vld [vmem:[#allocation9 + $0x70c] ss:$16 sps:$4 sm:$0xff]  }
 0x761   :  { %11620 = vmatprep.subr.bf16.mxu1 %v15058_v16  ;;  %v15119_v16 = vld [vmem:[#allocation9 + $0x700] ss:$16 sps:$4 sm:$0xff]  }
 0x763   :  { %11293 = vmatpush1.bf16.msra.mxu0 %v15053_v35  ;;  %v15122_v35 = vld [vmem:[#allocation9 + $0x708] ss:$16 sps:$4 sm:$0xff]  }
 0x764   :  { %11621 = vmatpush1.bf16.msra.mxu1 %v15056_v17  ;;  %11294 = vmatprep.subr.bf16.mxu0 %v15061_v56  ;;  %v15127_v17 = vld [vmem:[#allocation9 + $0x724] ss:$16 sps:$4 sm:$0xff]   ;;  %v15130_v56 = vld [vmem:[#allocation9 + $0x72c] ss:$16 sps:$4 sm:$0xff]  }
 0x765   :  { %11622 = vmatprep.subr.bf16.mxu1 %v15064_v54  ;;  %v15125_v54 = vld [vmem:[#allocation9 + $0x720] ss:$16 sps:$4 sm:$0xff]  }
 0x767   :  { %11295 = vmatpush1.bf16.msra.mxu0 %v15059_v58  ;;  %v15128_v58 = vld [vmem:[#allocation9 + $0x728] ss:$16 sps:$4 sm:$0xff]  }
 0x768   :  { %11623 = vmatpush1.bf16.msra.mxu1 %v15062_v13  ;;  %11296 = vmatprep.subr.bf16.mxu0 %v15067_v60  ;;  %v15133_v13 = vld [vmem:[#allocation9 + $0x744] ss:$16 sps:$4 sm:$0xff]   ;;  %v15136_v60 = vld [vmem:[#allocation9 + $0x74c] ss:$16 sps:$4 sm:$0xff]  }
 0x769   :  { %11624 = vmatprep.subr.bf16.mxu1 %v15070_v22  ;;  %v15131_v22 = vld [vmem:[#allocation9 + $0x740] ss:$16 sps:$4 sm:$0xff]  }
 0x76b   :  { %11297 = vmatpush1.bf16.msra.mxu0 %v15065_v63  ;;  %v15134_v63 = vld [vmem:[#allocation9 + $0x748] ss:$16 sps:$4 sm:$0xff]  }
 0x76c   :  { %11625 = vmatpush1.bf16.msra.mxu1 %v15068_v14  ;;  %11307 = vmatprep.subr.bf16.mxu0 %v15073_v9  ;;  %v15139_v14 = vld [vmem:[#allocation9 + $0x764] ss:$16 sps:$4 sm:$0xff]   ;;  %v15142_v9 = vld [vmem:[#allocation9 + $0x76c] ss:$16 sps:$4 sm:$0xff]  }
 0x76d   :  { %11635 = vmatprep.subr.bf16.mxu1 %v15076_v8  ;;  %v15137_v8 = vld [vmem:[#allocation9 + $0x760] ss:$16 sps:$4 sm:$0xff]  }
 0x76e   :  { %11299 = vmatmul.mubr.bf16.vlgmr.msra.gmra.mrb[16].mxu0 %v8078_v28 }
 0x76f   :  { %11627 = vmatmul.mubr.bf16.vlgmr.msra.gmra.mrb[16].mxu1 %v8078_v28  ;;  %11308 = vmatpush1.bf16.msra.mxu0 %v15071_v39  ;;  %v15140_v39 = vld [vmem:[#allocation9 + $0x768] ss:$16 sps:$4 sm:$0xff]   ;;  %v15145_v28 = vld [vmem:[#allocation9 + $0x784] ss:$16 sps:$4 sm:$0xff]  }
 0x770   :  { %11339 = vmatprep.mubr.bf16.mxu0 %v8081_v1  ;;  %11636 = vmatpush1.bf16.msra.mxu1 %v15074_v10  ;;  %v15148_v10 = vld [vmem:[#allocation9 + $0x78c] ss:$16 sps:$4 sm:$0xff]  }
 0x771   :  { %11667 = vmatprep.mubr.bf16.mxu1 %v8081_v1  ;;  %11309 = vmatprep.subr.bf16.mxu0 %v15079_v34  ;;  %v15143_v34 = vld [vmem:[#allocation9 + $0x780] ss:$16 sps:$4 sm:$0xff]   ;;  %v15146_v1 = vld [vmem:[#allocation9 + $0x788] ss:$16 sps:$4 sm:$0xff]  }
 0x772   :  { %11637 = vmatprep.subr.bf16.mxu1 %v15082_v33  ;;  %v15151_v33 = vld [vmem:[#allocation9 + $0x7a4] ss:$16 sps:$4 sm:$0xff]  }
 0x773   :  { %11310 = vmatpush1.bf16.msra.mxu0 %v15077_v42  ;;  %v15154_v42 = vld [vmem:[#allocation9 + $0x7ac] ss:$16 sps:$4 sm:$0xff]  }
 0x774   :  { %11638 = vmatpush1.bf16.msra.mxu1 %v15080_v45  ;;  %11311 = vmatprep.subr.bf16.mxu0 %v15085_v50  ;;  %v15149_v45 = vld [vmem:[#allocation9 + $0x7a0] ss:$16 sps:$4 sm:$0xff]   ;;  %v15152_v50 = vld [vmem:[#allocation9 + $0x7a8] ss:$16 sps:$4 sm:$0xff]  }
 0x775   :  { %11639 = vmatprep.subr.bf16.mxu1 %v15088_v27  ;;  %v15157_v27 = vld [vmem:[#allocation9 + $0x7c4] ss:$16 sps:$4 sm:$0xff]  }
 0x777   :  { %11312 = vmatpush1.bf16.msra.mxu0 %v15083_v26  ;;  %v15160_v26 = vld [vmem:[#allocation9 + $0x7cc] ss:$16 sps:$4 sm:$0xff]  }
 0x778   :  { %11640 = vmatpush1.bf16.msra.mxu1 %v15086_v18  ;;  %11313 = vmatprep.subr.bf16.mxu0 %v15091_v25  ;;  %v7871_v18 = vmul.f32 %v16562_v23, %v16498_v2  ;;  %v7919_v25 = vrot.slane %v16552_v21, %v16339_v0  ;;  %v15164_v2 = vld [vmem:[#allocation9 + $0x7e8] ss:$16 sps:$4 sm:$0xff]   ;;  %v15172_v21 = vld [vmem:[#allocation9 + $0x80c] ss:$16 sps:$4 sm:$0xff]  }
 0x779   :  { %11641 = vmatprep.subr.bf16.mxu1 %v15094_v24  ;;  %v15155_v24 = vld [vmem:[#allocation9 + $0x7c0] ss:$16 sps:$4 sm:$0xff]  }
 0x77b   :  { %11314 = vmatpush1.bf16.msra.mxu0 %v15089_v48  ;;  %v15158_v48 = vld [vmem:[#allocation9 + $0x7c8] ss:$16 sps:$4 sm:$0xff]  }
 0x77c   :  { %11642 = vmatpush1.bf16.msra.mxu1 %v15092_v57  ;;  %11315 = vmatprep.subr.bf16.mxu0 %v15097_v32  ;;  %v15163_v57 = vld [vmem:[#allocation9 + $0x7e4] ss:$16 sps:$4 sm:$0xff]   ;;  %v15166_v32 = vld [vmem:[#allocation9 + $0x7ec] ss:$16 sps:$4 sm:$0xff]  }
 0x77d   :  { %11643 = vmatprep.subr.bf16.mxu1 %v15100_v47  ;;  %v7969_v47 = vmul.f32 %v7919_v25, %v7871_v18  ;;  %v15221_v18 = vld [vmem:[#allocation9 + $0x920] ss:$16 sps:$4 sm:$0xff]   ;;  %v15224_v25 = vld [vmem:[#allocation9 + $0x928] ss:$16 sps:$4 sm:$0xff]  }
 0x77f   :  { %11316 = vmatpush1.bf16.msra.mxu0 %v15095_v46  ;;  %v8017_v46 = vrot.slane %v16587_v49, %v16339_v0 }
 0x780   :  { %11644 = vmatpush1.bf16.msra.mxu1 %v15098_v4  ;;  %11317 = vmatprep.subr.bf16.mxu0 %v15103_v6  ;;  %v15161_v4 = vld [vmem:[#allocation9 + $0x7e0] ss:$16 sps:$4 sm:$0xff]   ;;  %v15169_v6 = vld [vmem:[#allocation9 + $0x804] ss:$16 sps:$4 sm:$0xff]  }
 0x781   :  { %11645 = vmatprep.subr.bf16.mxu1 %v15106_v51  ;;  %v8067_v51 = vadd.f32 %v8017_v46, %v7969_v47  ;;  %v15235_v47 = vld [vmem:[#allocation9 + $0x964] ss:$16 sps:$4 sm:$0xff]   ;;  %v15238_v46 = vld [vmem:[#allocation9 + $0x96c] ss:$16 sps:$4 sm:$0xff]  }
 0x783   :  { %11318 = vmatpush1.bf16.msra.mxu0 %v15101_v37  ;;  %v15167_v37 = vld [vmem:[#allocation9 + $0x800] ss:$16 sps:$4 sm:$0xff]   ;;  %v8083_v49 = vpack.c.bf16 %v8067_v51, %v8067_v51 }
 0x784   :  { %11646 = vmatpush1.bf16.msra.mxu1 %v15104_v43  ;;  %11319 = vmatprep.subr.bf16.mxu0 %v15109_v31  ;;  %v8080_v43 = vpack.c.bf16 %v16595_v61, %v16595_v61  ;;  %v15170_v31 = vld [vmem:[#allocation9 + $0x808] ss:$16 sps:$4 sm:$0xff]   ;;  %v15179_v61 = vld [vmem:[#allocation9 + $0x840] ss:$16 sps:$4 sm:$0xff]  }
 0x785   :  { %11647 = vmatprep.subr.bf16.mxu1 %v15112_v40  ;;  %v15175_v40 = vld [vmem:[#allocation9 + $0x824] ss:$16 sps:$4 sm:$0xff]   ;;  %v15239_v51 = vld [vmem:[#allocation9 + $0x980] ss:$16 sps:$4 sm:$0xff]  }
 0x787   :  { %11320 = vmatpush1.bf16.msra.mxu0 %v15107_v55  ;;  %v15178_v55 = vld [vmem:[#allocation9 + $0x82c] ss:$16 sps:$4 sm:$0xff]  }
 0x788   :  { %11648 = vmatpush1.bf16.msra.mxu1 %v15110_v19  ;;  %11321 = vmatprep.subr.bf16.mxu0 %v15115_v29  ;;  %v15173_v19 = vld [vmem:[#allocation9 + $0x820] ss:$16 sps:$4 sm:$0xff]   ;;  %v15176_v29 = vld [vmem:[#allocation9 + $0x828] ss:$16 sps:$4 sm:$0xff]  }
 0x789   :  { %11649 = vmatprep.subr.bf16.mxu1 %v15118_v5  ;;  %v15181_v5 = vld [vmem:[#allocation9 + $0x844] ss:$16 sps:$4 sm:$0xff]  }
 0x78b   :  { %11322 = vmatpush1.bf16.msra.mxu0 %v15113_v15  ;;  %v15184_v15 = vld [vmem:[#allocation9 + $0x84c] ss:$16 sps:$4 sm:$0xff]  }
 0x78c   :  { %11650 = vmatpush1.bf16.msra.mxu1 %v15116_v52  ;;  %11323 = vmatprep.subr.bf16.mxu0 %v15121_v59  ;;  %v15182_v52 = vld [vmem:[#allocation9 + $0x848] ss:$16 sps:$4 sm:$0xff]   ;;  %v15187_v59 = vld [vmem:[#allocation9 + $0x864] ss:$16 sps:$4 sm:$0xff]  }
 0x78d   :  { %11651 = vmatprep.subr.bf16.mxu1 %v15124_v41  ;;  %v15190_v41 = vld [vmem:[#allocation9 + $0x86c] ss:$16 sps:$4 sm:$0xff]  }
 0x78f   :  { %11324 = vmatpush1.bf16.msra.mxu0 %v15119_v16  ;;  %v15185_v16 = vld [vmem:[#allocation9 + $0x860] ss:$16 sps:$4 sm:$0xff]  }
 0x790   :  { %11652 = vmatpush1.bf16.msra.mxu1 %v15122_v35  ;;  %11325 = vmatprep.subr.bf16.mxu0 %v15127_v17  ;;  %v15188_v35 = vld [vmem:[#allocation9 + $0x868] ss:$16 sps:$4 sm:$0xff]   ;;  %v15193_v17 = vld [vmem:[#allocation9 + $0x884] ss:$16 sps:$4 sm:$0xff]  }
 0x791   :  { %11653 = vmatprep.subr.bf16.mxu1 %v15130_v56  ;;  %v15196_v56 = vld [vmem:[#allocation9 + $0x88c] ss:$16 sps:$4 sm:$0xff]  }
 0x793   :  { %11326 = vmatpush1.bf16.msra.mxu0 %v15125_v54  ;;  %v15191_v54 = vld [vmem:[#allocation9 + $0x880] ss:$16 sps:$4 sm:$0xff]  }
 0x794   :  { %11654 = vmatpush1.bf16.msra.mxu1 %v15128_v58  ;;  %11327 = vmatprep.subr.bf16.mxu0 %v15133_v13  ;;  %v15194_v58 = vld [vmem:[#allocation9 + $0x888] ss:$16 sps:$4 sm:$0xff]   ;;  %v15199_v13 = vld [vmem:[#allocation9 + $0x8a4] ss:$16 sps:$4 sm:$0xff]  }
 0x795   :  { %11655 = vmatprep.subr.bf16.mxu1 %v15136_v60  ;;  %v15202_v60 = vld [vmem:[#allocation9 + $0x8ac] ss:$16 sps:$4 sm:$0xff]  }
 0x797   :  { %11328 = vmatpush1.bf16.msra.mxu0 %v15131_v22  ;;  %v15197_v22 = vld [vmem:[#allocation9 + $0x8a0] ss:$16 sps:$4 sm:$0xff]  }
 0x798   :  { %11656 = vmatpush1.bf16.msra.mxu1 %v15134_v63  ;;  %11329 = vmatprep.subr.bf16.mxu0 %v15139_v14  ;;  %v15200_v63 = vld [vmem:[#allocation9 + $0x8a8] ss:$16 sps:$4 sm:$0xff]   ;;  %v15205_v14 = vld [vmem:[#allocation9 + $0x8c4] ss:$16 sps:$4 sm:$0xff]  }
 0x799   :  { %11657 = vmatprep.subr.bf16.mxu1 %v15142_v9  ;;  %v15208_v9 = vld [vmem:[#allocation9 + $0x8cc] ss:$16 sps:$4 sm:$0xff]  }
 0x79b   :  { %11330 = vmatpush1.bf16.msra.mxu0 %v15137_v8  ;;  %v15203_v8 = vld [vmem:[#allocation9 + $0x8c0] ss:$16 sps:$4 sm:$0xff]  }
 0x79c   :  { %11658 = vmatpush1.bf16.msra.mxu1 %v15140_v39  ;;  %11331 = vmatprep.subr.bf16.mxu0 %v15145_v28  ;;  %v15206_v39 = vld [vmem:[#allocation9 + $0x8c8] ss:$16 sps:$4 sm:$0xff]   ;;  %v15211_v28 = vld [vmem:[#allocation9 + $0x8e4] ss:$16 sps:$4 sm:$0xff]  }
 0x79d   :  { %11659 = vmatprep.subr.bf16.mxu1 %v15148_v10  ;;  %v15214_v10 = vld [vmem:[#allocation9 + $0x8ec] ss:$16 sps:$4 sm:$0xff]  }
 0x79f   :  { %11332 = vmatpush1.bf16.msra.mxu0 %v15143_v34  ;;  %v15209_v34 = vld [vmem:[#allocation9 + $0x8e0] ss:$16 sps:$4 sm:$0xff]  }
 0x7a0   :  { %11660 = vmatpush1.bf16.msra.mxu1 %v15146_v1  ;;  %11333 = vmatprep.subr.bf16.mxu0 %v15151_v33  ;;  %v15212_v1 = vld [vmem:[#allocation9 + $0x8e8] ss:$16 sps:$4 sm:$0xff]   ;;  %v15217_v33 = vld [vmem:[#allocation9 + $0x904] ss:$16 sps:$4 sm:$0xff]  }
 0x7a1   :  { %11661 = vmatprep.subr.bf16.mxu1 %v15154_v42  ;;  %v15220_v42 = vld [vmem:[#allocation9 + $0x90c] ss:$16 sps:$4 sm:$0xff]  }
 0x7a3   :  { %11334 = vmatpush1.bf16.msra.mxu0 %v15149_v45  ;;  %v15215_v45 = vld [vmem:[#allocation9 + $0x900] ss:$16 sps:$4 sm:$0xff]  }
 0x7a4   :  { %11662 = vmatpush1.bf16.msra.mxu1 %v15152_v50  ;;  %11335 = vmatprep.subr.bf16.mxu0 %v15157_v27  ;;  %v15218_v50 = vld [vmem:[#allocation9 + $0x908] ss:$16 sps:$4 sm:$0xff]   ;;  %v15223_v27 = vld [vmem:[#allocation9 + $0x924] ss:$16 sps:$4 sm:$0xff]  }
 0x7a5   :  { %11663 = vmatprep.subr.bf16.mxu1 %v15160_v26  ;;  %v15226_v26 = vld [vmem:[#allocation9 + $0x92c] ss:$16 sps:$4 sm:$0xff]  }
 0x7a7   :  { %11336 = vmatpush1.bf16.msra.mxu0 %v15155_v24  ;;  %v15229_v24 = vld [vmem:[#allocation9 + $0x944] ss:$16 sps:$4 sm:$0xff]  }
 0x7a8   :  { %11664 = vmatpush1.bf16.msra.mxu1 %v15158_v48  ;;  %11337 = vmatprep.subr.bf16.mxu0 %v15163_v57  ;;  %v15232_v48 = vld [vmem:[#allocation9 + $0x94c] ss:$16 sps:$4 sm:$0xff]   ;;  %v15227_v57 = vld [vmem:[#allocation9 + $0x940] ss:$16 sps:$4 sm:$0xff]  }
 0x7a9   :  { %11665 = vmatprep.subr.bf16.mxu1 %v15166_v32  ;;  %v15230_v32 = vld [vmem:[#allocation9 + $0x948] ss:$16 sps:$4 sm:$0xff]  }
 0x7ab   :  { %11338 = vmatpush1.bf16.msra.mxu0 %v15161_v4  ;;  %v15233_v4 = vld [vmem:[#allocation9 + $0x960] ss:$16 sps:$4 sm:$0xff]  }
 0x7ac   :  { %11666 = vmatpush1.bf16.msra.mxu1 %v15164_v2  ;;  %11348 = vmatprep.subr.bf16.mxu0 %v15169_v6  ;;  %v15236_v2 = vld [vmem:[#allocation9 + $0x968] ss:$16 sps:$4 sm:$0xff]   ;;  %v15241_v6 = vld [vmem:[#allocation9 + $0x984] ss:$16 sps:$4 sm:$0xff]  }
 0x7ad   :  { %11676 = vmatprep.subr.bf16.mxu1 %v15172_v21  ;;  %v15244_v21 = vld [vmem:[#allocation9 + $0x98c] ss:$16 sps:$4 sm:$0xff]  }
 0x7ae   :  { %11340 = vmatmul.mubr.bf16.vlgmr.msra.gmra.mrb[16].mxu0 %v8080_v43 }
 0x7af   :  { %11668 = vmatmul.mubr.bf16.vlgmr.msra.gmra.mrb[16].mxu1 %v8080_v43  ;;  %11349 = vmatpush1.bf16.msra.mxu0 %v15167_v37  ;;  %v15242_v37 = vld [vmem:[#allocation9 + $0x988] ss:$16 sps:$4 sm:$0xff]   ;;  %v15247_v43 = vld [vmem:[#allocation9 + $0x9a4] ss:$16 sps:$4 sm:$0xff]  }
 0x7b0   :  { %11380 = vmatprep.mubr.bf16.mxu0 %v8083_v49  ;;  %11677 = vmatpush1.bf16.msra.mxu1 %v15170_v31  ;;  %v15250_v31 = vld [vmem:[#allocation9 + $0x9ac] ss:$16 sps:$4 sm:$0xff]  }
 0x7b1   :  { %11708 = vmatprep.mubr.bf16.mxu1 %v8083_v49  ;;  %11350 = vmatprep.subr.bf16.mxu0 %v15175_v40  ;;  %v15245_v40 = vld [vmem:[#allocation9 + $0x9a0] ss:$16 sps:$4 sm:$0xff]   ;;  %v15248_v49 = vld [vmem:[#allocation9 + $0x9a8] ss:$16 sps:$4 sm:$0xff]  }
 0x7b2   :  { %11678 = vmatprep.subr.bf16.mxu1 %v15178_v55  ;;  %v15253_v55 = vld [vmem:[#allocation9 + $0x9c4] ss:$16 sps:$4 sm:$0xff]  }
 0x7b3   :  { %11351 = vmatpush1.bf16.msra.mxu0 %v15173_v19  ;;  %v7870_v19 = vmul.f32 %v16562_v23, %v16492_v36  ;;  %v15260_v36 = vld [vmem:[#allocation9 + $0x9e8] ss:$16 sps:$4 sm:$0xff]  }
 0x7b4   :  { %11679 = vmatpush1.bf16.msra.mxu1 %v15176_v29  ;;  %11352 = vmatprep.subr.bf16.mxu0 %v15181_v5  ;;  %v15747_v29 = vld [vmem:[#allocation6 + $0x8] sm:$0xff] }
 0x7b5   :  { %11680 = vmatprep.subr.bf16.mxu1 %v15184_v15  ;;  %v7915_v5 = vrot.slane %v15747_v29, %v16336_v62  ;;  %v15256_v15 = vld [vmem:[#allocation9 + $0x9cc] ss:$16 sps:$4 sm:$0xff]   ;;  %v15320_v29 = vld [vmem:[#allocation9 + $0xb28] ss:$16 sps:$4 sm:$0xff]  }
 0x7b7   :  { %11353 = vmatpush1.bf16.msra.mxu0 %v15179_v61  ;;  %v15251_v61 = vld [vmem:[#allocation9 + $0x9c0] ss:$16 sps:$4 sm:$0xff]  }
 0x7b8   :  { %11681 = vmatpush1.bf16.msra.mxu1 %v15182_v52  ;;  %11354 = vmatprep.subr.bf16.mxu0 %v15187_v59  ;;  %v15254_v52 = vld [vmem:[#allocation9 + $0x9c8] ss:$16 sps:$4 sm:$0xff]   ;;  %v15259_v59 = vld [vmem:[#allocation9 + $0x9e4] ss:$16 sps:$4 sm:$0xff]  }
 0x7b9   :  { %11682 = vmatprep.subr.bf16.mxu1 %v15190_v41  ;;  %v7968_v41 = vmul.f32 %v7915_v5, %v7870_v19  ;;  %v15317_v19 = vld [vmem:[#allocation9 + $0xb20] ss:$16 sps:$4 sm:$0xff]   ;;  %v15325_v5 = vld [vmem:[#allocation9 + $0xb44] ss:$16 sps:$4 sm:$0xff]  }
 0x7bb   :  { %11355 = vmatpush1.bf16.msra.mxu0 %v15185_v16  ;;  %v15748_v16 = vld [vmem:[#allocation7 + $0x8] sm:$0xff] }
 0x7bc   :  { %11683 = vmatpush1.bf16.msra.mxu1 %v15188_v35  ;;  %11356 = vmatprep.subr.bf16.mxu0 %v15193_v17  ;;  %v8013_v35 = vrot.slane %v15748_v16, %v16336_v62  ;;  %v15262_v17 = vld [vmem:[#allocation9 + $0x9ec] ss:$16 sps:$4 sm:$0xff]   ;;  %v15329_v16 = vld [vmem:[#allocation9 + $0xb60] ss:$16 sps:$4 sm:$0xff]  }
 0x7bd   :  { %11684 = vmatprep.subr.bf16.mxu1 %v15196_v56  ;;  %v15257_v56 = vld [vmem:[#allocation9 + $0x9e0] ss:$16 sps:$4 sm:$0xff]  }
 0x7be   :  { %v8066_v23 = vadd.f32 %v8013_v35, %v7968_v41  ;;  %v15334_v41 = vld [vmem:[#allocation9 + $0xb6c] ss:$16 sps:$4 sm:$0xff]   ;;  %v15332_v35 = vld [vmem:[#allocation9 + $0xb68] ss:$16 sps:$4 sm:$0xff]  }
 0x7bf   :  { %11357 = vmatpush1.bf16.msra.mxu0 %v15191_v54  ;;  %v15265_v54 = vld [vmem:[#allocation9 + $0xa04] ss:$16 sps:$4 sm:$0xff]  }
 0x7c0   :  { %11685 = vmatpush1.bf16.msra.mxu1 %v15194_v58  ;;  %11358 = vmatprep.subr.bf16.mxu0 %v15199_v13  ;;  %v15268_v58 = vld [vmem:[#allocation9 + $0xa0c] ss:$16 sps:$4 sm:$0xff]   ;;  %v15263_v13 = vld [vmem:[#allocation9 + $0xa00] ss:$16 sps:$4 sm:$0xff]  }
 0x7c1   :  { %11686 = vmatprep.subr.bf16.mxu1 %v15202_v60  ;;  %v8082_v60 = vpack.c.bf16 %v8066_v23, %v8066_v23  ;;  %v15338_v23 = vld [vmem:[#allocation9 + $0xb88] ss:$16 sps:$4 sm:$0xff]  }
 0x7c3   :  { %11359 = vmatpush1.bf16.msra.mxu0 %v15197_v22  ;;  %v15266_v22 = vld [vmem:[#allocation9 + $0xa08] ss:$16 sps:$4 sm:$0xff]  }
 0x7c4   :  { %11687 = vmatpush1.bf16.msra.mxu1 %v15200_v63  ;;  %11360 = vmatprep.subr.bf16.mxu0 %v15205_v14  ;;  %v15271_v63 = vld [vmem:[#allocation9 + $0xa24] ss:$16 sps:$4 sm:$0xff]   ;;  %v8085_v14 = vpack.c.bf16 %v16619_v11, %v16619_v11  ;;  %v15286_v11 = vld [vmem:[#allocation9 + $0xa6c] ss:$16 sps:$4 sm:$0xff]  }
 0x7c5   :  { %11688 = vmatprep.subr.bf16.mxu1 %v15208_v9  ;;  %v15274_v9 = vld [vmem:[#allocation9 + $0xa2c] ss:$16 sps:$4 sm:$0xff]  }
 0x7c7   :  { %11361 = vmatpush1.bf16.msra.mxu0 %v15203_v8  ;;  %v15269_v8 = vld [vmem:[#allocation9 + $0xa20] ss:$16 sps:$4 sm:$0xff]  }
 0x7c8   :  { %11689 = vmatpush1.bf16.msra.mxu1 %v15206_v39  ;;  %11362 = vmatprep.subr.bf16.mxu0 %v15211_v28  ;;  %v15272_v39 = vld [vmem:[#allocation9 + $0xa28] ss:$16 sps:$4 sm:$0xff]   ;;  %v15277_v28 = vld [vmem:[#allocation9 + $0xa44] ss:$16 sps:$4 sm:$0xff]  }
 0x7c9   :  { %11690 = vmatprep.subr.bf16.mxu1 %v15214_v10  ;;  %v15280_v10 = vld [vmem:[#allocation9 + $0xa4c] ss:$16 sps:$4 sm:$0xff]  }
 0x7cb   :  { %11363 = vmatpush1.bf16.msra.mxu0 %v15209_v34  ;;  %v15275_v34 = vld [vmem:[#allocation9 + $0xa40] ss:$16 sps:$4 sm:$0xff]  }
 0x7cc   :  { %11691 = vmatpush1.bf16.msra.mxu1 %v15212_v1  ;;  %11364 = vmatprep.subr.bf16.mxu0 %v15217_v33  ;;  %v15278_v1 = vld [vmem:[#allocation9 + $0xa48] ss:$16 sps:$4 sm:$0xff]   ;;  %v15283_v33 = vld [vmem:[#allocation9 + $0xa64] ss:$16 sps:$4 sm:$0xff]  }
 0x7cd   :  { %11692 = vmatprep.subr.bf16.mxu1 %v15220_v42  ;;  %v15281_v42 = vld [vmem:[#allocation9 + $0xa60] ss:$16 sps:$4 sm:$0xff]  }
 0x7cf   :  { %11365 = vmatpush1.bf16.msra.mxu0 %v15215_v45  ;;  %v15284_v45 = vld [vmem:[#allocation9 + $0xa68] ss:$16 sps:$4 sm:$0xff]  }
 0x7d0   :  { %11693 = vmatpush1.bf16.msra.mxu1 %v15218_v50  ;;  %11366 = vmatprep.subr.bf16.mxu0 %v15223_v27  ;;  %v15289_v50 = vld [vmem:[#allocation9 + $0xa84] ss:$16 sps:$4 sm:$0xff]   ;;  %v15292_v27 = vld [vmem:[#allocation9 + $0xa8c] ss:$16 sps:$4 sm:$0xff]  }
 0x7d1   :  { %11694 = vmatprep.subr.bf16.mxu1 %v15226_v26  ;;  %v15287_v26 = vld [vmem:[#allocation9 + $0xa80] ss:$16 sps:$4 sm:$0xff]  }
 0x7d3   :  { %11367 = vmatpush1.bf16.msra.mxu0 %v15221_v18  ;;  %v15290_v18 = vld [vmem:[#allocation9 + $0xa88] ss:$16 sps:$4 sm:$0xff]  }
 0x7d4   :  { %11695 = vmatpush1.bf16.msra.mxu1 %v15224_v25  ;;  %11368 = vmatprep.subr.bf16.mxu0 %v15229_v24  ;;  %v15295_v25 = vld [vmem:[#allocation9 + $0xaa4] ss:$16 sps:$4 sm:$0xff]   ;;  %v15298_v24 = vld [vmem:[#allocation9 + $0xaac] ss:$16 sps:$4 sm:$0xff]  }
 0x7d5   :  { %11696 = vmatprep.subr.bf16.mxu1 %v15232_v48  ;;  %v15293_v48 = vld [vmem:[#allocation9 + $0xaa0] ss:$16 sps:$4 sm:$0xff]  }
 0x7d7   :  { %11369 = vmatpush1.bf16.msra.mxu0 %v15227_v57  ;;  %v15296_v57 = vld [vmem:[#allocation9 + $0xaa8] ss:$16 sps:$4 sm:$0xff]  }
 0x7d8   :  { %11697 = vmatpush1.bf16.msra.mxu1 %v15230_v32  ;;  %11370 = vmatprep.subr.bf16.mxu0 %v15235_v47  ;;  %v15301_v32 = vld [vmem:[#allocation9 + $0xac4] ss:$16 sps:$4 sm:$0xff]   ;;  %v15304_v47 = vld [vmem:[#allocation9 + $0xacc] ss:$16 sps:$4 sm:$0xff]  }
 0x7d9   :  { %11698 = vmatprep.subr.bf16.mxu1 %v15238_v46  ;;  %v15299_v46 = vld [vmem:[#allocation9 + $0xac0] ss:$16 sps:$4 sm:$0xff]  }
 0x7db   :  { %11371 = vmatpush1.bf16.msra.mxu0 %v15233_v4  ;;  %v15302_v4 = vld [vmem:[#allocation9 + $0xac8] ss:$16 sps:$4 sm:$0xff]  }
 0x7dc   :  { %11699 = vmatpush1.bf16.msra.mxu1 %v15236_v2  ;;  %11372 = vmatprep.subr.bf16.mxu0 %v15241_v6  ;;  %v15307_v2 = vld [vmem:[#allocation9 + $0xae4] ss:$16 sps:$4 sm:$0xff]   ;;  %v15310_v6 = vld [vmem:[#allocation9 + $0xaec] ss:$16 sps:$4 sm:$0xff]  }
 0x7dd   :  { %11700 = vmatprep.subr.bf16.mxu1 %v15244_v21  ;;  %v15305_v21 = vld [vmem:[#allocation9 + $0xae0] ss:$16 sps:$4 sm:$0xff]  }
 0x7df   :  { %11373 = vmatpush1.bf16.msra.mxu0 %v15239_v51  ;;  %v15308_v51 = vld [vmem:[#allocation9 + $0xae8] ss:$16 sps:$4 sm:$0xff]  }
 0x7e0   :  { %11701 = vmatpush1.bf16.msra.mxu1 %v15242_v37  ;;  %11374 = vmatprep.subr.bf16.mxu0 %v15247_v43  ;;  %v15313_v37 = vld [vmem:[#allocation9 + $0xb04] ss:$16 sps:$4 sm:$0xff]   ;;  %v15316_v43 = vld [vmem:[#allocation9 + $0xb0c] ss:$16 sps:$4 sm:$0xff]  }
 0x7e1   :  { %11702 = vmatprep.subr.bf16.mxu1 %v15250_v31  ;;  %v15311_v31 = vld [vmem:[#allocation9 + $0xb00] ss:$16 sps:$4 sm:$0xff]  }
 0x7e3   :  { %11375 = vmatpush1.bf16.msra.mxu0 %v15245_v40  ;;  %v15314_v40 = vld [vmem:[#allocation9 + $0xb08] ss:$16 sps:$4 sm:$0xff]  }
 0x7e4   :  { %11703 = vmatpush1.bf16.msra.mxu1 %v15248_v49  ;;  %11376 = vmatprep.subr.bf16.mxu0 %v15253_v55  ;;  %v15319_v49 = vld [vmem:[#allocation9 + $0xb24] ss:$16 sps:$4 sm:$0xff]   ;;  %v15322_v55 = vld [vmem:[#allocation9 + $0xb2c] ss:$16 sps:$4 sm:$0xff]  }
 0x7e5   :  { %11704 = vmatprep.subr.bf16.mxu1 %v15256_v15  ;;  %v15328_v15 = vld [vmem:[#allocation9 + $0xb4c] ss:$16 sps:$4 sm:$0xff]  }
 0x7e7   :  { %11377 = vmatpush1.bf16.msra.mxu0 %v15251_v61  ;;  %v15323_v61 = vld [vmem:[#allocation9 + $0xb40] ss:$16 sps:$4 sm:$0xff]  }
 0x7e8   :  { %11705 = vmatpush1.bf16.msra.mxu1 %v15254_v52  ;;  %11378 = vmatprep.subr.bf16.mxu0 %v15259_v59  ;;  %v15326_v52 = vld [vmem:[#allocation9 + $0xb48] ss:$16 sps:$4 sm:$0xff]   ;;  %v15331_v59 = vld [vmem:[#allocation9 + $0xb64] ss:$16 sps:$4 sm:$0xff]  }
 0x7e9   :  { %11706 = vmatprep.subr.bf16.mxu1 %v15262_v17  ;;  %v15337_v17 = vld [vmem:[#allocation9 + $0xb84] ss:$16 sps:$4 sm:$0xff]  }
 0x7eb   :  { %11379 = vmatpush1.bf16.msra.mxu0 %v15257_v56  ;;  %v15340_v56 = vld [vmem:[#allocation9 + $0xb8c] ss:$16 sps:$4 sm:$0xff]  }
 0x7ec   :  { %11707 = vmatpush1.bf16.msra.mxu1 %v15260_v36  ;;  %11389 = vmatprep.subr.bf16.mxu0 %v15265_v54  ;;  %v15335_v36 = vld [vmem:[#allocation9 + $0xb80] ss:$16 sps:$4 sm:$0xff]   ;;  %v15343_v54 = vld [vmem:[#allocation9 + $0xba4] ss:$16 sps:$4 sm:$0xff]  }
 0x7ed   :  { %11717 = vmatprep.subr.bf16.mxu1 %v15268_v58  ;;  %v15346_v58 = vld [vmem:[#allocation9 + $0xbac] ss:$16 sps:$4 sm:$0xff]  }
 0x7ee   :  { %11381 = vmatmul.mubr.bf16.vlgmr.msra.gmra.mrb[16].mxu0 %v8082_v60 }
 0x7ef   :  { %11709 = vmatmul.mubr.bf16.vlgmr.msra.gmra.mrb[16].mxu1 %v8082_v60  ;;  %11390 = vmatpush1.bf16.msra.mxu0 %v15263_v13  ;;  %v15341_v13 = vld [vmem:[#allocation9 + $0xba0] ss:$16 sps:$4 sm:$0xff]   ;;  %v15344_v60 = vld [vmem:[#allocation9 + $0xba8] ss:$16 sps:$4 sm:$0xff]  }
 0x7f0   :  { %11421 = vmatprep.mubr.bf16.mxu0 %v8085_v14  ;;  %11718 = vmatpush1.bf16.msra.mxu1 %v15266_v22  ;;  %v15349_v22 = vld [vmem:[#allocation9 + $0xbc4] ss:$16 sps:$4 sm:$0xff]  }
 0x7f1   :  { %11749 = vmatprep.mubr.bf16.mxu1 %v8085_v14  ;;  %11391 = vmatprep.subr.bf16.mxu0 %v15271_v63  ;;  %v15352_v63 = vld [vmem:[#allocation9 + $0xbcc] ss:$16 sps:$4 sm:$0xff]   ;;  %v15347_v14 = vld [vmem:[#allocation9 + $0xbc0] ss:$16 sps:$4 sm:$0xff]  }
 0x7f2   :  { %11719 = vmatprep.subr.bf16.mxu1 %v15274_v9  ;;  %v15350_v9 = vld [vmem:[#allocation9 + $0xbc8] ss:$16 sps:$4 sm:$0xff]  }
 0x7f3   :  { %11392 = vmatpush1.bf16.msra.mxu0 %v15269_v8  ;;  %v15355_v8 = vld [vmem:[#allocation9 + $0xbe4] ss:$16 sps:$4 sm:$0xff]  }
 0x7f4   :  { %11720 = vmatpush1.bf16.msra.mxu1 %v15272_v39  ;;  %11393 = vmatprep.subr.bf16.mxu0 %v15277_v28  ;;  %v15358_v39 = vld [vmem:[#allocation9 + $0xbec] ss:$16 sps:$4 sm:$0xff]   ;;  %v15353_v28 = vld [vmem:[#allocation9 + $0xbe0] ss:$16 sps:$4 sm:$0xff]  }
 0x7f5   :  { %11721 = vmatprep.subr.bf16.mxu1 %v15280_v10  ;;  %v15356_v10 = vld [vmem:[#allocation9 + $0xbe8] ss:$16 sps:$4 sm:$0xff]  }
 0x7f7   :  { %11394 = vmatpush1.bf16.msra.mxu0 %v15275_v34  ;;  %v15361_v34 = vld [vmem:[#allocation9 + $0xc04] ss:$16 sps:$4 sm:$0xff]  }
 0x7f8   :  { %11722 = vmatpush1.bf16.msra.mxu1 %v15278_v1  ;;  %11395 = vmatprep.subr.bf16.mxu0 %v15283_v33  ;;  %v15364_v1 = vld [vmem:[#allocation9 + $0xc0c] ss:$16 sps:$4 sm:$0xff]   ;;  %v15359_v33 = vld [vmem:[#allocation9 + $0xc00] ss:$16 sps:$4 sm:$0xff]  }
 0x7f9   :  { %11723 = vmatprep.subr.bf16.mxu1 %v15286_v11  ;;  %v8084_v11 = vpack.c.bf16 %v16623_v20, %v16623_v20  ;;  %v15371_v20 = vld [vmem:[#allocation9 + $0xc40] ss:$16 sps:$4 sm:$0xff]  }
 0x7fb   :  { %11396 = vmatpush1.bf16.msra.mxu0 %v15281_v42  ;;  %v15362_v42 = vld [vmem:[#allocation9 + $0xc08] ss:$16 sps:$4 sm:$0xff]  }
 0x7fc   :  { %11724 = vmatpush1.bf16.msra.mxu1 %v15284_v45  ;;  %11397 = vmatprep.subr.bf16.mxu0 %v15289_v50  ;;  %v15367_v45 = vld [vmem:[#allocation9 + $0xc24] ss:$16 sps:$4 sm:$0xff]   ;;  %v8087_v50 = vpack.c.bf16 %v16625_v44, %v16625_v44  ;;  %v15382_v44 = vld [vmem:[#allocation9 + $0xc6c] ss:$16 sps:$4 sm:$0xff]  }
 0x7fd   :  { %11725 = vmatprep.subr.bf16.mxu1 %v15292_v27  ;;  %v15370_v27 = vld [vmem:[#allocation9 + $0xc2c] ss:$16 sps:$4 sm:$0xff]  }
 0x7ff   :  { %11398 = vmatpush1.bf16.msra.mxu0 %v15287_v26  ;;  %v15365_v26 = vld [vmem:[#allocation9 + $0xc20] ss:$16 sps:$4 sm:$0xff]  }
 0x800   :  { %11726 = vmatpush1.bf16.msra.mxu1 %v15290_v18  ;;  %11399 = vmatprep.subr.bf16.mxu0 %v15295_v25  ;;  %v15368_v18 = vld [vmem:[#allocation9 + $0xc28] ss:$16 sps:$4 sm:$0xff]   ;;  %v15373_v25 = vld [vmem:[#allocation9 + $0xc44] ss:$16 sps:$4 sm:$0xff]  }
 0x801   :  { %11727 = vmatprep.subr.bf16.mxu1 %v15298_v24  ;;  %v15376_v24 = vld [vmem:[#allocation9 + $0xc4c] ss:$16 sps:$4 sm:$0xff]  }
 0x803   :  { %11400 = vmatpush1.bf16.msra.mxu0 %v15293_v48  ;;  %v15374_v48 = vld [vmem:[#allocation9 + $0xc48] ss:$16 sps:$4 sm:$0xff]  }
 0x804   :  { %11728 = vmatpush1.bf16.msra.mxu1 %v15296_v57  ;;  %11401 = vmatprep.subr.bf16.mxu0 %v15301_v32  ;;  %v15379_v57 = vld [vmem:[#allocation9 + $0xc64] ss:$16 sps:$4 sm:$0xff]   ;;  %v15377_v32 = vld [vmem:[#allocation9 + $0xc60] ss:$16 sps:$4 sm:$0xff]  }
 0x805   :  { %11729 = vmatprep.subr.bf16.mxu1 %v15304_v47  ;;  %v15380_v47 = vld [vmem:[#allocation9 + $0xc68] ss:$16 sps:$4 sm:$0xff]  }
 0x807   :  { %11402 = vmatpush1.bf16.msra.mxu0 %v15299_v46  ;;  %v15385_v46 = vld [vmem:[#allocation9 + $0xc84] ss:$16 sps:$4 sm:$0xff]  }
 0x808   :  { %11730 = vmatpush1.bf16.msra.mxu1 %v15302_v4  ;;  %11403 = vmatprep.subr.bf16.mxu0 %v15307_v2  ;;  %v15388_v4 = vld [vmem:[#allocation9 + $0xc8c] ss:$16 sps:$4 sm:$0xff]   ;;  %v15383_v2 = vld [vmem:[#allocation9 + $0xc80] ss:$16 sps:$4 sm:$0xff]  }
 0x809   :  { %11731 = vmatprep.subr.bf16.mxu1 %v15310_v6  ;;  %v15386_v6 = vld [vmem:[#allocation9 + $0xc88] ss:$16 sps:$4 sm:$0xff]  }
 0x80b   :  { %11404 = vmatpush1.bf16.msra.mxu0 %v15305_v21  ;;  %v15391_v21 = vld [vmem:[#allocation9 + $0xca4] ss:$16 sps:$4 sm:$0xff]  }
 0x80c   :  { %11732 = vmatpush1.bf16.msra.mxu1 %v15308_v51  ;;  %11405 = vmatprep.subr.bf16.mxu0 %v15313_v37  ;;  %v15394_v51 = vld [vmem:[#allocation9 + $0xcac] ss:$16 sps:$4 sm:$0xff]   ;;  %v15389_v37 = vld [vmem:[#allocation9 + $0xca0] ss:$16 sps:$4 sm:$0xff]  }
 0x80d   :  { %11733 = vmatprep.subr.bf16.mxu1 %v15316_v43  ;;  %v15392_v43 = vld [vmem:[#allocation9 + $0xca8] ss:$16 sps:$4 sm:$0xff]  }
 0x80f   :  { %11406 = vmatpush1.bf16.msra.mxu0 %v15311_v31  ;;  %v15397_v31 = vld [vmem:[#allocation9 + $0xcc4] ss:$16 sps:$4 sm:$0xff]  }
 0x810   :  { %11734 = vmatpush1.bf16.msra.mxu1 %v15314_v40  ;;  %11407 = vmatprep.subr.bf16.mxu0 %v15319_v49  ;;  %v15400_v40 = vld [vmem:[#allocation9 + $0xccc] ss:$16 sps:$4 sm:$0xff]   ;;  %v15395_v49 = vld [vmem:[#allocation9 + $0xcc0] ss:$16 sps:$4 sm:$0xff]  }
 0x811   :  { %11735 = vmatprep.subr.bf16.mxu1 %v15322_v55  ;;  %v15398_v55 = vld [vmem:[#allocation9 + $0xcc8] ss:$16 sps:$4 sm:$0xff]  }
 0x813   :  { %11408 = vmatpush1.bf16.msra.mxu0 %v15317_v19  ;;  %v15403_v19 = vld [vmem:[#allocation9 + $0xce4] ss:$16 sps:$4 sm:$0xff]  }
 0x814   :  { %11736 = vmatpush1.bf16.msra.mxu1 %v15320_v29  ;;  %11409 = vmatprep.subr.bf16.mxu0 %v15325_v5  ;;  %v15406_v29 = vld [vmem:[#allocation9 + $0xcec] ss:$16 sps:$4 sm:$0xff]   ;;  %v15401_v5 = vld [vmem:[#allocation9 + $0xce0] ss:$16 sps:$4 sm:$0xff]  }
 0x815   :  { %11737 = vmatprep.subr.bf16.mxu1 %v15328_v15  ;;  %v15404_v15 = vld [vmem:[#allocation9 + $0xce8] ss:$16 sps:$4 sm:$0xff]  }
 0x817   :  { %11410 = vmatpush1.bf16.msra.mxu0 %v15323_v61  ;;  %v15409_v61 = vld [vmem:[#allocation9 + $0xd04] ss:$16 sps:$4 sm:$0xff]  }
 0x818   :  { %11738 = vmatpush1.bf16.msra.mxu1 %v15326_v52  ;;  %11411 = vmatprep.subr.bf16.mxu0 %v15331_v59  ;;  %v15412_v52 = vld [vmem:[#allocation9 + $0xd0c] ss:$16 sps:$4 sm:$0xff]   ;;  %v15407_v59 = vld [vmem:[#allocation9 + $0xd00] ss:$16 sps:$4 sm:$0xff]  }
 0x819   :  { %11739 = vmatprep.subr.bf16.mxu1 %v15334_v41  ;;  %v15410_v41 = vld [vmem:[#allocation9 + $0xd08] ss:$16 sps:$4 sm:$0xff]  }
 0x81b   :  { %11412 = vmatpush1.bf16.msra.mxu0 %v15329_v16  ;;  %v15415_v16 = vld [vmem:[#allocation9 + $0xd24] ss:$16 sps:$4 sm:$0xff]  }
 0x81c   :  { %11740 = vmatpush1.bf16.msra.mxu1 %v15332_v35  ;;  %11413 = vmatprep.subr.bf16.mxu0 %v15337_v17  ;;  %v15418_v35 = vld [vmem:[#allocation9 + $0xd2c] ss:$16 sps:$4 sm:$0xff]   ;;  %v15413_v17 = vld [vmem:[#allocation9 + $0xd20] ss:$16 sps:$4 sm:$0xff]  }
 0x81d   :  { %11741 = vmatprep.subr.bf16.mxu1 %v15340_v56  ;;  %v15416_v56 = vld [vmem:[#allocation9 + $0xd28] ss:$16 sps:$4 sm:$0xff]  }
 0x81f   :  { %11414 = vmatpush1.bf16.msra.mxu0 %v15335_v36  ;;  %v15421_v36 = vld [vmem:[#allocation9 + $0xd44] ss:$16 sps:$4 sm:$0xff]  }
 0x820   :  { %11742 = vmatpush1.bf16.msra.mxu1 %v15338_v23  ;;  %11415 = vmatprep.subr.bf16.mxu0 %v15343_v54  ;;  %v15424_v23 = vld [vmem:[#allocation9 + $0xd4c] ss:$16 sps:$4 sm:$0xff]   ;;  %v15419_v54 = vld [vmem:[#allocation9 + $0xd40] ss:$16 sps:$4 sm:$0xff]  }
 0x821   :  { %11743 = vmatprep.subr.bf16.mxu1 %v15346_v58  ;;  %v15422_v58 = vld [vmem:[#allocation9 + $0xd48] ss:$16 sps:$4 sm:$0xff]  }
 0x823   :  { %11416 = vmatpush1.bf16.msra.mxu0 %v15341_v13  ;;  %v15427_v13 = vld [vmem:[#allocation9 + $0xd64] ss:$16 sps:$4 sm:$0xff]  }
 0x824   :  { %11744 = vmatpush1.bf16.msra.mxu1 %v15344_v60  ;;  %11417 = vmatprep.subr.bf16.mxu0 %v15349_v22  ;;  %v15430_v60 = vld [vmem:[#allocation9 + $0xd6c] ss:$16 sps:$4 sm:$0xff]   ;;  %v15425_v22 = vld [vmem:[#allocation9 + $0xd60] ss:$16 sps:$4 sm:$0xff]  }
 0x825   :  { %11745 = vmatprep.subr.bf16.mxu1 %v15352_v63  ;;  %v15428_v63 = vld [vmem:[#allocation9 + $0xd68] ss:$16 sps:$4 sm:$0xff]  }
 0x827   :  { %11418 = vmatpush1.bf16.msra.mxu0 %v15347_v14  ;;  %v15433_v14 = vld [vmem:[#allocation9 + $0xd84] ss:$16 sps:$4 sm:$0xff]  }
 0x828   :  { %11746 = vmatpush1.bf16.msra.mxu1 %v15350_v9  ;;  %11419 = vmatprep.subr.bf16.mxu0 %v15355_v8  ;;  %v15436_v9 = vld [vmem:[#allocation9 + $0xd8c] ss:$16 sps:$4 sm:$0xff]   ;;  %v15431_v8 = vld [vmem:[#allocation9 + $0xd80] ss:$16 sps:$4 sm:$0xff]  }
 0x829   :  { %11747 = vmatprep.subr.bf16.mxu1 %v15358_v39  ;;  %v15434_v39 = vld [vmem:[#allocation9 + $0xd88] ss:$16 sps:$4 sm:$0xff]  }
 0x82b   :  { %11420 = vmatpush1.bf16.msra.mxu0 %v15353_v28  ;;  %v15439_v28 = vld [vmem:[#allocation9 + $0xda4] ss:$16 sps:$4 sm:$0xff]  }
 0x82c   :  { %11748 = vmatpush1.bf16.msra.mxu1 %v15356_v10  ;;  %11430 = vmatprep.subr.bf16.mxu0 %v15361_v34  ;;  %v15442_v10 = vld [vmem:[#allocation9 + $0xdac] ss:$16 sps:$4 sm:$0xff]   ;;  %v15437_v34 = vld [vmem:[#allocation9 + $0xda0] ss:$16 sps:$4 sm:$0xff]  }
 0x82d   :  { %11758 = vmatprep.subr.bf16.mxu1 %v15364_v1  ;;  %v15440_v1 = vld [vmem:[#allocation9 + $0xda8] ss:$16 sps:$4 sm:$0xff]  }
 0x82e   :  { %11422 = vmatmul.mubr.bf16.vlgmr.msra.gmra.mrb[16].mxu0 %v8084_v11 }
 0x82f   :  { %11750 = vmatmul.mubr.bf16.vlgmr.msra.gmra.mrb[16].mxu1 %v8084_v11  ;;  %11431 = vmatpush1.bf16.msra.mxu0 %v15359_v33  ;;  %v15445_v33 = vld [vmem:[#allocation9 + $0xdc4] ss:$16 sps:$4 sm:$0xff]   ;;  %v15448_v11 = vld [vmem:[#allocation9 + $0xdcc] ss:$16 sps:$4 sm:$0xff]  }
 0x830   :  { %11462 = vmatprep.mubr.bf16.mxu0 %v8087_v50  ;;  %11759 = vmatpush1.bf16.msra.mxu1 %v15362_v42  ;;  %v15443_v42 = vld [vmem:[#allocation9 + $0xdc0] ss:$16 sps:$4 sm:$0xff]  }
 0x831   :  { %11790 = vmatprep.mubr.bf16.mxu1 %v8087_v50  ;;  %11432 = vmatprep.subr.bf16.mxu0 %v15367_v45  ;;  %v15446_v45 = vld [vmem:[#allocation9 + $0xdc8] ss:$16 sps:$4 sm:$0xff]   ;;  %v15451_v50 = vld [vmem:[#allocation9 + $0xde4] ss:$16 sps:$4 sm:$0xff]  }
 0x832   :  { %11760 = vmatprep.subr.bf16.mxu1 %v15370_v27  ;;  %v15454_v27 = vld [vmem:[#allocation9 + $0xdec] ss:$16 sps:$4 sm:$0xff]  }
 0x833   :  { %11433 = vmatpush1.bf16.msra.mxu0 %v15365_v26  ;;  %v15449_v26 = vld [vmem:[#allocation9 + $0xde0] ss:$16 sps:$4 sm:$0xff]  }
 0x834   :  { %11761 = vmatpush1.bf16.msra.mxu1 %v15368_v18  ;;  %11434 = vmatprep.subr.bf16.mxu0 %v15373_v25  ;;  %v15452_v18 = vld [vmem:[#allocation9 + $0xde8] ss:$16 sps:$4 sm:$0xff]   ;;  %v15457_v25 = vld [vmem:[#allocation9 + $0xe04] ss:$16 sps:$4 sm:$0xff]  }
 0x835   :  { %11762 = vmatprep.subr.bf16.mxu1 %v15376_v24  ;;  %v15460_v24 = vld [vmem:[#allocation9 + $0xe0c] ss:$16 sps:$4 sm:$0xff]  }
 0x837   :  { %11435 = vmatpush1.bf16.msra.mxu0 %v15371_v20  ;;  %v15455_v20 = vld [vmem:[#allocation9 + $0xe00] ss:$16 sps:$4 sm:$0xff]  }
 0x838   :  { %11763 = vmatpush1.bf16.msra.mxu1 %v15374_v48  ;;  %11436 = vmatprep.subr.bf16.mxu0 %v15379_v57  ;;  %v8086_v48 = vpack.c.bf16 %v16627_v12, %v16627_v12  ;;  %v15458_v57 = vld [vmem:[#allocation9 + $0xe08] ss:$16 sps:$4 sm:$0xff]   ;;  %v15467_v12 = vld [vmem:[#allocation9 + $0xe40] ss:$16 sps:$4 sm:$0xff]  }
 0x839   :  { %11764 = vmatprep.subr.bf16.mxu1 %v15382_v44  ;;  %v15463_v44 = vld [vmem:[#allocation9 + $0xe24] ss:$16 sps:$4 sm:$0xff]  }
 0x83b   :  { %11437 = vmatpush1.bf16.msra.mxu0 %v15377_v32  ;;  %v8089_v32 = vpack.c.bf16 %v16639_v30, %v16639_v30  ;;  %v15478_v30 = vld [vmem:[#allocation9 + $0xe6c] ss:$16 sps:$4 sm:$0xff]  }
 0x83c   :  { %11765 = vmatpush1.bf16.msra.mxu1 %v15380_v47  ;;  %11438 = vmatprep.subr.bf16.mxu0 %v15385_v46  ;;  %v15466_v47 = vld [vmem:[#allocation9 + $0xe2c] ss:$16 sps:$4 sm:$0xff]   ;;  %v15461_v46 = vld [vmem:[#allocation9 + $0xe20] ss:$16 sps:$4 sm:$0xff]  }
 0x83d   :  { %11766 = vmatprep.subr.bf16.mxu1 %v15388_v4  ;;  %v15464_v4 = vld [vmem:[#allocation9 + $0xe28] ss:$16 sps:$4 sm:$0xff]  }
 0x83f   :  { %11439 = vmatpush1.bf16.msra.mxu0 %v15383_v2  ;;  %v15469_v2 = vld [vmem:[#allocation9 + $0xe44] ss:$16 sps:$4 sm:$0xff]  }
 0x840   :  { %11767 = vmatpush1.bf16.msra.mxu1 %v15386_v6  ;;  %11440 = vmatprep.subr.bf16.mxu0 %v15391_v21  ;;  %v15472_v6 = vld [vmem:[#allocation9 + $0xe4c] ss:$16 sps:$4 sm:$0xff]   ;;  %v15470_v21 = vld [vmem:[#allocation9 + $0xe48] ss:$16 sps:$4 sm:$0xff]  }
 0x841   :  { %11768 = vmatprep.subr.bf16.mxu1 %v15394_v51  ;;  %v15475_v51 = vld [vmem:[#allocation9 + $0xe64] ss:$16 sps:$4 sm:$0xff]  }
 0x843   :  { %11441 = vmatpush1.bf16.msra.mxu0 %v15389_v37  ;;  %v15473_v37 = vld [vmem:[#allocation9 + $0xe60] ss:$16 sps:$4 sm:$0xff]  }
 0x844   :  { %11769 = vmatpush1.bf16.msra.mxu1 %v15392_v43  ;;  %11442 = vmatprep.subr.bf16.mxu0 %v15397_v31  ;;  %v15476_v43 = vld [vmem:[#allocation9 + $0xe68] ss:$16 sps:$4 sm:$0xff]   ;;  %v15481_v31 = vld [vmem:[#allocation9 + $0xe84] ss:$16 sps:$4 sm:$0xff]  }
 0x845   :  { %11770 = vmatprep.subr.bf16.mxu1 %v15400_v40  ;;  %v15484_v40 = vld [vmem:[#allocation9 + $0xe8c] ss:$16 sps:$4 sm:$0xff]  }
 0x847   :  { %11443 = vmatpush1.bf16.msra.mxu0 %v15395_v49  ;;  %v15479_v49 = vld [vmem:[#allocation9 + $0xe80] ss:$16 sps:$4 sm:$0xff]  }
 0x848   :  { %11771 = vmatpush1.bf16.msra.mxu1 %v15398_v55  ;;  %11444 = vmatprep.subr.bf16.mxu0 %v15403_v19  ;;  %v15482_v55 = vld [vmem:[#allocation9 + $0xe88] ss:$16 sps:$4 sm:$0xff]   ;;  %v15487_v19 = vld [vmem:[#allocation9 + $0xea4] ss:$16 sps:$4 sm:$0xff]  }
 0x849   :  { %11772 = vmatprep.subr.bf16.mxu1 %v15406_v29  ;;  %v15490_v29 = vld [vmem:[#allocation9 + $0xeac] ss:$16 sps:$4 sm:$0xff]  }
 0x84b   :  { %11445 = vmatpush1.bf16.msra.mxu0 %v15401_v5  ;;  %v15485_v5 = vld [vmem:[#allocation9 + $0xea0] ss:$16 sps:$4 sm:$0xff]  }
 0x84c   :  { %11773 = vmatpush1.bf16.msra.mxu1 %v15404_v15  ;;  %11446 = vmatprep.subr.bf16.mxu0 %v15409_v61  ;;  %v15488_v15 = vld [vmem:[#allocation9 + $0xea8] ss:$16 sps:$4 sm:$0xff]   ;;  %v15493_v61 = vld [vmem:[#allocation9 + $0xec4] ss:$16 sps:$4 sm:$0xff]  }
 0x84d   :  { %11774 = vmatprep.subr.bf16.mxu1 %v15412_v52  ;;  %v15496_v52 = vld [vmem:[#allocation9 + $0xecc] ss:$16 sps:$4 sm:$0xff]  }
 0x84f   :  { %11447 = vmatpush1.bf16.msra.mxu0 %v15407_v59  ;;  %v15491_v59 = vld [vmem:[#allocation9 + $0xec0] ss:$16 sps:$4 sm:$0xff]  }
 0x850   :  { %11775 = vmatpush1.bf16.msra.mxu1 %v15410_v41  ;;  %11448 = vmatprep.subr.bf16.mxu0 %v15415_v16  ;;  %v15494_v41 = vld [vmem:[#allocation9 + $0xec8] ss:$16 sps:$4 sm:$0xff]   ;;  %v15499_v16 = vld [vmem:[#allocation9 + $0xee4] ss:$16 sps:$4 sm:$0xff]  }
 0x851   :  { %11776 = vmatprep.subr.bf16.mxu1 %v15418_v35  ;;  %v15502_v35 = vld [vmem:[#allocation9 + $0xeec] ss:$16 sps:$4 sm:$0xff]  }
 0x853   :  { %11449 = vmatpush1.bf16.msra.mxu0 %v15413_v17  ;;  %v15497_v17 = vld [vmem:[#allocation9 + $0xee0] ss:$16 sps:$4 sm:$0xff]  }
 0x854   :  { %11777 = vmatpush1.bf16.msra.mxu1 %v15416_v56  ;;  %11450 = vmatprep.subr.bf16.mxu0 %v15421_v36  ;;  %v15500_v56 = vld [vmem:[#allocation9 + $0xee8] ss:$16 sps:$4 sm:$0xff]   ;;  %v15505_v36 = vld [vmem:[#allocation9 + $0xf04] ss:$16 sps:$4 sm:$0xff]  }
 0x855   :  { %11778 = vmatprep.subr.bf16.mxu1 %v15424_v23  ;;  %v15508_v23 = vld [vmem:[#allocation9 + $0xf0c] ss:$16 sps:$4 sm:$0xff]  }
 0x857   :  { %11451 = vmatpush1.bf16.msra.mxu0 %v15419_v54  ;;  %v15503_v54 = vld [vmem:[#allocation9 + $0xf00] ss:$16 sps:$4 sm:$0xff]  }
 0x858   :  { %11779 = vmatpush1.bf16.msra.mxu1 %v15422_v58  ;;  %11452 = vmatprep.subr.bf16.mxu0 %v15427_v13  ;;  %v15506_v58 = vld [vmem:[#allocation9 + $0xf08] ss:$16 sps:$4 sm:$0xff]   ;;  %v15511_v13 = vld [vmem:[#allocation9 + $0xf24] ss:$16 sps:$4 sm:$0xff]  }
 0x859   :  { %11780 = vmatprep.subr.bf16.mxu1 %v15430_v60  ;;  %v15514_v60 = vld [vmem:[#allocation9 + $0xf2c] ss:$16 sps:$4 sm:$0xff]  }
 0x85b   :  { %11453 = vmatpush1.bf16.msra.mxu0 %v15425_v22  ;;  %v15509_v22 = vld [vmem:[#allocation9 + $0xf20] ss:$16 sps:$4 sm:$0xff]  }
 0x85c   :  { %11781 = vmatpush1.bf16.msra.mxu1 %v15428_v63  ;;  %11454 = vmatprep.subr.bf16.mxu0 %v15433_v14  ;;  %v15512_v63 = vld [vmem:[#allocation9 + $0xf28] ss:$16 sps:$4 sm:$0xff]   ;;  %v15517_v14 = vld [vmem:[#allocation9 + $0xf44] ss:$16 sps:$4 sm:$0xff]  }
 0x85d   :  { %11782 = vmatprep.subr.bf16.mxu1 %v15436_v9  ;;  %v15520_v9 = vld [vmem:[#allocation9 + $0xf4c] ss:$16 sps:$4 sm:$0xff]  }
 0x85f   :  { %11455 = vmatpush1.bf16.msra.mxu0 %v15431_v8  ;;  %v15515_v8 = vld [vmem:[#allocation9 + $0xf40] ss:$16 sps:$4 sm:$0xff]  }
 0x860   :  { %11783 = vmatpush1.bf16.msra.mxu1 %v15434_v39  ;;  %11456 = vmatprep.subr.bf16.mxu0 %v15439_v28  ;;  %v15518_v39 = vld [vmem:[#allocation9 + $0xf48] ss:$16 sps:$4 sm:$0xff]   ;;  %v15523_v28 = vld [vmem:[#allocation9 + $0xf64] ss:$16 sps:$4 sm:$0xff]  }
 0x861   :  { %11784 = vmatprep.subr.bf16.mxu1 %v15442_v10  ;;  %v15526_v10 = vld [vmem:[#allocation9 + $0xf6c] ss:$16 sps:$4 sm:$0xff]  }
 0x863   :  { %11457 = vmatpush1.bf16.msra.mxu0 %v15437_v34  ;;  %v15521_v34 = vld [vmem:[#allocation9 + $0xf60] ss:$16 sps:$4 sm:$0xff]  }
 0x864   :  { %11785 = vmatpush1.bf16.msra.mxu1 %v15440_v1  ;;  %11458 = vmatprep.subr.bf16.mxu0 %v15445_v33  ;;  %v15524_v1 = vld [vmem:[#allocation9 + $0xf68] ss:$16 sps:$4 sm:$0xff]   ;;  %v15529_v33 = vld [vmem:[#allocation9 + $0xf84] ss:$16 sps:$4 sm:$0xff]  }
 0x865   :  { %11786 = vmatprep.subr.bf16.mxu1 %v15448_v11  ;;  %v15532_v11 = vld [vmem:[#allocation9 + $0xf8c] ss:$16 sps:$4 sm:$0xff]  }
 0x867   :  { %11459 = vmatpush1.bf16.msra.mxu0 %v15443_v42  ;;  %v15527_v42 = vld [vmem:[#allocation9 + $0xf80] ss:$16 sps:$4 sm:$0xff]  }
 0x868   :  { %11787 = vmatpush1.bf16.msra.mxu1 %v15446_v45  ;;  %11460 = vmatprep.subr.bf16.mxu0 %v15451_v50  ;;  %v15530_v45 = vld [vmem:[#allocation9 + $0xf88] ss:$16 sps:$4 sm:$0xff]   ;;  %v15535_v50 = vld [vmem:[#allocation9 + $0xfa4] ss:$16 sps:$4 sm:$0xff]  }
 0x869   :  { %11788 = vmatprep.subr.bf16.mxu1 %v15454_v27  ;;  %v15538_v27 = vld [vmem:[#allocation9 + $0xfac] ss:$16 sps:$4 sm:$0xff]  }
 0x86b   :  { %11461 = vmatpush1.bf16.msra.mxu0 %v15449_v26  ;;  %v15533_v26 = vld [vmem:[#allocation9 + $0xfa0] ss:$16 sps:$4 sm:$0xff]  }
 0x86c   :  { %11789 = vmatpush1.bf16.msra.mxu1 %v15452_v18  ;;  %11471 = vmatprep.subr.bf16.mxu0 %v15457_v25  ;;  %v15536_v18 = vld [vmem:[#allocation9 + $0xfa8] ss:$16 sps:$4 sm:$0xff]   ;;  %v15541_v25 = vld [vmem:[#allocation9 + $0xfc4] ss:$16 sps:$4 sm:$0xff]  }
 0x86d   :  { %11799 = vmatprep.subr.bf16.mxu1 %v15460_v24  ;;  %v15544_v24 = vld [vmem:[#allocation9 + $0xfcc] ss:$16 sps:$4 sm:$0xff]  }
 0x86e   :  { %11463 = vmatmul.mubr.bf16.vlgmr.msra.gmra.mrb[16].mxu0 %v8086_v48 }
 0x86f   :  { %11791 = vmatmul.mubr.bf16.vlgmr.msra.gmra.mrb[16].mxu1 %v8086_v48  ;;  %11472 = vmatpush1.bf16.msra.mxu0 %v15455_v20  ;;  %v15539_v20 = vld [vmem:[#allocation9 + $0xfc0] ss:$16 sps:$4 sm:$0xff]   ;;  %v15542_v48 = vld [vmem:[#allocation9 + $0xfc8] ss:$16 sps:$4 sm:$0xff]  }
 0x870   :  { %11503 = vmatprep.mubr.bf16.mxu0 %v8089_v32  ;;  %11800 = vmatpush1.bf16.msra.mxu1 %v15458_v57  ;;  %v15547_v57 = vld [vmem:[#allocation9 + $0xfe4] ss:$16 sps:$4 sm:$0xff]  }
 0x871   :  { %11831 = vmatprep.mubr.bf16.mxu1 %v8089_v32  ;;  %11473 = vmatprep.subr.bf16.mxu0 %v15463_v44  ;;  %v15550_v44 = vld [vmem:[#allocation9 + $0xfec] ss:$16 sps:$4 sm:$0xff]   ;;  %v15545_v32 = vld [vmem:[#allocation9 + $0xfe0] ss:$16 sps:$4 sm:$0xff]  }
 0x872   :  { %11801 = vmatprep.subr.bf16.mxu1 %v15466_v47  ;;  %v15548_v47 = vld [vmem:[#allocation9 + $0xfe8] ss:$16 sps:$4 sm:$0xff]  }
 0x873   :  { %11474 = vmatpush1.bf16.msra.mxu0 %v15461_v46  ;;  %v8088_v46 = vpack.c.bf16 %v16641_v38, %v16641_v38 }
 0x874   :  { %11802 = vmatpush1.bf16.msra.mxu1 %v15464_v4  ;;  %11475 = vmatprep.subr.bf16.mxu0 %v15469_v2  ;;  %v8602_v4 = vld [vmem:[#allocation10] sm:$0xf] }
 0x875   :  { %11803 = vmatprep.subr.bf16.mxu1 %v15472_v6  ;;  %v8607_v2 = vrot.slane %v8602_v4, %v16336_v62  ;;  %v8615_v6 = vrot.slane %v8602_v4, %v16344_v3 }
 0x877   :  { %11476 = vmatpush1.bf16.msra.mxu0 %v15467_v12  ;;  %v8611_v12 = vrot.slane %v8602_v4, %v16339_v0 }
 0x878   :  { %11804 = vmatpush1.bf16.msra.mxu1 %v15470_v21  ;;  %11477 = vmatprep.subr.bf16.mxu0 %v15475_v51  ;;  %v8619_v51 = vrot.slane %v8602_v4, %v16354_v7  ;;  %v15602_v4 = vld [vmem:[#allocation15 + $0x108] ss:$16 sps:$4 sm:$0xff]  }
 0x879   :  { %11805 = vmatprep.subr.bf16.mxu1 %v15478_v30 }
 0x87b   :  { %11478 = vmatpush1.bf16.msra.mxu0 %v15473_v37 }
 0x87c   :  { %11806 = vmatpush1.bf16.msra.mxu1 %v15476_v43  ;;  %11479 = vmatprep.subr.bf16.mxu0 %v15481_v31 }
 0x87d   :  { %11807 = vmatprep.subr.bf16.mxu1 %v15484_v40 }
 0x87f   :  { %11480 = vmatpush1.bf16.msra.mxu0 %v15479_v49 }
 0x880   :  { %11808 = vmatpush1.bf16.msra.mxu1 %v15482_v55  ;;  %11481 = vmatprep.subr.bf16.mxu0 %v15487_v19 }
 0x881   :  { %11809 = vmatprep.subr.bf16.mxu1 %v15490_v29 }
 0x883   :  { %11482 = vmatpush1.bf16.msra.mxu0 %v15485_v5 }
 0x884   :  { %11810 = vmatpush1.bf16.msra.mxu1 %v15488_v15  ;;  %11483 = vmatprep.subr.bf16.mxu0 %v15493_v61 }
 0x885   :  { %11811 = vmatprep.subr.bf16.mxu1 %v15496_v52 }
 0x887   :  { %11484 = vmatpush1.bf16.msra.mxu0 %v15491_v59 }
 0x888   :  { %11812 = vmatpush1.bf16.msra.mxu1 %v15494_v41  ;;  %11485 = vmatprep.subr.bf16.mxu0 %v15499_v16 }
 0x889   :  { %11813 = vmatprep.subr.bf16.mxu1 %v15502_v35 }
 0x88b   :  { %11486 = vmatpush1.bf16.msra.mxu0 %v15497_v17  ;;  %v15551_v17 = vld [vmem:[#allocation15] ss:$16 sps:$4 sm:$0xff]  }
 0x88c   :  { %11814 = vmatpush1.bf16.msra.mxu1 %v15500_v56  ;;  %11487 = vmatprep.subr.bf16.mxu0 %v15505_v36  ;;  %v15553_v56 = vld [vmem:[#allocation15 + $0x4] ss:$16 sps:$4 sm:$0xff]   ;;  %v15554_v36 = vld [vmem:[#allocation15 + $0x8] ss:$16 sps:$4 sm:$0xff]  }
 0x88d   :  { %11815 = vmatprep.subr.bf16.mxu1 %v15508_v23  ;;  %v15556_v23 = vld [vmem:[#allocation15 + $0xc] ss:$16 sps:$4 sm:$0xff]  }
 0x88f   :  { %11488 = vmatpush1.bf16.msra.mxu0 %v15503_v54  ;;  %v15559_v54 = vld [vmem:[#allocation15 + $0x24] ss:$16 sps:$4 sm:$0xff]  }
 0x890   :  { %11816 = vmatpush1.bf16.msra.mxu1 %v15506_v58  ;;  %11489 = vmatprep.subr.bf16.mxu0 %v15511_v13  ;;  %v15562_v58 = vld [vmem:[#allocation15 + $0x2c] ss:$16 sps:$4 sm:$0xff]   ;;  %v15557_v13 = vld [vmem:[#allocation15 + $0x20] ss:$16 sps:$4 sm:$0xff]  }
 0x891   :  { %11817 = vmatprep.subr.bf16.mxu1 %v15514_v60  ;;  %v15560_v60 = vld [vmem:[#allocation15 + $0x28] ss:$16 sps:$4 sm:$0xff]  }
 0x893   :  { %11490 = vmatpush1.bf16.msra.mxu0 %v15509_v22  ;;  %v15565_v22 = vld [vmem:[#allocation15 + $0x44] ss:$16 sps:$4 sm:$0xff]  }
 0x894   :  { %11818 = vmatpush1.bf16.msra.mxu1 %v15512_v63  ;;  %11491 = vmatprep.subr.bf16.mxu0 %v15517_v14  ;;  %v15568_v63 = vld [vmem:[#allocation15 + $0x4c] ss:$16 sps:$4 sm:$0xff]   ;;  %v15563_v14 = vld [vmem:[#allocation15 + $0x40] ss:$16 sps:$4 sm:$0xff]  }
 0x895   :  { %11819 = vmatprep.subr.bf16.mxu1 %v15520_v9  ;;  %v15566_v9 = vld [vmem:[#allocation15 + $0x48] ss:$16 sps:$4 sm:$0xff]  }
 0x897   :  { %11492 = vmatpush1.bf16.msra.mxu0 %v15515_v8  ;;  %v15571_v8 = vld [vmem:[#allocation15 + $0x64] ss:$16 sps:$4 sm:$0xff]  }
 0x898   :  { %11820 = vmatpush1.bf16.msra.mxu1 %v15518_v39  ;;  %11493 = vmatprep.subr.bf16.mxu0 %v15523_v28  ;;  %v15574_v39 = vld [vmem:[#allocation15 + $0x6c] ss:$16 sps:$4 sm:$0xff]   ;;  %v15569_v28 = vld [vmem:[#allocation15 + $0x60] ss:$16 sps:$4 sm:$0xff]  }
 0x899   :  { %11821 = vmatprep.subr.bf16.mxu1 %v15526_v10  ;;  %v15572_v10 = vld [vmem:[#allocation15 + $0x68] ss:$16 sps:$4 sm:$0xff]  }
 0x89b   :  { %11494 = vmatpush1.bf16.msra.mxu0 %v15521_v34  ;;  %v15577_v34 = vld [vmem:[#allocation15 + $0x84] ss:$16 sps:$4 sm:$0xff]  }
 0x89c   :  { %11822 = vmatpush1.bf16.msra.mxu1 %v15524_v1  ;;  %11495 = vmatprep.subr.bf16.mxu0 %v15529_v33  ;;  %v15580_v1 = vld [vmem:[#allocation15 + $0x8c] ss:$16 sps:$4 sm:$0xff]   ;;  %v15575_v33 = vld [vmem:[#allocation15 + $0x80] ss:$16 sps:$4 sm:$0xff]  }
 0x89d   :  { %11823 = vmatprep.subr.bf16.mxu1 %v15532_v11  ;;  %v15578_v11 = vld [vmem:[#allocation15 + $0x88] ss:$16 sps:$4 sm:$0xff]  }
 0x89f   :  { %11496 = vmatpush1.bf16.msra.mxu0 %v15527_v42  ;;  %v15583_v42 = vld [vmem:[#allocation15 + $0xa4] ss:$16 sps:$4 sm:$0xff]  }
 0x8a0   :  { %11824 = vmatpush1.bf16.msra.mxu1 %v15530_v45  ;;  %11497 = vmatprep.subr.bf16.mxu0 %v15535_v50  ;;  %v15586_v45 = vld [vmem:[#allocation15 + $0xac] ss:$16 sps:$4 sm:$0xff]   ;;  %v15581_v50 = vld [vmem:[#allocation15 + $0xa0] ss:$16 sps:$4 sm:$0xff]  }
 0x8a1   :  { %11825 = vmatprep.subr.bf16.mxu1 %v15538_v27  ;;  %v15584_v27 = vld [vmem:[#allocation15 + $0xa8] ss:$16 sps:$4 sm:$0xff]  }
 0x8a3   :  { %11498 = vmatpush1.bf16.msra.mxu0 %v15533_v26  ;;  %v15589_v26 = vld [vmem:[#allocation15 + $0xc4] ss:$16 sps:$4 sm:$0xff]  }
 0x8a4   :  { %11826 = vmatpush1.bf16.msra.mxu1 %v15536_v18  ;;  %11499 = vmatprep.subr.bf16.mxu0 %v15541_v25  ;;  %v15592_v18 = vld [vmem:[#allocation15 + $0xcc] ss:$16 sps:$4 sm:$0xff]   ;;  %v15587_v25 = vld [vmem:[#allocation15 + $0xc0] ss:$16 sps:$4 sm:$0xff]  }
 0x8a5   :  { %11827 = vmatprep.subr.bf16.mxu1 %v15544_v24  ;;  %v15590_v24 = vld [vmem:[#allocation15 + $0xc8] ss:$16 sps:$4 sm:$0xff]  }
 0x8a7   :  { %11500 = vmatpush1.bf16.msra.mxu0 %v15539_v20  ;;  %v15595_v20 = vld [vmem:[#allocation15 + $0xe4] ss:$16 sps:$4 sm:$0xff]  }
 0x8a8   :  { %11828 = vmatpush1.bf16.msra.mxu1 %v15542_v48  ;;  %11501 = vmatprep.subr.bf16.mxu0 %v15547_v57  ;;  %v15598_v48 = vld [vmem:[#allocation15 + $0xec] ss:$16 sps:$4 sm:$0xff]   ;;  %v15593_v57 = vld [vmem:[#allocation15 + $0xe0] ss:$16 sps:$4 sm:$0xff]  }
 0x8a9   :  { %11829 = vmatprep.subr.bf16.mxu1 %v15550_v44  ;;  %v15596_v44 = vld [vmem:[#allocation15 + $0xe8] ss:$16 sps:$4 sm:$0xff]  }
 0x8ab   :  { %11502 = vmatpush1.bf16.msra.mxu0 %v15545_v32  ;;  %v15601_v32 = vld [vmem:[#allocation15 + $0x104] ss:$16 sps:$4 sm:$0xff]  }
 0x8ac   :  { %11830 = vmatpush1.bf16.msra.mxu1 %v15548_v47  ;;  %12721 = vmatprep.subr.bf16.mxu0 %v15553_v56  ;;  %v15604_v47 = vld [vmem:[#allocation15 + $0x10c] ss:$16 sps:$4 sm:$0xff]  }
 0x8ad   :  { %12803 = vmatprep.subr.bf16.mxu1 %v15556_v23  ;;  %v15619_v23 = vld [vmem:[#allocation15 + $0x164] ss:$16 sps:$4 sm:$0xff]  }
 0x8ae   :  { %11504 = vmatmul.mubr.bf16.vlgmr.msra.gmra.mrb[16].mxu0 %v8088_v46 }
 0x8af   :  { %11832 = vmatmul.mubr.bf16.vlgmr.msra.gmra.mrb[16].mxu1 %v8088_v46  ;;  %12722 = vmatpush1.bf16.msra.mxu0 %v15551_v17  ;;  %v15599_v46 = vld [vmem:[#allocation15 + $0x100] ss:$16 sps:$4 sm:$0xff]  }
 0x8b0   :  { %12804 = vmatpush1.bf16.msra.mxu1 %v15554_v36  ;;  %12723 = vmatprep.subr.bf16.mxu0 %v15559_v54  ;;  %v15617_v36 = vld [vmem:[#allocation15 + $0x160] ss:$16 sps:$4 sm:$0xff]   ;;  %v15620_v54 = vld [vmem:[#allocation15 + $0x168] ss:$16 sps:$4 sm:$0xff]  }
 0x8b1   :  { %12805 = vmatprep.subr.bf16.mxu1 %v15562_v58  ;;  %v15622_v58 = vld [vmem:[#allocation15 + $0x16c] ss:$16 sps:$4 sm:$0xff]  }
 0x8b3   :  { %12724 = vmatpush1.bf16.msra.mxu0 %v15557_v13  ;;  %v15625_v13 = vld [vmem:[#allocation15 + $0x184] ss:$16 sps:$4 sm:$0xff]  }
 0x8b4   :  { %12806 = vmatpush1.bf16.msra.mxu1 %v15560_v60  ;;  %12725 = vmatprep.subr.bf16.mxu0 %v15565_v22  ;;  %v15628_v60 = vld [vmem:[#allocation15 + $0x18c] ss:$16 sps:$4 sm:$0xff]   ;;  %v15623_v22 = vld [vmem:[#allocation15 + $0x180] ss:$16 sps:$4 sm:$0xff]  }
 0x8b5   :  { %12807 = vmatprep.subr.bf16.mxu1 %v15568_v63  ;;  %v15626_v63 = vld [vmem:[#allocation15 + $0x188] ss:$16 sps:$4 sm:$0xff]  }
 0x8b7   :  { %12726 = vmatpush1.bf16.msra.mxu0 %v15563_v14  ;;  %v15631_v14 = vld [vmem:[#allocation15 + $0x1a4] ss:$16 sps:$4 sm:$0xff]  }
 0x8b8   :  { %12808 = vmatpush1.bf16.msra.mxu1 %v15566_v9  ;;  %12727 = vmatprep.subr.bf16.mxu0 %v15571_v8  ;;  %v15634_v9 = vld [vmem:[#allocation15 + $0x1ac] ss:$16 sps:$4 sm:$0xff]   ;;  %v15629_v8 = vld [vmem:[#allocation15 + $0x1a0] ss:$16 sps:$4 sm:$0xff]  }
 0x8b9   :  { %12809 = vmatprep.subr.bf16.mxu1 %v15574_v39  ;;  %v15632_v39 = vld [vmem:[#allocation15 + $0x1a8] ss:$16 sps:$4 sm:$0xff]  }
 0x8bb   :  { %12728 = vmatpush1.bf16.msra.mxu0 %v15569_v28  ;;  %v15637_v28 = vld [vmem:[#allocation15 + $0x1c4] ss:$16 sps:$4 sm:$0xff]  }
 0x8bc   :  { %12810 = vmatpush1.bf16.msra.mxu1 %v15572_v10  ;;  %12729 = vmatprep.subr.bf16.mxu0 %v15577_v34  ;;  %v15640_v10 = vld [vmem:[#allocation15 + $0x1cc] ss:$16 sps:$4 sm:$0xff]   ;;  %v15635_v34 = vld [vmem:[#allocation15 + $0x1c0] ss:$16 sps:$4 sm:$0xff]  }
 0x8bd   :  { %12811 = vmatprep.subr.bf16.mxu1 %v15580_v1  ;;  %v15638_v1 = vld [vmem:[#allocation15 + $0x1c8] ss:$16 sps:$4 sm:$0xff]  }
 0x8bf   :  { %12730 = vmatpush1.bf16.msra.mxu0 %v15575_v33  ;;  %v15643_v33 = vld [vmem:[#allocation15 + $0x1e4] ss:$16 sps:$4 sm:$0xff]  }
 0x8c0   :  { %12812 = vmatpush1.bf16.msra.mxu1 %v15578_v11  ;;  %12731 = vmatprep.subr.bf16.mxu0 %v15583_v42  ;;  %v15646_v11 = vld [vmem:[#allocation15 + $0x1ec] ss:$16 sps:$4 sm:$0xff]   ;;  %v15641_v42 = vld [vmem:[#allocation15 + $0x1e0] ss:$16 sps:$4 sm:$0xff]  }
 0x8c1   :  { %12813 = vmatprep.subr.bf16.mxu1 %v15586_v45  ;;  %v15644_v45 = vld [vmem:[#allocation15 + $0x1e8] ss:$16 sps:$4 sm:$0xff]  }
 0x8c3   :  { %12732 = vmatpush1.bf16.msra.mxu0 %v15581_v50  ;;  %v15649_v50 = vld [vmem:[#allocation15 + $0x204] ss:$16 sps:$4 sm:$0xff]  }
 0x8c4   :  { %12814 = vmatpush1.bf16.msra.mxu1 %v15584_v27  ;;  %12733 = vmatprep.subr.bf16.mxu0 %v15589_v26  ;;  %v15652_v27 = vld [vmem:[#allocation15 + $0x20c] ss:$16 sps:$4 sm:$0xff]  }
 0x8c5   :  { %12815 = vmatprep.subr.bf16.mxu1 %v15592_v18 }
 0x8c7   :  { %12734 = vmatpush1.bf16.msra.mxu0 %v15587_v25 }
 0x8c8   :  { %12816 = vmatpush1.bf16.msra.mxu1 %v15590_v24  ;;  %12735 = vmatprep.subr.bf16.mxu0 %v15595_v20  ;;  %v11840_v24 = vld [vmem:[#allocation12] sm:$0xf]  ;;  %v11841_v20 = vld [vmem:[#allocation13] sm:$0xf] }
 0x8c9   :  { %12817 = vmatprep.subr.bf16.mxu1 %v15598_v48  ;;  %v11885_v48 = vrot.slane %v11840_v24, %v16339_v0 }
 0x8cb   :  { %12736 = vmatpush1.bf16.msra.mxu0 %v15593_v57  ;;  %v11881_v57 = vrot.slane %v11840_v24, %v16336_v62 }
 0x8cc   :  { %12818 = vmatpush1.bf16.msra.mxu1 %v15596_v44  ;;  %12737 = vmatprep.subr.bf16.mxu0 %v15601_v32  ;;  %v11893_v44 = vrot.slane %v11840_v24, %v16354_v7  ;;  %v11889_v32 = vrot.slane %v11840_v24, %v16344_v3  ;;  %v15698_v24 = vld [vmem:[#allocation15 + $0x308] ss:$16 sps:$4 sm:$0xff]  }
 0x8cd   :  { %12819 = vmatprep.subr.bf16.mxu1 %v15604_v47 }
 0x8cf   :  { %12738 = vmatpush1.bf16.msra.mxu0 %v15599_v46  ;;  %v11910_v46 = vrot.slane %v11841_v20, %v16339_v0 }
 0x8d0   :  { %12820 = vmatpush1.bf16.msra.mxu1 %v15602_v4  ;;  %v11906_v4 = vrot.slane %v11841_v20, %v16336_v62 }
 0x981   :  { %v11505_v21 = vpop.f32.mrb[16].mxu0 }
 0x982   :  { %v16679_v30 = vadd.f32 %v11505_v21, %v8607_v2  ;;  %v11833_v37 = vpop.f32.mrb[16].mxu1  ;;  %v11507_v43 = vpop.f32.mrb[17].mxu0  ;;  %v15607_v2 = vld [vmem:[#allocation15 + $0x124] ss:$16 sps:$4 sm:$0xff]   ;;  %v15608_v21 = vld [vmem:[#allocation15 + $0x128] ss:$16 sps:$4 sm:$0xff]  }
 0x983   :  { %v16681_v31 = vadd.f32 %v11833_v37, %v8615_v6  ;;  %v16683_v40 = vadd.f32 %v11507_v43, %v8611_v12  ;;  %v11835_v38 = vpop.f32.mrb[17].mxu1  ;;  %v11509_v49 = vpop.f32.mrb[18].mxu0  ;;  %v15610_v6 = vld [vmem:[#allocation15 + $0x12c] ss:$16 sps:$4 sm:$0xff]   ;;  %v15605_v12 = vld [vmem:[#allocation15 + $0x120] ss:$16 sps:$4 sm:$0xff]   ;;  %12739 = vmatprep.subr.bf16.mxu0 %v15607_v2  ;;  %v11914_v2 = vrot.slane %v11841_v20, %v16344_v3 }
 0x984   :  { %v11842_v55 = vsel %vm7758_vm0, %v16679_v30, 0.0  ;;  %v11837_v19 = vpop.f32.mrb[18].mxu1  ;;  %v11510_v29 = vpop.f32.mrb[19].mxu0  ;;  %v16689_v15 = vadd.f32 %v11835_v38, %v8619_v51  ;;  %v15613_v51 = vld [vmem:[#allocation15 + $0x144] ss:$16 sps:$4 sm:$0xff]   ;;  %12821 = vmatprep.subr.bf16.mxu1 %v15610_v6  ;;  %12740 = vmatpush1.bf16.msra.mxu0 %v15605_v12 }
 0x985   :  { %v11843_v5 = vsel %vm7758_vm0, %v16683_v40, 0.0  ;;  %v11838_v61 = vpop.f32.mrb[19].mxu1  ;;  %v11845_v59 = vsel %vm7758_vm0, %v16681_v31, 0.0  ;;  %v15616_v37 = vld [vmem:[#allocation15 + $0x14c] ss:$16 sps:$4 sm:$0xff]   ;;  %12822 = vmatpush1.bf16.msra.mxu1 %v15608_v21  ;;  %12741 = vmatprep.subr.bf16.mxu0 %v15613_v51 }
 0x986   :  { %v11844_v52 = vadd.f32 %v11843_v5, %v11842_v55  ;;  %v11847_v16 = vsel %vm7758_vm0, %v16689_v15, 0.0  ;;  %v15611_v43 = vld [vmem:[#allocation15 + $0x140] ss:$16 sps:$4 sm:$0xff]   ;;  %v15614_v38 = vld [vmem:[#allocation15 + $0x148] ss:$16 sps:$4 sm:$0xff]   ;;  %12823 = vmatprep.subr.bf16.mxu1 %v15616_v37  ;;  %v11918_v37 = vrot.slane %v11841_v20, %v16354_v7 }
 0x987   :  { %v15703_v20 = vld [vmem:[#allocation15 + $0x324] ss:$16 sps:$4 sm:$0xff]  }
 0x988   :  { %v11846_v41 = vadd.f32 %v11845_v59, %v11844_v52  ;;  %12742 = vmatpush1.bf16.msra.mxu0 %v15611_v43 }
 0x989   :  { %12824 = vmatpush1.bf16.msra.mxu1 %v15614_v38  ;;  %12743 = vmatprep.subr.bf16.mxu0 %v15619_v23  ;;  %v15662_v23 = vld [vmem:[#allocation15 + $0x248] ss:$16 sps:$4 sm:$0xff]  }
 0x98a   :  { %v11848_v35 = vadd.f32 %v11847_v16, %v11846_v41  ;;  %12825 = vmatprep.subr.bf16.mxu1 %v15622_v58  ;;  %v15670_v58 = vld [vmem:[#allocation15 + $0x26c] ss:$16 sps:$4 sm:$0xff]  }
 0x98c   :  { %11849 = vadd.xlane.f32.xlu1 %v11848_v35  ;;  %12744 = vmatpush1.bf16.msra.mxu0 %v15617_v36  ;;  %v15659_v36 = vld [vmem:[#allocation15 + $0x240] ss:$16 sps:$4 sm:$0xff]  }
 0x98d   :  { %12826 = vmatpush1.bf16.msra.mxu1 %v15620_v54  ;;  %12745 = vmatprep.subr.bf16.mxu0 %v15625_v13  ;;  %v15667_v54 = vld [vmem:[#allocation15 + $0x264] ss:$16 sps:$4 sm:$0xff]   ;;  %v15665_v13 = vld [vmem:[#allocation15 + $0x260] ss:$16 sps:$4 sm:$0xff]  }
 0x98e   :  { %12827 = vmatprep.subr.bf16.mxu1 %v15628_v60  ;;  %v15668_v60 = vld [vmem:[#allocation15 + $0x268] ss:$16 sps:$4 sm:$0xff]  }
 0x990   :  { %12746 = vmatpush1.bf16.msra.mxu0 %v15623_v22  ;;  %v15673_v22 = vld [vmem:[#allocation15 + $0x284] ss:$16 sps:$4 sm:$0xff]  }
 0x991   :  { %12828 = vmatpush1.bf16.msra.mxu1 %v15626_v63  ;;  %12747 = vmatprep.subr.bf16.mxu0 %v15631_v14  ;;  %v15676_v63 = vld [vmem:[#allocation15 + $0x28c] ss:$16 sps:$4 sm:$0xff]   ;;  %v15671_v14 = vld [vmem:[#allocation15 + $0x280] ss:$16 sps:$4 sm:$0xff]  }
 0x992   :  { %12829 = vmatprep.subr.bf16.mxu1 %v15634_v9  ;;  %v15674_v9 = vld [vmem:[#allocation15 + $0x288] ss:$16 sps:$4 sm:$0xff]  }
 0x994   :  { %12748 = vmatpush1.bf16.msra.mxu0 %v15629_v8  ;;  %v15679_v8 = vld [vmem:[#allocation15 + $0x2a4] ss:$16 sps:$4 sm:$0xff]  }
 0x995   :  { %12830 = vmatpush1.bf16.msra.mxu1 %v15632_v39  ;;  %12749 = vmatprep.subr.bf16.mxu0 %v15637_v28  ;;  %v15682_v39 = vld [vmem:[#allocation15 + $0x2ac] ss:$16 sps:$4 sm:$0xff]   ;;  %v15677_v28 = vld [vmem:[#allocation15 + $0x2a0] ss:$16 sps:$4 sm:$0xff]  }
 0x996   :  { %12831 = vmatprep.subr.bf16.mxu1 %v15640_v10  ;;  %v15680_v10 = vld [vmem:[#allocation15 + $0x2a8] ss:$16 sps:$4 sm:$0xff]  }
 0x998   :  { %12750 = vmatpush1.bf16.msra.mxu0 %v15635_v34  ;;  %v15685_v34 = vld [vmem:[#allocation15 + $0x2c4] ss:$16 sps:$4 sm:$0xff]  }
 0x999   :  { %12832 = vmatpush1.bf16.msra.mxu1 %v15638_v1  ;;  %12751 = vmatprep.subr.bf16.mxu0 %v15643_v33  ;;  %v15688_v1 = vld [vmem:[#allocation15 + $0x2cc] ss:$16 sps:$4 sm:$0xff]   ;;  %v15683_v33 = vld [vmem:[#allocation15 + $0x2c0] ss:$16 sps:$4 sm:$0xff]  }
 0x99a   :  { %12833 = vmatprep.subr.bf16.mxu1 %v15646_v11  ;;  %v15686_v11 = vld [vmem:[#allocation15 + $0x2c8] ss:$16 sps:$4 sm:$0xff]  }
 0x99c   :  { %12752 = vmatpush1.bf16.msra.mxu0 %v15641_v42  ;;  %v15691_v42 = vld [vmem:[#allocation15 + $0x2e4] ss:$16 sps:$4 sm:$0xff]  }
 0x99d   :  { %12834 = vmatpush1.bf16.msra.mxu1 %v15644_v45  ;;  %12762 = vmatprep.subr.bf16.mxu0 %v15649_v50  ;;  %v15694_v45 = vld [vmem:[#allocation15 + $0x2ec] ss:$16 sps:$4 sm:$0xff]   ;;  %v15689_v50 = vld [vmem:[#allocation15 + $0x2e0] ss:$16 sps:$4 sm:$0xff]  }
 0x99e   :  { %12844 = vmatprep.subr.bf16.mxu1 %v15652_v27  ;;  %v15692_v27 = vld [vmem:[#allocation15 + $0x2e8] ss:$16 sps:$4 sm:$0xff]  }
 0xa19   :  { %v11850_v49 = vpop.xlane.xlu1 %11849 }
 0xa1a   :  { %v11852_v55 = vmul.f32 0.001953125, %v11850_v49 }
 0xa1c   :  { %v16696_v19 = vsub.f32 %v16679_v30, %v11852_v55  ;;  %v16699_v29 = vsub.f32 %v16683_v40, %v11852_v55  ;;  %v16702_v5 = vsub.f32 %v16681_v31, %v11852_v55  ;;  %v16705_v61 = vsub.f32 %v16689_v15, %v11852_v55 }
 0xa1e   :  { %v11857_v52 = vmul.f32 %v16696_v19, %v16696_v19  ;;  %v11858_v59 = vmul.f32 %v16699_v29, %v16699_v29  ;;  %v11859_v41 = vmul.f32 %v16702_v5, %v16702_v5  ;;  %v11860_v30 = vmul.f32 %v16705_v61, %v16705_v61 }
 0xa20   :  { %v11861_v40 = vsel %vm7758_vm0, %v11857_v52, 0.0  ;;  %v11862_v31 = vsel %vm7758_vm0, %v11858_v59, 0.0  ;;  %v11864_v15 = vsel %vm7758_vm0, %v11859_v41, 0.0  ;;  %v11866_v17 = vsel %vm7758_vm0, %v11860_v30, 0.0 }
 0xa21   :  { %v11863_v16 = vadd.f32 %v11862_v31, %v11861_v40  ;;  %v15647_v31 = vld [vmem:[#allocation15 + $0x200] ss:$16 sps:$4 sm:$0xff]  }
 0xa23   :  { %v11865_v35 = vadd.f32 %v11864_v15, %v11863_v16  ;;  %v15653_v15 = vld [vmem:[#allocation15 + $0x220] ss:$16 sps:$4 sm:$0xff]  }
 0xa25   :  { %v11867_v56 = vadd.f32 %v11866_v17, %v11865_v35  ;;  %v15656_v35 = vld [vmem:[#allocation15 + $0x228] ss:$16 sps:$4 sm:$0xff]   ;;  %v15661_v17 = vld [vmem:[#allocation15 + $0x244] ss:$16 sps:$4 sm:$0xff]  }
 0xa27   :  { %11868 = vadd.xlane.f32.xlu1 %v11867_v56  ;;  %v15664_v56 = vld [vmem:[#allocation15 + $0x24c] ss:$16 sps:$4 sm:$0xff]  }
 0xab4   :  { %v11869_v26 = vpop.xlane.xlu1 %11868 }
 0xab5   :  { %v11870_v18 = vmul.f32 0.001953125, %v11869_v26  ;;  %v15697_v26 = vld [vmem:[#allocation15 + $0x304] ss:$16 sps:$4 sm:$0xff]  }
 0xab7   :  { %v11871_v25 = vadd.f32 1e-05, %v11870_v18  ;;  %v15700_v18 = vld [vmem:[#allocation15 + $0x30c] ss:$16 sps:$4 sm:$0xff]  }
 0xab9   :  { %15745 = vrsqrt.f32 %v11871_v25  ;;  %v15695_v25 = vld [vmem:[#allocation15 + $0x300] ss:$16 sps:$4 sm:$0xff]  }
 0xac3   :  { %v15746_v47 = vpop.eup %15745 }
 0xac4   :  { %v11874_v6 = vmul.f32 %v15746_v47, %v16699_v29  ;;  %v11873_v12 = vmul.f32 %v15746_v47, %v16696_v19  ;;  %v11876_v21 = vmul.f32 %v15746_v47, %v16705_v61  ;;  %v11875_v51 = vmul.f32 %v15746_v47, %v16702_v5  ;;  %v15650_v29 = vld [vmem:[#allocation15 + $0x208] ss:$16 sps:$4 sm:$0xff]   ;;  %v15655_v19 = vld [vmem:[#allocation15 + $0x224] ss:$16 sps:$4 sm:$0xff]   ;;  %v15658_v61 = vld [vmem:[#allocation15 + $0x22c] ss:$16 sps:$4 sm:$0xff]  }
 0xac5   :  { %v15712_v47 = vld [vmem:[#allocation15 + $0x34c] ss:$16 sps:$4 sm:$0xff]  }
 0xac6   :  { %v11899_v43 = vmul.f32 %v11885_v48, %v11874_v6  ;;  %v11898_v38 = vmul.f32 %v11881_v57, %v11873_v12  ;;  %v11901_v49 = vmul.f32 %v11893_v44, %v11876_v21  ;;  %v11900_v55 = vmul.f32 %v11889_v32, %v11875_v51  ;;  %v15706_v48 = vld [vmem:[#allocation15 + $0x32c] ss:$16 sps:$4 sm:$0xff]   ;;  %v15701_v57 = vld [vmem:[#allocation15 + $0x320] ss:$16 sps:$4 sm:$0xff]   ;;  %v15704_v44 = vld [vmem:[#allocation15 + $0x328] ss:$16 sps:$4 sm:$0xff]  }
 0xac7   :  { %v15709_v32 = vld [vmem:[#allocation15 + $0x344] ss:$16 sps:$4 sm:$0xff]   ;;  %v15718_v6 = vld [vmem:[#allocation15 + $0x36c] ss:$16 sps:$4 sm:$0xff]   ;;  %v15713_v12 = vld [vmem:[#allocation15 + $0x360] ss:$16 sps:$4 sm:$0xff]  }
 0xac8   :  { %v11924_v52 = vadd.f32 %v11910_v46, %v11899_v43  ;;  %v11923_v59 = vadd.f32 %v11906_v4, %v11898_v38  ;;  %v16731_v41 = vadd.f32 %v11914_v2, %v11900_v55  ;;  %v11926_v30 = vadd.f32 %v11918_v37, %v11901_v49  ;;  %v15707_v46 = vld [vmem:[#allocation15 + $0x340] ss:$16 sps:$4 sm:$0xff]   ;;  %v15710_v4 = vld [vmem:[#allocation15 + $0x348] ss:$16 sps:$4 sm:$0xff]   ;;  %v15715_v2 = vld [vmem:[#allocation15 + $0x364] ss:$16 sps:$4 sm:$0xff]  }
 0xac9   :  { %v15716_v21 = vld [vmem:[#allocation15 + $0x368] ss:$16 sps:$4 sm:$0xff]   ;;  %v15721_v51 = vld [vmem:[#allocation15 + $0x384] ss:$16 sps:$4 sm:$0xff]   ;;  %v15724_v37 = vld [vmem:[#allocation15 + $0x38c] ss:$16 sps:$4 sm:$0xff]  }
 0xaca   :  { %v11928_v40 = vpack.c.bf16 %v11924_v52, %v11924_v52  ;;  %v11927_v16 = vpack.c.bf16 %v11923_v59, %v11923_v59  ;;  %v11930_v5 = vpack.c.bf16 %v11926_v30, %v11926_v30  ;;  %v15719_v43 = vld [vmem:[#allocation15 + $0x380] ss:$16 sps:$4 sm:$0xff]   ;;  %v15722_v38 = vld [vmem:[#allocation15 + $0x388] ss:$16 sps:$4 sm:$0xff]   ;;  %v15727_v49 = vld [vmem:[#allocation15 + $0x3a4] ss:$16 sps:$4 sm:$0xff]  }
 0xacb   :  { %v15730_v55 = vld [vmem:[#allocation15 + $0x3ac] ss:$16 sps:$4 sm:$0xff]   ;;  %v15725_v52 = vld [vmem:[#allocation15 + $0x3a0] ss:$16 sps:$4 sm:$0xff]   ;;  %v15728_v59 = vld [vmem:[#allocation15 + $0x3a8] ss:$16 sps:$4 sm:$0xff]  }
 0xacc   :  { %12753 = vmatprep.mubr.bf16.mxu0 %v11928_v40  ;;  %12835 = vmatprep.mubr.bf16.mxu1 %v11928_v40  ;;  %v15733_v30 = vld [vmem:[#allocation15 + $0x3c4] ss:$16 sps:$4 sm:$0xff]   ;;  %v15736_v40 = vld [vmem:[#allocation15 + $0x3cc] ss:$16 sps:$4 sm:$0xff]  }
 0xacd   :  { %12754 = vmatmul.mubr.bf16.vlgmr.msra.gmra.mrb[20].mxu0 %v11927_v16  ;;  %12836 = vmatmul.mubr.bf16.vlgmr.msra.gmra.mrb[20].mxu1 %v11927_v16  ;;  %v15739_v16 = vld [vmem:[#allocation15 + $0x3e4] ss:$16 sps:$4 sm:$0xff]  }
 0xace   :  { %12763 = vmatpush1.bf16.msra.mxu0 %v15647_v31  ;;  %12845 = vmatpush1.bf16.msra.mxu1 %v15650_v29  ;;  %v15731_v31 = vld [vmem:[#allocation15 + $0x3c0] ss:$16 sps:$4 sm:$0xff]   ;;  %v15734_v29 = vld [vmem:[#allocation15 + $0x3c8] ss:$16 sps:$4 sm:$0xff]  }
 0xacf   :  { %12794 = vmatprep.mubr.bf16.mxu0 %v11930_v5  ;;  %12876 = vmatprep.mubr.bf16.mxu1 %v11930_v5  ;;  %v15740_v5 = vld [vmem:[#allocation15 + $0x3e8] ss:$16 sps:$4 sm:$0xff]  }
 0xad0   :  { %12764 = vmatprep.subr.bf16.mxu0 %v15655_v19  ;;  %12846 = vmatprep.subr.bf16.mxu1 %v15658_v61  ;;  %v15742_v19 = vld [vmem:[#allocation15 + $0x3ec] ss:$16 sps:$4 sm:$0xff]   ;;  %v15737_v61 = vld [vmem:[#allocation15 + $0x3e0] ss:$16 sps:$4 sm:$0xff]  }
 0xad2   :  { %12765 = vmatpush1.bf16.msra.mxu0 %v15653_v15  ;;  %12847 = vmatpush1.bf16.msra.mxu1 %v15656_v35  ;;  %v11929_v15 = vpack.c.bf16 %v16731_v41, %v16731_v41  ;;  %v12059_v35 = vld [vmem:[#allocation16] sm:$0xf] }
 0xad3   :  { %12766 = vmatprep.subr.bf16.mxu0 %v15661_v17  ;;  %12848 = vmatprep.subr.bf16.mxu1 %v15664_v56  ;;  %v12064_v17 = vrot.slane %v12059_v35, %v16336_v62  ;;  %v12072_v56 = vrot.slane %v12059_v35, %v16344_v3 }
 0xad6   :  { %12767 = vmatpush1.bf16.msra.mxu0 %v15659_v36  ;;  %12849 = vmatpush1.bf16.msra.mxu1 %v15662_v23  ;;  %v12068_v36 = vrot.slane %v12059_v35, %v16339_v0  ;;  %v12076_v23 = vrot.slane %v12059_v35, %v16354_v7 }
 0xad7   :  { %12768 = vmatprep.subr.bf16.mxu0 %v15667_v54  ;;  %12850 = vmatprep.subr.bf16.mxu1 %v15670_v58 }
 0xada   :  { %12769 = vmatpush1.bf16.msra.mxu0 %v15665_v13  ;;  %12851 = vmatpush1.bf16.msra.mxu1 %v15668_v60 }
 0xadb   :  { %12770 = vmatprep.subr.bf16.mxu0 %v15673_v22  ;;  %12852 = vmatprep.subr.bf16.mxu1 %v15676_v63 }
 0xade   :  { %12771 = vmatpush1.bf16.msra.mxu0 %v15671_v14  ;;  %12853 = vmatpush1.bf16.msra.mxu1 %v15674_v9 }
 0xadf   :  { %12772 = vmatprep.subr.bf16.mxu0 %v15679_v8  ;;  %12854 = vmatprep.subr.bf16.mxu1 %v15682_v39 }
 0xae2   :  { %12773 = vmatpush1.bf16.msra.mxu0 %v15677_v28  ;;  %12855 = vmatpush1.bf16.msra.mxu1 %v15680_v10 }
 0xae3   :  { %12774 = vmatprep.subr.bf16.mxu0 %v15685_v34  ;;  %12856 = vmatprep.subr.bf16.mxu1 %v15688_v1 }
 0xae6   :  { %12775 = vmatpush1.bf16.msra.mxu0 %v15683_v33  ;;  %12857 = vmatpush1.bf16.msra.mxu1 %v15686_v11 }
 0xae7   :  { %12776 = vmatprep.subr.bf16.mxu0 %v15691_v42  ;;  %12858 = vmatprep.subr.bf16.mxu1 %v15694_v45 }
 0xaea   :  { %12777 = vmatpush1.bf16.msra.mxu0 %v15689_v50  ;;  %12859 = vmatpush1.bf16.msra.mxu1 %v15692_v27 }
 0xaeb   :  { %12778 = vmatprep.subr.bf16.mxu0 %v15697_v26  ;;  %12860 = vmatprep.subr.bf16.mxu1 %v15700_v18 }
 0xaee   :  { %12779 = vmatpush1.bf16.msra.mxu0 %v15695_v25  ;;  %12861 = vmatpush1.bf16.msra.mxu1 %v15698_v24 }
 0xaef   :  { %12780 = vmatprep.subr.bf16.mxu0 %v15703_v20  ;;  %12862 = vmatprep.subr.bf16.mxu1 %v15706_v48 }
 0xaf2   :  { %12781 = vmatpush1.bf16.msra.mxu0 %v15701_v57  ;;  %12863 = vmatpush1.bf16.msra.mxu1 %v15704_v44 }
 0xaf3   :  { %12782 = vmatprep.subr.bf16.mxu0 %v15709_v32  ;;  %12864 = vmatprep.subr.bf16.mxu1 %v15712_v47 }
 0xaf6   :  { %12783 = vmatpush1.bf16.msra.mxu0 %v15707_v46  ;;  %12865 = vmatpush1.bf16.msra.mxu1 %v15710_v4 }
 0xaf7   :  { %12784 = vmatprep.subr.bf16.mxu0 %v15715_v2  ;;  %12866 = vmatprep.subr.bf16.mxu1 %v15718_v6 }
 0xafa   :  { %12785 = vmatpush1.bf16.msra.mxu0 %v15713_v12  ;;  %12867 = vmatpush1.bf16.msra.mxu1 %v15716_v21 }
 0xafb   :  { %12786 = vmatprep.subr.bf16.mxu0 %v15721_v51  ;;  %12868 = vmatprep.subr.bf16.mxu1 %v15724_v37 }
 0xafe   :  { %12787 = vmatpush1.bf16.msra.mxu0 %v15719_v43  ;;  %12869 = vmatpush1.bf16.msra.mxu1 %v15722_v38 }
 0xaff   :  { %12788 = vmatprep.subr.bf16.mxu0 %v15727_v49  ;;  %12870 = vmatprep.subr.bf16.mxu1 %v15730_v55 }
 0xb02   :  { %12789 = vmatpush1.bf16.msra.mxu0 %v15725_v52  ;;  %12871 = vmatpush1.bf16.msra.mxu1 %v15728_v59 }
 0xb03   :  { %12790 = vmatprep.subr.bf16.mxu0 %v15733_v30  ;;  %12872 = vmatprep.subr.bf16.mxu1 %v15736_v40 }
 0xb06   :  { %12791 = vmatpush1.bf16.msra.mxu0 %v15731_v31  ;;  %12873 = vmatpush1.bf16.msra.mxu1 %v15734_v29 }
 0xb07   :  { %12792 = vmatprep.subr.bf16.mxu0 %v15739_v16  ;;  %12874 = vmatprep.subr.bf16.mxu1 %v15742_v19 }
 0xb0a   :  { %12793 = vmatpush1.bf16.msra.mxu0 %v15737_v61  ;;  %12875 = vmatpush1.bf16.msra.mxu1 %v15740_v5 }
 0xb0d   :  { %12795 = vmatmul.mubr.bf16.vlgmr.msra.gmra.mrb[20].mxu0 %v11929_v15  ;;  %12877 = vmatmul.mubr.bf16.vlgmr.msra.gmra.mrb[20].mxu1 %v11929_v15 }
 0xbe0   :  { %v12796_v54 = vpop.f32.mrb[20].mxu0  ;;  %v12878_v58 = vpop.f32.mrb[20].mxu1 }
 0xbe1   :  { %v14602_v13 = vadd.f32 %v12796_v54, %v12064_v17  ;;  %v14604_v60 = vadd.f32 %v12878_v58, %v12072_v56  ;;  %v12798_v22 = vpop.f32.mrb[21].mxu0  ;;  %v12880_v63 = vpop.f32.mrb[21].mxu1 }
 0xbe2   :  { %v14603_v14 = vadd.f32 %v12798_v22, %v12068_v36  ;;  %v14605_v9 = vadd.f32 %v12880_v63, %v12076_v23  ;;  %v12800_v41 = vpop.f32.mrb[22].mxu0  ;;  %v12882_v8 = vpop.f32.mrb[22].mxu1 }
 0xbe3   :  { %v12801_v39 = vpop.f32.mrb[23].mxu0  ;;  %v12883_v28 = vpop.f32.mrb[23].mxu1 }
 0xbe4   :  { %v12889_v10 = vcombine.low %v14602_v13, %v14603_v14  ;;  %v12890_v62 = vcombine.low %v14604_v60, %v14605_v9 }
 0xbe6   :  { %v12897_v3 = vrot.slane %v12889_v10, %v16185_v53  ;;  %v12904_v0 = vrot.slane %v12890_v62, %v16185_v53 }
 0xbe8   :  { %v12905_v34 = vcombine.low %v12897_v3, %v12904_v0 }
 0xbea   :  { %12907 = vst [vmem:[%s16755_s11] sm:$0xff] %v12905_v34 }
 0xbeb   :  { %12912 = vsyncpa [#allocation3], 1 }
 0xbec   :  { %12913 = vsyncpa [#allocation5], 1 }
 0xbed   :  { %12914 = vsyncpa [#allocation8], 1 }
 0xbee   :  { %12915 = vsyncpa [#allocation11], 1 }
 0xbef   :  { %12916 = vsyncpa [#allocation14], 1 }
 0xbf0   :  { %12917 = vsyncpa [#allocation17], 1 }

</bundles_post_ra>
